<compile_context>
chip_gen: v6e
topology: v6e:2x2x1
jax: 0.10.0
libtpu: 0.0.40
codegen_flags: <defaults>
</compile_context>

<pallas_src>
import jax
import jax.numpy as jnp
from jax import lax
from jax.experimental import pallas as pl
from jax.experimental.pallas import tpu as pltpu

H_IN = 21
W_IN = 170
# (kernel_w, stride_w, out_w) for cov1 / cov2 / cov3
TIME_CONVS = ((10, 5, 33), (20, 10, 16), (40, 20, 7))
W_CAT = 33 + 16 + 7        # 56  width after torch.cat on dim=3
DW_K = 20                  # cov4_1 kernel width
W_FULL = W_CAT - DW_K + 1  # 37  stride-1 depthwise output positions
W_DW = 19                  # (56-20)//2 + 1  (stride-2 depthwise width)
W_POOL = 4                 # width after AvgPool2d((1, 4))
C1 = 8                     # time-conv channels
C2 = 16                    # ch_conv1 / cov4_* channels
N_CLS = 5
BN_EPS = 1e-5


def _elu(v):
    # exp only ever sees v <= 0 (avoids burning EUP range on the unselected
    # positive branch of the where).
    return jnp.where(v > 0, v, jnp.exp(jnp.minimum(v, 0.0)) - 1.0)


def _build_kernel(tb):
    """Kernel processing `tb` batch elements per grid step."""

    def kernel(p1_ref, p2_ref, p3_ref,
               w1_ref, w2_ref, w3_ref,
               wd_ref, wp_ref, wl_ref, bias_ref,
               out_ref, zbuf):
        bz = bias_ref[0:1, :]                       # (1, 16) ch_conv1+bn2 bias
        b3 = bias_ref[1:2, :]                       # (1, 16) cov4_2+bn3 bias
        bl = bias_ref[2:3, 0:N_CLS]                 # (1, 5)  linear bias

        # ---- cov{1,2,3} + bn1 + ch_conv1 + bn2 + ELU: one matmul per scale --
        off = 0
        for p_ref, w_ref, (_, _, w_out) in zip(
                (p1_ref, p2_ref, p3_ref), (w1_ref, w2_ref, w3_ref), TIME_CONVS):
            y = jnp.dot(p_ref[...], w_ref[...],
                        preferred_element_type=jnp.float32)    # (tb*W_i, 16)
            y = _elu(y + bz)
            zbuf[:, off:off + w_out, :] = y.reshape(tb, w_out, C2)
            off += w_out

        # ---- cov4_1 depthwise (1,20): stride-1 conv via 20 shifted FMAs -----
        wd = wd_ref[...]                                        # (20, 16)
        full = jnp.zeros((tb, W_FULL, C2), jnp.float32)
        for k in range(DW_K):
            wk = wd[k:k + 1, :].reshape(1, 1, C2)
            full = full + zbuf[:, k:k + W_FULL, :] * wk         # (tb, 37, 16)

        # ---- cov4_2 (1x1 conv) + bn3 + ELU ----------------------------------
        e = jnp.dot(full.reshape(tb * W_FULL, C2), wp_ref[...],
                    preferred_element_type=jnp.float32)
        e = _elu(e + b3).reshape(tb, W_FULL, C2)                # (tb, 37, 16)

        # ---- stride-2 selection + AvgPool2d((1,4)) + Flatten + Linear -------
        # d[w'] = e[2w'] ;  pool_j = mean_m d[4j+m] = 0.25 * sum_m e[8j+2m]
        a = (e[:, 0:W_FULL - 6, :] + e[:, 2:W_FULL - 4, :]
             + e[:, 4:W_FULL - 2, :] + e[:, 6:W_FULL, :])       # (tb, 31, 16)
        flat = 0.25 * jnp.concatenate(
            [a[:, 0, :], a[:, 8, :], a[:, 16, :], a[:, 24, :]], axis=-1)
        out_ref[...] = jnp.dot(flat, wl_ref[...],
                               preferred_element_type=jnp.float32) + bl

    return kernel


# ----------------------------------------------------------------------------
# Parameters
# ----------------------------------------------------------------------------
def make_raw_params(key):
    ks = jax.random.split(key, 11)
    w_cov1 = jax.random.normal(ks[0], (8, 1, 1, 10), jnp.float32) * 0.30
    w_cov2 = jax.random.normal(ks[1], (8, 1, 1, 20), jnp.float32) * 0.20
    w_cov3 = jax.random.normal(ks[2], (8, 1, 1, 40), jnp.float32) * 0.15
    w_ch = jax.random.normal(ks[3], (16, 8, 21, 1), jnp.float32) * 0.08
    w_dw = jax.random.normal(ks[4], (16, 1, 1, 20), jnp.float32) * 0.20
    w_pw = jax.random.normal(ks[5], (16, 16, 1, 1), jnp.float32) * 0.25
    w_lin = jax.random.normal(ks[6], (5, 64), jnp.float32) * 0.10
    b_lin = jax.random.normal(ks[7], (5,), jnp.float32) * 0.10

    def bn_params(k, c):
        kk = jax.random.split(k, 4)
        gamma = 1.0 + 0.1 * jax.random.normal(kk[0], (c,), jnp.float32)
        beta = 0.1 * jax.random.normal(kk[1], (c,), jnp.float32)
        mean = 0.1 * jax.random.normal(kk[2], (c,), jnp.float32)
        var = 0.8 + 0.4 * jax.random.uniform(kk[3], (c,), jnp.float32)
        return (gamma, beta, mean, var)

    bn1 = bn_params(ks[8], 8)
    bn2 = bn_params(ks[9], 16)
    bn3 = bn_params(ks[10], 16)
    return (w_cov1, w_cov2, w_cov3, w_ch, w_dw, w_pw, w_lin, b_lin,
            bn1, bn2, bn3)


def _bn_fold(gamma, beta, mean, var):
    scale = gamma / jnp.sqrt(var + BN_EPS)
    shift = beta - mean * scale
    return scale, shift


def pack_kernel_params(raw):
    (w_cov1, w_cov2, w_cov3, w_ch, w_dw, w_pw, w_lin, b_lin,
     bn1, bn2, bn3) = raw
    s1, h1 = _bn_fold(*bn1)                         # (8,)
    s2, h2 = _bn_fold(*bn2)                         # (16,)
    s3, h3 = _bn_fold(*bn3)                         # (16,)

    wch = w_ch[:, :, :, 0]                          # (16, 8, 21)  [c2, c1, h]

    def comb(w_cov):
        wt = w_cov[:, 0, 0, :]                      # (8, K)
        # W[h*K+k, c2] = s2[c2] * sum_c1 wch[c2,c1,h] * s1[c1] * wt[c1,k]
        w = jnp.einsum('och,c,ck,o->hko', wch, s1, wt, s2)
        return w.reshape(H_IN * wt.shape[1], C2).astype(jnp.bfloat16)

    w1 = comb(w_cov1)                               # (210, 16) bf16
    w2 = comb(w_cov2)                               # (420, 16) bf16
    w3 = comb(w_cov3)                               # (840, 16) bf16

    bz = s2 * jnp.einsum('och,c->o', wch, h1) + h2  # (16,)  shared region bias
    wd = jnp.transpose(w_dw[:, 0, 0, :])            # (20, 16): wd[k, c]
    wp = jnp.transpose(w_pw[:, :, 0, 0]) * s3[None, :]   # (16,16): folds bn3 scale
    wl = jnp.transpose(w_lin.reshape(N_CLS, C2, W_POOL),
                       (2, 1, 0)).reshape(W_POOL * C2, N_CLS)   # (64, 5)
    bl_pad = jnp.zeros((C2,), jnp.float32).at[:N_CLS].set(b_lin)
    bias_pack = jnp.stack([bz, h3, bl_pad], axis=0).astype(jnp.float32)  # (3,16)

    return (w1, w2, w3,
            wd.astype(jnp.float32), wp.astype(jnp.float32),
            wl.astype(jnp.float32), bias_pack)


# ----------------------------------------------------------------------------
# Pallas wrapper
# ----------------------------------------------------------------------------
def vmf_forward_pallas(x, kernel_params, tb=32):
    """x: (B, 21, 170) (or anything reshapeable to it, as in the module)."""
    assert tb % 8 == 0
    B = x.shape[0]
    x = x.reshape(B, H_IN, W_IN).astype(jnp.float32)
    grid_b = -(-B // tb)
    Bp = grid_b * tb
    if Bp != B:
        x = jnp.pad(x, ((0, Bp - B), (0, 0), (0, 0)))

    # im2col glue for the strided (1,K) time convs, emitted pre-fused as
    # (Bp*W_i, 21*K_i) so the kernel LHS is a lane-dense 2-D matmul operand.
    patches = []
    for (ksz, stride, w_out) in TIME_CONVS:
        idx = jnp.arange(w_out)[:, None] * stride + jnp.arange(ksz)[None, :]
        p = x[:, :, idx]                                   # (Bp, 21, W_i, K)
        p = jnp.transpose(p, (0, 2, 1, 3))                 # (Bp, W_i, 21, K)
        patches.append(p.reshape(Bp * w_out, H_IN * ksz).astype(jnp.bfloat16))

    in_specs = [pl.BlockSpec((tb * w_out, H_IN * ksz), lambda b: (b, 0))
                for (ksz, _, w_out) in TIME_CONVS]

    def full_spec(a):
        nd = a.ndim
        return pl.BlockSpec(a.shape, lambda b, nd=nd: (0,) * nd)

    in_specs += [full_spec(a) for a in kernel_params]

    # VMEM per step (tb=32): ~2.5 MB double-buffered bf16 patches + ~0.1 MB
    # scratch -> comfortably inside the 32 MiB scoped default on v5e/v6e/v7x.
    out = pl.pallas_call(
        _build_kernel(tb),
        out_shape=jax.ShapeDtypeStruct((Bp, N_CLS), jnp.float32),
        grid=(grid_b,),
        in_specs=in_specs,
        out_specs=pl.BlockSpec((tb, N_CLS), lambda b: (b, 0)),
        scratch_shapes=[pltpu.VMEM((tb, W_CAT, C2), jnp.float32)],
        compiler_params=pltpu.CompilerParams(
            dimension_semantics=("parallel",)),
    )(*patches, *kernel_params)
    return out[:B]


# ----------------------------------------------------------------------------
# Pure-JAX reference (lax.conv), matching PyTorch eval-mode semantics
# ----------------------------------------------------------------------------
def vmf_forward_ref(x, raw):
    (w_cov1, w_cov2, w_cov3, w_ch, w_dw, w_pw, w_lin, b_lin,
     bn1, bn2, bn3) = raw
    B = x.shape[0]
    x4 = x.reshape(B, 1, H_IN, W_IN).astype(jnp.float32)
    dn = ('NCHW', 'OIHW', 'NCHW')

    def bn(t, params):
        gamma, beta, mean, var = params
        sc = gamma / jnp.sqrt(var + BN_EPS)
        return ((t - mean[None, :, None, None]) * sc[None, :, None, None]
                + beta[None, :, None, None])

    t1 = lax.conv_general_dilated(x4, w_cov1, (1, 5), 'VALID', dimension_numbers=dn)
    t2 = lax.conv_general_dilated(x4, w_cov2, (1, 10), 'VALID', dimension_numbers=dn)
    t3 = lax.conv_general_dilated(x4, w_cov3, (1, 20), 'VALID', dimension_numbers=dn)
    t = jnp.concatenate([t1, t2, t3], axis=3)               # (B, 8, 21, 56)
    t = bn(t, bn1)
    z = lax.conv_general_dilated(t, w_ch, (1, 1), 'VALID', dimension_numbers=dn)
    z = _elu(bn(z, bn2))                                     # (B, 16, 1, 56)
    d = lax.conv_general_dilated(z, w_dw, (2, 2), 'VALID',
                                 dimension_numbers=dn, feature_group_count=16)
    d = lax.conv_general_dilated(d, w_pw, (1, 1), 'VALID', dimension_numbers=dn)
    d = _elu(bn(d, bn3))                                     # (B, 16, 1, 19)
    p = d[..., :16].reshape(B, 16, 1, 4, 4).mean(axis=-1)    # AvgPool2d((1,4))
    flat = p.reshape(B, 16 * 1 * 4)                          # torch Flatten order
    return flat @ w_lin.T + b_lin


if __name__ == "__main__":
    key = jax.random.PRNGKey(0)
    k_in, k_par = jax.random.split(key)
    B = 16
    x = jax.random.normal(k_in, (B, H_IN, W_IN), jnp.float32)

    raw = make_raw_params(k_par)
    kparams = pack_kernel_params(raw)

    out = jax.block_until_ready(vmf_forward_pallas(x, kparams, tb=8))
    ref = jax.block_until_ready(vmf_forward_ref(x, raw))

    assert out.shape == (B, N_CLS), out.shape
    assert bool(jnp.all(jnp.isfinite(out)))
    # bf16 patches / combined weights (f32 accumulation) -> slightly looser
    # tolerance than a pure-f32 pipeline.
    assert jnp.allclose(out, ref, atol=3e-2, rtol=3e-2), (out, ref)
    print("KERNEL_OK")
</pallas_src>

<mosaic_0001>
module attributes {stable_mosaic.version = 11 : i64} {
  func.func @kernel(%arg0: i32, %arg1: memref<264x210xbf16, #tpu.memory_space<vmem>>, %arg2: memref<128x420xbf16, #tpu.memory_space<vmem>>, %arg3: memref<56x840xbf16, #tpu.memory_space<vmem>>, %arg4: memref<210x16xbf16, #tpu.memory_space<vmem>>, %arg5: memref<420x16xbf16, #tpu.memory_space<vmem>>, %arg6: memref<840x16xbf16, #tpu.memory_space<vmem>>, %arg7: memref<20x16xf32, #tpu.memory_space<vmem>>, %arg8: memref<16x16xf32, #tpu.memory_space<vmem>>, %arg9: memref<64x5xf32, #tpu.memory_space<vmem>>, %arg10: memref<3x16xf32, #tpu.memory_space<vmem>>, %arg11: memref<8x5xf32, #tpu.memory_space<vmem>>, %arg12: memref<8x56x16xf32, #tpu.memory_space<vmem>>) attributes {dimension_semantics = [#tpu.dimension_semantics<parallel>], iteration_bounds = array<i64: 2>, scalar_prefetch = 0 : i64, scratch_operands = 1 : i64, tpu.core_type = #tpu.core_type<tc>, window_params = [{transform_indices = @transform_0, window_bounds = array<i64: 264, 210>}, {transform_indices = @transform_1, window_bounds = array<i64: 128, 420>}, {transform_indices = @transform_2, window_bounds = array<i64: 56, 840>}, {pipeline_mode = #tpu.pipeline_mode<synchronous>, transform_indices = @transform_3, window_bounds = array<i64: 210, 16>}, {pipeline_mode = #tpu.pipeline_mode<synchronous>, transform_indices = @transform_4, window_bounds = array<i64: 420, 16>}, {pipeline_mode = #tpu.pipeline_mode<synchronous>, transform_indices = @transform_5, window_bounds = array<i64: 840, 16>}, {pipeline_mode = #tpu.pipeline_mode<synchronous>, transform_indices = @transform_6, window_bounds = array<i64: 20, 16>}, {pipeline_mode = #tpu.pipeline_mode<synchronous>, transform_indices = @transform_7, window_bounds = array<i64: 16, 16>}, {pipeline_mode = #tpu.pipeline_mode<synchronous>, transform_indices = @transform_8, window_bounds = array<i64: 64, 5>}, {pipeline_mode = #tpu.pipeline_mode<synchronous>, transform_indices = @transform_9, window_bounds = array<i64: 3, 16>}, {transform_indices = @transform_10, window_bounds = array<i64: 8, 5>}]} {
    %c0 = arith.constant 0 : index
    %c0_0 = arith.constant 0 : index
    %0 = vector.load %arg10[%c0, %c0_0] : memref<3x16xf32, #tpu.memory_space<vmem>>, vector<1x16xf32>
    %c1 = arith.constant 1 : index
    %c0_1 = arith.constant 0 : index
    %1 = vector.load %arg10[%c1, %c0_1] : memref<3x16xf32, #tpu.memory_space<vmem>>, vector<1x16xf32>
    %c2 = arith.constant 2 : index
    %c0_2 = arith.constant 0 : index
    %2 = vector.load %arg10[%c2, %c0_2] : memref<3x16xf32, #tpu.memory_space<vmem>>, vector<1x5xf32>
    %c0_3 = arith.constant 0 : index
    %c0_4 = arith.constant 0 : index
    %3 = vector.load %arg1[%c0_3, %c0_4] : memref<264x210xbf16, #tpu.memory_space<vmem>>, vector<264x210xbf16>
    %c0_5 = arith.constant 0 : index
    %c0_6 = arith.constant 0 : index
    %4 = vector.load %arg4[%c0_5, %c0_6] : memref<210x16xbf16, #tpu.memory_space<vmem>>, vector<210x16xbf16>
    %cst = arith.constant dense<0.000000e+00> : vector<264x16xf32>
    %5 = tpu.matmul %3, %4, %cst {dimension_numbers = #tpu.dot_dimension_numbers<[1], [0], [0], [1], [0, 0, 1, 1], [], []>} : vector<264x210xbf16>, vector<210x16xbf16>, vector<264x16xf32> -> vector<264x16xf32>
    %6 = vector.broadcast %0 : vector<1x16xf32> to vector<264x16xf32>
    %7 = arith.addf %5, %6 : vector<264x16xf32>
    %cst_7 = arith.constant 0.000000e+00 : f32
    %8 = vector.broadcast %cst_7 : f32 to vector<264x16xf32>
    %9 = arith.cmpf ogt, %7, %8 : vector<264x16xf32>
    %cst_8 = arith.constant 0.000000e+00 : f32
    %10 = vector.broadcast %cst_8 : f32 to vector<264x16xf32>
    %11 = arith.minimumf %7, %10 : vector<264x16xf32>
    %12 = math.exp %11 : vector<264x16xf32>
    %cst_9 = arith.constant 1.000000e+00 : f32
    %13 = vector.broadcast %cst_9 : f32 to vector<264x16xf32>
    %14 = arith.subf %12, %13 : vector<264x16xf32>
    %15 = arith.select %9, %7, %14 : vector<264x16xi1>, vector<264x16xf32>
    %16 = vector.shape_cast %15 : vector<264x16xf32> to vector<8x33x16xf32>
    %c0_10 = arith.constant 0 : index
    %c0_11 = arith.constant 0 : index
    %c0_12 = arith.constant 0 : index
    %17 = vector.load %arg12[%c0_10, %c0_11, %c0_12] : memref<8x56x16xf32, #tpu.memory_space<vmem>>, vector<8x33x16xf32>
    tpu.vector_store %arg12[%c0_10, %c0_11, %c0_12], %16 {strides = array<i32>} : memref<8x56x16xf32, #tpu.memory_space<vmem>>, vector<8x33x16xf32>,
    %c0_13 = arith.constant 0 : index
    %c0_14 = arith.constant 0 : index
    %18 = vector.load %arg2[%c0_13, %c0_14] : memref<128x420xbf16, #tpu.memory_space<vmem>>, vector<128x420xbf16>
    %c0_15 = arith.constant 0 : index
    %c0_16 = arith.constant 0 : index
    %19 = vector.load %arg5[%c0_15, %c0_16] : memref<420x16xbf16, #tpu.memory_space<vmem>>, vector<420x16xbf16>
    %cst_17 = arith.constant dense<0.000000e+00> : vector<128x16xf32>
    %20 = tpu.matmul %18, %19, %cst_17 {dimension_numbers = #tpu.dot_dimension_numbers<[1], [0], [0], [1], [0, 0, 1, 1], [], []>} : vector<128x420xbf16>, vector<420x16xbf16>, vector<128x16xf32> -> vector<128x16xf32>
    %21 = vector.broadcast %0 : vector<1x16xf32> to vector<128x16xf32>
    %22 = arith.addf %20, %21 : vector<128x16xf32>
    %cst_18 = arith.constant 0.000000e+00 : f32
    %23 = vector.broadcast %cst_18 : f32 to vector<128x16xf32>
    %24 = arith.cmpf ogt, %22, %23 : vector<128x16xf32>
    %cst_19 = arith.constant 0.000000e+00 : f32
    %25 = vector.broadcast %cst_19 : f32 to vector<128x16xf32>
    %26 = arith.minimumf %22, %25 : vector<128x16xf32>
    %27 = math.exp %26 : vector<128x16xf32>
    %cst_20 = arith.constant 1.000000e+00 : f32
    %28 = vector.broadcast %cst_20 : f32 to vector<128x16xf32>
    %29 = arith.subf %27, %28 : vector<128x16xf32>
    %30 = arith.select %24, %22, %29 : vector<128x16xi1>, vector<128x16xf32>
    %31 = vector.shape_cast %30 : vector<128x16xf32> to vector<8x16x16xf32>
    %c0_21 = arith.constant 0 : index
    %c33 = arith.constant 33 : index
    %c0_22 = arith.constant 0 : index
    %32 = vector.load %arg12[%c0_21, %c33, %c0_22] : memref<8x56x16xf32, #tpu.memory_space<vmem>>, vector<8x16x16xf32>
    tpu.vector_store %arg12[%c0_21, %c33, %c0_22], %31 {strides = array<i32>} : memref<8x56x16xf32, #tpu.memory_space<vmem>>, vector<8x16x16xf32>,
    %c0_23 = arith.constant 0 : index
    %c0_24 = arith.constant 0 : index
    %33 = vector.load %arg3[%c0_23, %c0_24] : memref<56x840xbf16, #tpu.memory_space<vmem>>, vector<56x840xbf16>
    %c0_25 = arith.constant 0 : index
    %c0_26 = arith.constant 0 : index
    %34 = vector.load %arg6[%c0_25, %c0_26] : memref<840x16xbf16, #tpu.memory_space<vmem>>, vector<840x16xbf16>
    %cst_27 = arith.constant dense<0.000000e+00> : vector<56x16xf32>
    %35 = tpu.matmul %33, %34, %cst_27 {dimension_numbers = #tpu.dot_dimension_numbers<[1], [0], [0], [1], [0, 0, 1, 1], [], []>} : vector<56x840xbf16>, vector<840x16xbf16>, vector<56x16xf32> -> vector<56x16xf32>
    %36 = vector.broadcast %0 : vector<1x16xf32> to vector<56x16xf32>
    %37 = arith.addf %35, %36 : vector<56x16xf32>
    %cst_28 = arith.constant 0.000000e+00 : f32
    %38 = vector.broadcast %cst_28 : f32 to vector<56x16xf32>
    %39 = arith.cmpf ogt, %37, %38 : vector<56x16xf32>
    %cst_29 = arith.constant 0.000000e+00 : f32
    %40 = vector.broadcast %cst_29 : f32 to vector<56x16xf32>
    %41 = arith.minimumf %37, %40 : vector<56x16xf32>
    %42 = math.exp %41 : vector<56x16xf32>
    %cst_30 = arith.constant 1.000000e+00 : f32
    %43 = vector.broadcast %cst_30 : f32 to vector<56x16xf32>
    %44 = arith.subf %42, %43 : vector<56x16xf32>
    %45 = arith.select %39, %37, %44 : vector<56x16xi1>, vector<56x16xf32>
    %46 = vector.shape_cast %45 : vector<56x16xf32> to vector<8x7x16xf32>
    %c0_31 = arith.constant 0 : index
    %c49 = arith.constant 49 : index
    %c0_32 = arith.constant 0 : index
    %47 = vector.load %arg12[%c0_31, %c49, %c0_32] : memref<8x56x16xf32, #tpu.memory_space<vmem>>, vector<8x7x16xf32>
    tpu.vector_store %arg12[%c0_31, %c49, %c0_32], %46 {strides = array<i32>} : memref<8x56x16xf32, #tpu.memory_space<vmem>>, vector<8x7x16xf32>,
    %c0_33 = arith.constant 0 : index
    %c0_34 = arith.constant 0 : index
    %48 = vector.load %arg7[%c0_33, %c0_34] : memref<20x16xf32, #tpu.memory_space<vmem>>, vector<20x16xf32>
    %cst_35 = arith.constant 0.000000e+00 : f32
    %49 = vector.broadcast %cst_35 : f32 to vector<8x37x16xf32>
    %50 = vector.extract_strided_slice %48 {offsets = [0, 0], sizes = [1, 16], strides = [1, 1]} : vector<20x16xf32> to vector<1x16xf32>
    %51 = vector.shape_cast %50 : vector<1x16xf32> to vector<1x1x16xf32>
    %c0_36 = arith.constant 0 : index
    %c0_37 = arith.constant 0 : index
    %c0_38 = arith.constant 0 : index
    %52 = vector.load %arg12[%c0_36, %c0_37, %c0_38] : memref<8x56x16xf32, #tpu.memory_space<vmem>>, vector<8x37x16xf32>
    %53 = vector.broadcast %51 : vector<1x1x16xf32> to vector<8x37x16xf32>
    %54 = arith.mulf %52, %53 : vector<8x37x16xf32>
    %55 = arith.addf %49, %54 : vector<8x37x16xf32>
    %56 = vector.extract_strided_slice %48 {offsets = [1, 0], sizes = [1, 16], strides = [1, 1]} : vector<20x16xf32> to vector<1x16xf32>
    %57 = vector.shape_cast %56 : vector<1x16xf32> to vector<1x1x16xf32>
    %c0_39 = arith.constant 0 : index
    %c1_40 = arith.constant 1 : index
    %c0_41 = arith.constant 0 : index
    %58 = vector.load %arg12[%c0_39, %c1_40, %c0_41] : memref<8x56x16xf32, #tpu.memory_space<vmem>>, vector<8x37x16xf32>
    %59 = vector.broadcast %57 : vector<1x1x16xf32> to vector<8x37x16xf32>
    %60 = arith.mulf %58, %59 : vector<8x37x16xf32>
    %61 = arith.addf %55, %60 : vector<8x37x16xf32>
    %62 = vector.extract_strided_slice %48 {offsets = [2, 0], sizes = [1, 16], strides = [1, 1]} : vector<20x16xf32> to vector<1x16xf32>
    %63 = vector.shape_cast %62 : vector<1x16xf32> to vector<1x1x16xf32>
    %c0_42 = arith.constant 0 : index
    %c2_43 = arith.constant 2 : index
    %c0_44 = arith.constant 0 : index
    %64 = vector.load %arg12[%c0_42, %c2_43, %c0_44] : memref<8x56x16xf32, #tpu.memory_space<vmem>>, vector<8x37x16xf32>
    %65 = vector.broadcast %63 : vector<1x1x16xf32> to vector<8x37x16xf32>
    %66 = arith.mulf %64, %65 : vector<8x37x16xf32>
    %67 = arith.addf %61, %66 : vector<8x37x16xf32>
    %68 = vector.extract_strided_slice %48 {offsets = [3, 0], sizes = [1, 16], strides = [1, 1]} : vector<20x16xf32> to vector<1x16xf32>
    %69 = vector.shape_cast %68 : vector<1x16xf32> to vector<1x1x16xf32>
    %c0_45 = arith.constant 0 : index
    %c3 = arith.constant 3 : index
    %c0_46 = arith.constant 0 : index
    %70 = vector.load %arg12[%c0_45, %c3, %c0_46] : memref<8x56x16xf32, #tpu.memory_space<vmem>>, vector<8x37x16xf32>
    %71 = vector.broadcast %69 : vector<1x1x16xf32> to vector<8x37x16xf32>
    %72 = arith.mulf %70, %71 : vector<8x37x16xf32>
    %73 = arith.addf %67, %72 : vector<8x37x16xf32>
    %74 = vector.extract_strided_slice %48 {offsets = [4, 0], sizes = [1, 16], strides = [1, 1]} : vector<20x16xf32> to vector<1x16xf32>
    %75 = vector.shape_cast %74 : vector<1x16xf32> to vector<1x1x16xf32>
    %c0_47 = arith.constant 0 : index
    %c4 = arith.constant 4 : index
    %c0_48 = arith.constant 0 : index
    %76 = vector.load %arg12[%c0_47, %c4, %c0_48] : memref<8x56x16xf32, #tpu.memory_space<vmem>>, vector<8x37x16xf32>
    %77 = vector.broadcast %75 : vector<1x1x16xf32> to vector<8x37x16xf32>
    %78 = arith.mulf %76, %77 : vector<8x37x16xf32>
    %79 = arith.addf %73, %78 : vector<8x37x16xf32>
    %80 = vector.extract_strided_slice %48 {offsets = [5, 0], sizes = [1, 16], strides = [1, 1]} : vector<20x16xf32> to vector<1x16xf32>
    %81 = vector.shape_cast %80 : vector<1x16xf32> to vector<1x1x16xf32>
    %c0_49 = arith.constant 0 : index
    %c5 = arith.constant 5 : index
    %c0_50 = arith.constant 0 : index
    %82 = vector.load %arg12[%c0_49, %c5, %c0_50] : memref<8x56x16xf32, #tpu.memory_space<vmem>>, vector<8x37x16xf32>
    %83 = vector.broadcast %81 : vector<1x1x16xf32> to vector<8x37x16xf32>
    %84 = arith.mulf %82, %83 : vector<8x37x16xf32>
    %85 = arith.addf %79, %84 : vector<8x37x16xf32>
    %86 = vector.extract_strided_slice %48 {offsets = [6, 0], sizes = [1, 16], strides = [1, 1]} : vector<20x16xf32> to vector<1x16xf32>
    %87 = vector.shape_cast %86 : vector<1x16xf32> to vector<1x1x16xf32>
    %c0_51 = arith.constant 0 : index
    %c6 = arith.constant 6 : index
    %c0_52 = arith.constant 0 : index
    %88 = vector.load %arg12[%c0_51, %c6, %c0_52] : memref<8x56x16xf32, #tpu.memory_space<vmem>>, vector<8x37x16xf32>
    %89 = vector.broadcast %87 : vector<1x1x16xf32> to vector<8x37x16xf32>
    %90 = arith.mulf %88, %89 : vector<8x37x16xf32>
    %91 = arith.addf %85, %90 : vector<8x37x16xf32>
    %92 = vector.extract_strided_slice %48 {offsets = [7, 0], sizes = [1, 16], strides = [1, 1]} : vector<20x16xf32> to vector<1x16xf32>
    %93 = vector.shape_cast %92 : vector<1x16xf32> to vector<1x1x16xf32>
    %c0_53 = arith.constant 0 : index
    %c7 = arith.constant 7 : index
    %c0_54 = arith.constant 0 : index
    %94 = vector.load %arg12[%c0_53, %c7, %c0_54] : memref<8x56x16xf32, #tpu.memory_space<vmem>>, vector<8x37x16xf32>
    %95 = vector.broadcast %93 : vector<1x1x16xf32> to vector<8x37x16xf32>
    %96 = arith.mulf %94, %95 : vector<8x37x16xf32>
    %97 = arith.addf %91, %96 : vector<8x37x16xf32>
    %98 = vector.extract_strided_slice %48 {offsets = [8, 0], sizes = [1, 16], strides = [1, 1]} : vector<20x16xf32> to vector<1x16xf32>
    %99 = vector.shape_cast %98 : vector<1x16xf32> to vector<1x1x16xf32>
    %c0_55 = arith.constant 0 : index
    %c8 = arith.constant 8 : index
    %c0_56 = arith.constant 0 : index
    %100 = vector.load %arg12[%c0_55, %c8, %c0_56] : memref<8x56x16xf32, #tpu.memory_space<vmem>>, vector<8x37x16xf32>
    %101 = vector.broadcast %99 : vector<1x1x16xf32> to vector<8x37x16xf32>
    %102 = arith.mulf %100, %101 : vector<8x37x16xf32>
    %103 = arith.addf %97, %102 : vector<8x37x16xf32>
    %104 = vector.extract_strided_slice %48 {offsets = [9, 0], sizes = [1, 16], strides = [1, 1]} : vector<20x16xf32> to vector<1x16xf32>
    %105 = vector.shape_cast %104 : vector<1x16xf32> to vector<1x1x16xf32>
    %c0_57 = arith.constant 0 : index
    %c9 = arith.constant 9 : index
    %c0_58 = arith.constant 0 : index
    %106 = vector.load %arg12[%c0_57, %c9, %c0_58] : memref<8x56x16xf32, #tpu.memory_space<vmem>>, vector<8x37x16xf32>
    %107 = vector.broadcast %105 : vector<1x1x16xf32> to vector<8x37x16xf32>
    %108 = arith.mulf %106, %107 : vector<8x37x16xf32>
    %109 = arith.addf %103, %108 : vector<8x37x16xf32>
    %110 = vector.extract_strided_slice %48 {offsets = [10, 0], sizes = [1, 16], strides = [1, 1]} : vector<20x16xf32> to vector<1x16xf32>
    %111 = vector.shape_cast %110 : vector<1x16xf32> to vector<1x1x16xf32>
    %c0_59 = arith.constant 0 : index
    %c10 = arith.constant 10 : index
    %c0_60 = arith.constant 0 : index
    %112 = vector.load %arg12[%c0_59, %c10, %c0_60] : memref<8x56x16xf32, #tpu.memory_space<vmem>>, vector<8x37x16xf32>
    %113 = vector.broadcast %111 : vector<1x1x16xf32> to vector<8x37x16xf32>
    %114 = arith.mulf %112, %113 : vector<8x37x16xf32>
    %115 = arith.addf %109, %114 : vector<8x37x16xf32>
    %116 = vector.extract_strided_slice %48 {offsets = [11, 0], sizes = [1, 16], strides = [1, 1]} : vector<20x16xf32> to vector<1x16xf32>
    %117 = vector.shape_cast %116 : vector<1x16xf32> to vector<1x1x16xf32>
    %c0_61 = arith.constant 0 : index
    %c11 = arith.constant 11 : index
    %c0_62 = arith.constant 0 : index
    %118 = vector.load %arg12[%c0_61, %c11, %c0_62] : memref<8x56x16xf32, #tpu.memory_space<vmem>>, vector<8x37x16xf32>
    %119 = vector.broadcast %117 : vector<1x1x16xf32> to vector<8x37x16xf32>
    %120 = arith.mulf %118, %119 : vector<8x37x16xf32>
    %121 = arith.addf %115, %120 : vector<8x37x16xf32>
    %122 = vector.extract_strided_slice %48 {offsets = [12, 0], sizes = [1, 16], strides = [1, 1]} : vector<20x16xf32> to vector<1x16xf32>
    %123 = vector.shape_cast %122 : vector<1x16xf32> to vector<1x1x16xf32>
    %c0_63 = arith.constant 0 : index
    %c12 = arith.constant 12 : index
    %c0_64 = arith.constant 0 : index
    %124 = vector.load %arg12[%c0_63, %c12, %c0_64] : memref<8x56x16xf32, #tpu.memory_space<vmem>>, vector<8x37x16xf32>
    %125 = vector.broadcast %123 : vector<1x1x16xf32> to vector<8x37x16xf32>
    %126 = arith.mulf %124, %125 : vector<8x37x16xf32>
    %127 = arith.addf %121, %126 : vector<8x37x16xf32>
    %128 = vector.extract_strided_slice %48 {offsets = [13, 0], sizes = [1, 16], strides = [1, 1]} : vector<20x16xf32> to vector<1x16xf32>
    %129 = vector.shape_cast %128 : vector<1x16xf32> to vector<1x1x16xf32>
    %c0_65 = arith.constant 0 : index
    %c13 = arith.constant 13 : index
    %c0_66 = arith.constant 0 : index
    %130 = vector.load %arg12[%c0_65, %c13, %c0_66] : memref<8x56x16xf32, #tpu.memory_space<vmem>>, vector<8x37x16xf32>
    %131 = vector.broadcast %129 : vector<1x1x16xf32> to vector<8x37x16xf32>
    %132 = arith.mulf %130, %131 : vector<8x37x16xf32>
    %133 = arith.addf %127, %132 : vector<8x37x16xf32>
    %134 = vector.extract_strided_slice %48 {offsets = [14, 0], sizes = [1, 16], strides = [1, 1]} : vector<20x16xf32> to vector<1x16xf32>
    %135 = vector.shape_cast %134 : vector<1x16xf32> to vector<1x1x16xf32>
    %c0_67 = arith.constant 0 : index
    %c14 = arith.constant 14 : index
    %c0_68 = arith.constant 0 : index
    %136 = vector.load %arg12[%c0_67, %c14, %c0_68] : memref<8x56x16xf32, #tpu.memory_space<vmem>>, vector<8x37x16xf32>
    %137 = vector.broadcast %135 : vector<1x1x16xf32> to vector<8x37x16xf32>
    %138 = arith.mulf %136, %137 : vector<8x37x16xf32>
    %139 = arith.addf %133, %138 : vector<8x37x16xf32>
    %140 = vector.extract_strided_slice %48 {offsets = [15, 0], sizes = [1, 16], strides = [1, 1]} : vector<20x16xf32> to vector<1x16xf32>
    %141 = vector.shape_cast %140 : vector<1x16xf32> to vector<1x1x16xf32>
    %c0_69 = arith.constant 0 : index
    %c15 = arith.constant 15 : index
    %c0_70 = arith.constant 0 : index
    %142 = vector.load %arg12[%c0_69, %c15, %c0_70] : memref<8x56x16xf32, #tpu.memory_space<vmem>>, vector<8x37x16xf32>
    %143 = vector.broadcast %141 : vector<1x1x16xf32> to vector<8x37x16xf32>
    %144 = arith.mulf %142, %143 : vector<8x37x16xf32>
    %145 = arith.addf %139, %144 : vector<8x37x16xf32>
    %146 = vector.extract_strided_slice %48 {offsets = [16, 0], sizes = [1, 16], strides = [1, 1]} : vector<20x16xf32> to vector<1x16xf32>
    %147 = vector.shape_cast %146 : vector<1x16xf32> to vector<1x1x16xf32>
    %c0_71 = arith.constant 0 : index
    %c16 = arith.constant 16 : index
    %c0_72 = arith.constant 0 : index
    %148 = vector.load %arg12[%c0_71, %c16, %c0_72] : memref<8x56x16xf32, #tpu.memory_space<vmem>>, vector<8x37x16xf32>
    %149 = vector.broadcast %147 : vector<1x1x16xf32> to vector<8x37x16xf32>
    %150 = arith.mulf %148, %149 : vector<8x37x16xf32>
    %151 = arith.addf %145, %150 : vector<8x37x16xf32>
    %152 = vector.extract_strided_slice %48 {offsets = [17, 0], sizes = [1, 16], strides = [1, 1]} : vector<20x16xf32> to vector<1x16xf32>
    %153 = vector.shape_cast %152 : vector<1x16xf32> to vector<1x1x16xf32>
    %c0_73 = arith.constant 0 : index
    %c17 = arith.constant 17 : index
    %c0_74 = arith.constant 0 : index
    %154 = vector.load %arg12[%c0_73, %c17, %c0_74] : memref<8x56x16xf32, #tpu.memory_space<vmem>>, vector<8x37x16xf32>
    %155 = vector.broadcast %153 : vector<1x1x16xf32> to vector<8x37x16xf32>
    %156 = arith.mulf %154, %155 : vector<8x37x16xf32>
    %157 = arith.addf %151, %156 : vector<8x37x16xf32>
    %158 = vector.extract_strided_slice %48 {offsets = [18, 0], sizes = [1, 16], strides = [1, 1]} : vector<20x16xf32> to vector<1x16xf32>
    %159 = vector.shape_cast %158 : vector<1x16xf32> to vector<1x1x16xf32>
    %c0_75 = arith.constant 0 : index
    %c18 = arith.constant 18 : index
    %c0_76 = arith.constant 0 : index
    %160 = vector.load %arg12[%c0_75, %c18, %c0_76] : memref<8x56x16xf32, #tpu.memory_space<vmem>>, vector<8x37x16xf32>
    %161 = vector.broadcast %159 : vector<1x1x16xf32> to vector<8x37x16xf32>
    %162 = arith.mulf %160, %161 : vector<8x37x16xf32>
    %163 = arith.addf %157, %162 : vector<8x37x16xf32>
    %164 = vector.extract_strided_slice %48 {offsets = [19, 0], sizes = [1, 16], strides = [1, 1]} : vector<20x16xf32> to vector<1x16xf32>
    %165 = vector.shape_cast %164 : vector<1x16xf32> to vector<1x1x16xf32>
    %c0_77 = arith.constant 0 : index
    %c19 = arith.constant 19 : index
    %c0_78 = arith.constant 0 : index
    %166 = vector.load %arg12[%c0_77, %c19, %c0_78] : memref<8x56x16xf32, #tpu.memory_space<vmem>>, vector<8x37x16xf32>
    %167 = vector.broadcast %165 : vector<1x1x16xf32> to vector<8x37x16xf32>
    %168 = arith.mulf %166, %167 : vector<8x37x16xf32>
    %169 = arith.addf %163, %168 : vector<8x37x16xf32>
    %170 = vector.shape_cast %169 : vector<8x37x16xf32> to vector<296x16xf32>
    %c0_79 = arith.constant 0 : index
    %c0_80 = arith.constant 0 : index
    %171 = vector.load %arg8[%c0_79, %c0_80] : memref<16x16xf32, #tpu.memory_space<vmem>>, vector<16x16xf32>
    %cst_81 = arith.constant dense<0.000000e+00> : vector<296x16xf32>
    %172 = tpu.matmul %170, %171, %cst_81 {dimension_numbers = #tpu.dot_dimension_numbers<[1], [0], [0], [1], [0, 0, 1, 1], [], []>} : vector<296x16xf32>, vector<16x16xf32>, vector<296x16xf32> -> vector<296x16xf32>
    %173 = vector.broadcast %1 : vector<1x16xf32> to vector<296x16xf32>
    %174 = arith.addf %172, %173 : vector<296x16xf32>
    %cst_82 = arith.constant 0.000000e+00 : f32
    %175 = vector.broadcast %cst_82 : f32 to vector<296x16xf32>
    %176 = arith.cmpf ogt, %174, %175 : vector<296x16xf32>
    %cst_83 = arith.constant 0.000000e+00 : f32
    %177 = vector.broadcast %cst_83 : f32 to vector<296x16xf32>
    %178 = arith.minimumf %174, %177 : vector<296x16xf32>
    %179 = math.exp %178 : vector<296x16xf32>
    %cst_84 = arith.constant 1.000000e+00 : f32
    %180 = vector.broadcast %cst_84 : f32 to vector<296x16xf32>
    %181 = arith.subf %179, %180 : vector<296x16xf32>
    %182 = arith.select %176, %174, %181 : vector<296x16xi1>, vector<296x16xf32>
    %183 = vector.shape_cast %182 : vector<296x16xf32> to vector<8x37x16xf32>
    %184 = vector.extract_strided_slice %183 {offsets = [0, 0, 0], sizes = [8, 31, 16], strides = [1, 1, 1]} : vector<8x37x16xf32> to vector<8x31x16xf32>
    %185 = vector.extract_strided_slice %183 {offsets = [0, 2, 0], sizes = [8, 31, 16], strides = [1, 1, 1]} : vector<8x37x16xf32> to vector<8x31x16xf32>
    %186 = arith.addf %184, %185 : vector<8x31x16xf32>
    %187 = vector.extract_strided_slice %183 {offsets = [0, 4, 0], sizes = [8, 31, 16], strides = [1, 1, 1]} : vector<8x37x16xf32> to vector<8x31x16xf32>
    %188 = arith.addf %186, %187 : vector<8x31x16xf32>
    %189 = vector.extract_strided_slice %183 {offsets = [0, 6, 0], sizes = [8, 31, 16], strides = [1, 1, 1]} : vector<8x37x16xf32> to vector<8x31x16xf32>
    %190 = arith.addf %188, %189 : vector<8x31x16xf32>
    %191 = vector.extract_strided_slice %190 {offsets = [0, 0, 0], sizes = [8, 1, 16], strides = [1, 1, 1]} : vector<8x31x16xf32> to vector<8x1x16xf32>
    %192 = vector.shape_cast %191 : vector<8x1x16xf32> to vector<8x16xf32>
    %193 = vector.extract_strided_slice %190 {offsets = [0, 8, 0], sizes = [8, 1, 16], strides = [1, 1, 1]} : vector<8x31x16xf32> to vector<8x1x16xf32>
    %194 = vector.shape_cast %193 : vector<8x1x16xf32> to vector<8x16xf32>
    %195 = vector.extract_strided_slice %190 {offsets = [0, 16, 0], sizes = [8, 1, 16], strides = [1, 1, 1]} : vector<8x31x16xf32> to vector<8x1x16xf32>
    %196 = vector.shape_cast %195 : vector<8x1x16xf32> to vector<8x16xf32>
    %197 = vector.extract_strided_slice %190 {offsets = [0, 24, 0], sizes = [8, 1, 16], strides = [1, 1, 1]} : vector<8x31x16xf32> to vector<8x1x16xf32>
    %198 = vector.shape_cast %197 : vector<8x1x16xf32> to vector<8x16xf32>
    %199 = tpu.concatenate %192, %194, %196, %198 in 1 : vector<8x16xf32>, vector<8x16xf32>, vector<8x16xf32>, vector<8x16xf32> -> vector<8x64xf32>
    %cst_85 = arith.constant 2.500000e-01 : f32
    %200 = vector.broadcast %cst_85 : f32 to vector<8x64xf32>
    %201 = arith.mulf %200, %199 : vector<8x64xf32>
    %c0_86 = arith.constant 0 : index
    %c0_87 = arith.constant 0 : index
    %202 = vector.load %arg9[%c0_86, %c0_87] : memref<64x5xf32, #tpu.memory_space<vmem>>, vector<64x5xf32>
    %cst_88 = arith.constant dense<0.000000e+00> : vector<8x5xf32>
    %203 = tpu.matmul %201, %202, %cst_88 {dimension_numbers = #tpu.dot_dimension_numbers<[1], [0], [0], [1], [0, 0, 1, 1], [], []>} : vector<8x64xf32>, vector<64x5xf32>, vector<8x5xf32> -> vector<8x5xf32>
    %204 = vector.broadcast %2 : vector<1x5xf32> to vector<8x5xf32>
    %205 = arith.addf %203, %204 : vector<8x5xf32>
    %c0_89 = arith.constant 0 : index
    %c0_90 = arith.constant 0 : index
    %206 = vector.load %arg11[%c0_89, %c0_90] : memref<8x5xf32, #tpu.memory_space<vmem>>, vector<8x5xf32>
    tpu.vector_store %arg11[%c0_89, %c0_90], %205 {strides = array<i32>} : memref<8x5xf32, #tpu.memory_space<vmem>>, vector<8x5xf32>,
    return
  }
  func.func @transform_0(%arg0: i32) -> (i32, i32) {
    %c0_i32 = arith.constant 0 : i32
    %c0_i32_0 = arith.constant 0 : i32
    return %arg0, %c0_i32 : i32, i32
  }
  func.func @transform_1(%arg0: i32) -> (i32, i32) {
    %c0_i32 = arith.constant 0 : i32
    %c0_i32_0 = arith.constant 0 : i32
    return %arg0, %c0_i32 : i32, i32
  }
  func.func @transform_2(%arg0: i32) -> (i32, i32) {
    %c0_i32 = arith.constant 0 : i32
    %c0_i32_0 = arith.constant 0 : i32
    return %arg0, %c0_i32 : i32, i32
  }
  func.func @transform_3(%arg0: i32) -> (i32, i32) {
    %c0_i32 = arith.constant 0 : i32
    %c0_i32_0 = arith.constant 0 : i32
    %c0_i32_1 = arith.constant 0 : i32
    return %c0_i32, %c0_i32_0 : i32, i32
  }
  func.func @transform_4(%arg0: i32) -> (i32, i32) {
    %c0_i32 = arith.constant 0 : i32
    %c0_i32_0 = arith.constant 0 : i32
    %c0_i32_1 = arith.constant 0 : i32
    return %c0_i32, %c0_i32_0 : i32, i32
  }
  func.func @transform_5(%arg0: i32) -> (i32, i32) {
    %c0_i32 = arith.constant 0 : i32
    %c0_i32_0 = arith.constant 0 : i32
    %c0_i32_1 = arith.constant 0 : i32
    return %c0_i32, %c0_i32_0 : i32, i32
  }
  func.func @transform_6(%arg0: i32) -> (i32, i32) {
    %c0_i32 = arith.constant 0 : i32
    %c0_i32_0 = arith.constant 0 : i32
    %c0_i32_1 = arith.constant 0 : i32
    return %c0_i32, %c0_i32_0 : i32, i32
  }
  func.func @transform_7(%arg0: i32) -> (i32, i32) {
    %c0_i32 = arith.constant 0 : i32
    %c0_i32_0 = arith.constant 0 : i32
    %c0_i32_1 = arith.constant 0 : i32
    return %c0_i32, %c0_i32_0 : i32, i32
  }
  func.func @transform_8(%arg0: i32) -> (i32, i32) {
    %c0_i32 = arith.constant 0 : i32
    %c0_i32_0 = arith.constant 0 : i32
    %c0_i32_1 = arith.constant 0 : i32
    return %c0_i32, %c0_i32_0 : i32, i32
  }
  func.func @transform_9(%arg0: i32) -> (i32, i32) {
    %c0_i32 = arith.constant 0 : i32
    %c0_i32_0 = arith.constant 0 : i32
    %c0_i32_1 = arith.constant 0 : i32
    return %c0_i32, %c0_i32_0 : i32, i32
  }
  func.func @transform_10(%arg0: i32) -> (i32, i32) {
    %c0_i32 = arith.constant 0 : i32
    %c0_i32_0 = arith.constant 0 : i32
    return %arg0, %c0_i32 : i32, i32
  }
}

</mosaic_0001>

<bundles_post_ra>
// kernel: tpu_custom_call.1
= control target key start
LH: loop header
LB: loop body
LE: loop exit
PB: predicated region body
PF: predicated region fallthrough
CT: control target
= control target key end

     0   :  { %s16497_s13 = smov 0   ;;  %s21748_s0 = inlined_call_operand.vmem [shape: bf16[528,210], index: 0, kind: input, shape index: {}]   ;;  %s21749_s1 = inlined_call_operand.vmem [shape: bf16[256,420], index: 1, kind: input, shape index: {}]   ;;  %s21750_s2 = inlined_call_operand.vmem [shape: bf16[112,840], index: 2, kind: input, shape index: {}]   ;;  %s21751_s3 = inlined_call_operand.vmem [shape: bf16[210,16], index: 3, kind: input, shape index: {}]   ;;  %s21752_s4 = inlined_call_operand.vmem [shape: bf16[420,16], index: 4, kind: input, shape index: {}]   ;;  %s21753_s5 = inlined_call_operand.vmem [shape: bf16[840,16], index: 5, kind: input, shape index: {}]   ;;  %s21754_s6 = inlined_call_operand.vmem [shape: f32[20,16], index: 6, kind: input, shape index: {}]   ;;  %s21755_s7 = inlined_call_operand.vmem [shape: f32[16,16], index: 7, kind: input, shape index: {}]   ;;  %s21756_s8 = inlined_call_operand.vmem [shape: f32[64,5], index: 8, kind: input, shape index: {}]   ;;  %s21757_s9 = inlined_call_operand.vmem [shape: f32[3,16], index: 9, kind: input, shape index: {}]   ;;  %s21758_s10 = inlined_call_operand.vmem [shape: f32[16,5], index: 10, kind: output, shape index: {}]  }
   0x1 LB: > { %s16503_s14 = sadd.s32 4294967295, %s16433_s13   ;;  %p15158_p0 = scmp.ge.s32.totalorder %s16433_s13, 1  ;;  %s16433_s13 = sphi %s16497_s13, %s20_s13  }
   0x2   : > { %p338_p1 = scmp.lt.s32.totalorder %s16433_s13, 3 }
   0x4   : > { %p339_p2 = pnand %p15158_p0, %p338_p1 }
   0x6   : > { %342 = sbr.rel (%p339_p2) target bundleno = 1829 (0x725), region = 60 }
   0xb   : > { %v16005_v0 = vld [vmem:[%s21751_s3 + $0x38] sm:$0xff]   ;;  %v16435_v1 = vmov 0   ;;  %v16006_v2 = vld [vmem:[%s21751_s3 + $0x30] sm:$0xff]   ;;  %s388_s19 = smul.u32 33, %s16503_s14  ;;  %v16007_v3 = vld [vmem:[%s21751_s3 + $0x28] sm:$0xff]   ;;  %vm712_vm0 = vcmask 670720  }
   0xc   : > { %768 = vmatprep.subr.bf16.mxu0 %v16435_v1  ;;  %v16008_v4 = vld [vmem:[%s21751_s3 + $0x20] sm:$0xff]   ;;  %v16009_v5 = vld [vmem:[%s21751_s3 + $0x18] sm:$0xff]   ;;  %v16010_v7 = vld [vmem:[%s21751_s3 + $0x10] sm:$0xff]   ;;  %vm764_vm1 = vcmask 1040384   ;;  %s15161_s21 = sshll.u32 %s16503_s14, 4  ;;  %vm4967_vm2 = vcmask 1041408  }
   0xd   : > { %769 = vmatpush1.bf16.msra.mxu0 %v16005_v0  ;;  %p389_p3 = scmp.lt.s32.totalorder %s388_s19, 65  ;;  %v16011_v8 = vld [vmem:[%s21751_s3 + $0x8] sm:$0xff]   ;;  %v16012_v9 = vld [vmem:[%s21751_s3] sm:$0xff]   ;;  %v16055_v13 = vld [vmem:[%s21752_s4 + $0x78] sm:$0xff]   ;;  %p396_p4 = scmp.lt.s32.totalorder %s15161_s21, 31  ;;  %vm4942_vm3 = vcmask 293888  }
   0xe   : > { %770 = vmatprep.subr.bf16.mxu0 %v16435_v1  ;;  %v16013_v10 = vld [vmem:[%s21751_s3 + $0x68] ss:$0 sps:$4 sm:$0x11]   ;;  %v16014_v12 = vld [vmem:[%s21751_s3 + $0x60] sm:$0xff]   ;;  %v16056_v14 = vld [vmem:[%s21752_s4 + $0x38] sm:$0xff]   ;;  %15595 = vmatprep.subr.bf16.mxu1 %v16055_v13  ;;  %s402_s18 = smul.u32 7, %s16503_s14 }
   0xf   : > { %s22214_s19 = smov (!%p389_p3, %s388_s19), 65  ;;  %v766_v11 = vsel %vm764_vm1, %v16013_v10, 0  ;;  %15596 = vmatpush3.bf16.msra.mxu1 %v16056_v14  ;;  %v16058_v15 = vld [vmem:[%s21752_s4 + $0x70] sm:$0xff]   ;;  %v16015_v16 = vld [vmem:[%s21751_s3 + $0x58] sm:$0xff]   ;;  %v16063_v19 = vld [vmem:[%s21752_s4 + $0x68] sm:$0xff]   ;;  %s22216_s21 = smov (!%p396_p4, %s15161_s21), 31 }
  0x10   : > { %s15593_s24 = sshll.u32 %s22214_s19, 3  ;;  %15597 = vmatprep.subr.bf16.mxu1 %v16058_v15  ;;  %v16061_v17 = vld [vmem:[%s21752_s4 + $0x30] sm:$0xff]   ;;  %v16064_v20 = vld [vmem:[%s21752_s4 + $0x28] sm:$0xff]   ;;  %v16065_v21 = vld [vmem:[%s21752_s4 + $0x60] sm:$0xff]   ;;  %p403_p5 = scmp.lt.s32.totalorder %s402_s18, 13  ;;  %vm5867_vm4 = vcmask 1043456  }
  0x11   : > { %771 = vmatpush1.bf16.msra.mxu0 %v16006_v2  ;;  %s16527_s27 = scalar_lea.vmem %s21748_s0, %s15593_s24  ;;  %v16016_v18 = vld [vmem:[%s21751_s3 + $0x50] sm:$0xff]   ;;  %v16068_v22 = vld [vmem:[%s21752_s4 + $0x20] sm:$0xff]   ;;  %v16017_v23 = vld [vmem:[%s21751_s3 + $0x48] sm:$0xff]   ;;  %s15594_s24 = sshll.u32 %s22216_s21, 4  ;;  %vm5854_vm8 = vcmask 588800   ;;  %vm4504_vm9 = vcmask 130048  }
  0x12   : > { %772 = vmatprep.subr.bf16.mxu0 %v16435_v1  ;;  %v16021_v6 = vld [vmem:[%s16527_s27 + $0x4] ss:$8 sps:$4 sm:$0xff]   ;;  %v16071_v24 = vld [vmem:[%s21752_s4 + $0x58] sm:$0xff]   ;;  %v16073_v26 = vld [vmem:[%s21752_s4 + $0x50] sm:$0xff]   ;;  %s16620_s30 = scalar_lea.vmem %s21749_s1, %s15594_s24  ;;  %s22218_s18 = smov (!%p403_p5, %s402_s18), 13  ;;  %vm4509_vm12 = vcmask 122880  }
  0x13   : > { %15215 = vmatprep.mubr.msk.bf16.mxu0 %vm712_vm0, %v16021_v6  ;;  %15598 = vmatpush3.bf16.msra.mxu1 %v16061_v17  ;;  %v16072_v25 = vld [vmem:[%s21752_s4 + $0x18] sm:$0xff]   ;;  %v16018_v27 = vld [vmem:[%s21751_s3 + $0x40] sm:$0xff]   ;;  %v16076_v30 = vld [vmem:[%s21752_s4 + $0x10] sm:$0xff]   ;;  %s15989_s23 = smul.u32 28, %s22218_s18  ;;  %s16440_s28 = smov 32  }
  0x14   : > { %15599 = vmatprep.subr.bf16.mxu1 %v16063_v19  ;;  %v16019_v28 = vld [vmem:[%s16527_s27] ss:$8 sps:$4 sm:$0xff]   ;;  %v16022_v29 = vld [vmem:[%s21752_s4 + $0xb8] sm:$0xff]   ;;  %v16026_v33 = vld [vmem:[%s21752_s4 + $0xb0] sm:$0xff]   ;;  %s16441_s29 = smov 48   ;;  %p409_p6 = scmp.lt.s32.totalorder %s16503_s14, 1 }
  0x15   : > { %773 = vmatpush1.bf16.msra.mxu0 %v16007_v3  ;;  %v16023_v31 = vld [vmem:[%s16527_s27 + $0x14] ss:$8 sps:$4 sm:$0xff]   ;;  %v16078_v32 = vld [vmem:[%s21752_s4 + $0x48] sm:$0xff]   ;;  %v16081_v35 = vld [vmem:[%s21752_s4 + $0x40] sm:$0xff]   ;;  %s16756_s11 = scalar_lea.vmem %s21750_s2, %s15989_s23  ;;  %s16439_s23 = smov 16  }
  0x16   : > { %774 = vmatprep.subr.bf16.mxu0 %v16435_v1  ;;  %v16079_v34 = vld [vmem:[%s21752_s4 + $0x8] sm:$0xff]   ;;  %v16088_v36 = vld [vmem:[%s16620_s30 + $0x4] ss:$16 sps:$4 sm:$0xff]   ;;  %v16025_v38 = vld [vmem:[%s16527_s27 + $0x10] ss:$8 sps:$4 sm:$0xff]   ;;  %s22220_s14 = smov (!%p409_p6, %s16503_s14), 1 }
  0x17   : > { %15600 = vmatpush3.bf16.msra.mxu1 %v16064_v20  ;;  %v16084_v37 = vld [vmem:[%s21752_s4] sm:$0xff]   ;;  %5003 = vmatprep.mubr.bf16.mxu1 %v16088_v36  ;;  %v16033_v40 = vld [vmem:[%s21752_s4 + $0xa8] sm:$0xff]   ;;  %v16108_v45 = vld [vmem:[%s21753_s5 + $0x78] sm:$0xff]   ;;  %s15165_s18 = sshll.u32 %s22220_s14, 3 }
  0x18   : > { %15601 = vmatprep.subr.bf16.mxu1 %v16065_v21  ;;  %v16027_v39 = vld [vmem:[%s16527_s27 + $0x24] ss:$8 sps:$4 sm:$0xff]   ;;  %v16086_v41 = vld [vmem:[%s16620_s30] ss:$16 sps:$4 sm:$0xff]   ;;  %v16109_v46 = vld [vmem:[%s21753_s5 + $0x38] sm:$0xff]  }
  0x19   : > { %775 = vmatpush1.bf16.msra.mxu0 %v16008_v4  ;;  %v16092_v42 = vld [vmem:[%s16620_s30 + $0x24] ss:$16 sps:$4 sm:$0xff]   ;;  %v16029_v44 = vld [vmem:[%s16527_s27 + $0x20] ss:$8 sps:$4 sm:$0xff]   ;;  %v16044_v48 = vld [vmem:[%s21752_s4 + $0x98] sm:$0xff]  }
  0x1a   : > { %776 = vmatprep.subr.bf16.mxu0 %v16435_v1  ;;  %v16039_v43 = vld [vmem:[%s21752_s4 + $0xa0] sm:$0xff]   ;;  %v16030_v47 = vld [vmem:[%s16527_s27 + $0x34] ss:$8 sps:$4 sm:$0xff]   ;;  %v16032_v54 = vld [vmem:[%s16527_s27 + $0x30] ss:$8 sps:$4 sm:$0xff]  }
  0x1b   : > { %15602 = vmatpush3.bf16.msra.mxu1 %v16068_v22  ;;  %v16095_v49 = vld [vmem:[%s16620_s30 + $0x20] ss:$16 sps:$4 sm:$0xff]   ;;  %v16099_v50 = vld [vmem:[%s16620_s30 + $0x44] ss:$16 sps:$4 sm:$0xff]   ;;  %v16057_v56 = vld [vmem:[%s21752_s4 + $0x88] sm:$0xff]  }
  0x1c   : > { %15603 = vmatprep.subr.bf16.mxu1 %v16071_v24  ;;  %v16050_v51 = vld [vmem:[%s21752_s4 + $0x90] sm:$0xff]   ;;  %v16034_v55 = vld [vmem:[%s16527_s27 + $0x44] ss:$8 sps:$4 sm:$0xff]   ;;  %v16036_v0 = vld [vmem:[%s16527_s27 + $0x40] ss:$8 sps:$4 sm:$0xff]  }
  0x1d   : > { %777 = vmatpush1.bf16.msra.mxu0 %v16009_v5  ;;  %v16118_v52 = vld [vmem:[%s21753_s5 + $0x70] sm:$0xff]   ;;  %v16070_v58 = vld [vmem:[%s21752_s4 + $0x80] sm:$0xff]   ;;  %v16128_v61 = vld [vmem:[%s21753_s5 + $0x68] sm:$0xff]  }
  0x1e   : > { %778 = vmatprep.subr.bf16.mxu0 %v16435_v1  ;;  %v16119_v53 = vld [vmem:[%s21753_s5 + $0x30] sm:$0xff]   ;;  %v16129_v62 = vld [vmem:[%s21753_s5 + $0x28] sm:$0xff]   ;;  %v16130_v63 = vld [vmem:[%s21753_s5 + $0x60] sm:$0xff]  }
  0x1f   : > { %15604 = vmatpush3.bf16.msra.mxu1 %v16072_v25  ;;  %v16101_v57 = vld [vmem:[%s16620_s30 + $0x40] ss:$16 sps:$4 sm:$0xff]   ;;  %v16105_v59 = vld [vmem:[%s16620_s30 + $0x64] ss:$16 sps:$4 sm:$0xff]   ;;  %v16141_v10 = vld [vmem:[%s21753_s5 + $0x18] sm:$0xff]  }
  0x20   : > { %15605 = vmatprep.subr.bf16.mxu1 %v16073_v26  ;;  %v16080_v60 = vld [vmem:[%s21752_s4 + $0xd0] ss:$0 sps:$4 sm:$0x33]   ;;  %v16133_v2 = vld [vmem:[%s21753_s5 + $0x20] sm:$0xff]   ;;  %v16037_v3 = vld [vmem:[%s16527_s27 + $0x54] ss:$8 sps:$4 sm:$0xff]  }
  0x21   : > { %779 = vmatpush1.bf16.msra.mxu0 %v16010_v7  ;;  %v4969_v4 = vsel %vm4967_vm2, %v16080_v60, 0  ;;  %v16107_v5 = vld [vmem:[%s16620_s30 + $0x60] ss:$16 sps:$4 sm:$0xff]   ;;  %v16114_v6 = vld [vmem:[%s16620_s30 + $0x84] ss:$16 sps:$4 sm:$0xff]   ;;  %v16094_v7 = vld [vmem:[%s21752_s4 + $0xc8] sm:$0xff]  }
  0x22   : > { %780 = vmatprep.subr.bf16.mxu0 %v16435_v1  ;;  %v16102_v13 = vld [vmem:[%s21752_s4 + $0xc0] sm:$0xff]   ;;  %v16113_v14 = vld [vmem:[%s21753_s5 + $0xf8] sm:$0xff]   ;;  %v16145_v15 = vld [vmem:[%s21753_s5 + $0x10] sm:$0xff]  }
  0x23   : > { %15606 = vmatpush3.bf16.msra.mxu1 %v16076_v30  ;;  %v16124_v17 = vld [vmem:[%s16620_s30 + $0xa4] ss:$16 sps:$4 sm:$0xff]   ;;  %v16043_v19 = vld [vmem:[%s16527_s27 + $0x60] ss:$8 sps:$4 sm:$0xff]   ;;  %v16164_v25 = vld [vmem:[%s21753_s5 + $0x178] sm:$0xff]  }
  0x24   : > { %15607 = vmatprep.subr.bf16.mxu1 %v16078_v32  ;;  %v16154_v20 = vld [vmem:[%s21753_s5 + $0x40] sm:$0xff]   ;;  %v16045_v21 = vld [vmem:[%s16527_s27 + $0x74] ss:$8 sps:$4 sm:$0xff]   ;;  %v16047_v26 = vld [vmem:[%s16527_s27 + $0x70] ss:$8 sps:$4 sm:$0xff]  }
  0x25   : > { %781 = vmatpush1.bf16.msra.mxu0 %v16011_v8  ;;  %v16140_v8 = vld [vmem:[%s21753_s5 + $0x58] sm:$0xff]   ;;  %v16157_v22 = vld [vmem:[%s21753_s5] sm:$0xff]  }
  0x26   : > { %782 = vmatprep.subr.bf16.mxu0 %v16435_v1  ;;  %v16136_v24 = vld [vmem:[%s16620_s30 + $0xc4] ss:$16 sps:$4 sm:$0xff]   ;;  %v16051_v30 = vld [vmem:[%s16527_s27 + $0x80] ss:$8 sps:$4 sm:$0xff]  }
  0x27   : > { %15608 = vmatpush3.bf16.msra.mxu1 %v16079_v34  ;;  %v16151_v32 = vld [vmem:[%s16620_s30 + $0xe0] ss:$16 sps:$4 sm:$0xff]   ;;  %v16082_v60 = vld [vmem:[%s16527_s27 + $0xd4] ss:$8 sps:$4 sm:$0xff]  }
  0x28   : > { %15609 = vmatprep.subr.bf16.mxu1 %v16081_v35  ;;  %v16054_v34 = vld [vmem:[%s16527_s27 + $0x90] ss:$8 sps:$4 sm:$0xff]   ;;  %v16059_v35 = vld [vmem:[%s16527_s27 + $0xa4] ss:$8 sps:$4 sm:$0xff]   ;;  %v16160_v36 = vld [vmem:[%s16756_s11] ss:$28 sps:$4 sm:$0xff]  }
  0x29   : > { %783 = vmatpush1.bf16.msra.mxu0 %v16012_v9  ;;  %v16040_v9 = vld [vmem:[%s16527_s27 + $0x50] ss:$8 sps:$4 sm:$0xff]  }
  0x2a   : > { %788 = vmatprep.subr.bf16.mxu0 %v16435_v1 }
  0x2b   : > { %15610 = vmatpush3.bf16.msra.mxu1 %v16084_v37  ;;  %v16165_v37 = vld [vmem:[%s21753_s5 + $0x138] sm:$0xff]  }
  0x2c   : > { %15659 = vmatprep.subr.bf16.mxu1 %v16108_v45  ;;  %v16177_v45 = vld [vmem:[%s21753_s5 + $0x128] sm:$0xff]  }
  0x2d   : > { %789 = vmatpush2.bf16.msra.mxu0 %v766_v11  ;;  %v16041_v11 = vld [vmem:[%s16527_s27 + $0x64] ss:$8 sps:$4 sm:$0xff]  }
  0x2e   : > { %790 = vmatprep.subr.bf16.mxu0 %v16435_v1  ;;  %5004 = vmatmul.mubr.bf16.vlgmr.msra.gmra.mxu1 %v16086_v41  ;;  %v16066_v41 = vld [vmem:[%s16527_s27 + $0xb4] ss:$8 sps:$4 sm:$0xff]  }
  0x2f   : > { %5011 = vmatprep.mubr.bf16.mxu1 %v16092_v42  ;;  %15660 = vmatpush3.bf16.msra.mxu1 %v16109_v46  ;;  %v16169_v42 = vld [vmem:[%s21753_s5 + $0x130] sm:$0xff]   ;;  %v16178_v46 = vld [vmem:[%s21753_s5 + $0x160] sm:$0xff]  }
  0x30   : > { %15661 = vmatprep.subr.bf16.mxu1 %v16118_v52  ;;  %v16074_v52 = vld [vmem:[%s16527_s27 + $0xc4] ss:$8 sps:$4 sm:$0xff]  }
  0x31   : > { %791 = vmatpush2.bf16.msra.mxu0 %v16014_v12  ;;  %v16142_v12 = vld [vmem:[%s21753_s5 + $0x50] sm:$0xff]  }
  0x32   : > { %792 = vmatprep.subr.bf16.mxu0 %v16435_v1 }
  0x33   : > { %15662 = vmatpush3.bf16.msra.mxu1 %v16119_v53  ;;  %v16187_v53 = vld [vmem:[%s16756_s11 + $0x70] ss:$28 sps:$4 sm:$0xff]  }
  0x34   : > { %15663 = vmatprep.subr.bf16.mxu1 %v16128_v61 }
  0x35   : > { %793 = vmatpush2.bf16.msra.mxu0 %v16015_v16  ;;  %v16117_v16 = vld [vmem:[%s16620_s30 + $0x80] ss:$16 sps:$4 sm:$0xff]  }
  0x36   : > { %794 = vmatprep.subr.bf16.mxu0 %v16435_v1  ;;  %5012 = vmatmul.mubr.bf16.gmra.mxu1 %v16095_v49  ;;  %v16069_v49 = vld [vmem:[%s16527_s27 + $0xb0] ss:$8 sps:$4 sm:$0xff]  }
  0x37   : > { %5019 = vmatprep.mubr.bf16.mxu1 %v16099_v50  ;;  %15664 = vmatpush3.bf16.msra.mxu1 %v16129_v62  ;;  %v16188_v50 = vld [vmem:[%s21753_s5 + $0x158] sm:$0xff]   ;;  %v16199_v62 = vld [vmem:[%s21753_s5 + $0x108] sm:$0xff]  }
  0x38   : > { %15665 = vmatprep.subr.bf16.mxu1 %v16130_v63  ;;  %v16208_v63 = vld [vmem:[%s16756_s11 + $0x14] ss:$28 sps:$4 sm:$0xff]  }
  0x39   : > { %795 = vmatpush2.bf16.msra.mxu0 %v16016_v18  ;;  %v16152_v18 = vld [vmem:[%s21753_s5 + $0x48] sm:$0xff]  }
  0x3a   : > { %796 = vmatprep.subr.bf16.mxu0 %v16435_v1 }
  0x3b   : > { %15666 = vmatpush3.bf16.msra.mxu1 %v16133_v2  ;;  %v16204_v2 = vld [vmem:[%s21753_s5 + $0x100] sm:$0xff]  }
  0x3c   : > { %15667 = vmatprep.subr.bf16.mxu1 %v16140_v8  ;;  %v16096_v8 = vld [vmem:[%s16527_s27 + $0xf4] ss:$8 sps:$4 sm:$0xff]  }
  0x3d   : > { %797 = vmatpush2.bf16.msra.mxu0 %v16017_v23  ;;  %v16127_v23 = vld [vmem:[%s16620_s30 + $0xa0] ss:$16 sps:$4 sm:$0xff]  }
  0x3e   : > { %798 = vmatprep.subr.bf16.mxu0 %v16435_v1  ;;  %5020 = vmatmul.mubr.bf16.gmra.mxu1 %v16101_v57  ;;  %v16193_v57 = vld [vmem:[%s21753_s5 + $0x110] sm:$0xff]  }
  0x3f   : > { %5027 = vmatprep.mubr.bf16.mxu1 %v16105_v59  ;;  %15668 = vmatpush3.bf16.msra.mxu1 %v16141_v10  ;;  %v16198_v59 = vld [vmem:[%s21753_s5 + $0x148] sm:$0xff]   ;;  %v16218_v10 = vld [vmem:[%s16756_s11 + $0x84] ss:$28 sps:$4 sm:$0xff]  }
  0x40   : > { %15669 = vmatprep.subr.bf16.mxu1 %v16142_v12  ;;  %v16098_v12 = vld [vmem:[%s16527_s27 + $0xf0] ss:$8 sps:$4 sm:$0xff]  }
  0x41   : > { %799 = vmatpush2.bf16.msra.mxu0 %v16018_v27  ;;  %v16048_v27 = vld [vmem:[%s16527_s27 + $0x84] ss:$8 sps:$4 sm:$0xff]  }
  0x42   : > { %5068 = vmatprep.subr.bf16.mxu0 %v16435_v1 }
  0x43   : > { %15670 = vmatpush3.bf16.msra.mxu1 %v16145_v15 }
  0x44   : > { %801 = vmatmul.mubr.bf16.vlgmr.msra.gmra.mxu0 %v16019_v28  ;;  %15671 = vmatprep.subr.bf16.mxu1 %v16152_v18  ;;  %v16139_v28 = vld [vmem:[%s16620_s30 + $0xc0] ss:$16 sps:$4 sm:$0xff]   ;;  %v16116_v18 = vld [vmem:[%s21753_s5 + $0xb8] sm:$0xff]  }
  0x45   : > { %5069 = vmatpush1.bf16.msra.mxu0 %v16022_v29  ;;  %15216 = vmatprep.mubr.msk.bf16.mxu0 %vm712_vm0, %v16023_v31  ;;  %v16148_v29 = vld [vmem:[%s16620_s30 + $0xe4] ss:$16 sps:$4 sm:$0xff]  }
  0x46   : > { %5070 = vmatprep.subr.bf16.mxu0 %v16435_v1  ;;  %5028 = vmatmul.mubr.bf16.gmra.mxu1 %v16107_v5  ;;  %v16052_v31 = vld [vmem:[%s16527_s27 + $0x94] ss:$8 sps:$4 sm:$0xff]   ;;  %v16206_v5 = vld [vmem:[%s16756_s11 + $0x10] ss:$28 sps:$4 sm:$0xff]  }
  0x47   : > { %5035 = vmatprep.mubr.bf16.mxu1 %v16114_v6  ;;  %v16212_v6 = vld [vmem:[%s16756_s11 + $0x4c] ss:$28 sps:$4 sm:$0xff]  }
  0x49   : > { %5071 = vmatpush1.bf16.msra.mxu0 %v16026_v33  ;;  %v16162_v33 = vld [vmem:[%s16756_s11 + $0x4] ss:$28 sps:$4 sm:$0xff]  }
  0x4a   : > { %5072 = vmatprep.subr.bf16.mxu0 %v16435_v1 }
  0x4c   : > { %809 = vmatmul.mubr.bf16.gmra.mxu0 %v16025_v38  ;;  %v16172_v38 = vld [vmem:[%s16756_s11 + $0x3c] ss:$28 sps:$4 sm:$0xff]  }
  0x4d   : > { %15217 = vmatprep.mubr.msk.bf16.mxu0 %vm712_vm0, %v16027_v39  ;;  %5073 = vmatpush1.bf16.msra.mxu0 %v16033_v40  ;;  %v16166_v39 = vld [vmem:[%s21753_s5 + $0x170] sm:$0xff]   ;;  %v16062_v40 = vld [vmem:[%s16527_s27 + $0xa0] ss:$8 sps:$4 sm:$0xff]  }
  0x4e   : > { %5074 = vmatprep.subr.bf16.mxu0 %v16435_v1  ;;  %5036 = vmatmul.mubr.bf16.gmra.mxu1 %v16117_v16  ;;  %v16112_v16 = vld [vmem:[%s16620_s30 + $0xc] ss:$16 sps:$4 sm:$0xff]  }
  0x4f   : > { %5043 = vmatprep.mubr.bf16.mxu1 %v16124_v17  ;;  %v16110_v17 = vld [vmem:[%s16620_s30 + $0x8] ss:$16 sps:$4 sm:$0xff]  }
  0x51   : > { %5075 = vmatpush1.bf16.msra.mxu0 %v16039_v43  ;;  %v16176_v43 = vld [vmem:[%s21753_s5 + $0x168] sm:$0xff]  }
  0x52   : > { %5076 = vmatprep.subr.bf16.mxu0 %v16435_v1 }
  0x54   : > { %817 = vmatmul.mubr.bf16.gmra.mxu0 %v16029_v44  ;;  %v16175_v44 = vld [vmem:[%s16756_s11 + $0x38] ss:$28 sps:$4 sm:$0xff]  }
  0x55   : > { %15218 = vmatprep.mubr.msk.bf16.mxu0 %vm712_vm0, %v16030_v47  ;;  %5077 = vmatpush1.bf16.msra.mxu0 %v16044_v48  ;;  %v16184_v47 = vld [vmem:[%s16756_s11 + $0x74] ss:$28 sps:$4 sm:$0xff]   ;;  %v16181_v48 = vld [vmem:[%s21753_s5 + $0x120] sm:$0xff]  }
  0x56   : > { %5078 = vmatprep.subr.bf16.mxu0 %v16435_v1  ;;  %5044 = vmatmul.mubr.bf16.gmra.mxu1 %v16127_v23 }
  0x57   : > { %5051 = vmatprep.mubr.bf16.mxu1 %v16136_v24 }
  0x59   : > { %5079 = vmatpush1.bf16.msra.mxu0 %v16050_v51  ;;  %v5301_v51 = vld [vmem:[%s16756_s11 + $0xa8] sm:$0xff] }
  0x5a   : > { %5080 = vmatprep.subr.bf16.mxu0 %v16435_v1  ;;  %v15401_v61 = vcombine.low %v5301_v51, %v5301_v51 }
  0x5c   : > { %825 = vmatmul.mubr.bf16.gmra.mxu0 %v16032_v54  ;;  %v16189_v54 = vld [vmem:[%s21753_s5 + $0x118] sm:$0xff]  }
  0x5d   : > { %15219 = vmatprep.mubr.msk.bf16.mxu0 %vm712_vm0, %v16034_v55  ;;  %5081 = vmatpush1.bf16.msra.mxu0 %v16057_v56  ;;  %v16190_v55 = vld [vmem:[%s21753_s5 + $0x150] sm:$0xff]   ;;  %v15402_v56 = vcombine.high %v5301_v51, %v5301_v51 }
  0x5e   : > { %5082 = vmatprep.subr.bf16.mxu0 %v16435_v1  ;;  %5052 = vmatmul.mubr.bf16.gmra.mxu1 %v16139_v28  ;;  %v16147_v28 = vld [vmem:[%s21753_s5 + $0xe0] sm:$0xff]  }
  0x5f   : > { %5059 = vmatprep.mubr.bf16.mxu1 %v16148_v29  ;;  %v16150_v29 = vld [vmem:[%s21753_s5 + $0xa0] sm:$0xff]  }
  0x61   : > { %5083 = vmatpush1.bf16.msra.mxu0 %v16070_v58  ;;  %v16077_v58 = vld [vmem:[%s16527_s27 + $0xc0] ss:$8 sps:$4 sm:$0xff]  }
  0x62   : > { %5094 = vmatprep.subr.bf16.mxu0 %v16435_v1 }
  0x64   : > { %833 = vmatmul.mubr.bf16.gmra.mxu0 %v16036_v0  ;;  %v16200_v0 = vld [vmem:[%s21753_s5 + $0x140] sm:$0xff]  }
  0x65   : > { %15220 = vmatprep.mubr.msk.bf16.mxu0 %vm712_vm0, %v16037_v3  ;;  %5095 = vmatpush2.bf16.msra.mxu0 %v4969_v4  ;;  %v16085_v3 = vld [vmem:[%s16527_s27 + $0xd0] ss:$8 sps:$4 sm:$0xff]   ;;  %v16089_v4 = vld [vmem:[%s16527_s27 + $0xe4] ss:$8 sps:$4 sm:$0xff]  }
  0x66   : > { %5096 = vmatprep.subr.bf16.mxu0 %v16435_v1  ;;  %5060 = vmatmul.mubr.bf16.gmra.mxu1 %v16151_v32  ;;  %v16143_v32 = vld [vmem:[%s16620_s30 + $0x6c] ss:$16 sps:$4 sm:$0xff]  }
  0x67   : > { %5903 = vmatprep.mubr.bf16.mxu1 %v16162_v33  ;;  %v16163_v33 = vld [vmem:[%s21753_s5 + $0x98] sm:$0xff]  }
  0x69   : > { %5097 = vmatpush2.bf16.msra.mxu0 %v16094_v7  ;;  %v16091_v7 = vld [vmem:[%s16527_s27 + $0xe0] ss:$8 sps:$4 sm:$0xff]  }
  0x6a   : > { %5098 = vmatprep.subr.bf16.mxu0 %v16435_v1  ;;  %v16153_v1 = vld [vmem:[%s21753_s5 + $0x8] sm:$0xff]  }
  0x6b   : > { %15672 = vmatpush3.bf16.msra.mxu1 %v16153_v1  ;;  %v16123_v1 = vld [vmem:[%s21753_s5 + $0xf0] sm:$0xff]  }
  0x6c   : > { %841 = vmatmul.mubr.bf16.gmra.mxu0 %v16040_v9  ;;  %15673 = vmatprep.subr.bf16.mxu1 %v16154_v20  ;;  %v16214_v9 = vld [vmem:[%s16756_s11 + $0x48] ss:$28 sps:$4 sm:$0xff]   ;;  %v16126_v20 = vld [vmem:[%s21753_s5 + $0xb0] sm:$0xff]  }
  0x6d   : > { %15221 = vmatprep.mubr.msk.bf16.mxu0 %vm712_vm0, %v16041_v11  ;;  %5099 = vmatpush2.bf16.msra.mxu0 %v16102_v13  ;;  %v449_v11 = vld [vmem:[%s16527_s27 + $0x100] sm:$0xff] }
  0x6e   : > { %15699 = vmatprep.subr.bf16.mxu0 %v16113_v14  ;;  %v15200_v13 = vcombine.high %v449_v11, %v449_v11  ;;  %v16220_v14 = vld [vmem:[%s16756_s11 + $0x80] ss:$28 sps:$4 sm:$0xff]   ;;  %v15199_v15 = vcombine.low %v449_v11, %v449_v11 }
  0x6f   : > { %15674 = vmatpush3.bf16.msra.mxu1 %v16157_v22  ;;  %v16135_v22 = vld [vmem:[%s21753_s5 + $0xe8] sm:$0xff]  }
  0x70   : > { %15739 = vmatprep.subr.bf16.mxu1 %v16164_v25  ;;  %v16122_v25 = vld [vmem:[%s16620_s30 + $0x28] ss:$16 sps:$4 sm:$0xff]  }
  0x72   : > { %5904 = vmatmul.mubr.bf16.vlgmr.msra.gmra.mxu1 %v16160_v36  ;;  %v16183_v36 = vld [vmem:[%s21753_s5 + $0xc8] sm:$0xff]  }
  0x73   : > { %15740 = vmatpush3.bf16.msra.mxu1 %v16165_v37  ;;  %5911 = vmatprep.mubr.bf16.mxu1 %v16172_v38  ;;  %v16146_v37 = vld [vmem:[%s16620_s30 + $0x68] ss:$16 sps:$4 sm:$0xff]   ;;  %v16155_v38 = vld [vmem:[%s16620_s30 + $0x8c] ss:$16 sps:$4 sm:$0xff]  }
  0x74   : > { %849 = vmatmul.mubr.bf16.gmra.mxu0 %v16043_v19  ;;  %15741 = vmatprep.subr.bf16.mxu1 %v16166_v39  ;;  %v16120_v19 = vld [vmem:[%s16620_s30 + $0x2c] ss:$16 sps:$4 sm:$0xff]  }
  0x75   : > { %15222 = vmatprep.mubr.msk.bf16.mxu0 %vm712_vm0, %v16045_v21  ;;  %v5303_v21 = vld [vmem:[%s16756_s11 + $0xb8] sm:$0xff]  ;;  %v16186_v39 = vld [vmem:[%s21753_s5 + $0x88] sm:$0xff]  }
  0x76   : > { %v15406_v23 = vcombine.high %v5303_v21, %v5303_v21  ;;  %v15405_v24 = vcombine.low %v5303_v21, %v5303_v21 }
  0x77   : > { %15742 = vmatpush3.bf16.msra.mxu1 %v16169_v42  ;;  %v16205_v42 = vld [vmem:[%s21753_s5 + $0x1a0] ss:$0 sps:$4 sm:$0xff]  }
  0x78   : > { %15743 = vmatprep.subr.bf16.mxu1 %v16176_v43  ;;  %v16158_v43 = vld [vmem:[%s16620_s30 + $0x88] ss:$16 sps:$4 sm:$0xff]  }
  0x7a   : > { %5912 = vmatmul.mubr.bf16.gmra.mxu1 %v16175_v44  ;;  %v16167_v44 = vld [vmem:[%s16620_s30 + $0xac] ss:$16 sps:$4 sm:$0xff]  }
  0x7b   : > { %15744 = vmatpush3.bf16.msra.mxu1 %v16177_v45  ;;  %5919 = vmatprep.mubr.bf16.mxu1 %v16184_v47  ;;  %v16170_v45 = vld [vmem:[%s16620_s30 + $0xa8] ss:$16 sps:$4 sm:$0xff]  }
  0x7c   : > { %857 = vmatmul.mubr.bf16.gmra.mxu0 %v16047_v26  ;;  %15745 = vmatprep.subr.bf16.mxu1 %v16178_v46  ;;  %v16131_v26 = vld [vmem:[%s16620_s30 + $0x4c] ss:$16 sps:$4 sm:$0xff]   ;;  %v16182_v47 = vld [vmem:[%s16620_s30 + $0xc8] ss:$16 sps:$4 sm:$0xff]  }
  0x7d   : > { %15223 = vmatprep.mubr.msk.bf16.mxu0 %vm712_vm0, %v16048_v27  ;;  %v16138_v27 = vld [vmem:[%s21753_s5 + $0xa8] sm:$0xff]  }
  0x7e   : > { %v16179_v46 = vld [vmem:[%s16620_s30 + $0xcc] ss:$16 sps:$4 sm:$0xff]  }
  0x7f   : > { %15746 = vmatpush3.bf16.msra.mxu1 %v16181_v48  ;;  %v16191_v48 = vld [vmem:[%s16620_s30 + $0xec] ss:$16 sps:$4 sm:$0xff]  }
  0x80   : > { %15747 = vmatprep.subr.bf16.mxu1 %v16188_v50  ;;  %v4577_v50 = vld [vmem:[%s16620_s30 + $0xf8] sm:$0xff] }
  0x82   : > { %5920 = vmatmul.mubr.bf16.gmra.mxu1 %v16187_v53  ;;  %v16930_v53 = vld [vmem:[%s21757_s9] ss:$0 sm:$0xff] }
  0x83   : > { %15748 = vmatpush3.bf16.msra.mxu1 %v16189_v54  ;;  %5927 = vmatprep.mubr.bf16.mxu1 %v15402_v56 }
  0x84   : > { %865 = vmatmul.mubr.bf16.gmra.mxu0 %v16051_v30  ;;  %15749 = vmatprep.subr.bf16.mxu1 %v16190_v55  ;;  %v16159_v30 = vld [vmem:[%s21753_s5 + $0xd8] sm:$0xff]  }
  0x85   : > { %15224 = vmatprep.mubr.msk.bf16.mxu0 %vm712_vm0, %v16052_v31  ;;  %v16134_v31 = vld [vmem:[%s16620_s30 + $0x48] ss:$16 sps:$4 sm:$0xff]  }
  0x87   : > { %15750 = vmatpush3.bf16.msra.mxu1 %v16193_v57 }
  0x88   : > { %15751 = vmatprep.subr.bf16.mxu1 %v16198_v59  ;;  %v16201_v59 = vld [vmem:[%s16756_s11 + $0x8] ss:$28 sps:$4 sm:$0xff]  }
  0x8a   : > { %5928 = vmatmul.mubr.bf16.gmra.mxu1 %v15401_v61 }
  0x8b   : > { %15752 = vmatpush3.bf16.msra.mxu1 %v16199_v62  ;;  %6031 = vmatprep.mubr.bf16.mxu1 %v16208_v63  ;;  %v16209_v62 = vld [vmem:[%s16756_s11 + $0x44] ss:$28 sps:$4 sm:$0xff]  }
  0x8c   : > { %873 = vmatmul.mubr.bf16.gmra.mxu0 %v16054_v34  ;;  %15753 = vmatprep.subr.bf16.mxu1 %v16200_v0  ;;  %v16171_v34 = vld [vmem:[%s21753_s5 + $0xd0] sm:$0xff]   ;;  %v5869_v0 = vsel %vm5867_vm4, %v16205_v42, 0 }
  0x8d   : > { %15225 = vmatprep.mubr.msk.bf16.mxu0 %vm712_vm0, %v16059_v35  ;;  %v16174_v35 = vld [vmem:[%s21753_s5 + $0x90] sm:$0xff]  }
  0x8f   : > { %15754 = vmatpush3.bf16.msra.mxu1 %v16204_v2  ;;  %v16211_v2 = vld [vmem:[%s21753_s5 + $0x198] sm:$0xff]  }
  0x92   : > { %6032 = vmatmul.mubr.bf16.vlgmr.msra.gmra.mxu1 %v16206_v5 }
  0x93   : > { %6039 = vmatprep.mubr.bf16.mxu1 %v16212_v6 }
  0x94   : > { %881 = vmatmul.mubr.bf16.gmra.mxu0 %v16062_v40  ;;  %v16194_v40 = vld [vmem:[%s21753_s5 + $0xc0] sm:$0xff]  }
  0x95   : > { %15226 = vmatprep.mubr.msk.bf16.mxu0 %vm712_vm0, %v16066_v41  ;;  %v16196_v41 = vld [vmem:[%s21753_s5 + $0x80] sm:$0xff]  }
  0x9a   : > { %6040 = vmatmul.mubr.bf16.gmra.mxu1 %v16214_v9 }
  0x9b   : > { %6047 = vmatprep.mubr.bf16.mxu1 %v16218_v10  ;;  %v16215_v10 = vld [vmem:[%s21753_s5 + $0x190] sm:$0xff]  }
  0x9c   : > { %889 = vmatmul.mubr.bf16.gmra.mxu0 %v16069_v49  ;;  %v4575_v49 = vld [vmem:[%s16620_s30 + $0xe8] sm:$0xff]  ;;  %s412_s30 = scalar_lea.vmem %s21758_s10, %s15165_s18 }
  0x9d   : > { %15227 = vmatprep.mubr.msk.bf16.mxu0 %vm712_vm0, %v16074_v52  ;;  %v15327_v51 = vcombine.low %v4575_v49, %v4577_v50  ;;  %v16203_v52 = vld [vmem:[%s16756_s11 + $0xc] ss:$28 sps:$4 sm:$0xff]  }
  0xa2   : > { %6048 = vmatmul.mubr.bf16.gmra.mxu1 %v16220_v14  ;;  %v1171_v14 = vlaneseq }
  0xa3   : > { %6055 = vmatprep.mubr.bf16.mxu1 %v15406_v23 }
  0xa4   : > { %897 = vmatmul.mubr.bf16.gmra.mxu0 %v16077_v58  ;;  %v16963_v23 = vshrl.u32 %v1171_v14, 7 }
  0xa5   : > { %15228 = vmatprep.mubr.msk.bf16.mxu0 %vm712_vm0, %v16082_v60 }
  0xaa   : > { %6056 = vmatmul.mubr.bf16.gmra.mxu1 %v15405_v24 }
  0xac   : > { %905 = vmatmul.mubr.bf16.gmra.mxu0 %v16085_v3 }
  0xad   : > { %15229 = vmatprep.mubr.msk.bf16.mxu0 %vm712_vm0, %v16089_v4 }
  0xb4   : > { %913 = vmatmul.mubr.bf16.gmra.mxu0 %v16091_v7  ;;  %v5286_v7 = vld [vmem:[%s16756_s11 + $0x40] sm:$0xff] }
  0xb5   : > { %15230 = vmatprep.mubr.msk.bf16.mxu0 %vm712_vm0, %v16096_v8  ;;  %v5290_v8 = vld [vmem:[%s16756_s11 + $0x5c] sm:$0xff] }
  0xbc   : > { %921 = vmatmul.mubr.bf16.gmra.mxu0 %v16098_v12  ;;  %v16436_v12 = vmov 1966171168  }
  0xbd   : > { %15231 = vmatprep.mubr.msk.bf16.mxu0 %vm712_vm0, %v15200_v13  ;;  %v1169_v13 = vunpack.c.l.s4 %v16436_v12 }
  0xc4   : > { %929 = vmatmul.mubr.bf16.gmra.mxu0 %v15199_v15 }
  0xc5   : > { %15356 = vmatprep.mubr.msk.bf16.mxu0 %vm4942_vm3, %v16112_v16  ;;  %v15389_v16 = vcombine.low %v5286_v7, %v5290_v8 }
  0xcc   : > { %5101 = vmatmul.mubr.bf16.vlgmr.msra.gmra.mxu0 %v16110_v17 }
  0xcd   : > { %15700 = vmatpush3.bf16.msra.mxu0 %v16116_v18  ;;  %15357 = vmatprep.mubr.msk.bf16.mxu0 %vm4942_vm3, %v16120_v19  ;;  %v16216_v19 = vld [vmem:[%s16756_s11 + $0x7c] ss:$28 sps:$4 sm:$0xff]  }
  0xce   : > { %15701 = vmatprep.subr.bf16.mxu0 %v16123_v1 }
  0xd1   : > { %15702 = vmatpush3.bf16.msra.mxu0 %v16126_v20  ;;  %v16221_v20 = vld [vmem:[%s21753_s5 + $0x188] sm:$0xff]  }
  0xd2   : > { %15703 = vmatprep.subr.bf16.mxu0 %v16135_v22  ;;  %v1170_v22 = vunpack.c.0.s8 %v1169_v13 }
  0xd4   : > { %5109 = vmatmul.mubr.bf16.gmra.mxu0 %v16122_v25 }
  0xd5   : > { %15358 = vmatprep.mubr.msk.bf16.mxu0 %vm4942_vm3, %v16131_v26  ;;  %15704 = vmatpush3.bf16.msra.mxu0 %v16138_v27  ;;  %v5294_v26 = vld [vmem:[%s16756_s11 + $0x78] sm:$0xff] }
  0xd6   : > { %15705 = vmatprep.subr.bf16.mxu0 %v16147_v28  ;;  %v5298_v27 = vld [vmem:[%s16756_s11 + $0x94] sm:$0xff] }
  0xd9   : > { %15706 = vmatpush3.bf16.msra.mxu0 %v16150_v29  ;;  %v16971_v29 = vld [vmem:[%s16756_s11 + $0xb0] sm:$0xff] }
  0xda   : > { %15707 = vmatprep.subr.bf16.mxu0 %v16159_v30  ;;  %v16226_v30 = vld [vmem:[%s21753_s5 + $0x180] sm:$0xff]  }
  0xdc   : > { %5117 = vmatmul.mubr.bf16.gmra.mxu0 %v16134_v31 }
  0xdd   : > { %15359 = vmatprep.mubr.msk.bf16.mxu0 %vm4942_vm3, %v16143_v32  ;;  %15708 = vmatpush3.bf16.msra.mxu0 %v16163_v33 }
  0xde   : > { %15709 = vmatprep.subr.bf16.mxu0 %v16171_v34  ;;  %v16978_v34 = vsub.s32 %v1170_v22, %v16963_v23 }
  0xe0   : > { %21819 = vst [vmem:[#allocation3_spill] sm:$0xff] %v16978_v34 }
  0xe1   : > { %15710 = vmatpush3.bf16.msra.mxu0 %v16174_v35 }
  0xe2   : > { %15711 = vmatprep.subr.bf16.mxu0 %v16183_v36  ;;  %v15396_v36 = vcombine.low %v5294_v26, %v5298_v27 }
  0xe4   : > { %5125 = vmatmul.mubr.bf16.gmra.mxu0 %v16146_v37 }
  0xe5   : > { %15360 = vmatprep.mubr.msk.bf16.mxu0 %vm4942_vm3, %v16155_v38  ;;  %15712 = vmatpush3.bf16.msra.mxu0 %v16186_v39 }
  0xe6   : > { %15713 = vmatprep.subr.bf16.mxu0 %v16194_v40  ;;  %v15404_v40 = vcombine.high %v16971_v29, %v16971_v29 }
  0xe9   : > { %15714 = vmatpush3.bf16.msra.mxu0 %v16196_v41 }
  0xea   : > { %15988 = vmatprep.subr.msk.bf16.mxu0 %vm5867_vm4, %v16205_v42 }
  0xec   : > { %5133 = vmatmul.mubr.bf16.gmra.mxu0 %v16158_v43 }
  0xed   : > { %15361 = vmatprep.mubr.msk.bf16.mxu0 %vm4942_vm3, %v16167_v44 }
  0xf4   : > { %5141 = vmatmul.mubr.bf16.gmra.mxu0 %v16170_v45 }
  0xf5   : > { %15362 = vmatprep.mubr.msk.bf16.mxu0 %vm4942_vm3, %v16179_v46 }
  0xfc   : > { %5149 = vmatmul.mubr.bf16.gmra.mxu0 %v16182_v47 }
  0xfd   : > { %15363 = vmatprep.mubr.msk.bf16.mxu0 %vm4942_vm3, %v16191_v48 }
 0x104   : > { %v802_v54 = vpop.f32.mrf.mxu0  ;;  %5157 = vmatmul.mubr.bf16.gmra.mxu0 %v15327_v51 }
 0x105   : > { %v16933_v55 = vadd.f32 %v16930_v53, %v802_v54  ;;  %5967 = vmatprep.mubr.bf16.mxu0 %v16203_v52 }
 0x106   : > { %v804_v56 = vpop.f32.mrf.mxu0 }
 0x107   : > { %v969_v57 = vmin.f32 %v16933_v55, 0.0  ;;  %vm936_vm5 = vcmp.gt.f32.partialorder %v16933_v55, 0.0 }
 0x108   : > { %v805_v58 = vpop.f32.mrf.mxu0 }
 0x109   : > { %v1002_v60 = vmul.f32 1.442695, %v969_v57  ;;  %v16938_v61 = vadd.f32 %v16930_v53, %v805_v58 }
 0x10a   : > { %v807_v63 = vpop.f32.mrf.mxu0 }
 0x10b   : > { %16231 = vpow2.f32 %v1002_v60  ;;  %v970_v3 = vmin.f32 %v16938_v61, 0.0  ;;  %vm937_vm6 = vcmp.gt.f32.partialorder %v16938_v61, 0.0 }
 0x10c   : > { %v810_v4 = vpop.f32.mrf.mxu0  ;;  %5968 = vmatmul.mubr.bf16.vlgmr.msra.gmra.mxu0 %v16201_v59 }
 0x10d   : > { %v1004_v5 = vmul.f32 1.442695, %v970_v3  ;;  %v16947_v6 = vadd.f32 %v16930_v53, %v810_v4  ;;  %15837 = vmatpush3.bf16.msra.mxu0 %v5869_v0  ;;  %5975 = vmatprep.mubr.bf16.mxu0 %v16209_v62 }
 0x10e   : > { %v812_v9 = vpop.f32.mrf.mxu0  ;;  %15838 = vmatprep.subr.bf16.mxu0 %v16211_v2 }
 0x10f   : > { %16233 = vpow2.f32 %v1004_v5  ;;  %v971_v11 = vmin.f32 %v16947_v6, 0.0  ;;  %vm938_vm7 = vcmp.gt.f32.partialorder %v16947_v6, 0.0 }
 0x110   : > { %v813_v15 = vpop.f32.mrf.mxu0 }
 0x111   : > { %v1006_v17 = vmul.f32 1.442695, %v971_v11  ;;  %v16956_v18 = vadd.f32 %v16930_v53, %v813_v15  ;;  %15839 = vmatpush3.bf16.msra.mxu0 %v16211_v2 }
 0x112   : > { %v815_v1 = vpop.f32.mrf.mxu0  ;;  %15840 = vmatprep.subr.bf16.mxu0 %v16215_v10 }
 0x113   : > { %16235 = vpow2.f32 %v1006_v17  ;;  %v972_v21 = vmin.f32 %v16956_v18, 0.0  ;;  %vm939_vm10 = vcmp.gt.f32.partialorder %v16956_v18, 0.0 }
 0x114   : > { %v818_v24 = vpop.f32.mrf.mxu0  ;;  %5976 = vmatmul.mubr.bf16.gmra.mxu0 %v15389_v16 }
 0x115   : > { %v16966_v25 = vadd.f32 %v16930_v53, %v818_v24  ;;  %15841 = vmatpush3.bf16.msra.mxu0 %v16215_v10  ;;  %5983 = vmatprep.mubr.bf16.mxu0 %v16216_v19  ;;  %v1008_v31 = vmul.f32 1.442695, %v972_v21 }
 0x116   : > { %v820_v28 = vpop.f32.mrf.mxu0  ;;  %15842 = vmatprep.subr.bf16.mxu0 %v16221_v20 }
 0x117   : > { %v973_v32 = vmin.f32 %v16966_v25, 0.0  ;;  %16237 = vpow2.f32 %v1008_v31  ;;  %vm940_vm11 = vcmp.gt.f32.partialorder %v16966_v25, 0.0 }
 0x118   : > { %v16232_v33 = vpop.eup %16231  ;;  %v821_v35 = vpop.f32.mrf.mxu0 }
 0x119   : > { %v15232_v37 = vadd.f32 -1.0, %v16232_v33  ;;  %v1010_v38 = vmul.f32 1.442695, %v973_v32  ;;  %v16981_v39 = vadd.f32 %v16930_v53, %v821_v35  ;;  %15843 = vmatpush3.bf16.msra.mxu0 %v16221_v20 }
 0x11a   : > { %v823_v41 = vpop.f32.mrf.mxu0  ;;  %15844 = vmatprep.subr.bf16.mxu0 %v16226_v30 }
 0x11b   : > { %v1101_v42 = vsel %vm936_vm5, %v16933_v55, %v15232_v37  ;;  %v974_v43 = vmin.f32 %v16981_v39, 0.0  ;;  %16239 = vpow2.f32 %v1010_v38  ;;  %v15403_v55 = vcombine.low %v16971_v29, %v16971_v29 }
 0x11c   : > { %v16234_v44 = vpop.eup %16233  ;;  %v1167_v45 = vcombine.high %v1101_v42, %v1101_v42  ;;  %v1174_v46 = vrot.slane %v1101_v42, %v16978_v34  ;;  %v826_v47 = vpop.f32.mrf.mxu0  ;;  %5984 = vmatmul.mubr.bf16.gmra.mxu0 %v15396_v36  ;;  %v16228_v42 = vld [vmem:[%s16756_s11 + $0x50] ss:$28 sps:$4 sm:$0xff]   ;;  %vm941_vm13 = vcmp.gt.f32.partialorder %v16981_v39, 0.0 }
 0x11d   : > { %v15233_v48 = vadd.f32 -1.0, %v16234_v44  ;;  %v1012_v49 = vmul.f32 1.442695, %v974_v43  ;;  %v16990_v50 = vadd.f32 %v16930_v53, %v826_v47  ;;  %5991 = vmatprep.mubr.bf16.mxu0 %v15404_v40  ;;  %15845 = vmatpush3.bf16.msra.mxu0 %v16226_v30  ;;  %v16229_v47 = vld [vmem:[%s16756_s11 + $0x88] ss:$28 sps:$4 sm:$0xff]  }
 0x11e   : > { %v1181_v51 = vrot.slane %v1167_v45, %v16978_v34  ;;  %v1182_v52 = vcombine.high %v1174_v46, %v1174_v46  ;;  %v828_v54 = vpop.f32.mrf.mxu0  ;;  %v1190_v60 = vrot.slane %v1174_v46, %v16978_v34 }
 0x11f   : > { %v1102_v56 = vsel %vm937_vm6, %v16938_v61, %v15233_v48  ;;  %v975_v57 = vmin.f32 %v16990_v50, 0.0  ;;  %16241 = vpow2.f32 %v1012_v49  ;;  %v16227_v61 = vld [vmem:[%s16756_s11 + $0x18] ss:$28 sps:$4 sm:$0xff]   ;;  %vm942_vm14 = vcmp.gt.f32.partialorder %v16990_v50, 0.0 }
 0x120   : > { %v16236_v58 = vpop.eup %16235  ;;  %v1183_v59 = vcombine.high %v1181_v51, %v1181_v51  ;;  %v1204_v62 = vrot.slane %v1182_v52, %v16978_v34  ;;  %v1216_v63 = vcombine.high %v1102_v56, %v1102_v56  ;;  %v17001_v0 = vpop.f32.mrf.mxu0  ;;  %v1197_v2 = vrot.slane %v1181_v51, %v16978_v34 }
 0x121   : > { %v1223_v3 = vrot.slane %v1102_v56, %v16978_v34  ;;  %v15234_v4 = vadd.f32 -1.0, %v16236_v58  ;;  %v17012_v14 = vmul.f32 1.442695, %v975_v57 }
 0x122   : > { %v1211_v5 = vrot.slane %v1183_v59, %v16978_v34  ;;  %v2784_v7 = vcombine.low %v1190_v60, %v1204_v62  ;;  %v15265_v8 = vcombine.high %v1190_v60, %v1204_v62  ;;  %v1230_v9 = vrot.slane %v1216_v63, %v16978_v34  ;;  %v831_v10 = vpop.f32.mrf.mxu0 }
 0x123   : > { %v1231_v11 = vcombine.high %v1223_v3, %v1223_v3  ;;  %v1239_v12 = vrot.slane %v1223_v3, %v16978_v34  ;;  %v1103_v13 = vsel %vm938_vm7, %v16947_v6, %v15234_v4  ;;  %16243 = vpow2.f32 %v17012_v14 }
 0x124   : > { %v2786_v15 = vcombine.low %v1197_v2, %v1211_v5  ;;  %v15266_v16 = vcombine.high %v1197_v2, %v1211_v5  ;;  %v2794_v17 = vrot.slane %v2784_v7, %v16978_v34  ;;  %v2801_v19 = vrot.slane %v15265_v8, %v16978_v34  ;;  %v17017_v1 = vpop.f32.mrf.mxu0  ;;  %5992 = vmatmul.mubr.bf16.gmra.mxu0 %v15403_v55  ;;  %v16238_v35 = vpop.eup %16237 }
 0x125   : > { %v1232_v20 = vcombine.high %v1230_v9, %v1230_v9  ;;  %v1246_v21 = vrot.slane %v1230_v9, %v16978_v34  ;;  %v1253_v22 = vrot.slane %v1231_v11, %v16978_v34  ;;  %v1265_v24 = vcombine.high %v1103_v13, %v1103_v13  ;;  %15846 = vmatprep.mubr.msk.bf16.mxu0 %vm5854_vm8, %v16227_v61 }
 0x126   : > { %v2808_v6 = vrot.slane %v2786_v15, %v16978_v34  ;;  %v2815_v26 = vrot.slane %v15266_v16, %v16978_v34  ;;  %v2816_v27 = vcombine.low %v2794_v17, %v2801_v19  ;;  %v1272_v28 = vrot.slane %v1103_v13, %v16978_v34  ;;  %v836_v29 = vpop.f32.mrf.mxu0 }
 0x127   : > { %v1260_v30 = vrot.slane %v1232_v20, %v16978_v34  ;;  %v2833_v31 = vcombine.low %v1239_v12, %v1253_v22  ;;  %v15267_v32 = vcombine.high %v1239_v12, %v1253_v22  ;;  %v1279_v33 = vrot.slane %v1265_v24, %v16978_v34 }
 0x128   : > { %v2817_v36 = vcombine.low %v2808_v6, %v2815_v26  ;;  %v2824_v37 = vrot.slane %v2816_v27, %v16978_v34  ;;  %v1280_v38 = vcombine.high %v1272_v28, %v1272_v28  ;;  %v1288_v40 = vrot.slane %v1272_v28, %v16978_v34  ;;  %v17030_v41 = vpop.f32.mrf.mxu0  ;;  %v16240_v48 = vpop.eup %16239  ;;  %v16230_v6 = vld [vmem:[%s16756_s11 + $0xc0] ss:$0 sps:$4 sm:$0xff]  }
 0x129   : > { %v2835_v43 = vcombine.low %v1246_v21, %v1260_v30  ;;  %v15268_v44 = vcombine.high %v1246_v21, %v1260_v30  ;;  %v2843_v45 = vrot.slane %v2833_v31, %v16978_v34  ;;  %v2850_v46 = vrot.slane %v15267_v32, %v16978_v34 }
 0x12a   : > { %v2831_v49 = vrot.slane %v2817_v36, %v16978_v34  ;;  %v1281_v51 = vcombine.high %v1279_v33, %v1279_v33  ;;  %v1295_v52 = vrot.slane %v1279_v33, %v16978_v34  ;;  %v1302_v54 = vrot.slane %v1280_v38, %v16978_v34  ;;  %v839_v55 = vpop.f32.mrf.mxu0 }
 0x12b   : > { %v2857_v56 = vrot.slane %v2835_v43, %v16978_v34  ;;  %v2864_v57 = vrot.slane %v15268_v44, %v16978_v34  ;;  %v2865_v58 = vcombine.low %v2843_v45, %v2850_v46  ;;  %v15235_v59 = vadd.f32 -1.0, %v16238_v35 }
 0x12c   : > { %v2832_v60 = vcombine.low %v2824_v37, %v2831_v49  ;;  %v1309_v62 = vrot.slane %v1281_v51, %v16978_v34  ;;  %v2882_v63 = vcombine.low %v1288_v40, %v1302_v54  ;;  %v15269_v2 = vcombine.high %v1288_v40, %v1302_v54  ;;  %v17042_v3 = vpop.f32.mrf.mxu0  ;;  %15847 = vmatmul.mubr.msk.bf16.vlgmr.msra.gmra.mxu0 %vm5854_vm8, %v16228_v42  ;;  %v16242_v8 = vpop.eup %16241 }
 0x12d   : > { %v2866_v4 = vcombine.low %v2857_v56, %v2864_v57  ;;  %v2873_v61 = vrot.slane %v2865_v58, %v16978_v34  ;;  %v1104_v5 = vsel %vm939_vm10, %v16956_v18, %v15235_v59  ;;  %v15236_v7 = vadd.f32 -1.0, %v16240_v48  ;;  %15850 = vmatprep.mubr.msk.bf16.mxu0 %vm5854_vm8, %v16229_v47 }
 0x12e   : > { %4505 = vst.msk [vmem:[#allocation2] sm:$0xff] %vm4504_vm9, %v2832_v60  ;;  %v2884_v9 = vcombine.low %v1295_v52, %v1309_v62  ;;  %v15270_v10 = vcombine.high %v1295_v52, %v1309_v62  ;;  %v2892_v11 = vrot.slane %v2882_v63, %v16978_v34  ;;  %v2899_v12 = vrot.slane %v15269_v2, %v16978_v34  ;;  %v844_v13 = vpop.f32.mrf.mxu0  ;;  %v17094_v2 = vld [vmem:[%s21754_s6] sm:$0xff] }
 0x12f   : > { %v2880_v15 = vrot.slane %v2866_v4, %v16978_v34  ;;  %v1314_v16 = vcombine.high %v1104_v5, %v1104_v5  ;;  %v1321_v17 = vrot.slane %v1104_v5, %v16978_v34  ;;  %v1105_v18 = vsel %vm940_vm11, %v16966_v25, %v15236_v7 }
 0x130   : > { %v2906_v19 = vrot.slane %v2884_v9, %v16978_v34  ;;  %v2913_v20 = vrot.slane %v15270_v10, %v16978_v34  ;;  %v2914_v21 = vcombine.low %v2892_v11, %v2899_v12  ;;  %v1363_v22 = vcombine.high %v1105_v18, %v1105_v18  ;;  %v17060_v24 = vpop.f32.mrf.mxu0 }
 0x131   : > { %v2881_v26 = vcombine.low %v2873_v61, %v2880_v15  ;;  %v1328_v27 = vrot.slane %v1314_v16, %v16978_v34  ;;  %v1329_v28 = vcombine.high %v1321_v17, %v1321_v17  ;;  %v1370_v30 = vrot.slane %v1105_v18, %v16978_v34 }
 0x132   : > { %v2915_v29 = vcombine.low %v2906_v19, %v2913_v20  ;;  %v847_v31 = vpop.f32.mrf.mxu0  ;;  %v2922_v25 = vrot.slane %v2914_v21, %v16978_v34  ;;  %v1337_v33 = vrot.slane %v1321_v17, %v16978_v34  ;;  %v1377_v37 = vrot.slane %v1363_v22, %v16978_v34 }
 0x133   : > { %4506 = vst.msk [vmem:[#allocation2 + $0x8] sm:$0xff] %vm4504_vm9, %v2881_v26  ;;  %v1330_v32 = vcombine.high %v1328_v27, %v1328_v27  ;;  %v1351_v35 = vrot.slane %v1329_v28, %v16978_v34  ;;  %v1378_v38 = vcombine.high %v1370_v30, %v1370_v30  ;;  %v1386_v40 = vrot.slane %v1370_v30, %v16978_v34 }
 0x134   : > { %v2929_v36 = vrot.slane %v2915_v29, %v16978_v34  ;;  %v17073_v42 = vpop.f32.mrf.mxu0  ;;  %15851 = vmatmul.mubr.msk.bf16.gmra.mxu0 %vm5854_vm8, %v16230_v6  ;;  %v1344_v14 = vrot.slane %v1328_v27, %v16978_v34  ;;  %v17082_v55 = vsub.s32 0, %v16963_v23  ;;  %v1379_v56 = vcombine.high %v1377_v37, %v1377_v37  ;;  %v16244_v6 = vpop.eup %16243 }
 0x135   : > { %v1358_v43 = vrot.slane %v1330_v32, %v16978_v34  ;;  %v2931_v44 = vcombine.low %v1337_v33, %v1351_v35  ;;  %v15271_v45 = vcombine.high %v1337_v33, %v1351_v35  ;;  %v1400_v47 = vrot.slane %v1378_v38, %v16978_v34 }
 0x136   : > { %v2930_v46 = vcombine.low %v2922_v25, %v2929_v36  ;;  %v852_v48 = vpop.f32.mrf.mxu0  ;;  %v2986_v57 = vrot.slane %v1386_v40, %v16978_v34  ;;  %v15237_v58 = vadd.f32 -1.0, %v16242_v8  ;;  %v1393_v63 = vrot.slane %v1377_v37, %v16978_v34 }
 0x137   : > { %v2933_v49 = vcombine.low %v1344_v14, %v1358_v43  ;;  %v15272_v51 = vcombine.high %v1344_v14, %v1358_v43  ;;  %v2941_v52 = vrot.slane %v2931_v44, %v16978_v34  ;;  %v2948_v54 = vrot.slane %v15271_v45, %v16978_v34 }
 0x138   : > { %4507 = vst.msk [vmem:[#allocation2 + $0x10] sm:$0xff] %vm4504_vm9, %v2930_v46  ;;  %v17086_v59 = vpop.f32.mrf.mxu0  ;;  %v17097_v4 = vsub.s32 1, %v16963_v23  ;;  %v1410_v5 = vcombine.high %v1400_v47, %v1400_v47  ;;  %v2993_v7 = vrot.slane %v2986_v57, %v16978_v34  ;;  %v1408_v9 = vcombine.high %v1386_v40, %v1386_v40 }
 0x139   : > { %v2955_v60 = vrot.slane %v2933_v49, %v16978_v34  ;;  %v2962_v62 = vrot.slane %v15272_v51, %v16978_v34  ;;  %v2963_v61 = vcombine.low %v2941_v52, %v2948_v54  ;;  %v1407_v11 = vrot.slane %v1379_v56, %v16978_v34 }
 0x13a   : > { %v855_v8 = vpop.f32.mrf.mxu0  ;;  %4510 = vst.msk [vmem:[#allocation2 + $0x20] sm:$0x1] %vm4509_vm12, %v2993_v7  ;;  %v1106_v12 = vsel %vm941_vm13, %v16981_v39, %v15237_v58  ;;  %v17108_v15 = vrot.slane %v17094_v2, %v17082_v55  ;;  %v6924_v16 = vld [vmem:[#allocation2 + $0x8] sm:$0xff]  ;;  %v1409_v17 = vcombine.high %v1393_v63, %v1393_v63  ;;  %v17112_v18 = vrot.slane %v17094_v2, %v17097_v4 }
 0x13b   : > { %v2964_v10 = vcombine.low %v2955_v60, %v2962_v62  ;;  %v2971_v19 = vrot.slane %v2963_v61, %v16978_v34  ;;  %v2995_v21 = vcombine.low %v1410_v5, %v1393_v63  ;;  %v2994_v26 = vcombine.low %v1400_v47, %v1408_v9 }
 0x13c   : > { %v17104_v13 = vpop.f32.mrf.mxu0  ;;  %21820 = vst [vmem:[#allocation4_spill] sm:$0xff] %v17108_v15  ;;  %21821 = vst [vmem:[#allocation5_spill] sm:$0xff] %v17112_v18  ;;  %v1412_v27 = vcombine.high %v1106_v12, %v1106_v12  ;;  %v1419_v28 = vrot.slane %v1106_v12, %v16978_v34  ;;  %v6968_v29 = vmul.f32 %v17108_v15, %v6924_v16  ;;  %v15238_v14 = vadd.f32 -1.0, %v16244_v6 }
 0x13d   : > { %v2978_v20 = vrot.slane %v2964_v10, %v16978_v34  ;;  %v1411_v25 = vcombine.high %v1407_v11, %v1407_v11  ;;  %v2996_v33 = vcombine.low %v1407_v11, %v1409_v17  ;;  %v3011_v38 = vrot.slane %v2995_v21, %v16978_v34 }
 0x13e   : > { %v860_v22 = vpop.f32.mrf.mxu0  ;;  %v1426_v35 = vrot.slane %v1412_v27, %v16978_v34  ;;  %v1427_v36 = vcombine.high %v1419_v28, %v1419_v28  ;;  %v1435_v40 = vrot.slane %v1419_v28, %v16978_v34  ;;  %v3004_v46 = vrot.slane %v2994_v26, %v16978_v34 }
 0x13f   : > { %v7048_v39 = vld [vmem:[#allocation2 + $0x9] sm:$0xff]  ;;  %v2979_v31 = vcombine.low %v2971_v19, %v2978_v20  ;;  %v1107_v56 = vsel %vm942_vm14, %v16990_v50, %v15238_v14  ;;  %v3018_v60 = vrot.slane %v2996_v33, %v16978_v34  ;;  %v17140_v8 = vadd.f32 %v16930_v53, %v17001_v0 }
 0x140   : > { %v7092_v30 = vmul.f32 %v17112_v18, %v7048_v39  ;;  %v17119_v32 = vpop.f32.mrf.mxu0  ;;  %v1428_v44 = vcombine.high %v1426_v35, %v1426_v35  ;;  %v1442_v45 = vrot.slane %v1426_v35, %v16978_v34  ;;  %v1449_v47 = vrot.slane %v1427_v36, %v16978_v34 }
 0x141   : > { %4508 = vst.msk [vmem:[#allocation2 + $0x18] sm:$0xff] %vm4504_vm9, %v2979_v31  ;;  %v1457_v48 = vcombine.high %v1435_v40, %v1435_v40  ;;  %v2997_v49 = vcombine.low %v1411_v25, %v1435_v40  ;;  %v3026_v57 = vcombine.low %v3004_v46, %v3011_v38  ;;  %v1468_v7 = vrot.slane %v1107_v56, %v16978_v34 }
 0x142   : > { %v17122_v37 = vadd.f32 %v7092_v30, %v6968_v29  ;;  %v863_v43 = vpop.f32.mrf.mxu0  ;;  %v1456_v52 = vrot.slane %v1428_v44, %v16978_v34  ;;  %v1458_v54 = vcombine.high %v1442_v45, %v1442_v45  ;;  %v1459_v58 = vcombine.high %v1449_v47, %v1449_v47 }
 0x143   : > { %v3025_v62 = vrot.slane %v2997_v49, %v16978_v34  ;;  %v3043_v61 = vcombine.low %v1449_v47, %v1457_v48  ;;  %v1484_v12 = vrot.slane %v1468_v7, %v16978_v34  ;;  %v3034_v16 = vrot.slane %v3026_v57, %v16978_v34 }
 0x144   : > { %v17131_v51 = vpop.f32.mrf.mxu0  ;;  %v1460_v5 = vcombine.high %v1456_v52, %v1456_v52  ;;  %v3044_v10 = vcombine.low %v1459_v58, %v1442_v45  ;;  %v3045_v50 = vcombine.low %v1456_v52, %v1458_v54  ;;  %v1476_v20 = vcombine.high %v1468_v7, %v1468_v7 }
 0x145   : > { %v3027_v9 = vcombine.low %v3018_v60, %v3025_v62  ;;  %v3053_v22 = vrot.slane %v3043_v61, %v16978_v34  ;;  %v976_v0 = vmin.f32 %v17140_v8, 0.0  ;;  %v1461_v26 = vcombine.high %v1107_v56, %v1107_v56 }
 0x146   : > { %v868_v63 = vpop.f32.mrf.mxu0  ;;  %v3060_v19 = vrot.slane %v3044_v10, %v16978_v34  ;;  %v3046_v6 = vcombine.low %v1460_v5, %v1484_v12  ;;  %v3067_v29 = vrot.slane %v3045_v50, %v16978_v34  ;;  %v1498_v25 = vrot.slane %v1476_v20, %v16978_v34 }
 0x147   : > { %v3041_v17 = vrot.slane %v3027_v9, %v16978_v34  ;;  %v1016_v31 = vmul.f32 1.442695, %v976_v0  ;;  %v17158_v33 = vadd.f32 %v16930_v53, %v17017_v1  ;;  %v1475_v38 = vrot.slane %v1461_v26, %v16978_v34 }
 0x148   : > { %v17142_v11 = vpop.f32.mrf.mxu0  ;;  %v3075_v28 = vcombine.low %v3053_v22, %v3060_v19  ;;  %v3074_v30 = vrot.slane %v3046_v6, %v16978_v34  ;;  %v17164_v14 = vadd.f32 %v16930_v53, %v17030_v41  ;;  %v17172_v1 = vadd.f32 %v16930_v53, %v17042_v3 }
 0x149   : > { %v3042_v39 = vcombine.low %v3034_v16, %v3041_v17  ;;  %16245 = vpow2.f32 %v1016_v31  ;;  %v977_v40 = vmin.f32 %v17158_v33, 0.0  ;;  %v1508_v46 = vcombine.high %v1498_v25, %v1498_v25 }
 0x14a   : > { %v871_v21 = vpop.f32.mrf.mxu0  ;;  %v3076_v36 = vcombine.low %v3067_v29, %v3074_v30  ;;  %v3083_v44 = vrot.slane %v3075_v28, %v16978_v34  ;;  %v978_v48 = vmin.f32 %v17164_v14, 0.0  ;;  %v17177_v49 = vadd.f32 %v16930_v53, %v17060_v24 }
 0x14b   : > { %4511 = vst.msk [vmem:[#allocation2 + $0x38] sm:$0xff] %vm4504_vm9, %v3042_v39  ;;  %v1018_v47 = vmul.f32 1.442695, %v977_v40  ;;  %v979_v54 = vmin.f32 %v17172_v1, 0.0  ;;  %v17182_v56 = vadd.f32 %v16930_v53, %v17073_v42  ;;  %v1491_v57 = vrot.slane %v1475_v38, %v16978_v34 }
 0x14c   : > { %v17150_v27 = vpop.f32.mrf.mxu0  ;;  %v3090_v45 = vrot.slane %v3076_v36, %v16978_v34  ;;  %v1506_v3 = vcombine.high %v1484_v12, %v1484_v12  ;;  %v1020_v58 = vmul.f32 1.442695, %v978_v48  ;;  %v1477_v62 = vcombine.high %v1475_v38, %v1475_v38 }
 0x14d   : > { %16247 = vpow2.f32 %v1018_v47  ;;  %v1022_v24 = vmul.f32 1.442695, %v979_v54  ;;  %v3093_v63 = vcombine.low %v1508_v46, %v1491_v57  ;;  %v980_v61 = vmin.f32 %v17177_v49, 0.0 }
 0x14e   : > { %v876_v35 = vpop.f32.mrf.mxu0  ;;  %v3091_v52 = vcombine.low %v3083_v44, %v3090_v45  ;;  %16249 = vpow2.f32 %v1020_v58  ;;  %v17191_v5 = vadd.f32 %v16930_v53, %v17086_v59  ;;  %v981_v7 = vmin.f32 %v17182_v56, 0.0 }
 0x14f   : > { %v17196_v9 = vadd.f32 %v16930_v53, %v17104_v13  ;;  %v17200_v10 = vadd.f32 %v16930_v53, %v17119_v32  ;;  %v3092_v50 = vcombine.low %v1498_v25, %v1506_v3  ;;  %16251 = vpow2.f32 %v1022_v24 }
 0x150   : > { %v17166_v43 = vpop.f32.mrf.mxu0  ;;  %4512 = vst.msk [vmem:[#allocation2 + $0x40] sm:$0xff] %vm4504_vm9, %v3091_v52  ;;  %v982_v12 = vmin.f32 %v17191_v5, 0.0  ;;  %v1505_v59 = vrot.slane %v1477_v62, %v16978_v34  ;;  %v1507_v17 = vcombine.high %v1491_v57, %v1491_v57  ;;  %v17209_v20 = vadd.f32 %v16930_v53, %v17131_v51 }
 0x151   : > { %v983_v19 = vmin.f32 %v17196_v9, 0.0  ;;  %v3109_v13 = vrot.slane %v3093_v63, %v16978_v34  ;;  %v1024_v21 = vmul.f32 1.442695, %v980_v61  ;;  %v1026_v22 = vmul.f32 1.442695, %v981_v7 }
 0x152   : > { %v879_v41 = vpop.f32.mrf.mxu0  ;;  %v984_v6 = vmin.f32 %v17200_v10, 0.0  ;;  %v17214_v39 = vsub.s32 2, %v16963_v23  ;;  %v3102_v26 = vrot.slane %v3092_v50, %v16978_v34  ;;  %v1028_v28 = vmul.f32 1.442695, %v982_v12 }
 0x153   : > { %v3094_v30 = vcombine.low %v1505_v59, %v1507_v17  ;;  %v1030_v51 = vmul.f32 1.442695, %v983_v19  ;;  %v985_v25 = vmin.f32 %v17209_v20, 0.0  ;;  %v17221_v35 = vsub.s32 3, %v16963_v23 }
 0x154   : > { %v17185_v60 = vpop.f32.mrf.mxu0  ;;  %v17223_v36 = vcombine.low %v3102_v26, %v3109_v13  ;;  %vm943_vm15 = vcmp.gt.f32.partialorder %v17140_v8, 0.0  ;;  %16253 = vpow2.f32 %v1024_v21  ;;  %v1032_v44 = vmul.f32 1.442695, %v984_v6 }
 0x155   : > { %16255 = vpow2.f32 %v1026_v22  ;;  %v17229_v45 = vadd.f32 %v16930_v53, %v17142_v11  ;;  %v1509_v46 = vcombine.high %v1505_v59, %v1505_v59  ;;  %v3116_v54 = vrot.slane %v3094_v30, %v16978_v34 }
 0x156   : > { %v884_v42 = vpop.f32.mrf.mxu0  ;;  %v16246_v0 = vpop.eup %16245  ;;  %16257 = vpow2.f32 %v1028_v28  ;;  %vm944_vm0 = vcmp.gt.f32.partialorder %v17158_v33, 0.0  ;;  %v3132_v24 = vrot.slane %v17223_v36, %v16978_v34  ;;  %vm945_vm1 = vcmp.gt.f32.partialorder %v17164_v14, 0.0 }
 0x157   : > { %v15239_v31 = vadd.f32 -1.0, %v16246_v0  ;;  %16259 = vpow2.f32 %v1030_v51  ;;  %v986_v63 = vmin.f32 %v17229_v45, 0.0  ;;  %vm946_vm2 = vcmp.gt.f32.partialorder %v17172_v1, 0.0 }
 0x158   : > { %v17203_v16 = vpop.f32.mrf.mxu0  ;;  %16261 = vpow2.f32 %v1032_v44  ;;  %vm947_vm3 = vcmp.gt.f32.partialorder %v17177_v49, 0.0  ;;  %vm948_vm4 = vcmp.gt.f32.partialorder %v17182_v56, 0.0  ;;  %vm949_vm5 = vcmp.gt.f32.partialorder %v17191_v5, 0.0 }
 0x159   : > { %v1108_v40 = vsel %vm943_vm15, %v17140_v8, %v15239_v31  ;;  %v1034_v8 = vmul.f32 1.442695, %v985_v25  ;;  %vm950_vm6 = vcmp.gt.f32.partialorder %v17196_v9, 0.0  ;;  %vm951_vm7 = vcmp.gt.f32.partialorder %v17200_v10, 0.0 }
 0x15a   : > { %v887_v32 = vpop.f32.mrf.mxu0  ;;  %v1510_v47 = vcombine.high %v1108_v40, %v1108_v40  ;;  %v1517_v48 = vrot.slane %v1108_v40, %v16978_v34  ;;  %v16248_v52 = vpop.eup %16247  ;;  %vm952_vm8 = vcmp.gt.f32.partialorder %v17209_v20, 0.0  ;;  %vm953_vm10 = vcmp.gt.f32.partialorder %v17229_v45, 0.0 }
 0x15b   : > { %v15240_v11 = vadd.f32 -1.0, %v16248_v52  ;;  %v16250_v62 = vpop.eup %16249  ;;  %16263 = vpow2.f32 %v1034_v8  ;;  %vm16438_vm11 = vmmov 0  }
 0x15c   : > { %v17217_v29 = vpop.f32.mrf.mxu0  ;;  %v1524_v57 = vrot.slane %v1510_v47, %v16978_v34  ;;  %v1525_v3 = vcombine.high %v1517_v48, %v1517_v48  ;;  %v1533_v53 = vrot.slane %v1517_v48, %v16978_v34  ;;  %v16252_v59 = vpop.eup %16251  ;;  %v15241_v13 = vadd.f32 -1.0, %v16250_v62 }
 0x15d   : > { %v1109_v19 = vsel %vm944_vm0, %v17158_v33, %v15240_v11  ;;  %v15242_v36 = vadd.f32 -1.0, %v16252_v59 }
 0x15e   : > { %v892_v38 = vpop.f32.mrf.mxu0  ;;  %v1526_v61 = vcombine.high %v1524_v57, %v1524_v57  ;;  %v1540_v42 = vrot.slane %v1524_v57, %v16978_v34  ;;  %v1547_v7 = vrot.slane %v1525_v3, %v16978_v34  ;;  %v1555_v50 = vcombine.high %v1533_v53, %v1533_v53 }
 0x15f   : > { %v3095_v17 = vcombine.low %v1509_v46, %v1533_v53  ;;  %v1559_v28 = vcombine.high %v1109_v19, %v1109_v19  ;;  %v1566_v30 = vrot.slane %v1109_v19, %v16978_v34  ;;  %v1110_v31 = vsel %vm945_vm1, %v17164_v14, %v15241_v13 }
 0x160   : > { %v17232_v41 = vpop.f32.mrf.mxu0  ;;  %v1554_v21 = vrot.slane %v1526_v61, %v16978_v34  ;;  %v1556_v32 = vcombine.high %v1540_v42, %v1540_v42  ;;  %v1557_v22 = vcombine.high %v1547_v7, %v1547_v7  ;;  %v3141_v6 = vcombine.low %v1547_v7, %v1555_v50 }
 0x161   : > { %v3123_v26 = vrot.slane %v3095_v17, %v16978_v34  ;;  %v1573_v46 = vrot.slane %v1559_v28, %v16978_v34  ;;  %v1574_v47 = vcombine.high %v1566_v30, %v1566_v30  ;;  %v1582_v52 = vrot.slane %v1566_v30, %v16978_v34  ;;  %v16254_v3 = vpop.eup %16253 }
 0x162   : > { %v895_v58 = vpop.f32.mrf.mxu0  ;;  %v3142_v51 = vcombine.low %v1557_v22, %v1540_v42  ;;  %v3143_v25 = vcombine.low %v1554_v21, %v1556_v32  ;;  %v1558_v33 = vcombine.high %v1554_v21, %v1554_v21  ;;  %v3151_v44 = vrot.slane %v3141_v6, %v16978_v34  ;;  %v17266_v62 = vpop.eup %16255 }
 0x163   : > { %v3125_v40 = vcombine.low %v3116_v54, %v3123_v26  ;;  %v1608_v8 = vcombine.high %v1110_v31, %v1110_v31  ;;  %v1615_v14 = vrot.slane %v1110_v31, %v16978_v34  ;;  %v1575_v11 = vcombine.high %v1573_v46, %v1573_v46  ;;  %v17271_v17 = vpop.eup %16257 }
 0x164   : > { %v17244_v12 = vpop.f32.mrf.mxu0  ;;  %v3158_v48 = vrot.slane %v3142_v51, %v16978_v34  ;;  %v1589_v58 = vrot.slane %v1573_v46, %v16978_v34  ;;  %v1596_v54 = vrot.slane %v1574_v47, %v16978_v34  ;;  %v3144_v42 = vcombine.low %v1558_v33, %v1582_v52  ;;  %v17276_v22 = vpop.eup %16259 }
 0x165   : > { %v3139_v53 = vrot.slane %v3125_v40, %v16978_v34  ;;  %v1622_v7 = vrot.slane %v1608_v8, %v16978_v34  ;;  %v1623_v50 = vcombine.high %v1615_v14, %v1615_v14  ;;  %v1603_v13 = vrot.slane %v1575_v11, %v16978_v34  ;;  %v17284_v40 = vpop.eup %16261 }
 0x166   : > { %v900_v0 = vpop.f32.mrf.mxu0  ;;  %v3173_v61 = vcombine.low %v3151_v44, %v3158_v48  ;;  %v3196_v21 = vrot.slane %v1596_v54, %v16978_v34  ;;  %v15273_v32 = vcombine.high %v1582_v52, %v1596_v54  ;;  %v3172_v26 = vrot.slane %v3144_v42, %v16978_v34 }
 0x167   : > { %v3140_v19 = vcombine.low %v3132_v24, %v3139_v53  ;;  %v3165_v0 = vrot.slane %v3143_v25, %v16978_v34  ;;  %v1624_v28 = vcombine.high %v1622_v7, %v1622_v7  ;;  %v3205_v31 = vcombine.low %v1589_v58, %v1603_v13 }
 0x168   : > { %v17256_v38 = vpop.f32.mrf.mxu0  ;;  %v3181_v6 = vrot.slane %v3173_v61, %v16978_v34  ;;  %v3203_v24 = vrot.slane %v3196_v21, %v16978_v34  ;;  %v15274_v51 = vcombine.high %v1589_v58, %v1603_v13  ;;  %v1631_v33 = vrot.slane %v1615_v14, %v16978_v34  ;;  %v17298_v53 = vpop.eup %16263 }
 0x169   : > { %4513 = vst.msk [vmem:[#allocation2 + $0x48] sm:$0xff] %vm4504_vm9, %v3140_v19  ;;  %v3174_v44 = vcombine.low %v3165_v0, %v3172_v26  ;;  %v1638_v46 = vrot.slane %v1622_v7, %v16978_v34  ;;  %v1645_v47 = vrot.slane %v1623_v50, %v16978_v34  ;;  %v1652_v25 = vrot.slane %v1624_v28, %v16978_v34 }
 0x16a   : > { %v903_v57 = vpop.f32.mrf.mxu0  ;;  %v3214_v52 = vrot.slane %v15273_v32, %v16978_v34  ;;  %v3221_v8 = vrot.slane %v3205_v31, %v16978_v34  ;;  %4515 = vst.msk [vmem:[#allocation2 + $0x58] sm:$0x1] %vm4509_vm12, %v3203_v24  ;;  %v1111_v14 = vsel %vm946_vm2, %v17172_v1, %v15242_v36  ;;  %v3228_v7 = vrot.slane %v15274_v51, %v16978_v34 }
 0x16b   : > { %v15243_v57 = vadd.f32 -1.0, %v16254_v3  ;;  %v3188_v11 = vrot.slane %v3174_v44, %v16978_v34  ;;  %v3207_v58 = vcombine.low %v1631_v33, %v1645_v47  ;;  %v15275_v54 = vcombine.high %v1631_v33, %v1645_v47 }
 0x16c   : > { %v17269_v59 = vpop.f32.mrf.mxu0  ;;  %v3254_v61 = vcombine.low %v1638_v46, %v1652_v25  ;;  %v3236_v50 = vcombine.low %v3214_v52, %v3221_v8  ;;  %v1657_v19 = vcombine.high %v1111_v14, %v1111_v14  ;;  %v1664_v13 = vrot.slane %v1111_v14, %v16978_v34 }
 0x16d   : > { %v3189_v21 = vcombine.low %v3181_v6, %v3188_v11  ;;  %v3235_v1 = vrot.slane %v3207_v58, %v16978_v34  ;;  %v3263_v36 = vrot.slane %v15275_v54, %v16978_v34  ;;  %v15276_v0 = vcombine.high %v1638_v46, %v1652_v25 }
 0x16e   : > { %v908_v30 = vpop.f32.mrf.mxu0  ;;  %v3270_v3 = vrot.slane %v3254_v61, %v16978_v34  ;;  %v1671_v26 = vrot.slane %v1657_v19, %v16978_v34  ;;  %v1672_v28 = vcombine.high %v1664_v13, %v1664_v13  ;;  %v3244_v24 = vrot.slane %v3236_v50, %v16978_v34 }
 0x16f   : > { %v1036_v30 = vmul.f32 1.442695, %v986_v63  ;;  %4514 = vst.msk [vmem:[#allocation2 + $0x50] sm:$0xff] %vm4504_vm9, %v3189_v21  ;;  %v3237_v6 = vcombine.low %v3228_v7, %v3235_v1  ;;  %v1112_v51 = vsel %vm947_vm3, %v17177_v49, %v15243_v57  ;;  %v1680_v46 = vrot.slane %v1664_v13, %v16978_v34 }
 0x170   : > { %v17289_v48 = vpop.f32.mrf.mxu0  ;;  %v3285_v31 = vcombine.low %v3263_v36, %v3270_v3  ;;  %v1673_v44 = vcombine.high %v1671_v26, %v1671_v26  ;;  %v1694_v47 = vrot.slane %v1672_v28, %v16978_v34  ;;  %v1706_v25 = vcombine.high %v1112_v51, %v1112_v51 }
 0x171   : > { %v3251_v52 = vrot.slane %v3237_v6, %v16978_v34  ;;  %v1687_v63 = vrot.slane %v1671_v26, %v16978_v34  ;;  %v1713_v8 = vrot.slane %v1112_v51, %v16978_v34  ;;  %v15244_v14 = vadd.f32 -1.0, %v17266_v62 }
 0x172   : > { %v911_v42 = vpop.f32.mrf.mxu0  ;;  %v1701_v11 = vrot.slane %v1673_v44, %v16978_v34  ;;  %v3256_v58 = vcombine.low %v1680_v46, %v1694_v47  ;;  %v15277_v54 = vcombine.high %v1680_v46, %v1694_v47  ;;  %v1720_v49 = vrot.slane %v1706_v25, %v16978_v34 }
 0x173   : > { %v3252_v57 = vcombine.low %v3244_v24, %v3251_v52  ;;  %v3277_v61 = vrot.slane %v15276_v0, %v16978_v34  ;;  %v1721_v42 = vcombine.high %v1713_v8, %v1713_v8  ;;  %v1113_v7 = vsel %vm948_vm4, %v17182_v56, %v15244_v14 }
 0x174   : > { %v17306_v32 = vpop.f32.mrf.mxu0  ;;  %v3293_v50 = vrot.slane %v3285_v31, %v16978_v34  ;;  %v3284_v19 = vrot.slane %v3256_v58, %v16978_v34  ;;  %v3303_v13 = vcombine.low %v1687_v63, %v1701_v11  ;;  %v15278_v62 = vcombine.high %v1687_v63, %v1701_v11 }
 0x175   : > { %4516 = vst.msk [vmem:[#allocation2 + $0x70] sm:$0xff] %vm4504_vm9, %v3252_v57  ;;  %v1722_v21 = vcombine.high %v1720_v49, %v1720_v49  ;;  %v1729_v1 = vrot.slane %v1713_v8, %v16978_v34  ;;  %v1743_v36 = vrot.slane %v1721_v42, %v16978_v34  ;;  %v1755_v3 = vcombine.high %v1113_v7, %v1113_v7 }
 0x176   : > { %v916_v33 = vpop.f32.mrf.mxu0  ;;  %v3286_v0 = vcombine.low %v3277_v61, %v3284_v19  ;;  %v3312_v26 = vrot.slane %v15277_v54, %v16978_v34  ;;  %v3319_v56 = vrot.slane %v3303_v13, %v16978_v34  ;;  %v1762_v28 = vrot.slane %v1113_v7, %v16978_v34 }
 0x177   : > { %v1736_v24 = vrot.slane %v1720_v49, %v16978_v34  ;;  %v1750_v6 = vrot.slane %v1722_v21, %v16978_v34  ;;  %v3305_v31 = vcombine.low %v1729_v1, %v1743_v36  ;;  %v1769_v51 = vrot.slane %v1755_v3, %v16978_v34 }
 0x178   : > { %v3300_v33 = vrot.slane %v3286_v0, %v16978_v34  ;;  %v3326_v44 = vrot.slane %v15278_v62, %v16978_v34  ;;  %v1770_v46 = vcombine.high %v1762_v28, %v1762_v28  ;;  %v1778_v47 = vrot.slane %v1762_v28, %v16978_v34 }
 0x179   : > { %v3334_v25 = vcombine.low %v3312_v26, %v3319_v56  ;;  %v3333_v52 = vrot.slane %v3305_v31, %v16978_v34  ;;  %v15279_v63 = vcombine.high %v1729_v1, %v1743_v36  ;;  %v3352_v8 = vcombine.low %v1736_v24, %v1750_v6 }
 0x17a   : > { %v3301_v14 = vcombine.low %v3293_v50, %v3300_v33  ;;  %v1771_v11 = vcombine.high %v1769_v51, %v1769_v51  ;;  %v1785_v58 = vrot.slane %v1769_v51, %v16978_v34  ;;  %16265 = vpow2.f32 %v1036_v30 }
 0x17b   : > { %v3335_v54 = vcombine.low %v3326_v44, %v3333_v52  ;;  %v15280_v49 = vcombine.high %v1736_v24, %v1750_v6  ;;  %v3368_v57 = vrot.slane %v3352_v8, %v16978_v34  ;;  %v1792_v61 = vrot.slane %v1770_v46, %v16978_v34 }
 0x17c   : > { %4517 = vst.msk [vmem:[#allocation2 + $0x78] sm:$0xff] %vm4504_vm9, %v3301_v14  ;;  %v1799_v42 = vrot.slane %v1771_v11, %v16978_v34  ;;  %v1800_v7 = vcombine.high %v1778_v47, %v1778_v47  ;;  %v1801_v19 = vcombine.high %v1785_v58, %v1785_v58  ;;  %v15245_v13 = vadd.f32 -1.0, %v17271_v17  ;;  %v17374_v14 = vld [vmem:[%s21757_s9] ss:$0 sm:$0xff] }
 0x17d   : > { %v3342_v50 = vrot.slane %v3334_v25, %v16978_v34  ;;  %v3349_v62 = vrot.slane %v3335_v54, %v16978_v34  ;;  %v3361_v30 = vrot.slane %v15279_v63, %v16978_v34  ;;  %v1802_v21 = vcombine.high %v1792_v61, %v1792_v61 }
 0x17e   : > { %v3354_v1 = vcombine.low %v1778_v47, %v1792_v61  ;;  %v3406_v36 = vrot.slane %v1800_v7, %v16978_v34  ;;  %v3415_v3 = vcombine.low %v1799_v42, %v1801_v19  ;;  %v1114_v0 = vsel %vm949_vm5, %v17191_v5, %v15245_v13 }
 0x17f   : > { %v3350_v26 = vcombine.low %v3342_v50, %v3349_v62  ;;  %v3375_v56 = vrot.slane %v15280_v49, %v16978_v34  ;;  %v3383_v28 = vcombine.low %v3361_v30, %v3368_v57  ;;  %v3414_v17 = vcombine.low %v1802_v21, %v1785_v58 }
 0x180   : > { %v3382_v24 = vrot.slane %v3354_v1, %v16978_v34  ;;  %v3413_v6 = vrot.slane %v3406_v36, %v16978_v34  ;;  %v3431_v31 = vrot.slane %v3415_v3, %v16978_v34  ;;  %v1804_v51 = vcombine.high %v1114_v0, %v1114_v0 }
 0x181   : > { %v21764_v33 = vsub.s32 4, %v16963_v23  ;;  %4518 = vst.msk [vmem:[#allocation2 + $0x80] sm:$0xff] %vm4504_vm9, %v3350_v26  ;;  %v3424_v44 = vrot.slane %v3414_v17, %v16978_v34  ;;  %v1811_v5 = vrot.slane %v1114_v0, %v16978_v34  ;;  %v15246_v46 = vadd.f32 -1.0, %v17276_v22 }
 0x182   : > { %v3384_v47 = vcombine.low %v3375_v56, %v3382_v24  ;;  %4520 = vst.msk [vmem:[#allocation2 + $0x90] sm:$0x1] %vm4509_vm12, %v3413_v6  ;;  %v1818_v25 = vrot.slane %v1804_v51, %v16978_v34  ;;  %v1803_v52 = vcombine.high %v1799_v42, %v1799_v42  ;;  %v17378_v22 = vadd.f32 %v17374_v14, %v17150_v27 }
 0x183   : > { %v1819_v63 = vcombine.high %v1811_v5, %v1811_v5  ;;  %v1827_v8 = vrot.slane %v1811_v5, %v16978_v34  ;;  %v3391_v11 = vrot.slane %v3383_v28, %v16978_v34  ;;  %v3446_v54 = vcombine.low %v3424_v44, %v3431_v31 }
 0x184   : > { %v3398_v58 = vrot.slane %v3384_v47, %v16978_v34  ;;  %v1115_v49 = vsel %vm950_vm6, %v17196_v9, %v15246_v46  ;;  %v1820_v57 = vcombine.high %v1818_v25, %v1818_v25  ;;  %v1834_v61 = vrot.slane %v1818_v25, %v16978_v34 }
 0x185   : > { %v15247_v42 = vadd.f32 -1.0, %v17284_v40  ;;  %v17387_v7 = vadd.f32 %v17374_v14, %v17166_v43  ;;  %v1841_v27 = vrot.slane %v1819_v63, %v16978_v34  ;;  %v1849_v13 = vcombine.high %v1827_v8, %v1827_v8 }
 0x186   : > { %v3399_v19 = vcombine.low %v3391_v11, %v3398_v58  ;;  %v15248_v50 = vadd.f32 -1.0, %v17298_v53  ;;  %v1848_v30 = vrot.slane %v1820_v57, %v16978_v34  ;;  %v1850_v21 = vcombine.high %v1834_v61, %v1834_v61 }
 0x187   : > { %v16266_v62 = vpop.eup %16265  ;;  %v3416_v9 = vcombine.low %v1803_v52, %v1827_v8  ;;  %v1853_v1 = vcombine.high %v1115_v49, %v1115_v49  ;;  %v3454_v36 = vrot.slane %v3446_v54, %v16978_v34  ;;  %v1851_v40 = vcombine.high %v1841_v27, %v1841_v27 }
 0x188   : > { %4519 = vst.msk [vmem:[#allocation2 + $0x88] sm:$0xff] %vm4504_vm9, %v3399_v19  ;;  %v3417_v3 = vcombine.low %v1841_v27, %v1849_v13  ;;  %v1860_v43 = vrot.slane %v1115_v49, %v16978_v34  ;;  %v3464_v26 = vcombine.low %v1848_v30, %v1850_v21  ;;  %v1852_v56 = vcombine.high %v1848_v30, %v1848_v30 }
 0x189   : > { %v3438_v0 = vrot.slane %v3416_v9, %v16978_v34  ;;  %v1867_v53 = vrot.slane %v1853_v1, %v16978_v34  ;;  %v3463_v17 = vcombine.low %v1851_v40, %v1834_v61  ;;  %v1116_v5 = vsel %vm951_vm7, %v17200_v10, %v15247_v42 }
 0x18a   : > { %v3445_v28 = vrot.slane %v3417_v3, %v16978_v34  ;;  %v1868_v24 = vcombine.high %v1860_v43, %v1860_v43  ;;  %v1876_v6 = vrot.slane %v1860_v43, %v16978_v34  ;;  %v3480_v31 = vrot.slane %v3464_v26, %v16978_v34 }
 0x18b   : > { %v1869_v51 = vcombine.high %v1867_v53, %v1867_v53  ;;  %v1883_v44 = vrot.slane %v1867_v53, %v16978_v34  ;;  %v3473_v47 = vrot.slane %v3463_v17, %v16978_v34  ;;  %v1902_v58 = vcombine.high %v1116_v5, %v1116_v5 }
 0x18c   : > { %v3447_v46 = vcombine.low %v3438_v0, %v3445_v28  ;;  %v1890_v25 = vrot.slane %v1868_v24, %v16978_v34  ;;  %v1898_v52 = vcombine.high %v1876_v6, %v1876_v6  ;;  %v3465_v11 = vcombine.low %v1852_v56, %v1876_v6 }
 0x18d   : > { %v1897_v63 = vrot.slane %v1869_v51, %v16978_v34  ;;  %v1899_v8 = vcombine.high %v1883_v44, %v1883_v44  ;;  %v3495_v49 = vcombine.low %v3473_v47, %v3480_v31  ;;  %v1909_v19 = vrot.slane %v1116_v5, %v16978_v34 }
 0x18e   : > { %v3461_v54 = vrot.slane %v3447_v46, %v16978_v34  ;;  %v1900_v57 = vcombine.high %v1890_v25, %v1890_v25  ;;  %v3466_v61 = vcombine.low %v1890_v25, %v1898_v52  ;;  %v3487_v10 = vrot.slane %v3465_v11, %v16978_v34 }
 0x18f   : > { %v3513_v42 = vcombine.low %v1897_v63, %v1899_v8  ;;  %v15249_v27 = vadd.f32 -1.0, %v16266_v62  ;;  %v1901_v9 = vcombine.high %v1897_v63, %v1897_v63  ;;  %v3503_v1 = vrot.slane %v3495_v49, %v16978_v34 }
 0x190   : > { %v3462_v13 = vcombine.low %v3454_v36, %v3461_v54  ;;  %v3494_v30 = vrot.slane %v3466_v61, %v16978_v34  ;;  %v3512_v21 = vcombine.low %v1900_v57, %v1883_v44  ;;  %v1916_v40 = vrot.slane %v1902_v58, %v16978_v34 }
 0x191   : > { %v1917_v3 = vcombine.high %v1909_v19, %v1909_v19  ;;  %v1925_v43 = vrot.slane %v1909_v19, %v16978_v34  ;;  %v3529_v56 = vrot.slane %v3513_v42, %v16978_v34  ;;  %v1117_v62 = vsel %vm952_vm8, %v17209_v20, %v15248_v50 }
 0x192   : > { %4521 = vst.msk [vmem:[#allocation2 + $0xa8] sm:$0xff] %vm4504_vm9, %v3462_v13  ;;  %v3496_v0 = vcombine.low %v3487_v10, %v3494_v30  ;;  %v3522_v26 = vrot.slane %v3512_v21, %v16978_v34  ;;  %v1918_v36 = vcombine.high %v1916_v40, %v1916_v40  ;;  %v1932_v53 = vrot.slane %v1916_v40, %v16978_v34 }
 0x193   : > { %v1939_v28 = vrot.slane %v1917_v3, %v16978_v34  ;;  %v1947_v17 = vcombine.high %v1925_v43, %v1925_v43  ;;  %v3514_v6 = vcombine.low %v1901_v9, %v1925_v43  ;;  %v1951_v31 = vcombine.high %v1117_v62, %v1117_v62 }
 0x194   : > { %v3510_v24 = vrot.slane %v3496_v0, %v16978_v34  ;;  %v1118_v51 = vsel %vm953_vm10, %v17229_v45, %v15249_v27  ;;  %v1946_v44 = vrot.slane %v1918_v36, %v16978_v34  ;;  %v1948_v5 = vcombine.high %v1932_v53, %v1932_v53 }
 0x195   : > { %v1949_v46 = vcombine.high %v1939_v28, %v1939_v28  ;;  %v3515_v47 = vcombine.low %v1939_v28, %v1947_v17  ;;  %v3544_v50 = vcombine.low %v3522_v26, %v3529_v56  ;;  %v3536_v25 = vrot.slane %v3514_v6, %v16978_v34 }
 0x196   : > { %v3511_v20 = vcombine.low %v3503_v1, %v3510_v24  ;;  %v1958_v52 = vrot.slane %v1117_v62, %v16978_v34  ;;  %v3562_v11 = vcombine.low %v1946_v44, %v1948_v5  ;;  %v1950_v58 = vcombine.high %v1946_v44, %v1946_v44  ;;  %v7047_v62 = vld [vmem:[#allocation2 + $0x1] sm:$0xff] }
 0x197   : > { %v3543_v63 = vrot.slane %v3515_v47, %v16978_v34  ;;  %v3561_v8 = vcombine.low %v1949_v46, %v1932_v53  ;;  %v1965_v45 = vrot.slane %v1951_v31, %v16978_v34  ;;  %v2000_v57 = vcombine.high %v1118_v51, %v1118_v51 }
 0x198   : > { %4522 = vst.msk [vmem:[#allocation2 + $0xb0] sm:$0xff] %vm4504_vm9, %v3511_v20  ;;  %v1966_v54 = vcombine.high %v1958_v52, %v1958_v52  ;;  %v1974_v49 = vrot.slane %v1958_v52, %v16978_v34  ;;  %v3578_v42 = vrot.slane %v3562_v11, %v16978_v34  ;;  %v2007_v19 = vrot.slane %v1118_v51, %v16978_v34 }
 0x199   : > { %v3545_v61 = vcombine.low %v3536_v25, %v3543_v63  ;;  %v3571_v10 = vrot.slane %v3561_v8, %v16978_v34  ;;  %v3552_v27 = vrot.slane %v3544_v50, %v16978_v34  ;;  %v1967_v13 = vcombine.high %v1965_v45, %v1965_v45 }
 0x19a   : > { %v1988_v30 = vrot.slane %v1966_v54, %v16978_v34  ;;  %v987_v21 = vmin.f32 %v17378_v22, 0.0  ;;  %v1981_v1 = vrot.slane %v1965_v45, %v16978_v34  ;;  %v1996_v40 = vcombine.high %v1974_v49, %v1974_v49  ;;  %v6923_v45 = vld [vmem:[#allocation2] sm:$0xff] }
 0x19b   : > { %v3559_v9 = vrot.slane %v3545_v61, %v16978_v34  ;;  %v3563_v3 = vcombine.low %v1950_v58, %v1974_v49  ;;  %v1995_v43 = vrot.slane %v1967_v13, %v16978_v34  ;;  %v2014_v26 = vrot.slane %v2000_v57, %v16978_v34 }
 0x19c   : > { %v1998_v0 = vcombine.high %v1988_v30, %v1988_v30  ;;  %v2015_v56 = vcombine.high %v2007_v19, %v2007_v19  ;;  %v3593_v53 = vcombine.low %v3571_v10, %v3578_v42  ;;  %v3564_v28 = vcombine.low %v1988_v30, %v1996_v40 }
 0x19d   : > { %v3560_v36 = vcombine.low %v3552_v27, %v3559_v9  ;;  %v3585_v17 = vrot.slane %v3563_v3, %v16978_v34  ;;  %v3624_v6 = vcombine.low %v1981_v1, %v1995_v43  ;;  %v15281_v31 = vcombine.high %v1981_v1, %v1995_v43 }
 0x19e   : > { %v3616_v24 = vrot.slane %v1998_v0, %v16978_v34  ;;  %v2016_v51 = vcombine.high %v2014_v26, %v2014_v26  ;;  %v3592_v44 = vrot.slane %v3564_v28, %v16978_v34  ;;  %v2037_v5 = vrot.slane %v2015_v56, %v16978_v34  ;;  %v7171_v0 = vld [vmem:[#allocation2 + $0x2] sm:$0xff] }
 0x19f   : > { %4523 = vst.msk [vmem:[#allocation2 + $0xb8] sm:$0xff] %vm4504_vm9, %v3560_v36  ;;  %v1038_v46 = vmul.f32 1.442695, %v987_v21  ;;  %v988_v47 = vmin.f32 %v17387_v7, 0.0  ;;  %v7091_v20 = vmul.f32 %v17112_v18, %v7047_v62  ;;  %v2023_v25 = vrot.slane %v2007_v19, %v16978_v34 }
 0x1a0   : > { %v3623_v50 = vrot.slane %v3616_v24, %v16978_v34  ;;  %v17456_v52 = vadd.f32 %v17374_v14, %v17185_v60  ;;  %v3594_v63 = vcombine.low %v3585_v17, %v3592_v44  ;;  %v3634_v8 = vrot.slane %v3624_v6, %v16978_v34  ;;  %v16418_v24 = vld [vmem:[%s21754_s6] sm:$0xff] }
 0x1a1   : > { %v3641_v11 = vrot.slane %v15281_v31, %v16978_v34  ;;  %v17462_v58 = vadd.f32 %v17374_v14, %v17203_v16  ;;  %v3601_v54 = vrot.slane %v3593_v53, %v16978_v34  ;;  %v2044_v49 = vrot.slane %v2016_v51, %v16978_v34 }
 0x1a2   : > { %4525 = vst.msk [vmem:[#allocation2 + $0xc8] sm:$0x1] %vm4509_vm12, %v3623_v50  ;;  %v3626_v57 = vcombine.low %v2023_v25, %v2037_v5  ;;  %v15282_v61 = vcombine.high %v2023_v25, %v2037_v5  ;;  %v3608_v60 = vrot.slane %v3594_v63, %v16978_v34  ;;  %16267 = vpow2.f32 %v1038_v46  ;;  %v17514_v50 = vpop.f32.mrf.mxu0  ;;  %v7295_v25 = vld [vmem:[#allocation2 + $0x3] sm:$0xff] }
 0x1a3   : > { %v3656_v10 = vcombine.low %v3634_v8, %v3641_v11  ;;  %v1040_v42 = vmul.f32 1.442695, %v988_v47  ;;  %v17470_v19 = vrot.slane %v17094_v2, %v17214_v39  ;;  %v21763_v16 = vsub.s32 5, %v16963_v23 }
 0x1a4   : > { %v3648_v27 = vrot.slane %v3626_v57, %v16978_v34  ;;  %v3655_v13 = vrot.slane %v15282_v61, %v16978_v34  ;;  %v6967_v30 = vmul.f32 %v17108_v15, %v6923_v45  ;;  %v3609_v21 = vcombine.low %v3601_v54, %v3608_v60  ;;  %v7543_v45 = vld [vmem:[#allocation2 + $0x5] sm:$0xff]  ;;  %v919_v60 = vpop.f32.mrf.mxu0 }
 0x1a5   : > { %21822 = vst [vmem:[#allocation6_spill] sm:$0xff] %v17470_v19  ;;  %v2030_v9 = vrot.slane %v2014_v26, %v16978_v34  ;;  %16269 = vpow2.f32 %v1040_v42  ;;  %v21762_v1 = vsub.s32 6, %v16963_v23  ;;  %v21761_v40 = vsub.s32 7, %v16963_v23  ;;  %v7667_v54 = vld [vmem:[#allocation2 + $0x6] sm:$0xff] }
 0x1a6   : > { %v3657_v3 = vcombine.low %v3648_v27, %v3655_v13  ;;  %v989_v2 = vmin.f32 %v17456_v52, 0.0  ;;  %v7131_v43 = vadd.f32 %v7091_v20, %v6967_v30  ;;  %v3664_v56 = vrot.slane %v3656_v10, %v16978_v34  ;;  %4524 = vst.msk [vmem:[#allocation2 + $0xc0] sm:$0xff] %vm4504_vm9, %v3609_v21  ;;  %v17512_v20 = vpop.f32.mrf.mxu1  ;;  %v11036_v30 = vld [vmem:[%s21755_s7 + $0x8] sm:$0xff] }
 0x1a7   : > { %v3673_v62 = vcombine.low %v2030_v9, %v2044_v49  ;;  %v990_v36 = vmin.f32 %v17462_v58, 0.0  ;;  %v15283_v26 = vcombine.high %v2030_v9, %v2044_v49  ;;  %v17486_v17 = vadd.f32 %v17374_v14, %v17217_v29  ;;  %v17505_v29 = vld [vmem:[%s21754_s6 + $0x8] sm:$0xff] }
 0x1a8   : > { %v3671_v53 = vrot.slane %v3657_v3, %v16978_v34  ;;  %v1042_v28 = vmul.f32 1.442695, %v989_v2  ;;  %v17492_v6 = vrot.slane %v16418_v24, %v17221_v35  ;;  %v17496_v31 = vrot.slane %v16418_v24, %v21764_v33  ;;  %v17553_v2 = vpop.f32.mrf.mxu1 }
 0x1a9   : > { %v1044_v51 = vmul.f32 1.442695, %v990_v36  ;;  %v17500_v44 = vadd.f32 %v17374_v14, %v17232_v41  ;;  %v7215_v5 = vmul.f32 %v17470_v19, %v7171_v0  ;;  %v17510_v47 = vadd.f32 %v17374_v14, %v17244_v12  ;;  %v7419_v41 = vld [vmem:[#allocation2 + $0x4] sm:$0xff] }
 0x1aa   : > { %21823 = vst [vmem:[#allocation7_spill] sm:$0xff] %v17496_v31  ;;  %v3672_v46 = vcombine.low %v3664_v56, %v3671_v53  ;;  %16271 = vpow2.f32 %v1042_v28  ;;  %v17518_v63 = vrot.slane %v16418_v24, %v21763_v16  ;;  %v17522_v8 = vrot.slane %v16418_v24, %v21762_v1 }
 0x1ab   : > { %v17526_v11 = vrot.slane %v16418_v24, %v21761_v40  ;;  %16273 = vpow2.f32 %v1044_v51  ;;  %v7255_v12 = vadd.f32 %v7215_v5, %v7131_v43  ;;  %v3683_v49 = vrot.slane %v3673_v62, %v16978_v34  ;;  %v11035_v62 = vld [vmem:[%s21755_s7] sm:$0xff] }
 0x1ac   : > { %21824 = vst [vmem:[#allocation8_spill] sm:$0xff] %v17518_v63  ;;  %21825 = vst [vmem:[#allocation9_spill] sm:$0xff] %v17522_v8  ;;  %v3690_v57 = vrot.slane %v15283_v26, %v16978_v34  ;;  %v991_v61 = vmin.f32 %v17486_v17, 0.0  ;;  %v17534_v10 = vrot.slane %v17505_v29, %v17082_v55  ;;  %v17538_v42 = vrot.slane %v17505_v29, %v17097_v4 }
 0x1ad   : > { %21826 = vst [vmem:[#allocation10_spill] sm:$0xff] %v17526_v11  ;;  %4526 = vst.msk [vmem:[#allocation2 + $0xe0] sm:$0xff] %vm4504_vm9, %v3672_v46  ;;  %v992_v27 = vmin.f32 %v17500_v44, 0.0  ;;  %v17543_v13 = vadd.f32 %v17374_v14, %v17256_v38  ;;  %v7339_v21 = vmul.f32 %v17492_v6, %v7295_v25  ;;  %v17550_v9 = vmul.f32 %v17496_v31, %v7419_v41  ;;  %v17583_v41 = vpop.f32.mrf.mxu1 }
 0x1ae   : > { %v993_v3 = vmin.f32 %v17510_v47, 0.0  ;;  %v17556_v43 = vmul.f32 %v17518_v63, %v7543_v45  ;;  %v17559_v0 = vmul.f32 %v17522_v8, %v7667_v54  ;;  %v17563_v38 = vadd.f32 %v17374_v14, %v17269_v59 }
 0x1af   : > { %v21759_v56 = vmov 0.0   ;;  %v16268_v36 = vpop.eup %16267  ;;  %v17570_v53 = vadd.f32 %v7339_v21, %v7255_v12  ;;  %v3705_v26 = vcombine.low %v3683_v49, %v3690_v57  ;;  %v1046_v28 = vmul.f32 1.442695, %v991_v61 }
 0x1b0   : > { %15854 = vmatprep.subr.mxu1 %v21759_v56  ;;  %15969 = vmatprep.subr.mxu0 %v21759_v56  ;;  %v15250_v24 = vadd.f32 -1.0, %v16268_v36  ;;  %v1048_v51 = vmul.f32 1.442695, %v992_v27  ;;  %v994_v59 = vmin.f32 %v17543_v13, 0.0  ;;  %v17575_v5 = vadd.f32 %v17374_v14, %v17289_v48 }
 0x1b1   : > { %15855 = vmatpush3.msra.mxu1 %v11036_v30  ;;  %15858 = vmatprep.mubr.msk.f32.mxu1 %vm16438_vm11, %v21759_v56  ;;  %vm954_vm13 = vcmp.gt.f32.partialorder %v17378_v22, 0.0  ;;  %vm955_vm14 = vcmp.gt.f32.partialorder %v17387_v7, 0.0  ;;  %vm956_vm15 = vcmp.gt.f32.partialorder %v17456_v52, 0.0  ;;  %v1050_v25 = vmul.f32 1.442695, %v993_v3  ;;  %v17599_v3 = vpop.f32.mrf.mxu1 }
 0x1b2   : > { %15856 = vmatprep.subr.mxu1 %v21759_v56  ;;  %v16270_v46 = vpop.eup %16269  ;;  %15985 = vmatprep.mubr.msk.f32.mxu0 %vm16438_vm11, %v21759_v56  ;;  %v1119_v48 = vsel %vm954_vm13, %v17378_v22, %v15250_v24  ;;  %vm957_vm0 = vcmp.gt.f32.partialorder %v17462_v58, 0.0  ;;  %v995_v45 = vmin.f32 %v17563_v38, 0.0  ;;  %v17591_v54 = vrot.slane %v3705_v26, %v16978_v34 }
 0x1b3   : > { %15857 = vmatpush3.msra.mxu1 %v11035_v62  ;;  %v15251_v12 = vadd.f32 -1.0, %v16270_v46  ;;  %v2049_v49 = vcombine.high %v1119_v48, %v1119_v48  ;;  %v2056_v57 = vrot.slane %v1119_v48, %v16978_v34  ;;  %16275 = vpow2.f32 %v1046_v28 }
 0x1b4   : > { %16277 = vpow2.f32 %v1048_v51  ;;  %v17595_v60 = vmul.f32 1.442695, %v994_v59  ;;  %v17603_v28 = vmul.f32 1.442695, %v995_v45  ;;  %vm958_vm1 = vcmp.gt.f32.partialorder %v17486_v17, 0.0 }
 0x1b5   : > { %v1120_v61 = vsel %vm955_vm14, %v17387_v7, %v15251_v12  ;;  %v2063_v22 = vrot.slane %v2049_v49, %v16978_v34  ;;  %v2064_v30 = vcombine.high %v2056_v57, %v2056_v57  ;;  %16279 = vpow2.f32 %v1050_v25 }
 0x1b6   : > { %v2098_v21 = vcombine.high %v1120_v61, %v1120_v61  ;;  %v2072_v36 = vrot.slane %v2056_v57, %v16978_v34  ;;  %v2105_v26 = vrot.slane %v1120_v61, %v16978_v34  ;;  %v17607_v7 = vadd.f32 %v17374_v14, %v17306_v32  ;;  %v17614_v32 = vpop.f32.mrf.mxu1 }
 0x1b7   : > { %v16272_v62 = vpop.eup %16271  ;;  %v2065_v51 = vcombine.high %v2063_v22, %v2063_v22  ;;  %v2079_v59 = vrot.slane %v2063_v22, %v16978_v34  ;;  %v2086_v46 = vrot.slane %v2064_v30, %v16978_v34  ;;  %vm959_vm2 = vcmp.gt.f32.partialorder %v17500_v44, 0.0 }
 0x1b8   : > { %v16274_v24 = vpop.eup %16273  ;;  %v2112_v25 = vrot.slane %v2098_v21, %v16978_v34  ;;  %v2113_v48 = vcombine.high %v2105_v26, %v2105_v26  ;;  %v2121_v12 = vrot.slane %v2105_v26, %v16978_v34  ;;  %v15252_v49 = vadd.f32 -1.0, %v16272_v62  ;;  %v17624_v62 = vpop.f32.mrf.mxu0 }
 0x1b9   : > { %v15253_v57 = vadd.f32 -1.0, %v16274_v24  ;;  %v2093_v45 = vrot.slane %v2065_v51, %v16978_v34  ;;  %v3675_v61 = vcombine.low %v2072_v36, %v2086_v46  ;;  %v15284_v56 = vcombine.high %v2072_v36, %v2086_v46 }
 0x1ba   : > { %v2114_v40 = vcombine.high %v2112_v25, %v2112_v25  ;;  %v2128_v14 = vrot.slane %v2112_v25, %v16978_v34  ;;  %v2135_v22 = vrot.slane %v2113_v48, %v16978_v34  ;;  %v1121_v30 = vsel %vm956_vm15, %v17456_v52, %v15252_v49  ;;  %v924_v16 = vpop.f32.mrf.mxu0 }
 0x1bb   : > { %v1122_v21 = vsel %vm957_vm0, %v17462_v58, %v15253_v57  ;;  %v3697_v26 = vrot.slane %v3675_v61, %v16978_v34  ;;  %v3704_v36 = vrot.slane %v15284_v56, %v16978_v34  ;;  %v3722_v24 = vcombine.low %v2079_v59, %v2093_v45  ;;  %v17632_v57 = vpop.f32.mrf.mxu1 }
 0x1bc   : > { %v15285_v51 = vcombine.high %v2079_v59, %v2093_v45  ;;  %v2142_v46 = vrot.slane %v2114_v40, %v16978_v34  ;;  %v3724_v25 = vcombine.low %v2121_v12, %v2135_v22  ;;  %v15286_v48 = vcombine.high %v2121_v12, %v2135_v22 }
 0x1bd   : > { %v2147_v1 = vcombine.high %v1121_v30, %v1121_v30  ;;  %v3706_v33 = vcombine.low %v3697_v26, %v3704_v36  ;;  %v3732_v52 = vrot.slane %v3722_v24, %v16978_v34  ;;  %v2154_v58 = vrot.slane %v1121_v30, %v16978_v34 }
 0x1be   : > { %v3739_v49 = vrot.slane %v15285_v51, %v16978_v34  ;;  %v3746_v61 = vrot.slane %v3724_v25, %v16978_v34  ;;  %v3753_v56 = vrot.slane %v15286_v48, %v16978_v34  ;;  %v3771_v59 = vcombine.low %v2128_v14, %v2142_v46 }
 0x1bf   : > { %v15287_v45 = vcombine.high %v2128_v14, %v2142_v46  ;;  %v3720_v40 = vrot.slane %v3706_v33, %v16978_v34  ;;  %v2161_v16 = vrot.slane %v2147_v1, %v16978_v34  ;;  %v2162_v22 = vcombine.high %v2154_v58, %v2154_v58  ;;  %v17645_v1 = vpop.f32.mrf.mxu1 }
 0x1c0   : > { %v3754_v12 = vcombine.low %v3732_v52, %v3739_v49  ;;  %v16276_v26 = vpop.eup %16275  ;;  %v3755_v36 = vcombine.low %v3746_v61, %v3753_v56  ;;  %v3781_v24 = vrot.slane %v3771_v59, %v16978_v34  ;;  %v2170_v51 = vrot.slane %v2154_v58, %v16978_v34  ;;  %21827 = vst [vmem:[#allocation11_spill] sm:$0xff] %v17645_v1 }
 0x1c1   : > { %v3788_v30 = vrot.slane %v15287_v45, %v16978_v34  ;;  %v16278_v25 = vpop.eup %16277  ;;  %v3721_v48 = vcombine.low %v17591_v54, %v3720_v40  ;;  %v2163_v33 = vcombine.high %v2161_v16, %v2161_v16  ;;  %v2177_v46 = vrot.slane %v2161_v16, %v16978_v34 }
 0x1c2   : > { %v3762_v14 = vrot.slane %v3754_v12, %v16978_v34  ;;  %v17647_v52 = vpop.eup %16279  ;;  %v3769_v49 = vrot.slane %v3755_v36, %v16978_v34  ;;  %v2184_v56 = vrot.slane %v2162_v22, %v16978_v34  ;;  %v2196_v58 = vcombine.high %v1122_v21, %v1122_v21 }
 0x1c3   : > { %v3803_v61 = vcombine.low %v3781_v24, %v3788_v30  ;;  %4527 = vst.msk [vmem:[#allocation2 + $0xe8] sm:$0xff] %vm4504_vm9, %v3721_v48  ;;  %v2191_v59 = vrot.slane %v2163_v33, %v16978_v34  ;;  %v2193_v54 = vcombine.high %v2177_v46, %v2177_v46  ;;  %v3826_v45 = vrot.slane %v2177_v46, %v16978_v34  ;;  %v17659_v48 = vpop.f32.mrf.mxu1 }
 0x1c4   : > { %v2203_v40 = vrot.slane %v1122_v21, %v16978_v34  ;;  %v3770_v12 = vcombine.low %v3762_v14, %v3769_v49  ;;  %v3773_v16 = vcombine.low %v2170_v51, %v2184_v56  ;;  %v15288_v27 = vcombine.high %v2170_v51, %v2184_v56  ;;  %21828 = vst [vmem:[#allocation12_spill] sm:$0xff] %v17659_v48 }
 0x1c5   : > { %v997_v8 = vmin.f32 %v17607_v7, 0.0  ;;  %v3811_v36 = vrot.slane %v3803_v61, %v16978_v34  ;;  %v3833_v24 = vrot.slane %v3826_v45, %v16978_v34  ;;  %v2195_v22 = vcombine.high %v2191_v59, %v2191_v59  ;;  %v17667_v45 = vpop.f32.mrf.mxu1 }
 0x1c6   : > { %v2210_v30 = vrot.slane %v2196_v58, %v16978_v34  ;;  %4528 = vst.msk [vmem:[#allocation2 + $0xf0] sm:$0xff] %vm4504_vm9, %v3770_v12  ;;  %v3795_v33 = vrot.slane %v3773_v16, %v16978_v34  ;;  %v3802_v21 = vrot.slane %v15288_v27, %v16978_v34  ;;  %v2211_v14 = vcombine.high %v2203_v40, %v2203_v40  ;;  %v17669_v58 = vpop.f32.mrf.mxu0 }
 0x1c7   : > { %v2219_v51 = vrot.slane %v2203_v40, %v16978_v34  ;;  %v3834_v46 = vcombine.low %v2191_v59, %v2193_v54  ;;  %4530 = vst.msk [vmem:[#allocation2 + $0x100] sm:$0x1] %vm4509_vm12, %v3833_v24  ;;  %v15254_v56 = vadd.f32 -1.0, %v16276_v26  ;;  %21829 = vst [vmem:[#allocation13_spill] sm:$0xff] %v17667_v45  ;;  %v15255_v54 = vadd.f32 -1.0, %v16278_v25  ;;  %v17676_v40 = vpop.f32.mrf.mxu1 }
 0x1c8   : > { %v2212_v49 = vcombine.high %v2210_v30, %v2210_v30  ;;  %v2226_v61 = vrot.slane %v2210_v30, %v16978_v34  ;;  %v3804_v63 = vcombine.low %v3795_v33, %v3802_v21  ;;  %v2233_v12 = vrot.slane %v2211_v14, %v16978_v34  ;;  %21830 = vst [vmem:[#allocation14_spill] sm:$0xff] %v17676_v40  ;;  %v927_v26 = vpop.f32.mrf.mxu0 }
 0x1c9   : > { %v2241_v16 = vcombine.high %v2219_v51, %v2219_v51  ;;  %v3835_v48 = vcombine.low %v2195_v22, %v2219_v51  ;;  %v1123_v59 = vsel %vm958_vm1, %v17486_v17, %v15254_v56  ;;  %v3844_v21 = vrot.slane %v3834_v46, %v16978_v34  ;;  %v17683_v14 = vpop.f32.mrf.mxu1 }
 0x1ca   : > { %v2240_v27 = vrot.slane %v2212_v49, %v16978_v34  ;;  %v2242_v1 = vcombine.high %v2226_v61, %v2226_v61  ;;  %v3818_v24 = vrot.slane %v3804_v63, %v16978_v34  ;;  %v2243_v30 = vcombine.high %v2233_v12, %v2233_v12  ;;  %21831 = vst [vmem:[#allocation15_spill] sm:$0xff] %v17683_v14  ;;  %v17685_v17 = vpop.f32.mrf.mxu0 }
 0x1cb   : > { %v3836_v45 = vcombine.low %v2233_v12, %v2241_v16  ;;  %v3851_v33 = vrot.slane %v3835_v48, %v16978_v34  ;;  %16281 = vpow2.f32 %v17595_v60  ;;  %v21832_v63 = vmin.f32 %v17575_v5, 0.0  ;;  %v17691_v12 = vpop.f32.mrf.mxu1 }
 0x1cc   : > { %v3883_v22 = vcombine.low %v2240_v27, %v2242_v1  ;;  %v3819_v25 = vcombine.low %v3811_v36, %v3818_v24  ;;  %v3837_v51 = vcombine.low %v2243_v30, %v2226_v61  ;;  %16283 = vpow2.f32 %v17603_v28  ;;  %21833 = vst [vmem:[#allocation16_spill] sm:$0xff] %v17691_v12  ;;  %v932_v16 = vpop.f32.mrf.mxu0 }
 0x1cd   : > { %v1056_v49 = vmul.f32 1.442695, %v21832_v63  ;;  %v3858_v48 = vrot.slane %v3836_v45, %v16978_v34  ;;  %v3866_v56 = vcombine.low %v3844_v21, %v3851_v33  ;;  %v2245_v46 = vcombine.high %v1123_v59, %v1123_v59  ;;  %v17702_v30 = vpop.f32.mrf.mxu1 }
 0x1ce   : > { %v1058_v1 = vmul.f32 1.442695, %v997_v8  ;;  %4529 = vst.msk [vmem:[#allocation2 + $0xf8] sm:$0xff] %vm4504_vm9, %v3819_v25  ;;  %v3865_v60 = vrot.slane %v3837_v51, %v16978_v34  ;;  %v2244_v26 = vcombine.high %v2240_v27, %v2240_v27  ;;  %v2252_v36 = vrot.slane %v1123_v59, %v16978_v34  ;;  %21834 = vst [vmem:[#allocation17_spill] sm:$0xff] %v17702_v30  ;;  %v933_v33 = vpop.f32.mrf.mxu0 }
 0x1cf   : > { %v1124_v28 = vsel %vm959_vm2, %v17500_v44, %v15255_v54  ;;  %v3874_v61 = vrot.slane %v3866_v56, %v16978_v34  ;;  %v2259_v45 = vrot.slane %v2245_v46, %v16978_v34  ;;  %v3893_v8 = vrot.slane %v3883_v22, %v16978_v34  ;;  %v17710_v22 = vpop.f32.mrf.mxu1 }
 0x1d0   : > { %v2294_v24 = vcombine.high %v1124_v28, %v1124_v28  ;;  %v3867_v21 = vcombine.low %v3858_v48, %v3865_v60  ;;  %v2260_v25 = vcombine.high %v2252_v36, %v2252_v36  ;;  %v2268_v27 = vrot.slane %v2252_v36, %v16978_v34  ;;  %21835 = vst [vmem:[#allocation18_spill] sm:$0xff] %v17710_v22  ;;  %v934_v56 = vpop.f32.mrf.mxu0 }
 0x1d1   : > { %v2301_v59 = vrot.slane %v1124_v28, %v16978_v34  ;;  %vm960_vm3 = vcmp.gt.f32.partialorder %v17510_v47, 0.0  ;;  %v2261_v51 = vcombine.high %v2259_v45, %v2259_v45  ;;  %v2275_v44 = vrot.slane %v2259_v45, %v16978_v34  ;;  %v17715_v12 = vpop.f32.mrf.mxu1 }
 0x1d2   : > { %v2308_v54 = vrot.slane %v2294_v24, %v16978_v34  ;;  %v15256_v63 = vadd.f32 -1.0, %v17647_v52  ;;  %v3881_v46 = vrot.slane %v3867_v21, %v16978_v34  ;;  %v2282_v48 = vrot.slane %v2260_v25, %v16978_v34  ;;  %21836 = vst [vmem:[#allocation19_spill] sm:$0xff] %v17715_v12  ;;  %v17717_v45 = vpop.f32.mrf.mxu0 }
 0x1d3   : > { %v2290_v16 = vcombine.high %v2268_v27, %v2268_v27  ;;  %v3884_v60 = vcombine.low %v2244_v26, %v2268_v27  ;;  %v2289_v36 = vrot.slane %v2261_v51, %v16978_v34  ;;  %v2291_v28 = vcombine.high %v2275_v44, %v2275_v44  ;;  %21837 = vst [vmem:[#allocation20_spill] sm:$0xff] %v17717_v45  ;;  %v17722_v27 = vpop.f32.mrf.mxu1 }
 0x1d4   : > { %v2309_v33 = vcombine.high %v2301_v59, %v2301_v59  ;;  %v2310_v30 = vcombine.high %v2308_v54, %v2308_v54  ;;  %v3882_v24 = vcombine.low %v3874_v61, %v3881_v46  ;;  %v2292_v52 = vcombine.high %v2282_v48, %v2282_v48  ;;  %21838 = vst [vmem:[#allocation21_spill] sm:$0xff] %v17722_v27  ;;  %v5104_v51 = vpop.f32.mrf.mxu0 }
 0x1d5   : > { %v3885_v14 = vcombine.low %v2282_v48, %v2290_v16  ;;  %v3900_v56 = vrot.slane %v3884_v60, %v16978_v34  ;;  %v3932_v22 = vcombine.low %v2289_v36, %v2291_v28  ;;  %v2293_v21 = vcombine.high %v2289_v36, %v2289_v36  ;;  %v17727_v16 = vpop.f32.mrf.mxu1 }
 0x1d6   : > { %v2317_v25 = vrot.slane %v2301_v59, %v16978_v34  ;;  %v2324_v26 = vrot.slane %v2308_v54, %v16978_v34  ;;  %4531 = vst.msk [vmem:[#allocation2 + $0x118] sm:$0xff] %vm4504_vm9, %v3882_v24  ;;  %v3886_v40 = vcombine.low %v2292_v52, %v2275_v44  ;;  %v2331_v45 = vrot.slane %v2309_v33, %v16978_v34  ;;  %v17729_v59 = vpop.f32.mrf.mxu0 }
 0x1d7   : > { %v3915_v12 = vcombine.low %v3893_v8, %v3900_v56  ;;  %16285 = vpow2.f32 %v1056_v49  ;;  %v2338_v61 = vrot.slane %v2310_v30, %v16978_v34  ;;  %v3907_v60 = vrot.slane %v3885_v14, %v16978_v34  ;;  %v17738_v33 = vpop.f32.mrf.mxu1 }
 0x1d8   : > { %v2339_v46 = vcombine.high %v2317_v25, %v2317_v25  ;;  %v3933_v48 = vcombine.low %v2293_v21, %v2317_v25  ;;  %16287 = vpow2.f32 %v1058_v1  ;;  %v16282_v54 = vpop.eup %16281  ;;  %v3914_v36 = vrot.slane %v3886_v40, %v16978_v34  ;;  %v5107_v52 = vpop.f32.mrf.mxu0 }
 0x1d9   : > { %v2340_v28 = vcombine.high %v2324_v26, %v2324_v26  ;;  %v2341_v44 = vcombine.high %v2331_v45, %v2331_v45  ;;  %v16284_v8 = vpop.eup %16283  ;;  %v3942_v49 = vrot.slane %v3932_v22, %v16978_v34  ;;  %v1125_v1 = vsel %vm960_vm3, %v17510_v47, %v15256_v63 }
 0x1da   : > { %v3934_v24 = vcombine.low %v2331_v45, %v2339_v46  ;;  %v3949_v30 = vrot.slane %v3933_v48, %v16978_v34  ;;  %v3916_v56 = vcombine.low %v3907_v60, %v3914_v36  ;;  %v3923_v14 = vrot.slane %v3915_v12, %v16978_v34  ;;  %v17743_v46 = vpop.f32.mrf.mxu1  ;;  %v17745_v48 = vpop.f32.mrf.mxu0 }
 0x1db   : > { %v3935_v21 = vcombine.low %v2341_v44, %v2324_v26  ;;  %v2343_v40 = vcombine.high %v1125_v1, %v1125_v1  ;;  %v2342_v45 = vcombine.high %v2338_v61, %v2338_v61  ;;  %v2350_v22 = vrot.slane %v1125_v1, %v16978_v34  ;;  %21839 = vst [vmem:[#allocation22_spill] sm:$0xff] %v17743_v46 }
 0x1dc   : > { %v3956_v25 = vrot.slane %v3934_v24, %v16978_v34  ;;  %v3964_v51 = vcombine.low %v3942_v49, %v3949_v30  ;;  %v3930_v47 = vrot.slane %v3916_v56, %v16978_v34  ;;  %v15257_v36 = vadd.f32 -1.0, %v16282_v54  ;;  %v17752_v24 = vpop.f32.mrf.mxu1  ;;  %v5112_v49 = vpop.f32.mrf.mxu0 }
 0x1dd   : > { %v3963_v63 = vrot.slane %v3935_v21, %v16978_v34  ;;  %v2357_v60 = vrot.slane %v2343_v40, %v16978_v34  ;;  %v3981_v12 = vcombine.low %v2338_v61, %v2340_v28  ;;  %v2358_v26 = vcombine.high %v2350_v22, %v2350_v22 }
 0x1de   : > { %v2366_v44 = vrot.slane %v2350_v22, %v16978_v34  ;;  %vm961_vm4 = vcmp.gt.f32.partialorder %v17543_v13, 0.0  ;;  %v3931_v30 = vcombine.low %v3923_v14, %v3930_v47  ;;  %v3972_v52 = vrot.slane %v3964_v51, %v16978_v34  ;;  %v17756_v54 = vpop.f32.mrf.mxu1  ;;  %v17758_v61 = vpop.f32.mrf.mxu0 }
 0x1df   : > { %v3965_v1 = vcombine.low %v3956_v25, %v3963_v63  ;;  %v2359_v46 = vcombine.high %v2357_v60, %v2357_v60  ;;  %v2380_v56 = vrot.slane %v2358_v26, %v16978_v34  ;;  %v15258_v40 = vadd.f32 -1.0, %v16284_v8  ;;  %21840 = vst [vmem:[#allocation23_spill] sm:$0xff] %v17756_v54 }
 0x1e0   : > { %v2388_v21 = vcombine.high %v2366_v44, %v2366_v44  ;;  %v3982_v27 = vcombine.low %v2342_v45, %v2366_v44  ;;  %4532 = vst.msk [vmem:[#allocation2 + $0x120] sm:$0xff] %vm4504_vm9, %v3931_v30  ;;  %v2373_v22 = vrot.slane %v2357_v60, %v16978_v34  ;;  %v1126_v25 = vsel %vm961_vm4, %v17543_v13, %v15257_v36  ;;  %v17768_v63 = vpop.f32.mrf.mxu1  ;;  %v5115_v26 = vpop.f32.mrf.mxu0  ;;  %v7791_v60 = vld [vmem:[#allocation2 + $0x7] sm:$0xff] }
 0x1e1   : > { %v3979_v28 = vrot.slane %v3965_v1, %v16978_v34  ;;  %v2387_v14 = vrot.slane %v2359_v46, %v16978_v34  ;;  %v2390_v51 = vcombine.high %v2380_v56, %v2380_v56  ;;  %v2392_v45 = vcombine.high %v1126_v25, %v1126_v25  ;;  %21841 = vst [vmem:[#allocation24_spill] sm:$0xff] %v17768_v63 }
 0x1e2   : > { %v3983_v47 = vcombine.low %v2380_v56, %v2388_v21  ;;  %v3998_v8 = vrot.slane %v3982_v27, %v16978_v34  ;;  %v2399_v30 = vrot.slane %v1126_v25, %v16978_v34  ;;  %vm962_vm5 = vcmp.gt.f32.partialorder %v17563_v38, 0.0  ;;  %v17776_v56 = vpop.f32.mrf.mxu1  ;;  %v17778_v21 = vpop.f32.mrf.mxu0 }
 0x1e3   : > { %v3980_v44 = vcombine.low %v3972_v52, %v3979_v28  ;;  %v4036_v49 = vrot.slane %v2387_v14, %v16978_v34  ;;  %v3984_v1 = vcombine.low %v2390_v51, %v2373_v22  ;;  %v3991_v13 = vrot.slane %v3981_v12, %v16978_v34  ;;  %21842 = vst [vmem:[#allocation25_spill] sm:$0xff] %v17776_v56 }
 0x1e4   : > { %v16286_v46 = vpop.eup %16285  ;;  %v2406_v36 = vrot.slane %v2392_v45, %v16978_v34  ;;  %v1127_v27 = vsel %vm962_vm5, %v17563_v38, %v15258_v40  ;;  %v7503_v28 = vadd.f32 %v17550_v9, %v17570_v53  ;;  %v15289_v26 = vcombine.high %v2373_v22, %v2387_v14  ;;  %v17786_v40 = vpop.f32.mrf.mxu1 }
 0x1e5   : > { %v16288_v52 = vpop.eup %16287  ;;  %4533 = vst.msk [vmem:[#allocation2 + $0x128] sm:$0xff] %vm4504_vm9, %v3980_v44  ;;  %v4043_v25 = vrot.slane %v4036_v49, %v16978_v34  ;;  %v2407_v51 = vcombine.high %v2399_v30, %v2399_v30  ;;  %v4005_v12 = vrot.slane %v3983_v47, %v16978_v34  ;;  %v4012_v45 = vrot.slane %v3984_v1, %v16978_v34  ;;  %v5120_v56 = vpop.f32.mrf.mxu0 }
 0x1e6   : > { %v4013_v63 = vcombine.low %v3991_v13, %v3998_v8  ;;  %v2408_v38 = vcombine.high %v2406_v36, %v2406_v36  ;;  %21843 = vst [vmem:[#allocation26_spill] sm:$0xff] %v17786_v40  ;;  %v17789_v54 = vmul.f32 %v17526_v11, %v7791_v60  ;;  %v2415_v9 = vrot.slane %v2399_v30, %v16978_v34  ;;  %v17797_v49 = vpop.f32.mrf.mxu1 }
 0x1e7   : > { %4535 = vst.msk [vmem:[#allocation2 + $0x138] sm:$0x1] %vm4509_vm12, %v4043_v25  ;;  %v2429_v53 = vrot.slane %v2407_v51, %v16978_v34  ;;  %v2441_v22 = vcombine.high %v1127_v27, %v1127_v27  ;;  %v4014_v14 = vcombine.low %v4005_v12, %v4012_v45  ;;  %v2422_v47 = vrot.slane %v2406_v36, %v16978_v34  ;;  %v17799_v1 = vpop.f32.mrf.mxu0 }
 0x1e8   : > { %v2436_v44 = vrot.slane %v2408_v38, %v16978_v34  ;;  %v2448_v8 = vrot.slane %v1127_v27, %v16978_v34  ;;  %21844 = vst [vmem:[#allocation27_spill] sm:$0xff] %v17797_v49  ;;  %v7627_v60 = vadd.f32 %v17556_v43, %v7503_v28  ;;  %v4054_v13 = vrot.slane %v15289_v26, %v16978_v34  ;;  %v17808_v40 = vpop.f32.mrf.mxu1 }
 0x1e9   : > { %v4045_v56 = vcombine.low %v2415_v9, %v2429_v53  ;;  %vm963_vm6 = vcmp.gt.f32.partialorder %v17575_v5, 0.0  ;;  %v4021_v30 = vrot.slane %v4013_v63, %v16978_v34  ;;  %v4028_v25 = vrot.slane %v4014_v14, %v16978_v34  ;;  %v5123_v12 = vpop.f32.mrf.mxu0  ;;  %21845 = vst [vmem:[#allocation28_spill] sm:$0xff] %v17808_v40 }
 0x1ea   : > { %v15290_v36 = vcombine.high %v2415_v9, %v2429_v53  ;;  %v4047_v51 = vcombine.low %v2422_v47, %v2436_v44  ;;  %v2455_v45 = vrot.slane %v2441_v22, %v16978_v34  ;;  %v15259_v38 = vadd.f32 -1.0, %v16286_v46 }
 0x1eb   : > { %v4061_v27 = vrot.slane %v4045_v56, %v16978_v34  ;;  %v15260_v49 = vadd.f32 -1.0, %v16288_v52  ;;  %v4029_v43 = vcombine.low %v4021_v30, %v4028_v25  ;;  %v2456_v11 = vcombine.high %v2448_v8, %v2448_v8  ;;  %v17812_v63 = vpop.f32.mrf.mxu0 }
 0x1ec   : > { %v4068_v28 = vrot.slane %v15290_v36, %v16978_v34  ;;  %v4075_v26 = vrot.slane %v4047_v51, %v16978_v34  ;;  %v15291_v9 = vcombine.high %v2422_v47, %v2436_v44  ;;  %v2457_v53 = vcombine.high %v2455_v45, %v2455_v45 }
 0x1ed   : > { %v4076_v14 = vcombine.low %v4054_v13, %v4061_v27  ;;  %vm964_vm7 = vcmp.gt.f32.partialorder %v17607_v7, 0.0  ;;  %4534 = vst.msk [vmem:[#allocation2 + $0x130] sm:$0xff] %vm4504_vm9, %v4029_v43  ;;  %v2464_v46 = vrot.slane %v2448_v8, %v16978_v34  ;;  %v2471_v52 = vrot.slane %v2455_v45, %v16978_v34  ;;  %v5128_v30 = vpop.f32.mrf.mxu0  ;;  %v17825_v13 = vpop.f32.mrf.mxu1 }
 0x1ee   : > { %v4077_v22 = vcombine.low %v4068_v28, %v4075_v26  ;;  %v2478_v56 = vrot.slane %v2456_v11, %v16978_v34  ;;  %v2485_v36 = vrot.slane %v2457_v53, %v16978_v34  ;;  %v1128_v47 = vsel %vm963_vm6, %v17575_v5, %v15259_v38 }
 0x1ef   : > { %v4084_v25 = vrot.slane %v4076_v14, %v16978_v34  ;;  %v1129_v44 = vsel %vm964_vm7, %v17607_v7, %v15260_v49  ;;  %v2490_v27 = vcombine.high %v1128_v47, %v1128_v47  ;;  %v7751_v11 = vadd.f32 %v17559_v0, %v7627_v60  ;;  %v17833_v49 = vpop.f32.mrf.mxu0  ;;  %v17837_v0 = vpop.f32.mrf.mxu1 }
 0x1f0   : > { %v4091_v51 = vrot.slane %v4077_v22, %v16978_v34  ;;  %v4094_v8 = vcombine.low %v2464_v46, %v2478_v56  ;;  %v15292_v12 = vcombine.high %v2464_v46, %v2478_v56  ;;  %v4096_v45 = vcombine.low %v2471_v52, %v2485_v36  ;;  %21846 = vst [vmem:[#allocation29_spill] sm:$0xff] %v17833_v49 }
 0x1f1   : > { %v2497_v43 = vrot.slane %v1128_v47, %v16978_v34  ;;  %v2539_v28 = vcombine.high %v1129_v44, %v1129_v44  ;;  %v4103_v14 = vrot.slane %v15291_v9, %v16978_v34  ;;  %v2504_v7 = vrot.slane %v2490_v27, %v16978_v34 }
 0x1f2   : > { %v4092_v26 = vcombine.low %v4084_v25, %v4091_v51  ;;  %v4110_v5 = vrot.slane %v4094_v8, %v16978_v34  ;;  %v4117_v38 = vrot.slane %v15292_v12, %v16978_v34  ;;  %v4124_v53 = vrot.slane %v4096_v45, %v16978_v34  ;;  %v5131_v25 = vpop.f32.mrf.mxu0 }
 0x1f3   : > { %v15293_v22 = vcombine.high %v2471_v52, %v2485_v36  ;;  %v2505_v46 = vcombine.high %v2497_v43, %v2497_v43  ;;  %v2506_v56 = vcombine.high %v2504_v7, %v2504_v7  ;;  %v2513_v9 = vrot.slane %v2497_v43, %v16978_v34 }
 0x1f4   : > { %4536 = vst.msk [vmem:[#allocation2 + $0x150] sm:$0xff] %vm4504_vm9, %v4092_v26  ;;  %v4125_v60 = vcombine.low %v4103_v14, %v4110_v5  ;;  %v2546_v30 = vrot.slane %v1129_v44, %v16978_v34  ;;  %v4126_v47 = vcombine.low %v4117_v38, %v4124_v53  ;;  %v2520_v51 = vrot.slane %v2504_v7, %v16978_v34  ;;  %v17848_v26 = vpop.f32.mrf.mxu0  ;;  %v17851_v38 = vpop.f32.mrf.mxu1 }
 0x1f5   : > { %v2527_v8 = vrot.slane %v2505_v46, %v16978_v34  ;;  %v2553_v12 = vrot.slane %v2539_v28, %v16978_v34  ;;  %v2534_v36 = vrot.slane %v2506_v56, %v16978_v34  ;;  %21847 = vst [vmem:[#allocation30_spill] sm:$0xff] %v17848_v26  ;;  %21848 = vst [vmem:[#allocation31_spill] sm:$0xff] %v17851_v38  ;;  %v21859_v26 = vsub.s32 5, %v16963_v23 }
 0x1f6   : > { %v4133_v52 = vrot.slane %v4125_v60, %v16978_v34  ;;  %v2554_v27 = vcombine.high %v2546_v30, %v2546_v30  ;;  %v2562_v45 = vrot.slane %v2546_v30, %v16978_v34  ;;  %v4140_v43 = vrot.slane %v4126_v47, %v16978_v34  ;;  %v5136_v60 = vpop.f32.mrf.mxu0 }
 0x1f7   : > { %v4143_v44 = vcombine.low %v2513_v9, %v2527_v8  ;;  %v15294_v14 = vcombine.high %v2513_v9, %v2527_v8  ;;  %v2555_v5 = vcombine.high %v2553_v12, %v2553_v12  ;;  %v4145_v7 = vcombine.low %v2520_v51, %v2534_v36 }
 0x1f8   : > { %v15295_v53 = vcombine.high %v2520_v51, %v2534_v36  ;;  %v2569_v28 = vrot.slane %v2553_v12, %v16978_v34  ;;  %v2576_v46 = vrot.slane %v2554_v27, %v16978_v34  ;;  %v4141_v56 = vcombine.low %v4133_v52, %v4140_v43  ;;  %v17862_v51 = vpop.f32.mrf.mxu0  ;;  %v17867_v27 = vpop.f32.mrf.mxu1  ;;  %v7052_v43 = vld [vmem:[#allocation2 + $0x39] sm:$0xff] }
 0x1f9   : > { %v4152_v25 = vrot.slane %v15293_v22, %v16978_v34  ;;  %v4159_v30 = vrot.slane %v4143_v44, %v16978_v34  ;;  %v17858_v40 = vrot.slane %v2555_v5, %v16978_v34  ;;  %v4166_v9 = vrot.slane %v15294_v14, %v16978_v34  ;;  %21849 = vst [vmem:[#allocation32_spill] sm:$0xff] %v17862_v51  ;;  %v16419_v51 = vld [vmem:[#allocation2 + $0x8] sm:$0xff] }
 0x1fa   : > { %v4173_v47 = vrot.slane %v4145_v7, %v16978_v34  ;;  %v2585_v8 = vcombine.high %v2569_v28, %v2569_v28  ;;  %v4192_v38 = vcombine.low %v2562_v45, %v2576_v46  ;;  %v7875_v12 = vadd.f32 %v17789_v54, %v7751_v11  ;;  %4537 = vst.msk [vmem:[#allocation2 + $0x158] sm:$0xff] %vm4504_vm9, %v4141_v56  ;;  %v5139_v60 = vpop.f32.mrf.mxu0 }
 0x1fb   : > { %v4174_v52 = vcombine.low %v4152_v25, %v4159_v30  ;;  %v15296_v36 = vcombine.high %v2562_v45, %v2576_v46  ;;  %v4194_v22 = vcombine.low %v2569_v28, %v17858_v40  ;;  %21850 = vst [vmem:[#allocation33_spill] sm:$0xff] %v17867_v27  ;;  %v4201_v14 = vrot.slane %v15295_v53, %v16978_v34  ;;  %v6928_v46 = vld [vmem:[#allocation2 + $0x38] sm:$0xff] }
 0x1fc   : > { %v4175_v44 = vcombine.low %v4166_v9, %v4173_v47  ;;  %v4208_v5 = vrot.slane %v4192_v38, %v16978_v34  ;;  %v4246_v7 = vrot.slane %v2585_v8, %v16978_v34  ;;  %v7935_v54 = vmul.f32 %v16419_v51, %v17534_v10  ;;  %v17878_v30 = vpop.f32.mrf.mxu0  ;;  %v7172_v38 = vld [vmem:[#allocation2 + $0xa] sm:$0xff] }
 0x1fd   : > { %v4215_v11 = vrot.slane %v15296_v36, %v16978_v34  ;;  %v4222_v45 = vrot.slane %v4194_v22, %v16978_v34  ;;  %v4182_v28 = vrot.slane %v4174_v52, %v16978_v34  ;;  %21851 = vst [vmem:[#allocation34_spill] sm:$0xff] %v17878_v30  ;;  %v16420_v9 = vld [vmem:[#allocation2 + $0x9] sm:$0xff]  ;;  %v7096_v8 = vmul.f32 %v17112_v18, %v7052_v43  ;;  %v7057_v51 = vld [vmem:[#allocation2 + $0x71] sm:$0xff]  ;;  %v17882_v22 = vpop.f32.mrf.mxu1 }
 0x1fe   : > { %v4189_v56 = vrot.slane %v4175_v44, %v16978_v34  ;;  %v4223_v25 = vcombine.low %v4201_v14, %v4208_v5  ;;  %v4253_v53 = vrot.slane %v4246_v7, %v16978_v34  ;;  %v8035_v47 = vmul.f32 %v16420_v9, %v17538_v42  ;;  %21852 = vst [vmem:[#allocation35_spill] sm:$0xff] %v17882_v22  ;;  %v5144_v14 = vpop.f32.mrf.mxu0  ;;  %v6933_v43 = vld [vmem:[#allocation2 + $0x70] sm:$0xff] }
 0x1ff   : > { %v4224_v36 = vcombine.low %v4215_v11, %v4222_v45  ;;  %v7975_v60 = vadd.f32 %v7935_v54, %v7875_v12  ;;  %v17887_v52 = vrot.slane %v17505_v29, %v17214_v39  ;;  %v17891_v44 = vrot.slane %v17505_v29, %v17221_v35  ;;  %v17896_v54 = vld [vmem:[#allocation2 + $0xb] sm:$0xff]  ;;  %v7176_v45 = vld [vmem:[#allocation2 + $0x3a] sm:$0xff]  ;;  %v17910_v22 = vpop.f32.mrf.mxu1 }
 0x200   : > { %v4190_v27 = vcombine.low %v4182_v28, %v4189_v56  ;;  %4540 = vst.msk [vmem:[#allocation2 + $0x170] sm:$0x1] %vm4509_vm12, %v4253_v53  ;;  %v6972_v5 = vmul.f32 %v17108_v15, %v6928_v46  ;;  %v4231_v7 = vrot.slane %v4223_v25, %v16978_v34  ;;  %v7101_v28 = vmul.f32 %v17112_v18, %v7057_v51  ;;  %v17906_v46 = vpop.f32.mrf.mxu0 }
 0x201   : > { %21853 = vst [vmem:[#allocation36_spill] sm:$0xff] %v17887_v52  ;;  %21854 = vst [vmem:[#allocation37_spill] sm:$0xff] %v17891_v44  ;;  %v4238_v12 = vrot.slane %v4224_v36, %v16978_v34  ;;  %v8075_v11 = vadd.f32 %v8035_v47, %v7975_v60  ;;  %v8135_v56 = vmul.f32 %v17887_v52, %v7172_v38  ;;  %v21855_v53 = vsub.s32 4, %v16963_v23  ;;  %v17908_v36 = vld [vmem:[#allocation2 + $0xc] sm:$0xff]  ;;  %v7300_v47 = vld [vmem:[#allocation2 + $0x3b] sm:$0xff] }
 0x202   : > { %4538 = vst.msk [vmem:[#allocation2 + $0x160] sm:$0xff] %vm4504_vm9, %v4190_v27  ;;  %21857 = vst [vmem:[#allocation39_spill] sm:$0xff] %v17906_v46  ;;  %v7136_v25 = vadd.f32 %v7096_v8, %v6972_v5  ;;  %v7424_v60 = vld [vmem:[#allocation2 + $0x3c] sm:$0xff]  ;;  %v6977_v51 = vmul.f32 %v17108_v15, %v6933_v43  ;;  %v8235_v30 = vmul.f32 %v17891_v44, %v17896_v54  ;;  %v5147_v46 = vpop.f32.mrf.mxu0 }
 0x203   : > { %v17904_v9 = vrot.slane %v17505_v29, %v21855_v53  ;;  %v4239_v14 = vcombine.low %v4231_v7, %v4238_v12  ;;  %21858 = vst [vmem:[#allocation40_spill] sm:$0xff] %v17910_v22  ;;  %v8175_v27 = vadd.f32 %v8135_v56, %v8075_v11  ;;  %v17918_v53 = vrot.slane %v17505_v29, %v21859_v26  ;;  %v7181_v7 = vld [vmem:[#allocation2 + $0x72] sm:$0xff] }
 0x204   : > { %v7216_v8 = vmul.f32 %v17470_v19, %v7172_v38  ;;  %v7220_v5 = vmul.f32 %v17470_v19, %v7176_v45  ;;  %v17923_v12 = vld [vmem:[#allocation2 + $0xd] sm:$0xff]  ;;  %v7141_v43 = vadd.f32 %v7101_v28, %v6977_v51  ;;  %v21861_v38 = vsub.s32 6, %v16963_v23  ;;  %v17935_v46 = vpop.f32.mrf.mxu0 }
 0x205   : > { %21856 = vst [vmem:[#allocation38_spill] sm:$0xff] %v17904_v9  ;;  %21860 = vst [vmem:[#allocation41_spill] sm:$0xff] %v17918_v53  ;;  %v7305_v11 = vld [vmem:[#allocation2 + $0x73] sm:$0xff]  ;;  %v8275_v49 = vadd.f32 %v8235_v30, %v8175_v27  ;;  %v8335_v26 = vmul.f32 %v17904_v9, %v17908_v36  ;;  %v17943_v51 = vmul.f32 %v17492_v6, %v7300_v47  ;;  %v17950_v9 = vpop.f32.mrf.mxu1 }
 0x206   : > { %4539 = vst.msk [vmem:[#allocation2 + $0x168] sm:$0xff] %vm4504_vm9, %v4239_v14  ;;  %v7429_v56 = vld [vmem:[#allocation2 + $0x74] sm:$0xff]  ;;  %v6922_v22 = vld [vmem:[%s21754_s6 + $0x10] sm:$0xf]  ;;  %v17933_v45 = vrot.slane %v17505_v29, %v21861_v38  ;;  %21863 = vst [vmem:[#allocation43_spill] sm:$0xff] %v17935_v46  ;;  %v17938_v14 = vadd.f32 %v7216_v8, %v17122_v37  ;;  %v17940_v28 = vadd.f32 %v7220_v5, %v7136_v25  ;;  %v21869_v37 = vsub.s32 7, %v16963_v23  ;;  %v5152_v47 = vpop.f32.mrf.mxu0 }
 0x207   : > { %21866 = vst [vmem:[#allocation46_spill] sm:$0xff] %v17943_v51  ;;  %v17946_v30 = vmul.f32 %v17496_v31, %v7424_v60  ;;  %v17948_v27 = vld [vmem:[#allocation2 + $0xe] sm:$0xff]  ;;  %21868 = vst [vmem:[#allocation48_spill] sm:$0xff] %v17950_v9  ;;  %v7225_v38 = vmul.f32 %v17470_v19, %v7181_v7  ;;  %v8375_v44 = vadd.f32 %v8335_v26, %v8275_v49  ;;  %v17974_v49 = vld [vmem:[%s21757_s9] ss:$0 sm:$0xff] }
 0x208   : > { %21862 = vst [vmem:[#allocation42_spill] sm:$0xff] %v17933_v45  ;;  %21864 = vst [vmem:[#allocation44_spill] sm:$0xff] %v17938_v14  ;;  %v8435_v46 = vmul.f32 %v17918_v53, %v17923_v12  ;;  %v17958_v25 = vrot.slane %v17505_v29, %v21869_v37  ;;  %v17961_v8 = vmul.f32 %v17492_v6, %v7305_v11  ;;  %v17966_v5 = vld [vmem:[#allocation2 + $0xf] sm:$0xff]  ;;  %v17990_v37 = vpop.f32.mrf.mxu0 }
 0x209   : > { %21865 = vst [vmem:[#allocation45_spill] sm:$0xff] %v17940_v28  ;;  %21867 = vst [vmem:[#allocation47_spill] sm:$0xff] %v17946_v30  ;;  %v17964_v60 = vmul.f32 %v17496_v31, %v7429_v56  ;;  %v17969_v7 = vrot.slane %v6922_v22, %v17082_v55  ;;  %v17978_v23 = vadd.f32 %v17974_v49, %v17514_v50  ;;  %v17982_v11 = vld [vmem:[#allocation2 + $0x10] sm:$0xff] }
 0x20a   : > { %21870 = vst [vmem:[#allocation49_spill] sm:$0xff] %v17958_v25  ;;  %21871 = vst [vmem:[#allocation50_spill] sm:$0xff] %v17961_v8  ;;  %v17980_v29 = vadd.f32 %v7225_v38, %v7141_v43  ;;  %v8475_v56 = vadd.f32 %v8435_v46, %v8375_v44  ;;  %v8535_v26 = vmul.f32 %v17933_v45, %v17948_v27  ;;  %v18000_v46 = vpop.f32.mrf.mxu1  ;;  %v18002_v38 = vld [vmem:[#allocation2 + $0x11] sm:$0xff] }
 0x20b   : > { %21872 = vst [vmem:[#allocation51_spill] sm:$0xff] %v17964_v60  ;;  %21873 = vst [vmem:[#allocation52_spill] sm:$0xff] %v17969_v7  ;;  %v17988_v55 = vadd.f32 %v17974_v49, %v17624_v62  ;;  %v15613_v47 = vadd.f32 %v17553_v2, %v17512_v20  ;;  %v15616_v50 = vadd.f32 %v17599_v3, %v17583_v41  ;;  %v998_v44 = vmin.f32 %v17978_v23, 0.0  ;;  %v5155_v2 = vpop.f32.mrf.mxu0 }
 0x20c   : > { %21874 = vst [vmem:[#allocation53_spill] sm:$0xff] %v17980_v29  ;;  %21875 = vst [vmem:[#allocation54_spill] sm:$0xff] %v17990_v37  ;;  %v17997_v43 = vrot.slane %v6922_v22, %v17097_v4  ;;  %v8575_v60 = vadd.f32 %v8535_v26, %v8475_v56  ;;  %v8635_v62 = vmul.f32 %v17958_v25, %v17966_v5  ;;  %v6938_v26 = vld [vmem:[#allocation2 + $0xa8] sm:$0xff]  ;;  %vm965_vm8 = vcmp.gt.f32.partialorder %v17978_v23, 0.0 }
 0x20d   : > { %21877 = vst [vmem:[#allocation56_spill] sm:$0xff] %v18000_v46  ;;  %v999_v8 = vmin.f32 %v17988_v55, 0.0  ;;  %v18009_v20 = vadd.f32 %v17974_v49, %v17669_v58  ;;  %v8735_v4 = vmul.f32 %v17969_v7, %v17982_v11  ;;  %v18014_v41 = vrot.slane %v6922_v22, %v17214_v39  ;;  %v7062_v29 = vld [vmem:[#allocation2 + $0xa9] sm:$0xff]  ;;  %v18023_v28 = vpop.f32.mrf.mxu0  ;;  %v18025_v7 = vld [vmem:[#allocation2 + $0x12] sm:$0xff] }
 0x20e   : > { %21876 = vst [vmem:[#allocation55_spill] sm:$0xff] %v17997_v43  ;;  %v1060_v3 = vmul.f32 1.442695, %v998_v44  ;;  %v18018_v56 = vadd.f32 %v17974_v49, %v17685_v17  ;;  %v8675_v30 = vadd.f32 %v8635_v62, %v8575_v60  ;;  %v15619_v51 = vadd.f32 %v17632_v57, %v17614_v32  ;;  %21879 = vst [vmem:[#allocation58_spill] sm:$0xff] %v18023_v28  ;;  %v21881_v17 = vld [vmem:[#allocation11_spill] sm:$0xff]  ;;  %v21882_v25 = vld [vmem:[#allocation12_spill] sm:$0xff]  ;;  %v18034_v62 = vpop.f32.mrf.mxu1 }
 0x20f   : > { %21878 = vst [vmem:[#allocation57_spill] sm:$0xff] %v18014_v41  ;;  %v1062_v58 = vmul.f32 1.442695, %v999_v8  ;;  %v1000_v2 = vmin.f32 %v18009_v20, 0.0  ;;  %v8835_v39 = vmul.f32 %v17997_v43, %v18002_v38  ;;  %v18030_v44 = vrot.slane %v6922_v22, %v17221_v35  ;;  %21883 = vst [vmem:[#allocation11_spill] sm:$0xff] %v18034_v62  ;;  %v18036_v32 = vld [vmem:[#allocation2 + $0x13] sm:$0xff]  ;;  %v5160_v53 = vpop.f32.mrf.mxu0 }
 0x210   : > { %16289 = vpow2.f32 %v1060_v3  ;;  %v15622_v60 = vadd.f32 %v21882_v25, %v21881_v17  ;;  %v8775_v57 = vadd.f32 %v8735_v4, %v8675_v30  ;;  %v1001_v45 = vmin.f32 %v18018_v56, 0.0  ;;  %v7186_v3 = vld [vmem:[#allocation2 + $0xaa] sm:$0xff] }
 0x211   : > { %21880 = vst [vmem:[#allocation59_spill] sm:$0xff] %v18030_v44  ;;  %16291 = vpow2.f32 %v1062_v58  ;;  %v1064_v8 = vmul.f32 1.442695, %v1000_v2  ;;  %v18040_v14 = vmul.f32 %v17108_v15, %v6938_v26  ;;  %v18043_v35 = vmul.f32 %v17112_v18, %v7062_v29  ;;  %v21884_v26 = vld [vmem:[#allocation13_spill] sm:$0xff]  ;;  %v21885_v58 = vld [vmem:[#allocation14_spill] sm:$0xff]  ;;  %v21886_v29 = vld [vmem:[#allocation20_spill] sm:$0xff] }
 0x212   : > { %v5006_v22 = vadd.f32 %v17974_v49, %v15613_v47  ;;  %v5009_v25 = vadd.f32 %v17974_v49, %v15616_v50  ;;  %v8875_v17 = vadd.f32 %v8835_v39, %v8775_v57  ;;  %v8935_v30 = vmul.f32 %v18014_v41, %v18025_v7  ;;  %v18060_v50 = vpop.f32.mrf.mxu1 }
 0x213   : > { %16293 = vpow2.f32 %v1064_v8  ;;  %v5014_v4 = vadd.f32 %v17974_v49, %v15619_v51  ;;  %v9035_v53 = vmul.f32 %v18030_v44, %v18036_v32  ;;  %v15625_v2 = vadd.f32 %v21885_v58, %v21884_v26  ;;  %21887 = vst [vmem:[#allocation12_spill] sm:$0xff] %v18060_v50  ;;  %v21888_v58 = vld [vmem:[#allocation15_spill] sm:$0xff] }
 0x214   : > { %v18055_v43 = vadd.f32 %v21886_v29, %v5006_v22  ;;  %v18058_v47 = vadd.f32 %v17729_v59, %v5009_v25  ;;  %v8975_v39 = vadd.f32 %v8935_v30, %v8875_v17  ;;  %v1066_v57 = vmul.f32 1.442695, %v1001_v45  ;;  %v21889_v17 = vld [vmem:[#allocation16_spill] sm:$0xff]  ;;  %v18084_v41 = vpop.f32.mrf.mxu1 }
 0x215   : > { %v18063_v8 = vadd.f32 %v17745_v48, %v5014_v4  ;;  %v5017_v51 = vadd.f32 %v17974_v49, %v15622_v60  ;;  %v18067_v44 = vmul.f32 %v17470_v19, %v7186_v3  ;;  %v18071_v26 = vmul.f32 %v17112_v18, %v18002_v38  ;;  %21890 = vst [vmem:[#allocation13_spill] sm:$0xff] %v18084_v41 }
 0x216   : > { %v5181_v22 = vmin.f32 %v18055_v43, 0.0  ;;  %v5182_v59 = vmin.f32 %v18058_v47, 0.0  ;;  %v9075_v25 = vadd.f32 %v9035_v53, %v8975_v39  ;;  %v15628_v45 = vadd.f32 %v21889_v17, %v21888_v58  ;;  %v18096_v17 = vpop.f32.mrf.mxu1 }
 0x217   : > { %v5183_v48 = vmin.f32 %v18063_v8, 0.0  ;;  %v18079_v30 = vadd.f32 %v17758_v61, %v5017_v51  ;;  %v5022_v29 = vadd.f32 %v17974_v49, %v15625_v2  ;;  %16295 = vpow2.f32 %v1066_v57  ;;  %21891 = vst [vmem:[#allocation14_spill] sm:$0xff] %v18096_v17 }
 0x218   : > { %v5197_v3 = vmul.f32 1.442695, %v5181_v22  ;;  %v5199_v4 = vmul.f32 1.442695, %v5182_v59  ;;  %v9155_v50 = vcombine.high %v9075_v25, %v9075_v25  ;;  %v9162_v53 = vrot.slane %v9075_v25, %v16978_v34 }
 0x219   : > { %v5201_v39 = vmul.f32 1.442695, %v5183_v48  ;;  %v5184_v61 = vmin.f32 %v18079_v30, 0.0  ;;  %v18090_v51 = vadd.f32 %v17778_v21, %v5022_v29  ;;  %v5025_v2 = vadd.f32 %v17974_v49, %v15628_v45 }
 0x21a   : > { %16297 = vpow2.f32 %v5197_v3  ;;  %v9169_v22 = vrot.slane %v9155_v50, %v16978_v34  ;;  %v9170_v59 = vcombine.high %v9162_v53, %v9162_v53  ;;  %v9178_v58 = vrot.slane %v9162_v53, %v16978_v34 }
 0x21b   : > { %16299 = vpow2.f32 %v5199_v4  ;;  %v5203_v25 = vmul.f32 1.442695, %v5184_v61  ;;  %v5185_v57 = vmin.f32 %v18090_v51, 0.0  ;;  %v18101_v50 = vadd.f32 %v17799_v1, %v5025_v2  ;;  %v18113_v1 = vpop.f32.mrf.mxu1 }
 0x21c   : > { %16301 = vpow2.f32 %v5201_v39  ;;  %v9171_v3 = vcombine.high %v9169_v22, %v9169_v22  ;;  %v9185_v60 = vrot.slane %v9169_v22, %v16978_v34  ;;  %v9192_v21 = vrot.slane %v9170_v59, %v16978_v34  ;;  %21893 = vst [vmem:[#allocation15_spill] sm:$0xff] %v18113_v1 }
 0x21d   : > { %v16290_v48 = vpop.eup %16289  ;;  %16303 = vpow2.f32 %v5203_v25  ;;  %v5205_v45 = vmul.f32 1.442695, %v5185_v57  ;;  %v18105_v53 = vadd.f32 %v17837_v0, %v17825_v13  ;;  %vm966_vm10 = vcmp.gt.f32.partialorder %v17988_v55, 0.0 }
 0x21e   : > { %v16292_v4 = vpop.eup %16291  ;;  %v15261_v29 = vadd.f32 -1.0, %v16290_v48  ;;  %v9199_v39 = vrot.slane %v9171_v3, %v16978_v34  ;;  %v11041_v61 = vcombine.low %v9178_v58, %v9192_v21  ;;  %v15479_v17 = vcombine.high %v9178_v58, %v9192_v21 }
 0x21f   : > { %21892 = vst [vmem:[#allocation20_spill] sm:$0xff] %v18105_v53  ;;  %v15262_v41 = vadd.f32 -1.0, %v16292_v4  ;;  %vm967_vm13 = vcmp.gt.f32.partialorder %v18009_v20, 0.0  ;;  %16305 = vpow2.f32 %v5205_v45  ;;  %vm968_vm14 = vcmp.gt.f32.partialorder %v18018_v56, 0.0 }
 0x220   : > { %v16294_v62 = vpop.eup %16293  ;;  %v1130_v22 = vsel %vm965_vm8, %v17978_v23, %v15261_v29  ;;  %v11043_v59 = vcombine.low %v9185_v60, %v9199_v39  ;;  %v15480_v13 = vcombine.high %v9185_v60, %v9199_v39  ;;  %v11051_v0 = vrot.slane %v11041_v61, %v16978_v34 }
 0x221   : > { %v11058_v2 = vrot.slane %v15479_v17, %v16978_v34  ;;  %v2588_v58 = vcombine.high %v1130_v22, %v1130_v22  ;;  %v2595_v25 = vrot.slane %v1130_v22, %v16978_v34  ;;  %v1131_v57 = vsel %vm966_vm10, %v17988_v55, %v15262_v41  ;;  %v18124_v17 = vpop.f32.mrf.mxu1 }
 0x222   : > { %v15263_v48 = vadd.f32 -1.0, %v16294_v62  ;;  %v11065_v23 = vrot.slane %v11043_v59, %v16978_v34  ;;  %v11072_v3 = vrot.slane %v15480_v13, %v16978_v34  ;;  %v2637_v4 = vcombine.high %v1131_v57, %v1131_v57  ;;  %21894 = vst [vmem:[#allocation16_spill] sm:$0xff] %v18124_v17 }
 0x223   : > { %v11073_v21 = vcombine.low %v11051_v0, %v11058_v2  ;;  %v2602_v29 = vrot.slane %v2588_v58, %v16978_v34  ;;  %v2603_v45 = vcombine.high %v2595_v25, %v2595_v25  ;;  %v2611_v60 = vrot.slane %v2595_v25, %v16978_v34 }
 0x224   : > { %v2644_v39 = vrot.slane %v1131_v57, %v16978_v34  ;;  %v11074_v61 = vcombine.low %v11065_v23, %v11072_v3  ;;  %v2651_v55 = vrot.slane %v2637_v4, %v16978_v34  ;;  %v1132_v41 = vsel %vm967_vm13, %v18009_v20, %v15263_v48  ;;  %v16296_v62 = vpop.eup %16295 }
 0x225   : > { %v11081_v22 = vrot.slane %v11073_v21, %v16978_v34  ;;  %v2604_v59 = vcombine.high %v2602_v29, %v2602_v29  ;;  %v2618_v13 = vrot.slane %v2602_v29, %v16978_v34  ;;  %v2625_v0 = vrot.slane %v2603_v45, %v16978_v34  ;;  %v18140_v29 = vpop.f32.mrf.mxu1  ;;  %v18142_v45 = vpop.f32.mrf.mxu0 }
 0x226   : > { %v2633_v2 = vcombine.high %v2611_v60, %v2611_v60  ;;  %v11088_v25 = vrot.slane %v11074_v61, %v16978_v34  ;;  %v21895_v57 = vcombine.high %v17858_v40, %v17858_v40  ;;  %v2652_v3 = vcombine.high %v2644_v39, %v2644_v39  ;;  %21896 = vst [vmem:[#allocation60_spill] sm:$0xff] %v18140_v29 }
 0x227   : > { %v16298_v58 = vpop.eup %16297  ;;  %v2653_v21 = vcombine.high %v2651_v55, %v2651_v55  ;;  %v2632_v20 = vrot.slane %v2604_v59, %v16978_v34  ;;  %v2634_v48 = vcombine.high %v2618_v13, %v2618_v13  ;;  %v2635_v17 = vcombine.high %v2625_v0, %v2625_v0  ;;  %21897 = vst [vmem:[#allocation61_spill] sm:$0xff] %v18142_v45 }
 0x228   : > { %v4254_v23 = vcombine.low %v21895_v57, %v2611_v60  ;;  %v18137_v4 = vpop.eup %16299  ;;  %v4255_v1 = vcombine.low %v2625_v0, %v2633_v2  ;;  %v11089_v61 = vcombine.low %v11081_v22, %v11088_v25  ;;  %v2660_v40 = vrot.slane %v2644_v39, %v16978_v34  ;;  %v5163_v2 = vpop.f32.mrf.mxu0 }
 0x229   : > { %v18144_v46 = vpop.eup %16301  ;;  %v2667_v60 = vrot.slane %v2651_v55, %v16978_v34  ;;  %v4256_v57 = vcombine.low %v2635_v17, %v2618_v13  ;;  %v4257_v59 = vcombine.low %v2632_v20, %v2634_v48  ;;  %v2636_v0 = vcombine.high %v2632_v20, %v2632_v20  ;;  %v18158_v48 = vpop.f32.mrf.mxu1 }
 0x22a   : > { %v4264_v9 = vrot.slane %v4254_v23, %v16978_v34  ;;  %v4271_v28 = vrot.slane %v4255_v1, %v16978_v34  ;;  %v18151_v29 = vpop.eup %16303  ;;  %15859 = vmatmul.mubr.msk.f32.vlgmr.msra.gmra.mxu1 %vm4504_vm9, %v11089_v61  ;;  %v2674_v22 = vrot.slane %v2652_v3, %v16978_v34  ;;  %v2681_v25 = vrot.slane %v2653_v21, %v16978_v34 }
 0x22b   : > { %v2682_v23 = vcombine.high %v2660_v40, %v2660_v40  ;;  %v2683_v39 = vcombine.high %v2667_v60, %v2667_v60  ;;  %v4278_v55 = vrot.slane %v4256_v57, %v16978_v34  ;;  %v4285_v45 = vrot.slane %v4257_v59, %v16978_v34 }
 0x22c   : > { %v4286_v17 = vcombine.low %v4264_v9, %v4271_v28  ;;  %v4303_v13 = vcombine.low %v2636_v0, %v2660_v40  ;;  %v21898_v1 = vmov 0.0   ;;  %v18162_v20 = vpop.eup %16305  ;;  %v2684_v61 = vcombine.high %v2674_v22, %v2674_v22 }
 0x22d   : > { %15861 = vmatprep.mubr.msk.f32.mxu1 %vm16438_vm11, %v21898_v1  ;;  %v4304_v2 = vcombine.low %v2674_v22, %v2682_v23  ;;  %v4306_v3 = vcombine.low %v2681_v25, %v2683_v39  ;;  %v2685_v37 = vcombine.high %v2681_v25, %v2681_v25  ;;  %v4287_v21 = vcombine.low %v4278_v55, %v4285_v45  ;;  %v18172_v25 = vpop.f32.mrf.mxu1 }
 0x22e   : > { %v4294_v53 = vrot.slane %v4286_v17, %v16978_v34  ;;  %v4313_v57 = vrot.slane %v4303_v13, %v16978_v34  ;;  %v2686_v52 = vcombine.high %v1132_v41, %v1132_v41  ;;  %v4305_v59 = vcombine.low %v2684_v61, %v2667_v60 }
 0x22f   : > { %v4320_v9 = vrot.slane %v4304_v2, %v16978_v34  ;;  %v4334_v28 = vrot.slane %v4306_v3, %v16978_v34  ;;  %v2693_v40 = vrot.slane %v1132_v41, %v16978_v34  ;;  %v4301_v0 = vrot.slane %v4287_v21, %v16978_v34 }
 0x230   : > { %v2700_v1 = vrot.slane %v2686_v52, %v16978_v34  ;;  %v15264_v22 = vadd.f32 -1.0, %v16296_v62  ;;  %vm5165_vm15 = vcmp.gt.f32.partialorder %v18055_v43, 0.0  ;;  %v15364_v45 = vadd.f32 -1.0, %v16298_v58 }
 0x231   : > { %v4327_v23 = vrot.slane %v4305_v59, %v16978_v34  ;;  %v4335_v39 = vcombine.low %v4313_v57, %v4320_v9  ;;  %v2701_v60 = vcombine.high %v2693_v40, %v2693_v40  ;;  %v2709_v55 = vrot.slane %v2693_v40, %v16978_v34 }
 0x232   : > { %v4302_v17 = vcombine.low %v4294_v53, %v4301_v0  ;;  %v2702_v13 = vcombine.high %v2700_v1, %v2700_v1  ;;  %v2716_v41 = vrot.slane %v2700_v1, %v16978_v34  ;;  %v1133_v52 = vsel %vm968_vm14, %v18018_v56, %v15264_v22  ;;  %v18185_v1 = vpop.f32.mrf.mxu1 }
 0x233   : > { %v4336_v62 = vcombine.low %v4327_v23, %v4334_v28  ;;  %v4343_v61 = vrot.slane %v4335_v39, %v16978_v34  ;;  %v2723_v58 = vrot.slane %v2701_v60, %v16978_v34  ;;  %v2731_v2 = vcombine.high %v2709_v55, %v2709_v55 }
 0x234   : > { %4541 = vst.msk [vmem:[#allocation2 + $0x188] sm:$0xff] %vm4504_vm9, %v4302_v17  ;;  %v2730_v3 = vrot.slane %v2702_v13, %v16978_v34  ;;  %v2732_v21 = vcombine.high %v2716_v41, %v2716_v41  ;;  %v4352_v57 = vcombine.low %v2685_v37, %v2709_v55  ;;  %v2735_v53 = vcombine.high %v1133_v52, %v1133_v52 }
 0x235   : > { %vm5166_vm0 = vcmp.gt.f32.partialorder %v18058_v47, 0.0  ;;  %v4350_v59 = vrot.slane %v4336_v62, %v16978_v34  ;;  %v2733_v56 = vcombine.high %v2723_v58, %v2723_v58  ;;  %v4353_v9 = vcombine.low %v2723_v58, %v2731_v2  ;;  %v18195_v2 = vpop.f32.mrf.mxu1 }
 0x236   : > { %v2742_v28 = vrot.slane %v1133_v52, %v16978_v34  ;;  %v4355_v40 = vcombine.low %v2730_v3, %v2732_v21  ;;  %v4362_v0 = vrot.slane %v4352_v57, %v16978_v34  ;;  %v2734_v22 = vcombine.high %v2730_v3, %v2730_v3  ;;  %21899 = vst [vmem:[#allocation62_spill] sm:$0xff] %v18195_v2 }
 0x237   : > { %v2749_v23 = vrot.slane %v2735_v53, %v16978_v34  ;;  %v4351_v39 = vcombine.low %v4343_v61, %v4350_v59  ;;  %v4354_v60 = vcombine.low %v2733_v56, %v2716_v41  ;;  %v4369_v37 = vrot.slane %v4353_v9, %v16978_v34 }
 0x238   : > { %v2750_v55 = vcombine.high %v2742_v28, %v2742_v28  ;;  %v4383_v17 = vrot.slane %v4355_v40, %v16978_v34  ;;  %v2758_v62 = vrot.slane %v2742_v28, %v16978_v34  ;;  %v5245_v41 = vsel %vm5165_vm15, %v18055_v43, %v15364_v45  ;;  %v18210_v43 = vpop.f32.mrf.mxu0 }
 0x239   : > { %v2751_v13 = vcombine.high %v2749_v23, %v2749_v23  ;;  %v2765_v58 = vrot.slane %v2749_v23, %v16978_v34  ;;  %4542 = vst.msk [vmem:[#allocation2 + $0x190] sm:$0xff] %vm4504_vm9, %v4351_v39  ;;  %v4376_v52 = vrot.slane %v4354_v60, %v16978_v34  ;;  %v4384_v3 = vcombine.low %v4362_v0, %v4369_v37  ;;  %v18208_v37 = vpop.f32.mrf.mxu1 }
 0x23a   : > { %v2772_v61 = vrot.slane %v2750_v55, %v16978_v34  ;;  %v2780_v57 = vcombine.high %v2758_v62, %v2758_v62  ;;  %v4401_v59 = vcombine.low %v2734_v22, %v2758_v62  ;;  %5261 = vst.msk [vmem:[#allocation2 + $0x21] sm:$0xff] %vm4504_vm9, %v5245_v41  ;;  %v15365_v28 = vadd.f32 -1.0, %v18137_v4  ;;  %21900 = vst [vmem:[#allocation63_spill] sm:$0xff] %v18208_v37  ;;  %v18222_v41 = vpop.f32.mrf.mxu0 }
 0x23b   : > { %v2779_v21 = vrot.slane %v2751_v13, %v16978_v34  ;;  %v2781_v53 = vcombine.high %v2765_v58, %v2765_v58  ;;  %v4385_v56 = vcombine.low %v4376_v52, %v4383_v17  ;;  %v5186_v40 = vmin.f32 %v18101_v50, 0.0  ;;  %21901 = vst [vmem:[#allocation64_spill] sm:$0xff] %v18210_v43  ;;  %v7310_v17 = vld [vmem:[#allocation2 + $0xab] sm:$0xff]  ;;  %21902 = vst [vmem:[#allocation65_spill] sm:$0xff] %v18222_v41 }
 0x23c   : > { %v2782_v9 = vcombine.high %v2772_v61, %v2772_v61  ;;  %v4392_v0 = vrot.slane %v4384_v3, %v16978_v34  ;;  %v4402_v39 = vcombine.low %v2772_v61, %v2780_v57  ;;  %v4411_v55 = vrot.slane %v4401_v59, %v16978_v34  ;;  %v15696_v61 = vpop.f32.mrf.mxu1  ;;  %v21976_v41 = vld [vmem:[#allocation56_spill] sm:$0xff] }
 0x23d   : > { %v2783_v23 = vcombine.high %v2779_v21, %v2779_v21  ;;  %v4404_v60 = vcombine.low %v2779_v21, %v2781_v53  ;;  %v4399_v45 = vrot.slane %v4385_v56, %v16978_v34  ;;  %v5246_v4 = vsel %vm5166_vm0, %v18058_v47, %v15365_v28  ;;  %v7072_v53 = vld [vmem:[#allocation2 + $0x119] sm:$0xff] }
 0x23e   : > { %v4403_v22 = vcombine.low %v2782_v9, %v2765_v58  ;;  %v4418_v13 = vrot.slane %v4402_v39, %v16978_v34  ;;  %5262 = vst.msk [vmem:[#allocation2 + $0x29] sm:$0xff] %vm4504_vm9, %v5246_v4  ;;  %v15366_v3 = vadd.f32 -1.0, %v18144_v46  ;;  %v7067_v58 = vld [vmem:[#allocation2 + $0xe1] sm:$0xff]  ;;  %v6969_v21 = vmul.f32 %v17108_v15, %v17982_v11  ;;  %v15697_v28 = vpop.f32.mrf.mxu1 }
 0x23f   : > { %v4432_v62 = vrot.slane %v4404_v60, %v16978_v34  ;;  %v4456_v52 = vrot.slane %v2783_v23, %v16978_v34  ;;  %v4400_v57 = vcombine.low %v4392_v0, %v4399_v45  ;;  %vm5167_vm1 = vcmp.gt.f32.partialorder %v18063_v8, 0.0  ;;  %v18231_v23 = vpop.f32.mrf.mxu0  ;;  %v6943_v60 = vld [vmem:[#allocation2 + $0xe0] sm:$0xff]  ;;  %v6948_v45 = vld [vmem:[#allocation2 + $0x118] sm:$0xff]  ;;  %v21909_v28 = vld [vmem:[#allocation17_spill] sm:$0xff] }
 0x240   : > { %v4425_v47 = vrot.slane %v4403_v22, %v16978_v34  ;;  %v4433_v59 = vcombine.low %v4411_v55, %v4418_v13  ;;  %v5247_v9 = vsel %vm5167_vm1, %v18063_v8, %v15366_v3  ;;  %v15367_v46 = vadd.f32 -1.0, %v18151_v29  ;;  %21903 = vst [vmem:[#allocation66_spill] sm:$0xff] %v18231_v23  ;;  %v7077_v55 = vld [vmem:[#allocation2 + $0x151] sm:$0xff]  ;;  %v21957_v23 = vld [vmem:[#allocation31_spill] sm:$0xff] }
 0x241   : > { %v4463_v56 = vrot.slane %v4456_v52, %v16978_v34  ;;  %v7146_v39 = vadd.f32 %v18043_v35, %v18040_v14  ;;  %v18236_v0 = vmul.f32 %v17492_v6, %v7310_v17  ;;  %4543 = vst.msk [vmem:[#allocation2 + $0x198] sm:$0xff] %vm4504_vm9, %v4400_v57  ;;  %5263 = vst.msk [vmem:[#allocation2 + $0x59] sm:$0xff] %vm4504_vm9, %v5247_v9  ;;  %v15368_v8 = vadd.f32 -1.0, %v18162_v20  ;;  %v18246_v17 = vpop.f32.mrf.mxu1  ;;  %v18248_v13 = vpop.f32.mrf.mxu0  ;;  %v6927_v37 = vld [vmem:[#allocation2 + $0x20] sm:$0x1f] }
 0x242   : > { %v4434_v22 = vcombine.low %v4425_v47, %v4432_v62  ;;  %v7111_v29 = vmul.f32 %v17112_v18, %v7067_v58  ;;  %v7133_v4 = vadd.f32 %v18071_v26, %v6969_v21  ;;  %v7217_v14 = vmul.f32 %v17470_v19, %v18025_v7  ;;  %21905 = vst [vmem:[#allocation68_spill] sm:$0xff] %v18246_v17  ;;  %v7434_v62 = vld [vmem:[#allocation2 + $0xac] sm:$0xff]  ;;  %v7191_v47 = vld [vmem:[#allocation2 + $0xe2] sm:$0xff] }
 0x243   : > { %21904 = vst [vmem:[#allocation67_spill] sm:$0xff] %v18236_v0  ;;  %4545 = vst.msk [vmem:[#allocation2 + $0x1a8] sm:$0x1] %vm4509_vm12, %v4463_v56  ;;  %v5207_v35 = vmul.f32 1.442695, %v5186_v40  ;;  %v7116_v52 = vmul.f32 %v17112_v18, %v7072_v53  ;;  %v4441_v20 = vrot.slane %v4433_v59, %v16978_v34  ;;  %vm5168_vm2 = vcmp.gt.f32.partialorder %v18079_v30, 0.0  ;;  %v18258_v21 = vpop.f32.mrf.mxu1  ;;  %v18260_v57 = vpop.f32.mrf.mxu0 }
 0x244   : > { %21906 = vst [vmem:[#allocation69_spill] sm:$0xff] %v18248_v13  ;;  %v4448_v3 = vrot.slane %v4434_v22, %v16978_v34  ;;  %v6987_v26 = vmul.f32 %v17108_v15, %v6943_v60  ;;  %v6992_v61 = vmul.f32 %v17108_v15, %v6948_v45  ;;  %v6953_v58 = vld [vmem:[#allocation2 + $0x150] sm:$0xff]  ;;  %v5248_v40 = vsel %vm5168_vm2, %v18079_v30, %v15367_v46  ;;  %v7315_v53 = vld [vmem:[#allocation2 + $0xe3] sm:$0xff]  ;;  %v7196_v59 = vld [vmem:[#allocation2 + $0x11a] sm:$0xff] }
 0x245   : > { %vm5169_vm12 = vcmp.gt.f32.partialorder %v18090_v51, 0.0  ;;  %21907 = vst [vmem:[#allocation70_spill] sm:$0xff] %v18258_v21  ;;  %21908 = vst [vmem:[#allocation71_spill] sm:$0xff] %v18260_v57  ;;  %v7121_v56 = vmul.f32 %v17112_v18, %v7077_v55  ;;  %v21910_v22 = vld [vmem:[#allocation18_spill] sm:$0xff]  ;;  %v18268_v30 = vmul.f32 %v17496_v31, %v7434_v62  ;;  %v7257_v0 = vadd.f32 %v7217_v14, %v7133_v4  ;;  %v7051_v2 = vld [vmem:[#allocation2 + $0x21] sm:$0x1f]  ;;  %v18271_v57 = vpop.f32.mrf.mxu1  ;;  %v18273_v55 = vpop.f32.mrf.mxu0 }
 0x246   : > { %v4449_v9 = vcombine.low %v4441_v20, %v4448_v3  ;;  %v15631_v60 = vadd.f32 %v21910_v22, %v21909_v28  ;;  %5264 = vst.msk [vmem:[#allocation2 + $0x61] sm:$0xff] %vm4504_vm9, %v5248_v40  ;;  %v5249_v45 = vsel %vm5169_vm12, %v18090_v51, %v15368_v8  ;;  %v7151_v46 = vadd.f32 %v7111_v29, %v6987_v26  ;;  %v7439_v3 = vld [vmem:[#allocation2 + $0xe4] sm:$0xff] }
 0x247   : > { %21911 = vst [vmem:[#allocation17_spill] sm:$0xff] %v18268_v30  ;;  %5265 = vst.msk [vmem:[#allocation2 + $0x91] sm:$0xff] %vm4504_vm9, %v5249_v45  ;;  %16307 = vpow2.f32 %v5207_v35  ;;  %v18276_v20 = vadd.f32 %v18067_v44, %v7146_v39  ;;  %v7156_v40 = vadd.f32 %v7116_v52, %v6992_v61  ;;  %v6997_v51 = vmul.f32 %v17108_v15, %v6953_v58  ;;  %v7320_v35 = vld [vmem:[#allocation2 + $0x11b] sm:$0xff]  ;;  %v7201_v39 = vld [vmem:[#allocation2 + $0x152] sm:$0xff]  ;;  %v18291_v52 = vpop.f32.mrf.mxu1  ;;  %v18293_v26 = vpop.f32.mrf.mxu0 }
 0x248   : > { %21912 = vst [vmem:[#allocation18_spill] sm:$0xff] %v18271_v57  ;;  %21913 = vst [vmem:[#allocation72_spill] sm:$0xff] %v18273_v55  ;;  %v18281_v8 = vmul.f32 %v17492_v6, %v17896_v54  ;;  %v7235_v29 = vmul.f32 %v17470_v19, %v7191_v47  ;;  %v18286_v4 = vmul.f32 %v17492_v6, %v7315_v53  ;;  %v7444_v44 = vld [vmem:[#allocation2 + $0x11c] sm:$0xff]  ;;  %vm5170_vm3 = vcmp.gt.f32.partialorder %v18101_v50, 0.0 }
 0x249   : > { %21914 = vst [vmem:[#allocation73_spill] sm:$0xff] %v18276_v20  ;;  %4544 = vst.msk [vmem:[#allocation2 + $0x1a0] sm:$0xff] %vm4504_vm9, %v4449_v9  ;;  %v7240_v14 = vmul.f32 %v17470_v19, %v7196_v59  ;;  %v7341_v62 = vmul.f32 %v17492_v6, %v18036_v32  ;;  %v7161_v54 = vadd.f32 %v7121_v56, %v6997_v51  ;;  %v18307_v22 = vpop.f32.mrf.mxu1  ;;  %v18309_v45 = vpop.f32.mrf.mxu0  ;;  %v21955_v55 = vld [vmem:[#allocation34_spill] sm:$0xff] }
 0x24a   : > { %21915 = vst [vmem:[#allocation74_spill] sm:$0xff] %v18286_v4  ;;  %21916 = vst [vmem:[#allocation75_spill] sm:$0xff] %v18291_v52  ;;  %v6971_v61 = vmul.f32 %v17108_v15, %v6927_v37  ;;  %v7095_v58 = vmul.f32 %v17112_v18, %v7051_v2  ;;  %v5030_v47 = vadd.f32 %v17974_v49, %v15631_v60  ;;  %v21932_v4 = vld [vmem:[#allocation10_spill] sm:$0xff]  ;;  %v6958_v52 = vld [vmem:[#allocation2 + $0x188] sm:$0xff] }
 0x24b   : > { %21917 = vst [vmem:[#allocation76_spill] sm:$0xff] %v18293_v26  ;;  %v18298_v53 = vadd.f32 %v7235_v29, %v7151_v46  ;;  %v18301_v59 = vmul.f32 %v17496_v31, %v7439_v3  ;;  %v18303_v9 = vadd.f32 %v7341_v62, %v7257_v0  ;;  %v15637_v28 = vadd.f32 %v17738_v33, %v17727_v16  ;;  %v6932_v46 = vld [vmem:[#allocation2 + $0x58] sm:$0x1f]  ;;  %v21925_v33 = vld [vmem:[#allocation8_spill] sm:$0xff]  ;;  %v7175_v62 = vld [vmem:[#allocation2 + $0x22] sm:$0x1f] }
 0x24c   : > { %21920 = vst [vmem:[#allocation79_spill] sm:$0xff] %v18307_v22  ;;  %21921 = vst [vmem:[#allocation80_spill] sm:$0xff] %v18309_v45  ;;  %v18311_v56 = vadd.f32 %v7240_v14, %v7156_v40  ;;  %v18314_v2 = vmul.f32 %v17492_v6, %v7320_v35  ;;  %v18317_v37 = vmul.f32 %v17496_v31, %v7444_v44  ;;  %v7056_v0 = vld [vmem:[#allocation2 + $0x59] sm:$0x1f]  ;;  %v21926_v40 = vld [vmem:[#allocation9_spill] sm:$0xff] }
 0x24d   : > { %21918 = vst [vmem:[#allocation77_spill] sm:$0xff] %v18298_v53  ;;  %21919 = vst [vmem:[#allocation78_spill] sm:$0xff] %v18301_v59  ;;  %v7245_v60 = vmul.f32 %v17470_v19, %v7201_v39  ;;  %v7325_v3 = vld [vmem:[#allocation2 + $0x153] sm:$0xff]  ;;  %v18322_v16 = vmul.f32 %v17496_v31, %v17908_v36  ;;  %v18326_v51 = vmul.f32 %v21925_v33, %v17923_v12  ;;  %v21927_v14 = vld [vmem:[#allocation19_spill] sm:$0xff]  ;;  %v18334_v39 = vpop.f32.mrf.mxu1 }
 0x24e   : > { %21922 = vst [vmem:[#allocation81_spill] sm:$0xff] %v18311_v56  ;;  %21923 = vst [vmem:[#allocation82_spill] sm:$0xff] %v18314_v2  ;;  %v18330_v29 = vmul.f32 %v21926_v40, %v17948_v27  ;;  %v21928_v35 = vld [vmem:[#allocation21_spill] sm:$0xff]  ;;  %v7135_v56 = vadd.f32 %v7095_v58, %v6971_v61  ;;  %v21931_v36 = vld [vmem:[#allocation22_spill] sm:$0xff]  ;;  %v18341_v12 = vadd.f32 %v17812_v63, %v5030_v47 }
 0x24f   : > { %21924 = vst [vmem:[#allocation83_spill] sm:$0xff] %v18317_v37  ;;  %v15634_v44 = vadd.f32 %v21928_v35, %v21927_v14  ;;  %21929 = vst [vmem:[#allocation19_spill] sm:$0xff] %v18334_v39  ;;  %v18336_v37 = vpop.f32.mrf.mxu0  ;;  %v7285_v2 = vadd.f32 %v7245_v60, %v7161_v54  ;;  %v15640_v59 = vadd.f32 %v17752_v24, %v21931_v36  ;;  %v18350_v30 = vpop.f32.mrf.mxu1  ;;  %v7082_v63 = vld [vmem:[#allocation2 + $0x189] sm:$0xff]  ;;  %v21935_v58 = vld [vmem:[#allocation23_spill] sm:$0xff] }
 0x250   : > { %21930 = vst [vmem:[#allocation21_spill] sm:$0xff] %v18336_v37  ;;  %v18345_v27 = vmul.f32 %v21932_v4, %v17966_v5  ;;  %v6976_v53 = vmul.f32 %v17108_v15, %v6932_v46  ;;  %v7100_v14 = vmul.f32 %v17112_v18, %v7056_v0  ;;  %v5038_v35 = vadd.f32 %v17974_v49, %v15637_v28  ;;  %v21936_v47 = vld [vmem:[#allocation24_spill] sm:$0xff] }
 0x251   : > { %21933 = vst [vmem:[#allocation22_spill] sm:$0xff] %v18350_v30  ;;  %v18352_v54 = vpop.f32.mrf.mxu0  ;;  %v7369_v61 = vmul.f32 %v17492_v6, %v7325_v3  ;;  %v18357_v24 = vmul.f32 %v17534_v10, %v17982_v11  ;;  %v7219_v5 = vmul.f32 %v17470_v19, %v7175_v62  ;;  %v15643_v60 = vadd.f32 %v21936_v47, %v21935_v58  ;;  %v21937_v28 = vld [vmem:[#allocation36_spill] sm:$0xff]  ;;  %v21938_v3 = vld [vmem:[#allocation37_spill] sm:$0xff]  ;;  %v7299_v11 = vld [vmem:[#allocation2 + $0x23] sm:$0x1f] }
 0x252   : > { %21934 = vst [vmem:[#allocation10_spill] sm:$0xff] %v18352_v54  ;;  %v18364_v46 = vmul.f32 %v17538_v42, %v18002_v38  ;;  %v18368_v0 = vmul.f32 %v21937_v28, %v18025_v7  ;;  %v18372_v36 = vmul.f32 %v21938_v3, %v18036_v32  ;;  %v5033_v20 = vadd.f32 %v17974_v49, %v15634_v44  ;;  %v18375_v54 = vpop.f32.mrf.mxu1  ;;  %v7180_v38 = vld [vmem:[#allocation2 + $0x5a] sm:$0x1f]  ;;  %v21942_v30 = vld [vmem:[#allocation29_spill] sm:$0xff]  ;;  %v7423_v45 = vld [vmem:[#allocation2 + $0x24] sm:$0x1f] }
 0x253   : > { %21940 = vst [vmem:[#allocation24_spill] sm:$0xff] %v18375_v54  ;;  %v18377_v62 = vpop.f32.mrf.mxu0  ;;  %v18379_v58 = vadd.f32 %v7369_v61, %v7285_v2  ;;  %v7259_v47 = vadd.f32 %v7219_v5, %v7135_v56  ;;  %v5187_v37 = vmin.f32 %v18341_v12, 0.0  ;;  %v5041_v7 = vadd.f32 %v17974_v49, %v15640_v59  ;;  %v21943_v44 = vld [vmem:[#allocation30_spill] sm:$0xff] }
 0x254   : > { %21939 = vst [vmem:[#allocation23_spill] sm:$0xff] %v18372_v36  ;;  %21941 = vst [vmem:[#allocation36_spill] sm:$0xff] %v18377_v62  ;;  %v7126_v57 = vmul.f32 %v17112_v18, %v7082_v63  ;;  %v7140_v32 = vadd.f32 %v7100_v14, %v6976_v53  ;;  %v18385_v39 = vadd.f32 %v21942_v30, %v5033_v20  ;;  %v18390_v54 = vpop.f32.mrf.mxu1  ;;  %v16308_v56 = vpop.eup %16307  ;;  %v21946_v62 = vld [vmem:[#allocation32_spill] sm:$0xff]  ;;  %v21947_v30 = vld [vmem:[#allocation25_spill] sm:$0xff]  ;;  %vm5171_vm4 = vcmp.gt.f32.partialorder %v18341_v12, 0.0 }
 0x255   : > { %v18388_v22 = vadd.f32 %v21943_v44, %v5038_v35  ;;  %21944 = vst [vmem:[#allocation37_spill] sm:$0xff] %v18390_v54  ;;  %v18392_v2 = vpop.f32.mrf.mxu0  ;;  %v7343_v61 = vmul.f32 %v17492_v6, %v7299_v11  ;;  %v5209_v5 = vmul.f32 1.442695, %v5187_v37  ;;  %v18396_v59 = vadd.f32 %v21946_v62, %v5041_v7  ;;  %v21948_v20 = vld [vmem:[#allocation26_spill] sm:$0xff] }
 0x256   : > { %21945 = vst [vmem:[#allocation29_spill] sm:$0xff] %v18392_v2  ;;  %v5046_v63 = vadd.f32 %v17974_v49, %v15643_v60  ;;  %v7224_v53 = vmul.f32 %v17470_v19, %v7180_v38  ;;  %v15646_v14 = vadd.f32 %v21948_v20, %v21947_v30  ;;  %v15369_v35 = vadd.f32 -1.0, %v16308_v56  ;;  %v18403_v54 = vpop.f32.mrf.mxu1  ;;  %v7304_v62 = vld [vmem:[#allocation2 + $0x5b] sm:$0x1f]  ;;  %v7206_v38 = vld [vmem:[#allocation2 + $0x18a] sm:$0xff] }
 0x257   : > { %v5188_v44 = vmin.f32 %v18385_v39, 0.0  ;;  %21949 = vst [vmem:[#allocation30_spill] sm:$0xff] %v18403_v54  ;;  %v18405_v2 = vpop.f32.mrf.mxu0  ;;  %v7002_v11 = vmul.f32 %v17108_v15, %v6958_v52  ;;  %v7383_v37 = vadd.f32 %v7343_v61, %v7259_v47  ;;  %16309 = vpow2.f32 %v5209_v5  ;;  %v7449_v60 = vld [vmem:[#allocation2 + $0x154] sm:$0xff]  ;;  %v21953_v52 = vld [vmem:[#allocation27_spill] sm:$0xff]  ;;  %v21954_v47 = vld [vmem:[#allocation28_spill] sm:$0xff] }
 0x258   : > { %21950 = vst [vmem:[#allocation32_spill] sm:$0xff] %v18405_v2  ;;  %v7264_v7 = vadd.f32 %v7224_v53, %v7140_v32  ;;  %v5250_v30 = vsel %vm5170_vm3, %v18101_v50, %v15369_v35  ;;  %v5189_v20 = vmin.f32 %v18388_v22, 0.0  ;;  %v18411_v26 = vpop.f32.mrf.mxu1  ;;  %v15649_v61 = vadd.f32 %v21954_v47, %v21953_v52  ;;  %v7697_v52 = vld [vmem:[#allocation2 + $0x156] sm:$0xff] }
 0x259   : > { %v5211_v56 = vmul.f32 1.442695, %v5188_v44  ;;  %21951 = vst [vmem:[#allocation25_spill] sm:$0xff] %v18411_v26  ;;  %v18413_v54 = vpop.f32.mrf.mxu0  ;;  %v7166_v2 = vadd.f32 %v7126_v57, %v7002_v11  ;;  %5266 = vst.msk [vmem:[#allocation2 + $0x99] sm:$0xff] %vm4504_vm9, %v5250_v30  ;;  %v5190_v5 = vmin.f32 %v18396_v59, 0.0  ;;  %v18420_v13 = vadd.f32 %v21955_v55, %v5046_v63  ;;  %v7573_v11 = vld [vmem:[#allocation2 + $0x155] sm:$0xff] }
 0x25a   : > { %21952 = vst [vmem:[#allocation26_spill] sm:$0xff] %v18413_v54  ;;  %v7467_v50 = vmul.f32 %v17496_v31, %v7423_v45  ;;  %v7348_v32 = vmul.f32 %v17492_v6, %v7304_v62  ;;  %v5213_v53 = vmul.f32 1.442695, %v5189_v20  ;;  %v18424_v35 = vpop.f32.mrf.mxu1  ;;  %v7493_v57 = vmul.f32 %v17496_v31, %v7449_v60  ;;  %v7547_v63 = vld [vmem:[#allocation2 + $0x25] sm:$0x1f]  ;;  %v21958_v62 = vld [vmem:[#allocation33_spill] sm:$0xff] }
 0x25b   : > { %16311 = vpow2.f32 %v5211_v56  ;;  %21956 = vst [vmem:[#allocation27_spill] sm:$0xff] %v18424_v35  ;;  %v15736_v44 = vpop.f32.mrf.mxu0  ;;  %v7250_v30 = vmul.f32 %v17470_v19, %v7206_v38  ;;  %v5215_v47 = vmul.f32 1.442695, %v5190_v5  ;;  %v5191_v26 = vmin.f32 %v18420_v13, 0.0  ;;  %v7428_v45 = vld [vmem:[#allocation2 + $0x5c] sm:$0x1f] }
 0x25c   : > { %v7507_v55 = vadd.f32 %v7467_v50, %v7383_v37  ;;  %v7388_v54 = vadd.f32 %v7348_v32, %v7264_v7  ;;  %v15655_v56 = vadd.f32 %v21958_v62, %v21957_v23  ;;  %16313 = vpow2.f32 %v5213_v53  ;;  %v18431_v20 = vpop.f32.mrf.mxu1  ;;  %v7330_v35 = vld [vmem:[#allocation2 + $0x18b] sm:$0xff] }
 0x25d   : > { %21959 = vst [vmem:[#allocation28_spill] sm:$0xff] %v18431_v20  ;;  %v15737_v44 = vpop.f32.mrf.mxu0  ;;  %v7454_v60 = vld [vmem:[#allocation2 + $0x18c] sm:$0xff]  ;;  %16315 = vpow2.f32 %v5215_v47  ;;  %v5217_v21 = vmul.f32 1.442695, %v5191_v26  ;;  %v5049_v38 = vadd.f32 %v17974_v49, %v15646_v14  ;;  %v5054_v5 = vadd.f32 %v17974_v49, %v15649_v61  ;;  %v7671_v47 = vld [vmem:[#allocation2 + $0x26] sm:$0x1f] }
 0x25e   : > { %v18436_v37 = vadd.f32 %v7493_v57, %v18379_v58  ;;  %v18439_v7 = vmul.f32 %v21925_v33, %v7573_v11  ;;  %v18442_v23 = vmul.f32 %v21926_v40, %v7697_v52  ;;  %v7290_v50 = vadd.f32 %v7250_v30, %v7166_v2  ;;  %v7578_v32 = vld [vmem:[#allocation2 + $0x18d] sm:$0xff]  ;;  %v18444_v53 = vpop.f32.mrf.mxu1  ;;  %v7795_v61 = vld [vmem:[#allocation2 + $0x27] sm:$0x1f]  ;;  %v7552_v44 = vld [vmem:[#allocation2 + $0x5d] sm:$0x1f] }
 0x25f   : > { %21963 = vst [vmem:[#allocation84_spill] sm:$0xff] %v18444_v53  ;;  %v18446_v62 = vpop.f32.mrf.mxu0  ;;  %v7702_v26 = vld [vmem:[#allocation2 + $0x18e] sm:$0xff]  ;;  %v7591_v14 = vmul.f32 %v21925_v33, %v7547_v63  ;;  %v7472_v58 = vmul.f32 %v17496_v31, %v7428_v45  ;;  %16317 = vpow2.f32 %v5217_v21  ;;  %v21965_v57 = vld [vmem:[#allocation39_spill] sm:$0xff]  ;;  %v7374_v52 = vmul.f32 %v17492_v6, %v7330_v35  ;;  %v7916_v30 = vld [vmem:[#allocation2 + $0x28] sm:$0x1f] }
 0x260   : > { %21960 = vst [vmem:[#allocation34_spill] sm:$0xff] %v18436_v37  ;;  %21961 = vst [vmem:[#allocation31_spill] sm:$0xff] %v18439_v7  ;;  %v18451_v11 = vadd.f32 %v21965_v57, %v5049_v38  ;;  %v18455_v2 = vmul.f32 %v17496_v31, %v7454_v60  ;;  %v5062_v63 = vadd.f32 %v17974_v49, %v15655_v56  ;;  %v15776_v53 = vpop.f32.mrf.mxu1  ;;  %v8016_v38 = vld [vmem:[#allocation2 + $0x29] sm:$0x1f]  ;;  %v6937_v35 = vld [vmem:[#allocation2 + $0x90] sm:$0x1f] }
 0x261   : > { %21962 = vst [vmem:[#allocation33_spill] sm:$0xff] %v18442_v23  ;;  %21964 = vst [vmem:[#allocation85_spill] sm:$0xff] %v18446_v62  ;;  %v21966_v23 = vld [vmem:[#allocation20_spill] sm:$0xff]  ;;  %v18460_v37 = vpop.f32.mrf.mxu0  ;;  %v18463_v21 = vmul.f32 %v21925_v33, %v7578_v32  ;;  %v7631_v45 = vadd.f32 %v7591_v14, %v7507_v55  ;;  %v7512_v57 = vadd.f32 %v7472_v58, %v7388_v54  ;;  %v7061_v20 = vld [vmem:[#allocation2 + $0x91] sm:$0x1f]  ;;  %vm5172_vm5 = vcmp.gt.f32.partialorder %v18385_v39, 0.0 }
 0x262   : > { %v5057_v7 = vadd.f32 %v17974_v49, %v21966_v23  ;;  %21967 = vst [vmem:[#allocation39_spill] sm:$0xff] %v18460_v37  ;;  %v21969_v60 = vld [vmem:[#allocation43_spill] sm:$0xff]  ;;  %v18469_v17 = vmul.f32 %v21926_v40, %v7702_v26  ;;  %v7715_v23 = vmul.f32 %v21926_v40, %v7671_v47  ;;  %v7839_v49 = vmul.f32 %v21932_v4, %v7795_v61  ;;  %v21971_v56 = vld [vmem:[#allocation54_spill] sm:$0xff]  ;;  %v15777_v32 = vpop.f32.mrf.mxu1  ;;  %v8116_v55 = vld [vmem:[#allocation2 + $0x2a] sm:$0x1f] }
 0x263   : > { %21968 = vst [vmem:[#allocation20_spill] sm:$0xff] %v18463_v21  ;;  %v18466_v62 = vadd.f32 %v21969_v60, %v5054_v5  ;;  %v18476_v21 = vadd.f32 %v7374_v52, %v7290_v50  ;;  %v18479_v54 = vmul.f32 %v17534_v10, %v7916_v30  ;;  %v7596_v5 = vmul.f32 %v21925_v33, %v7552_v44  ;;  %v18483_v26 = vpop.f32.mrf.mxu0  ;;  %v7676_v61 = vld [vmem:[#allocation2 + $0x5e] sm:$0x1f]  ;;  %v7185_v44 = vld [vmem:[#allocation2 + $0x92] sm:$0x1f] }
 0x264   : > { %21970 = vst [vmem:[#allocation43_spill] sm:$0xff] %v18469_v17  ;;  %v18474_v53 = vadd.f32 %v21971_v56, %v5057_v7  ;;  %v5192_v14 = vmin.f32 %v18451_v11, 0.0  ;;  %21972 = vst [vmem:[#allocation54_spill] sm:$0xff] %v18483_v26  ;;  %v16310_v58 = vpop.eup %16309  ;;  %v18486_v47 = vmul.f32 %v17538_v42, %v8016_v38  ;;  %v6981_v7 = vmul.f32 %v17108_v15, %v6937_v35  ;;  %v21973_v52 = vld [vmem:[#allocation58_spill] sm:$0xff]  ;;  %v21975_v38 = vld [vmem:[#allocation48_spill] sm:$0xff] }
 0x265   : > { %v7105_v50 = vmul.f32 %v17112_v18, %v7061_v20  ;;  %v18491_v60 = vadd.f32 %v21973_v52, %v5062_v63  ;;  %v7755_v30 = vadd.f32 %v7715_v23, %v7631_v45  ;;  %v7636_v56 = vadd.f32 %v7596_v5, %v7512_v57  ;;  %v7800_v32 = vld [vmem:[#allocation2 + $0x5f] sm:$0x1f] }
 0x266   : > { %v15370_v17 = vadd.f32 -1.0, %v16310_v58  ;;  %v5193_v37 = vmin.f32 %v18466_v62, 0.0  ;;  %v18495_v26 = vmul.f32 %v21937_v28, %v8116_v55  ;;  %v18500_v35 = vadd.f32 %v21976_v41, %v21975_v38  ;;  %v18506_v58 = vpop.f32.mrf.mxu0 }
 0x267   : > { %v5194_v20 = vmin.f32 %v18474_v53, 0.0  ;;  %v7720_v45 = vmul.f32 %v21926_v40, %v7676_v61  ;;  %v5219_v23 = vmul.f32 1.442695, %v5192_v14  ;;  %v5195_v5 = vmin.f32 %v18491_v60, 0.0  ;;  %21977 = vst [vmem:[#allocation48_spill] sm:$0xff] %v18506_v58  ;;  %v21978_v58 = vld [vmem:[#allocation44_spill] sm:$0xff] }
 0x268   : > { %21974 = vst [vmem:[#allocation58_spill] sm:$0xff] %v18495_v26  ;;  %v16312_v63 = vpop.eup %16311  ;;  %v5251_v57 = vsel %vm5171_vm4, %v18341_v12, %v15370_v17  ;;  %v7844_v55 = vmul.f32 %v21932_v4, %v7800_v32  ;;  %v7145_v52 = vadd.f32 %v7105_v50, %v6981_v7  ;;  %v7229_v26 = vmul.f32 %v17470_v19, %v7185_v44  ;;  %v7309_v7 = vld [vmem:[#allocation2 + $0x93] sm:$0x1f] }
 0x269   : > { %5267 = vst.msk [vmem:[#allocation2 + $0xc9] sm:$0xff] %vm4504_vm9, %v5251_v57  ;;  %v15371_v41 = vadd.f32 -1.0, %v16312_v63  ;;  %v16314_v38 = vpop.eup %16313  ;;  %v7879_v43 = vadd.f32 %v7839_v49, %v7755_v30  ;;  %v7760_v34 = vadd.f32 %v7720_v45, %v7636_v56  ;;  %v5221_v61 = vmul.f32 1.442695, %v5193_v37  ;;  %v18517_v30 = vpop.f32.mrf.mxu0  ;;  %v7918_v37 = vld [vmem:[#allocation2 + $0x60] sm:$0x1f] }
 0x26a   : > { %v16316_v17 = vpop.eup %16315  ;;  %v15372_v14 = vadd.f32 -1.0, %v16314_v38  ;;  %v5223_v36 = vmul.f32 1.442695, %v5194_v20  ;;  %v7380_v32 = vadd.f32 %v18281_v8, %v21978_v58  ;;  %vm5173_vm6 = vcmp.gt.f32.partialorder %v18388_v22, 0.0  ;;  %v8216_v57 = vld [vmem:[#allocation2 + $0x2b] sm:$0x1f] }
 0x26b   : > { %v5252_v12 = vsel %vm5172_vm5, %v18385_v39, %v15371_v41  ;;  %v15373_v50 = vadd.f32 -1.0, %v16316_v17  ;;  %16319 = vpow2.f32 %v5219_v23  ;;  %v5225_v49 = vmul.f32 1.442695, %v5195_v5  ;;  %v8118_v41 = vld [vmem:[#allocation2 + $0x62] sm:$0x1f] }
 0x26c   : > { %5268 = vst.msk [vmem:[#allocation2 + $0xd1] sm:$0xff] %vm4504_vm9, %v5252_v12  ;;  %v16318_v56 = vpop.eup %16317  ;;  %v7269_v44 = vadd.f32 %v7229_v26, %v7145_v52  ;;  %v5253_v39 = vsel %vm5173_vm6, %v18388_v22, %v15372_v14  ;;  %vm5174_vm7 = vcmp.gt.f32.partialorder %v18396_v59, 0.0  ;;  %v7504_v20 = vadd.f32 %v18322_v16, %v7380_v32  ;;  %v7433_v16 = vld [vmem:[#allocation2 + $0x94] sm:$0x1f]  ;;  %v8018_v52 = vld [vmem:[#allocation2 + $0x61] sm:$0x1f] }
 0x26d   : > { %v7884_v8 = vadd.f32 %v7844_v55, %v7760_v34  ;;  %5269 = vst.msk [vmem:[#allocation2 + $0x101] sm:$0xff] %vm4504_vm9, %v5253_v39  ;;  %v5254_v63 = vsel %vm5174_vm7, %v18396_v59, %v15373_v50  ;;  %v15374_v45 = vadd.f32 -1.0, %v16318_v56  ;;  %16321 = vpow2.f32 %v5221_v61  ;;  %v18531_v55 = vpop.f32.mrf.mxu0  ;;  %v8218_v38 = vld [vmem:[#allocation2 + $0x63] sm:$0x1f]  ;;  %v21981_v12 = vld [vmem:[#allocation12_spill] sm:$0xff]  ;;  %v21982_v32 = vld [vmem:[#allocation13_spill] sm:$0xff] }
 0x26e   : > { %v7353_v23 = vmul.f32 %v17492_v6, %v7309_v7  ;;  %5270 = vst.msk [vmem:[#allocation2 + $0x109] sm:$0xff] %vm4504_vm9, %v5254_v63  ;;  %vm5175_vm8 = vcmp.gt.f32.partialorder %v18420_v13, 0.0  ;;  %16323 = vpow2.f32 %v5223_v36  ;;  %v7628_v22 = vadd.f32 %v18326_v51, %v7504_v20  ;;  %v21983_v7 = vld [vmem:[#allocation14_spill] sm:$0xff]  ;;  %v21985_v39 = vld [vmem:[#allocation35_spill] sm:$0xff] }
 0x26f   : > { %v7979_v26 = vadd.f32 %v18479_v54, %v7879_v43  ;;  %v7944_v34 = vmul.f32 %v17534_v10, %v7918_v37  ;;  %v5255_v59 = vsel %vm5175_vm8, %v18420_v13, %v15374_v45  ;;  %16325 = vpow2.f32 %v5225_v49  ;;  %v21980_v13 = vld [vmem:[#allocation11_spill] sm:$0xff]  ;;  %v15853_v49 = vpop.f32.mrf.mxu0 }
 0x270   : > { %v6942_v5 = vld [vmem:[#allocation2 + $0xc8] sm:$0x1f]  ;;  %v7393_v61 = vadd.f32 %v7353_v23, %v7269_v44  ;;  %5271 = vst.msk [vmem:[#allocation2 + $0x139] sm:$0xff] %vm4504_vm9, %v5255_v59  ;;  %v7752_v43 = vadd.f32 %v18330_v29, %v7628_v22  ;;  %v18538_v54 = vmul.f32 %v21938_v3, %v8216_v57  ;;  %v15680_v14 = vadd.f32 %v21981_v12, %v21980_v13  ;;  %v7557_v44 = vld [vmem:[#allocation2 + $0x95] sm:$0x1f] }
 0x271   : > { %v7066_v58 = vld [vmem:[#allocation2 + $0xc9] sm:$0x1f]  ;;  %v6986_v36 = vmul.f32 %v17108_v15, %v6942_v5  ;;  %v7984_v17 = vadd.f32 %v7944_v34, %v7884_v8  ;;  %v15683_v50 = vadd.f32 %v21983_v7, %v21982_v32  ;;  %v18546_v56 = vadd.f32 %v18455_v2, %v18476_v21  ;;  %v21989_v2 = vld [vmem:[#allocation15_spill] sm:$0xff]  ;;  %v18563_v34 = vld [vmem:[#allocation2 + $0x14] sm:$0xff] }
 0x272   : > { %v7110_v51 = vmul.f32 %v17112_v18, %v7066_v58  ;;  %21979 = vst [vmem:[#allocation56_spill] sm:$0xff] %v18538_v54  ;;  %v7477_v37 = vmul.f32 %v17496_v31, %v7433_v16  ;;  %v21986_v29 = vld [vmem:[#allocation40_spill] sm:$0xff]  ;;  %v7876_v8 = vadd.f32 %v18345_v27, %v7752_v43  ;;  %v8044_v63 = vmul.f32 %v17538_v42, %v8018_v52  ;;  %v18571_v59 = vld [vmem:[%s21757_s9] ss:$0 sm:$0xff] }
 0x273   : > { %21984 = vst [vmem:[#allocation44_spill] sm:$0xff] %v18546_v56  ;;  %v18551_v20 = vadd.f32 %v21986_v29, %v21985_v39  ;;  %v18556_v45 = vmul.f32 %v21937_v28, %v8118_v41  ;;  %v18559_v57 = vmul.f32 %v21938_v3, %v8218_v38  ;;  %v7190_v23 = vld [vmem:[#allocation2 + $0xca] sm:$0x1f]  ;;  %v18566_v16 = vadd.f32 %v18486_v47, %v7979_v26  ;;  %v18591_v12 = vld [vmem:[#allocation2 + $0x19] sm:$0xff] }
 0x274   : > { %v21990_v21 = vld [vmem:[#allocation16_spill] sm:$0xff]  ;;  %v7517_v5 = vadd.f32 %v7477_v37, %v7393_v61  ;;  %v7150_v58 = vadd.f32 %v7110_v51, %v6986_v36  ;;  %v6947_v27 = vld [vmem:[#allocation2 + $0x100] sm:$0x1f]  ;;  %v18575_v52 = vadd.f32 %v18571_v59, %v18500_v35  ;;  %v18577_v41 = vadd.f32 %v8044_v63, %v7984_v17  ;;  %v18586_v61 = vld [vmem:[#allocation2 + $0x18] sm:$0xff] }
 0x275   : > { %21987 = vst [vmem:[#allocation11_spill] sm:$0xff] %v18556_v45  ;;  %21988 = vst [vmem:[#allocation12_spill] sm:$0xff] %v18559_v57  ;;  %v15686_v22 = vadd.f32 %v21990_v21, %v21989_v2  ;;  %v7601_v38 = vmul.f32 %v21925_v33, %v7557_v44  ;;  %v7071_v43 = vld [vmem:[#allocation2 + $0x101] sm:$0x1f]  ;;  %v18581_v47 = vadd.f32 %v18571_v59, %v15680_v14  ;;  %v7681_v36 = vld [vmem:[#allocation2 + $0x96] sm:$0x1f] }
 0x276   : > { %21991 = vst [vmem:[#allocation13_spill] sm:$0xff] %v18566_v16  ;;  %21992 = vst [vmem:[#allocation14_spill] sm:$0xff] %v18577_v41  ;;  %v18584_v26 = vadd.f32 %v18571_v59, %v15683_v50  ;;  %v7805_v51 = vld [vmem:[#allocation2 + $0x97] sm:$0x1f]  ;;  %v7234_v13 = vmul.f32 %v17470_v19, %v7190_v23  ;;  %v6991_v35 = vmul.f32 %v17108_v15, %v6947_v27  ;;  %v7314_v14 = vld [vmem:[#allocation2 + $0xcb] sm:$0x1f] }
 0x277   : > { %v7115_v17 = vmul.f32 %v17112_v18, %v7071_v43  ;;  %v7465_v32 = vmul.f32 %v17496_v31, %v18563_v34  ;;  %v18596_v7 = vadd.f32 %v18571_v59, %v15686_v22  ;;  %v21993_v50 = vld [vmem:[#allocation60_spill] sm:$0xff]  ;;  %v18602_v37 = vadd.f32 %v18185_v1, %v18172_v25  ;;  %v18604_v44 = vld [vmem:[#allocation2 + $0x15] sm:$0xff]  ;;  %v7195_v25 = vld [vmem:[#allocation2 + $0x102] sm:$0x1f] }
 0x278   : > { %v15689_v49 = vadd.f32 %v18158_v48, %v21993_v50  ;;  %v7976_v39 = vadd.f32 %v18357_v24, %v7876_v8  ;;  %v16320_v29 = vpop.eup %16319  ;;  %v7641_v63 = vadd.f32 %v7601_v38, %v7517_v5  ;;  %v7274_v23 = vadd.f32 %v7234_v13, %v7150_v58  ;;  %v18609_v21 = vld [vmem:[#allocation2 + $0x1a] sm:$0xff]  ;;  %v7438_v38 = vld [vmem:[#allocation2 + $0xcc] sm:$0x1f]  ;;  %v7319_v56 = vld [vmem:[#allocation2 + $0x103] sm:$0x1f] }
 0x279   : > { %v6970_v2 = vmul.f32 %v17108_v15, %v18586_v61  ;;  %v7505_v22 = vadd.f32 %v7465_v32, %v18303_v9  ;;  %v7725_v48 = vmul.f32 %v21926_v40, %v7681_v36  ;;  %v7849_v27 = vmul.f32 %v21932_v4, %v7805_v51  ;;  %v7669_v51 = vld [vmem:[#allocation2 + $0x16] sm:$0xff] }
 0x27a   : > { %vm5176_vm10 = vcmp.gt.f32.partialorder %v18451_v11, 0.0  ;;  %v7094_v1 = vmul.f32 %v17112_v18, %v18591_v12  ;;  %v16322_v24 = vpop.eup %16321  ;;  %v7358_v8 = vmul.f32 %v17492_v6, %v7314_v14  ;;  %v7155_v5 = vadd.f32 %v7115_v17, %v6991_v35 }
 0x27b   : > { %vm5177_vm13 = vcmp.gt.f32.partialorder %v18466_v62, 0.0  ;;  %v7589_v58 = vmul.f32 %v21925_v33, %v18604_v44  ;;  %v16324_v9 = vpop.eup %16323  ;;  %v15375_v43 = vadd.f32 -1.0, %v16320_v29  ;;  %vm5178_vm14 = vcmp.gt.f32.partialorder %v18474_v53, 0.0 }
 0x27c   : > { %v7218_v36 = vmul.f32 %v17470_v19, %v18609_v21  ;;  %v8076_v13 = vadd.f32 %v18364_v46, %v7976_v39  ;;  %v16326_v32 = vpop.eup %16325  ;;  %v7765_v50 = vadd.f32 %v7725_v48, %v7641_v63  ;;  %v7398_v14 = vadd.f32 %v7358_v8, %v7274_v23  ;;  %v7562_v63 = vld [vmem:[#allocation2 + $0xcd] sm:$0x1f] }
 0x27d   : > { %v7239_v35 = vmul.f32 %v17470_v19, %v7195_v25  ;;  %v7629_v17 = vadd.f32 %v7589_v58, %v7505_v22  ;;  %v5256_v57 = vsel %vm5176_vm10, %v18451_v11, %v15375_v43  ;;  %v15376_v29 = vadd.f32 -1.0, %v16322_v24  ;;  %v18636_v11 = vld [vmem:[#allocation2 + $0x1b] sm:$0xff]  ;;  %v7443_v58 = vld [vmem:[#allocation2 + $0x104] sm:$0x1f] }
 0x27e   : > { %vm5179_vm15 = vcmp.gt.f32.partialorder %v18491_v60, 0.0  ;;  %v7134_v45 = vadd.f32 %v7094_v1, %v6970_v2  ;;  %v7482_v41 = vmul.f32 %v17496_v31, %v7438_v38  ;;  %5272 = vst.msk [vmem:[#allocation2 + $0x141] sm:$0xff] %vm4504_vm9, %v5256_v57  ;;  %v15377_v46 = vadd.f32 -1.0, %v16324_v9  ;;  %v7793_v25 = vld [vmem:[#allocation2 + $0x17] sm:$0xff] }
 0x27f   : > { %v7279_v54 = vadd.f32 %v7239_v35, %v7155_v5  ;;  %v7713_v39 = vmul.f32 %v21926_v40, %v7669_v51  ;;  %v5257_v23 = vsel %vm5177_vm13, %v18466_v62, %v15376_v29  ;;  %v15378_v22 = vadd.f32 -1.0, %v16326_v32  ;;  %v7920_v1 = vld [vmem:[#allocation2 + $0x98] sm:$0x1f] }
 0x280   : > { %v7258_v48 = vadd.f32 %v7218_v36, %v7134_v45  ;;  %v8176_v2 = vadd.f32 %v18368_v0, %v8076_v13  ;;  %v7522_v24 = vadd.f32 %v7482_v41, %v7398_v14  ;;  %v7363_v8 = vmul.f32 %v17492_v6, %v7319_v56  ;;  %5273 = vst.msk [vmem:[#allocation2 + $0x171] sm:$0xff] %vm4504_vm9, %v5257_v23  ;;  %v21994_v45 = vld [vmem:[#allocation23_spill] sm:$0xff]  ;;  %v21995_v56 = vld [vmem:[#allocation38_spill] sm:$0xff] }
 0x281   : > { %v5258_v57 = vsel %vm5178_vm14, %v18474_v53, %v15377_v46  ;;  %v7753_v5 = vadd.f32 %v7713_v39, %v7629_v17  ;;  %v18646_v62 = vadd.f32 %v18571_v59, %v15689_v49  ;;  %v5259_v0 = vsel %vm5179_vm15, %v18491_v60, %v15378_v22  ;;  %v6952_v53 = vld [vmem:[#allocation2 + $0x138] sm:$0x1f]  ;;  %v7686_v39 = vld [vmem:[#allocation2 + $0xce] sm:$0x1f] }
 0x282   : > { %5274 = vst.msk [vmem:[#allocation2 + $0x179] sm:$0xff] %vm4504_vm9, %v5258_v57  ;;  %v8276_v41 = vadd.f32 %v21994_v45, %v8176_v2  ;;  %v8336_v9 = vmul.f32 %v21995_v56, %v18563_v34  ;;  %v7606_v38 = vmul.f32 %v21925_v33, %v7562_v63  ;;  %v7403_v43 = vadd.f32 %v7363_v8, %v7279_v54  ;;  %v7076_v36 = vld [vmem:[#allocation2 + $0x139] sm:$0x1f]  ;;  %v21996_v34 = vld [vmem:[#allocation41_spill] sm:$0xff]  ;;  %v7567_v8 = vld [vmem:[#allocation2 + $0x105] sm:$0x1f] }
 0x283   : > { %5275 = vst.msk [vmem:[#allocation2 + $0x1a9] sm:$0xff] %vm4504_vm9, %v5259_v0  ;;  %v7342_v49 = vmul.f32 %v17492_v6, %v18636_v11  ;;  %v7837_v13 = vmul.f32 %v21932_v4, %v7793_v25  ;;  %v7889_v32 = vadd.f32 %v7849_v27, %v7765_v50  ;;  %v7949_v60 = vmul.f32 %v17534_v10, %v7920_v1  ;;  %v8020_v14 = vld [vmem:[#allocation2 + $0x99] sm:$0x1f] }
 0x284   : > { %v18660_v35 = vld [vmem:[#allocation2 + $0x1c] sm:$0xff]  ;;  %v8376_v17 = vadd.f32 %v8336_v9, %v8276_v41  ;;  %v8436_v29 = vmul.f32 %v21996_v34, %v18604_v44  ;;  %v7646_v46 = vadd.f32 %v7606_v38, %v7522_v24  ;;  %v7487_v63 = vmul.f32 %v17496_v31, %v7443_v58 }
 0x285   : > { %v8120_v54 = vld [vmem:[#allocation2 + $0x9a] sm:$0x1f]  ;;  %v7382_v23 = vadd.f32 %v7342_v49, %v7258_v48  ;;  %v7877_v22 = vadd.f32 %v7837_v13, %v7753_v5  ;;  %v6996_v27 = vmul.f32 %v17108_v15, %v6952_v53  ;;  %v7120_v50 = vmul.f32 %v17112_v18, %v7076_v36  ;;  %v7810_v53 = vld [vmem:[#allocation2 + $0xcf] sm:$0x1f] }
 0x286   : > { %v8220_v2 = vld [vmem:[#allocation2 + $0x9b] sm:$0x1f]  ;;  %v8476_v1 = vadd.f32 %v8436_v29, %v8376_v17  ;;  %v8049_v45 = vmul.f32 %v17538_v42, %v8020_v14  ;;  %v7527_v41 = vadd.f32 %v7487_v63, %v7403_v43  ;;  %v7466_v44 = vmul.f32 %v17496_v31, %v18660_v35  ;;  %v7922_v17 = vld [vmem:[#allocation2 + $0xd0] sm:$0x1f] }
 0x287   : > { %v21997_v57 = vld [vmem:[#allocation42_spill] sm:$0xff]  ;;  %v7937_v24 = vmul.f32 %v17534_v10, %v18586_v61  ;;  %v7989_v48 = vadd.f32 %v7949_v60, %v7889_v32  ;;  %v18674_v5 = vmul.f32 %v21937_v28, %v8120_v54  ;;  %v7730_v58 = vmul.f32 %v21926_v40, %v7686_v39  ;;  %v7691_v32 = vld [vmem:[#allocation2 + $0x106] sm:$0x1f]  ;;  %v22000_v54 = vld [vmem:[#allocation49_spill] sm:$0xff] }
 0x288   : > { %v8536_v0 = vmul.f32 %v21997_v57, %v7669_v51  ;;  %v18677_v9 = vld [vmem:[#allocation2 + $0x1d] sm:$0xff]  ;;  %v18680_v51 = vmul.f32 %v21938_v3, %v8220_v2  ;;  %v7611_v43 = vmul.f32 %v21925_v33, %v7567_v8  ;;  %v7506_v49 = vadd.f32 %v7466_v44, %v7382_v23  ;;  %v8022_v63 = vld [vmem:[#allocation2 + $0xd1] sm:$0x1f]  ;;  %v7815_v44 = vld [vmem:[#allocation2 + $0x107] sm:$0x1f] }
 0x289   : > { %21998 = vst [vmem:[#allocation35_spill] sm:$0xff] %v18674_v5  ;;  %v7200_v36 = vld [vmem:[#allocation2 + $0x13a] sm:$0x1f]  ;;  %v7977_v13 = vadd.f32 %v7937_v24, %v7877_v22  ;;  %v7770_v14 = vadd.f32 %v7730_v58, %v7646_v46  ;;  %v7160_v60 = vadd.f32 %v7120_v50, %v6996_v27  ;;  %v18685_v29 = vadd.f32 %v18571_v59, %v18602_v37  ;;  %v8122_v27 = vld [vmem:[#allocation2 + $0xd2] sm:$0x1f] }
 0x28a   : > { %v8576_v38 = vadd.f32 %v8536_v0, %v8476_v1  ;;  %21999 = vst [vmem:[#allocation40_spill] sm:$0xff] %v18680_v51  ;;  %v8636_v39 = vmul.f32 %v22000_v54, %v7793_v25  ;;  %v7651_v1 = vadd.f32 %v7611_v43, %v7527_v41  ;;  %v7590_v2 = vmul.f32 %v21925_v33, %v18677_v9  ;;  %v8222_v0 = vld [vmem:[#allocation2 + $0xd3] sm:$0x1f]  ;;  %v7324_v24 = vld [vmem:[#allocation2 + $0x13b] sm:$0x1f] }
 0x28b   : > { %v8037_v8 = vmul.f32 %v17538_v42, %v18591_v12  ;;  %v8137_v46 = vmul.f32 %v21937_v28, %v18609_v21  ;;  %v18694_v23 = vadd.f32 %v8049_v45, %v7989_v48  ;;  %v7854_v22 = vmul.f32 %v21932_v4, %v7810_v53  ;;  %v22002_v53 = vld [vmem:[#allocation52_spill] sm:$0xff] }
 0x28c   : > { %v7244_v37 = vmul.f32 %v17470_v19, %v7200_v36  ;;  %v8676_v50 = vadd.f32 %v8636_v39, %v8576_v38  ;;  %v7954_v25 = vmul.f32 %v17534_v10, %v7922_v17  ;;  %v7735_v41 = vmul.f32 %v21926_v40, %v7691_v32  ;;  %v7924_v17 = vld [vmem:[#allocation2 + $0x108] sm:$0x1f] }
 0x28d   : > { %22001 = vst [vmem:[#allocation15_spill] sm:$0xff] %v18694_v23  ;;  %v18700_v58 = vadd.f32 %v7590_v2, %v7506_v49  ;;  %v8077_v43 = vadd.f32 %v8037_v8, %v7977_v13  ;;  %v7894_v51 = vadd.f32 %v7854_v22, %v7770_v14  ;;  %v8054_v45 = vmul.f32 %v17538_v42, %v8022_v63  ;;  %v8024_v39 = vld [vmem:[#allocation2 + $0x109] sm:$0x1f]  ;;  %v7448_v2 = vld [vmem:[#allocation2 + $0x13c] sm:$0x1f] }
 0x28e   : > { %v7284_v48 = vadd.f32 %v7244_v37, %v7160_v60  ;;  %v8736_v5 = vmul.f32 %v22002_v53, %v18586_v61  ;;  %v18706_v36 = vmul.f32 %v21937_v28, %v8122_v27  ;;  %v7775_v38 = vadd.f32 %v7735_v41, %v7651_v1  ;;  %v8124_v14 = vld [vmem:[#allocation2 + $0x10a] sm:$0x1f]  ;;  %v7571_v8 = vld [vmem:[#allocation2 + $0x135] sm:$0xff] }
 0x28f   : > { %v8177_v23 = vadd.f32 %v8137_v46, %v8077_v43  ;;  %v5065_v32 = vadd.f32 %v18571_v59, %v18551_v20  ;;  %v18711_v49 = vmul.f32 %v21938_v3, %v8222_v0  ;;  %v7859_v13 = vmul.f32 %v21932_v4, %v7815_v44  ;;  %v8224_v61 = vld [vmem:[#allocation2 + $0x10b] sm:$0x1f]  ;;  %v22005_v46 = vld [vmem:[#allocation55_spill] sm:$0xff]  ;;  %v22006_v20 = vld [vmem:[#allocation57_spill] sm:$0xff] }
 0x290   : > { %22003 = vst [vmem:[#allocation16_spill] sm:$0xff] %v18706_v36  ;;  %v7368_v60 = vmul.f32 %v17492_v6, %v7324_v24  ;;  %v8776_v63 = vadd.f32 %v8736_v5, %v8676_v50  ;;  %v8237_v1 = vmul.f32 %v21938_v3, %v18636_v11  ;;  %v8836_v22 = vmul.f32 %v22005_v46, %v18591_v12  ;;  %v22007_v37 = vld [vmem:[#allocation61_spill] sm:$0xff] }
 0x291   : > { %22004 = vst [vmem:[#allocation60_spill] sm:$0xff] %v18711_v49  ;;  %v8936_v27 = vmul.f32 %v22006_v20, %v18609_v21  ;;  %v18722_v0 = vadd.f32 %v22007_v37, %v5065_v32  ;;  %v7994_v41 = vadd.f32 %v7954_v25, %v7894_v51  ;;  %v7959_v44 = vmul.f32 %v17534_v10, %v7924_v17  ;;  %v7695_v24 = vld [vmem:[#allocation2 + $0x136] sm:$0xff]  ;;  %v7820_v17 = vld [vmem:[#allocation2 + $0x13f] sm:$0x1f] }
 0x292   : > { %v8059_v5 = vmul.f32 %v17538_v42, %v8024_v39  ;;  %v7408_v50 = vadd.f32 %v7368_v60, %v7284_v48  ;;  %v7899_v43 = vadd.f32 %v7859_v13, %v7775_v38  ;;  %v18727_v49 = vmul.f32 %v21937_v28, %v8124_v14  ;;  %v7572_v51 = vld [vmem:[#allocation2 + $0x13d] sm:$0x1f] }
 0x293   : > { %v8277_v36 = vadd.f32 %v8237_v1, %v8177_v23  ;;  %v8876_v16 = vadd.f32 %v8836_v22, %v8776_v63  ;;  %v18730_v12 = vmul.f32 %v21938_v3, %v8224_v61  ;;  %v7492_v21 = vmul.f32 %v17496_v31, %v7448_v2  ;;  %v7696_v38 = vld [vmem:[#allocation2 + $0x13e] sm:$0x1f] }
 0x294   : > { %22008 = vst [vmem:[#allocation23_spill] sm:$0xff] %v18727_v49  ;;  %v18734_v32 = vmul.f32 %v21925_v33, %v7571_v8  ;;  %v5196_v25 = vmin.f32 %v18722_v0, 0.0  ;;  %v18738_v48 = vmul.f32 %v21926_v40, %v7695_v24  ;;  %v8337_v23 = vmul.f32 %v21995_v56, %v18660_v35  ;;  %v22012_v13 = vld [vmem:[#allocation59_spill] sm:$0xff] }
 0x295   : > { %22009 = vst [vmem:[#allocation38_spill] sm:$0xff] %v18730_v12  ;;  %v8976_v39 = vadd.f32 %v8936_v27, %v8876_v16  ;;  %v9036_v14 = vmul.f32 %v22012_v13, %v18636_v11  ;;  %v7670_v60 = vld [vmem:[#allocation2 + $0x1e] sm:$0xff]  ;;  %v18744_v63 = vadd.f32 %v8054_v45, %v7994_v41  ;;  %v7532_v61 = vadd.f32 %v7492_v21, %v7408_v50 }
 0x296   : > { %22010 = vst [vmem:[#allocation41_spill] sm:$0xff] %v18734_v32  ;;  %22011 = vst [vmem:[#allocation57_spill] sm:$0xff] %v18738_v48  ;;  %v18747_v2 = vmul.f32 %v21996_v34, %v7571_v8  ;;  %v7926_v1 = vld [vmem:[#allocation2 + $0x140] sm:$0x1f]  ;;  %v5227_v37 = vmul.f32 1.442695, %v5196_v25  ;;  %v7999_v24 = vadd.f32 %v7959_v44, %v7899_v43  ;;  %v7616_v48 = vmul.f32 %v21925_v33, %v7572_v51 }
 0x297   : > { %22013 = vst [vmem:[#allocation61_spill] sm:$0xff] %v18744_v63  ;;  %v8026_v22 = vld [vmem:[#allocation2 + $0x141] sm:$0x1f]  ;;  %v8377_v12 = vadd.f32 %v8337_v23, %v8277_v36  ;;  %v9076_v35 = vadd.f32 %v9036_v14, %v8976_v39  ;;  %v7740_v27 = vmul.f32 %v21926_v40, %v7696_v38  ;;  %v18752_v11 = vmul.f32 %v21932_v4, %v7820_v17  ;;  %v6957_v43 = vld [vmem:[#allocation2 + $0x170] sm:$0x1f] }
 0x298   : > { %22014 = vst [vmem:[#allocation86_spill] sm:$0xff] %v18747_v2  ;;  %v8126_v32 = vld [vmem:[#allocation2 + $0x142] sm:$0x1f]  ;;  %16327 = vpow2.f32 %v5227_v37  ;;  %v7714_v8 = vmul.f32 %v21926_v40, %v7670_v60  ;;  %v18756_v41 = vmul.f32 %v17534_v10, %v7926_v1  ;;  %v18759_v44 = vmul.f32 %v17538_v42, %v8026_v22  ;;  %v7081_v36 = vld [vmem:[#allocation2 + $0x171] sm:$0x1f] }
 0x299   : > { %v7794_v16 = vld [vmem:[#allocation2 + $0x1f] sm:$0xff]  ;;  %v9204_v21 = vcombine.high %v9076_v35, %v9076_v35  ;;  %v7656_v38 = vadd.f32 %v7616_v48, %v7532_v61  ;;  %v18763_v17 = vmul.f32 %v21937_v28, %v8126_v32  ;;  %v18767_v14 = vadd.f32 %v8059_v5, %v7999_v24  ;;  %v7205_v61 = vld [vmem:[#allocation2 + $0x172] sm:$0x1f] }
 0x29a   : > { %v8226_v45 = vld [vmem:[#allocation2 + $0x143] sm:$0x1f]  ;;  %22015 = vst [vmem:[#allocation87_spill] sm:$0xff] %v18756_v41  ;;  %22016 = vst [vmem:[#allocation88_spill] sm:$0xff] %v18759_v44  ;;  %v7754_v23 = vadd.f32 %v7714_v8, %v18700_v58  ;;  %v7838_v39 = vmul.f32 %v21932_v4, %v7794_v16  ;;  %v18777_v48 = vmul.f32 %v17108_v15, %v6957_v43  ;;  %v22023_v43 = vld [vmem:[#allocation65_spill] sm:$0xff]  ;;  %vm5180_vm0 = vcmp.gt.f32.partialorder %v18722_v0, 0.0 }
 0x29b   : > { %v8326_v50 = vld [vmem:[#allocation2 + $0x144] sm:$0x1f]  ;;  %22019 = vst [vmem:[#allocation89_spill] sm:$0xff] %v18767_v14  ;;  %v18770_v1 = vmul.f32 %v21938_v3, %v8226_v45  ;;  %v18780_v32 = vmul.f32 %v17112_v18, %v7081_v36  ;;  %v8437_v45 = vmul.f32 %v21996_v34, %v18677_v9  ;;  %v18786_v8 = vadd.f32 %v7740_v27, %v7656_v38 }
 0x29c   : > { %v22017_v51 = vld [vmem:[#allocation3_spill] sm:$0xff]  ;;  %v18774_v49 = vmul.f32 %v21995_v56, %v8326_v50  ;;  %v7878_v58 = vadd.f32 %v7838_v39, %v7754_v23  ;;  %v8537_v38 = vmul.f32 %v21997_v57, %v7670_v60  ;;  %v22024_v14 = vld [vmem:[#allocation68_spill] sm:$0xff]  ;;  %vm6911_vm5 = vcmask 129024  }
 0x29d   : > { %v9211_v25 = vrot.slane %v9076_v35, %v22017_v51  ;;  %22018 = vst [vmem:[#allocation3_spill] sm:$0xff] %v18763_v17  ;;  %22020 = vst [vmem:[#allocation90_spill] sm:$0xff] %v18770_v1  ;;  %v9218_v22 = vrot.slane %v9204_v21, %v22017_v51  ;;  %v7915_v2 = vld [vmem:[#allocation2 + $0x20] sm:$0xff]  ;;  %v22022_v21 = vld [vmem:[#allocation64_spill] sm:$0xff]  ;;  %v8477_v17 = vadd.f32 %v8437_v45, %v8377_v12 }
 0x29e   : > { %22021 = vst [vmem:[#allocation91_spill] sm:$0xff] %v18774_v49  ;;  %v15717_v49 = vadd.f32 %v22023_v43, %v22022_v21  ;;  %v7938_v36 = vmul.f32 %v17534_v10, %v7915_v2  ;;  %v8015_v27 = vld [vmem:[#allocation2 + $0x21] sm:$0xff] }
 0x29f   : > { %v9219_v37 = vcombine.high %v9211_v25, %v9211_v25  ;;  %v9220_v5 = vcombine.high %v9218_v22, %v9218_v22  ;;  %v9227_v24 = vrot.slane %v9211_v25, %v22017_v51  ;;  %v9234_v50 = vrot.slane %v9218_v22, %v22017_v51 }
 0x2a0   : > { %v18794_v25 = vmul.f32 %v17470_v19, %v7205_v61  ;;  %v7978_v9 = vadd.f32 %v7938_v36, %v7878_v58  ;;  %v8637_v61 = vmul.f32 %v22000_v54, %v7794_v16  ;;  %v8038_v60 = vmul.f32 %v17538_v42, %v8015_v27  ;;  %v8115_v16 = vld [vmem:[#allocation2 + $0x22] sm:$0xff] }
 0x2a1   : > { %v9241_v35 = vrot.slane %v9219_v37, %v22017_v51  ;;  %v9248_v23 = vrot.slane %v9220_v5, %v22017_v51  ;;  %v5970_v5 = vadd.f32 %v15717_v49, %v18575_v52  ;;  %v22028_v52 = vld [vmem:[#allocation71_spill] sm:$0xff]  ;;  %v22029_v49 = vld [vmem:[#allocation72_spill] sm:$0xff] }
 0x2a2   : > { %v15723_v44 = vadd.f32 %v22029_v49, %v22028_v52 }
 0x2a3   : > { %v11090_v39 = vcombine.low %v9227_v24, %v9241_v35  ;;  %v15481_v1 = vcombine.high %v9227_v24, %v9241_v35  ;;  %v11092_v22 = vcombine.low %v9234_v50, %v9248_v23  ;;  %v15482_v37 = vcombine.high %v9234_v50, %v9248_v23  ;;  %v22025_v24 = vld [vmem:[#allocation70_spill] sm:$0xff]  ;;  %v22027_v23 = vld [vmem:[#allocation69_spill] sm:$0xff] }
 0x2a4   : > { %v15757_v12 = vadd.f32 %v22025_v24, %v22024_v14  ;;  %v8577_v35 = vadd.f32 %v8537_v38, %v8477_v17  ;;  %v22026_v50 = vld [vmem:[#allocation66_spill] sm:$0xff]  ;;  %v8078_v38 = vadd.f32 %v8038_v60, %v7978_v9  ;;  %v22030_v24 = vld [vmem:[#allocation76_spill] sm:$0xff] }
 0x2a5   : > { %v11100_v21 = vrot.slane %v11090_v39, %v22017_v51  ;;  %v11107_v43 = vrot.slane %v15481_v1, %v22017_v51  ;;  %v11114_v45 = vrot.slane %v11092_v22, %v22017_v51  ;;  %v11121_v58 = vrot.slane %v15482_v37, %v22017_v51  ;;  %v16328_v14 = vpop.eup %16327  ;;  %v22031_v37 = vld [vmem:[#allocation80_spill] sm:$0xff] }
 0x2a6   : > { %v15720_v39 = vadd.f32 %v22027_v23, %v22026_v50  ;;  %v8677_v63 = vadd.f32 %v8637_v61, %v8577_v35  ;;  %v8737_v1 = vmul.f32 %v22002_v53, %v7915_v2  ;;  %v8837_v22 = vmul.f32 %v22005_v46, %v8015_v27  ;;  %v22032_v35 = vld [vmem:[#allocation79_spill] sm:$0xff]  ;;  %v22035_v27 = vld [vmem:[#allocation24_spill] sm:$0xff] }
 0x2a7   : > { %v11122_v36 = vcombine.low %v11100_v21, %v11107_v43  ;;  %v11123_v17 = vcombine.low %v11114_v45, %v11121_v58  ;;  %v15726_v21 = vadd.f32 %v22031_v37, %v22030_v24  ;;  %v7329_v43 = vld [vmem:[#allocation2 + $0x173] sm:$0x1f]  ;;  %v15379_v19 = vadd.f32 -1.0, %v16328_v14  ;;  %v22033_v61 = vld [vmem:[#allocation19_spill] sm:$0xff]  ;;  %v22034_v58 = vld [vmem:[#allocation22_spill] sm:$0xff] }
 0x2a8   : > { %v8777_v41 = vadd.f32 %v8737_v1, %v8677_v63  ;;  %v5978_v50 = vadd.f32 %v15723_v44, %v18584_v26  ;;  %v15763_v2 = vadd.f32 %v22033_v61, %v22032_v35  ;;  %v8215_v45 = vld [vmem:[#allocation2 + $0x23] sm:$0xff]  ;;  %v15766_v60 = vadd.f32 %v22035_v27, %v22034_v58  ;;  %v22037_v14 = vld [vmem:[#allocation62_spill] sm:$0xff] }
 0x2a9   : > { %v11130_v23 = vrot.slane %v11122_v36, %v22017_v51  ;;  %v11137_v52 = vrot.slane %v11123_v17, %v22017_v51  ;;  %v5981_v9 = vadd.f32 %v15726_v21, %v18596_v7  ;;  %v5260_v49 = vsel %vm5180_vm0, %v18722_v0, %v15379_v19  ;;  %v22038_v7 = vld [vmem:[#allocation63_spill] sm:$0xff]  ;;  %v22039_v24 = vld [vmem:[#allocation18_spill] sm:$0xff] }
 0x2aa   : > { %v8138_v63 = vmul.f32 %v21937_v28, %v8115_v16  ;;  %v8877_v26 = vadd.f32 %v8837_v22, %v8777_v41  ;;  %v8937_v44 = vmul.f32 %v22006_v20, %v8115_v16  ;;  %v18829_v1 = vmul.f32 %v17492_v6, %v7329_v43  ;;  %5276 = vst.msk [vmem:[#allocation2 + $0x1b1] sm:$0xff] %vm4504_vm9, %v5260_v49  ;;  %v22040_v37 = vld [vmem:[#allocation75_spill] sm:$0xff]  ;;  %v7453_v35 = vld [vmem:[#allocation2 + $0x174] sm:$0x1f]  ;;  %v22041_v22 = vld [vmem:[#allocation32_spill] sm:$0xff] }
 0x2ab   : > { %v11138_v36 = vcombine.low %v11130_v23, %v11137_v52  ;;  %v15695_v17 = vadd.f32 %v22038_v7, %v22037_v14  ;;  %v15760_v21 = vadd.f32 %v22040_v37, %v22039_v24  ;;  %v9037_v0 = vmul.f32 %v22012_v13, %v8215_v45  ;;  %v22042_v43 = vld [vmem:[#allocation26_spill] sm:$0xff]  ;;  %v22050_v24 = vld [vmem:[#allocation36_spill] sm:$0xff]  ;;  %v22051_v37 = vld [vmem:[#allocation29_spill] sm:$0xff] }
 0x2ac   : > { %22036 = vst [vmem:[#allocation64_spill] sm:$0xff] %v18829_v1  ;;  %v8178_v61 = vadd.f32 %v8138_v63, %v8078_v38  ;;  %v8977_v19 = vadd.f32 %v8937_v44, %v8877_v26  ;;  %v6042_v41 = vadd.f32 %v15763_v2, %v5978_v50  ;;  %v5973_v16 = vadd.f32 %v15720_v39, %v18581_v47  ;;  %v22044_v50 = vld [vmem:[#allocation85_spill] sm:$0xff]  ;;  %v22049_v14 = vld [vmem:[#allocation10_spill] sm:$0xff] }
 0x2ad   : > { %15862 = vmatmul.mubr.msk.f32.gmra.mxu1 %vm4504_vm9, %v11138_v36  ;;  %v15735_v23 = vadd.f32 %v22042_v43, %v22041_v22  ;;  %v6034_v52 = vadd.f32 %v15757_v12, %v5970_v5  ;;  %v6045_v58 = vadd.f32 %v15766_v60, %v5981_v9  ;;  %v18843_v27 = vadd.f32 %v18780_v32, %v18777_v48  ;;  %v8315_v5 = vld [vmem:[#allocation2 + $0x24] sm:$0xff]  ;;  %v22047_v48 = vld [vmem:[#allocation54_spill] sm:$0xff]  ;;  %v18861_v60 = vld [vmem:[#allocation2 + $0x16d] sm:$0xff] }
 0x2ae   : > { %v22043_v49 = vmov 0.0   ;;  %v8238_v38 = vmul.f32 %v21938_v3, %v8215_v45  ;;  %v9077_v63 = vadd.f32 %v9037_v0, %v8977_v19  ;;  %v18849_v2 = vadd.f32 %v22044_v50, %v6042_v41  ;;  %v22046_v12 = vld [vmem:[#allocation39_spill] sm:$0xff]  ;;  %v22048_v36 = vld [vmem:[#allocation21_spill] sm:$0xff]  ;;  %v22053_v19 = vld [vmem:[#allocation84_spill] sm:$0xff] }
 0x2af   : > { %15864 = vmatprep.mubr.msk.f32.mxu1 %vm16438_vm11, %v22043_v49  ;;  %v18852_v47 = vmul.f32 %v17496_v31, %v7453_v35  ;;  %v5930_v39 = vadd.f32 %v18571_v59, %v15695_v17  ;;  %v18856_v9 = vadd.f32 %v22046_v12, %v6034_v52  ;;  %v18859_v32 = vadd.f32 %v22047_v48, %v6045_v58  ;;  %v22052_v17 = vld [vmem:[#allocation28_spill] sm:$0xff]  ;;  %v22057_v12 = vld [vmem:[#allocation30_spill] sm:$0xff] }
 0x2b0   : > { %v8278_v26 = vadd.f32 %v8238_v38, %v8178_v61  ;;  %v9253_v45 = vcombine.high %v9077_v63, %v9077_v63  ;;  %v9260_v44 = vrot.slane %v9077_v63, %v22017_v51  ;;  %v15729_v7 = vadd.f32 %v22049_v14, %v22048_v36  ;;  %v22058_v14 = vld [vmem:[#allocation25_spill] sm:$0xff] }
 0x2b1   : > { %22045 = vst [vmem:[#allocation65_spill] sm:$0xff] %v18852_v47  ;;  %v15732_v35 = vadd.f32 %v22051_v37, %v22050_v24  ;;  %v5994_v59 = vadd.f32 %v15735_v23, %v5930_v39  ;;  %v15775_v0 = vadd.f32 %v22053_v19, %v22052_v17  ;;  %v6037_v41 = vadd.f32 %v15760_v21, %v5973_v16  ;;  %v22055_v23 = vld [vmem:[#allocation48_spill] sm:$0xff]  ;;  %v22059_v24 = vld [vmem:[#allocation27_spill] sm:$0xff] }
 0x2b2   : > { %v8338_v22 = vmul.f32 %v21995_v56, %v8315_v5  ;;  %v9267_v43 = vrot.slane %v9253_v45, %v22017_v51  ;;  %v9268_v52 = vcombine.high %v9260_v44, %v9260_v44  ;;  %v6136_v61 = vmin.f32 %v18849_v2, 0.0  ;;  %v22056_v5 = vld [vmem:[#allocation37_spill] sm:$0xff] }
 0x2b3   : > { %v18875_v58 = vmul.f32 %v21925_v33, %v18861_v60  ;;  %v6134_v38 = vmin.f32 %v18856_v9, 0.0  ;;  %v6137_v63 = vmin.f32 %v18859_v32, 0.0  ;;  %v18880_v50 = vadd.f32 %v22055_v23, %v6037_v41 }
 0x2b4   : > { %v8378_v39 = vadd.f32 %v8338_v22, %v8278_v26  ;;  %v9269_v21 = vcombine.high %v9267_v43, %v9267_v43  ;;  %v5986_v16 = vadd.f32 %v15729_v7, %v18646_v62  ;;  %v15769_v48 = vadd.f32 %v22057_v12, %v22056_v5 }
 0x2b5   : > { %22054 = vst [vmem:[#allocation68_spill] sm:$0xff] %v18875_v58  ;;  %v9276_v45 = vrot.slane %v9260_v44, %v22017_v51  ;;  %v5989_v36 = vadd.f32 %v15732_v35, %v18685_v29  ;;  %v15772_v37 = vadd.f32 %v22059_v24, %v22058_v14  ;;  %v6058_v17 = vadd.f32 %v15775_v0, %v5994_v59  ;;  %v8415_v44 = vld [vmem:[#allocation2 + $0x25] sm:$0xff]  ;;  %v7700_v24 = vld [vmem:[#allocation2 + $0x16e] sm:$0xff] }
 0x2b6   : > { %v9283_v19 = vrot.slane %v9267_v43, %v22017_v51  ;;  %v9290_v41 = vrot.slane %v9268_v52, %v22017_v51  ;;  %v9297_v26 = vrot.slane %v9269_v21, %v22017_v51  ;;  %v6145_v22 = vmul.f32 1.442695, %v6136_v61  ;;  %v6116_v52 = vpop.f32.mrf.mxu0 }
 0x2b7   : > { %v6141_v23 = vmul.f32 1.442695, %v6134_v38  ;;  %v6147_v62 = vmul.f32 1.442695, %v6137_v63  ;;  %v6135_v7 = vmin.f32 %v18880_v50, 0.0  ;;  %v18894_v5 = vadd.f32 %v18517_v30, %v6058_v17 }
 0x2b8   : > { %v11139_v29 = vcombine.low %v9276_v45, %v9290_v41  ;;  %v15483_v35 = vcombine.high %v9276_v45, %v9290_v41  ;;  %v11141_v12 = vcombine.low %v9283_v19, %v9297_v26  ;;  %v15484_v14 = vcombine.high %v9283_v19, %v9297_v26  ;;  %v8515_v19 = vld [vmem:[#allocation2 + $0x26] sm:$0xff] }
 0x2b9   : > { %16329 = vpow2.f32 %v6145_v22  ;;  %v6143_v59 = vmul.f32 1.442695, %v6135_v7  ;;  %v6050_v0 = vadd.f32 %v15769_v48, %v5986_v16  ;;  %v6053_v43 = vadd.f32 %v15772_v37, %v5989_v36  ;;  %v7577_v16 = vld [vmem:[#allocation2 + $0x175] sm:$0x1f] }
 0x2ba   : > { %v11149_v61 = vrot.slane %v11139_v29, %v22017_v51  ;;  %v11156_v38 = vrot.slane %v15483_v35, %v22017_v51  ;;  %v11163_v63 = vrot.slane %v11141_v12, %v22017_v51  ;;  %v11170_v30 = vrot.slane %v15484_v14, %v22017_v51  ;;  %v7701_v22 = vld [vmem:[#allocation2 + $0x176] sm:$0x1f]  ;;  %v8615_v14 = vld [vmem:[#allocation2 + $0x27] sm:$0xff] }
 0x2bb   : > { %v8438_v21 = vmul.f32 %v21996_v34, %v8415_v44  ;;  %16331 = vpow2.f32 %v6141_v23  ;;  %v6140_v45 = vmin.f32 %v18894_v5, 0.0  ;;  %v18903_v17 = vadd.f32 %v18531_v55, %v6050_v0  ;;  %v7825_v23 = vld [vmem:[#allocation2 + $0x177] sm:$0x1f] }
 0x2bc   : > { %v11171_v48 = vcombine.low %v11149_v61, %v11156_v38  ;;  %v11172_v36 = vcombine.low %v11163_v63, %v11170_v30  ;;  %16333 = vpow2.f32 %v6147_v62  ;;  %v18905_v37 = vadd.f32 %v6116_v52, %v6053_v43  ;;  %v7928_v7 = vld [vmem:[#allocation2 + $0x178] sm:$0x1f]  ;;  %v18926_v43 = vld [vmem:[#allocation2 + $0x41] sm:$0xff]  ;;  %v18938_v38 = vld [vmem:[#allocation2 + $0x49] sm:$0xff] }
 0x2bd   : > { %v7904_v41 = vadd.f32 %v18752_v11, %v18786_v8  ;;  %v18910_v26 = vmul.f32 %v21926_v40, %v7700_v24  ;;  %v8478_v44 = vadd.f32 %v8438_v21, %v8378_v39  ;;  %16335 = vpow2.f32 %v6143_v59  ;;  %v8028_v55 = vld [vmem:[#allocation2 + $0x179] sm:$0x1f]  ;;  %v18924_v59 = vld [vmem:[#allocation2 + $0x40] sm:$0xff] }
 0x2be   : > { %v11179_v29 = vrot.slane %v11171_v48, %v22017_v51  ;;  %v11186_v35 = vrot.slane %v11172_v36, %v22017_v51  ;;  %v6153_v62 = vmul.f32 1.442695, %v6140_v45  ;;  %v6138_v12 = vmin.f32 %v18903_v17, 0.0  ;;  %v8128_v21 = vld [vmem:[#allocation2 + $0x17a] sm:$0x1f]  ;;  %v18948_v36 = vld [vmem:[#allocation2 + $0x48] sm:$0xff] }
 0x2bf   : > { %22060 = vst [vmem:[#allocation70_spill] sm:$0xff] %v18910_v26  ;;  %v18917_v11 = vmul.f32 %v21996_v34, %v18861_v60  ;;  %v18920_v8 = vmul.f32 %v21925_v33, %v7577_v16  ;;  %v6139_v0 = vmin.f32 %v18905_v37, 0.0  ;;  %v8538_v39 = vmul.f32 %v21997_v57, %v8515_v19  ;;  %v8228_v45 = vld [vmem:[#allocation2 + $0x17b] sm:$0x1f] }
 0x2c0   : > { %v18930_v52 = vadd.f32 %v18794_v25, %v18843_v27  ;;  %v18933_v24 = vmul.f32 %v21926_v40, %v7701_v22  ;;  %v18936_v60 = vmul.f32 %v21932_v4, %v7825_v23  ;;  %v11187_v61 = vcombine.low %v11179_v29, %v11186_v35  ;;  %v8715_v27 = vld [vmem:[#allocation2 + $0x28] sm:$0xff]  ;;  %v22067_v23 = vld [vmem:[#allocation87_spill] sm:$0xff] }
 0x2c1   : > { %22061 = vst [vmem:[#allocation66_spill] sm:$0xff] %v18917_v11  ;;  %22062 = vst [vmem:[#allocation69_spill] sm:$0xff] %v18920_v8  ;;  %v18941_v63 = vmul.f32 %v17534_v10, %v7928_v7  ;;  %v18944_v30 = vmul.f32 %v17538_v42, %v8028_v55  ;;  %v8578_v16 = vadd.f32 %v8538_v39, %v8478_v44  ;;  %16337 = vpow2.f32 %v6153_v62  ;;  %v8815_v29 = vld [vmem:[#allocation2 + $0x29] sm:$0xff]  ;;  %v7672_v8 = vld [vmem:[#allocation2 + $0x3e] sm:$0xff] }
 0x2c2   : > { %22063 = vst [vmem:[#allocation71_spill] sm:$0xff] %v18933_v24  ;;  %22064 = vst [vmem:[#allocation72_spill] sm:$0xff] %v18936_v60  ;;  %v8638_v25 = vmul.f32 %v22000_v54, %v8615_v14  ;;  %15865 = vmatmul.mubr.msk.f32.gmra.mxu1 %vm4504_vm9, %v11187_v61  ;;  %v6149_v48 = vmul.f32 1.442695, %v6138_v12  ;;  %v6973_v19 = vmul.f32 %v17108_v15, %v18924_v59  ;;  %v6151_v55 = vmul.f32 1.442695, %v6139_v0 }
 0x2c3   : > { %22065 = vst [vmem:[#allocation76_spill] sm:$0xff] %v18941_v63  ;;  %22066 = vst [vmem:[#allocation80_spill] sm:$0xff] %v18944_v30  ;;  %v7097_v22 = vmul.f32 %v17112_v18, %v18926_v43  ;;  %v18955_v7 = vadd.f32 %v22067_v23, %v7904_v41  ;;  %15867 = vmatprep.mubr.msk.f32.mxu1 %vm16438_vm11, %v22043_v49  ;;  %v7098_v35 = vmul.f32 %v17112_v18, %v18938_v38  ;;  %v18961_v62 = vld [vmem:[#allocation2 + $0x42] sm:$0xff]  ;;  %v18975_v61 = vld [vmem:[#allocation2 + $0x4a] sm:$0xff] }
 0x2c4   : > { %v8678_v44 = vadd.f32 %v8638_v25, %v8578_v16  ;;  %v18964_v12 = vmul.f32 %v21937_v28, %v8128_v21  ;;  %v18967_v14 = vmul.f32 %v21938_v3, %v8228_v45  ;;  %v8738_v41 = vmul.f32 %v22002_v53, %v8715_v27  ;;  %v18977_v16 = vld [vmem:[#allocation2 + $0x43] sm:$0xff] }
 0x2c5   : > { %22068 = vst [vmem:[#allocation79_spill] sm:$0xff] %v18955_v7  ;;  %v7137_v39 = vadd.f32 %v7097_v22, %v6973_v19  ;;  %vm6129_vm1 = vcmp.gt.f32.partialorder %v18849_v2, 0.0  ;;  %vm6127_vm2 = vcmp.gt.f32.partialorder %v18856_v9, 0.0  ;;  %vm6130_vm12 = vcmp.gt.f32.partialorder %v18859_v32, 0.0  ;;  %v18979_v21 = vld [vmem:[#allocation2 + $0x44] sm:$0xff]  ;;  %v22071_v22 = vld [vmem:[#allocation6_spill] sm:$0xff] }
 0x2c6   : > { %22069 = vst [vmem:[#allocation19_spill] sm:$0xff] %v18964_v12  ;;  %22070 = vst [vmem:[#allocation22_spill] sm:$0xff] %v18967_v14  ;;  %v6974_v0 = vmul.f32 %v17108_v15, %v18948_v36  ;;  %v16330_v45 = vpop.eup %16329  ;;  %v7548_v25 = vld [vmem:[#allocation2 + $0x3d] sm:$0xff]  ;;  %vm6128_vm3 = vcmp.gt.f32.partialorder %v18880_v50, 0.0  ;;  %16339 = vpow2.f32 %v6149_v48  ;;  %v8778_v27 = vadd.f32 %v8738_v41, %v8678_v44  ;;  %v18985_v11 = vld [vmem:[#allocation2 + $0x45] sm:$0xff] }
 0x2c7   : > { %v8838_v19 = vmul.f32 %v22005_v46, %v8815_v29  ;;  %v7221_v23 = vmul.f32 %v22071_v22, %v18961_v62  ;;  %22072 = vst [vmem:[#allocation24_spill] sm:$0xff] %v18985_v11  ;;  %v15467_v26 = vadd.f32 -1.0, %v16330_v45  ;;  %16341 = vpow2.f32 %v6151_v55  ;;  %v22073_v14 = vld [vmem:[#allocation45_spill] sm:$0xff]  ;;  %v22074_v12 = vld [vmem:[#allocation46_spill] sm:$0xff] }
 0x2c8   : > { %v7138_v58 = vadd.f32 %v7098_v35, %v6974_v0  ;;  %v7384_v30 = vadd.f32 %v22074_v12, %v22073_v14  ;;  %v16332_v63 = vpop.eup %16331  ;;  %v7222_v60 = vmul.f32 %v22071_v22, %v18975_v61  ;;  %v7345_v48 = vmul.f32 %v17492_v6, %v18977_v16 }
 0x2c9   : > { %v7261_v24 = vadd.f32 %v7221_v23, %v7137_v39  ;;  %v18995_v44 = vmul.f32 %v17496_v31, %v18979_v21  ;;  %v16334_v29 = vpop.eup %16333  ;;  %v6164_v55 = vsel %vm6129_vm1, %v18849_v2, %v15467_v26  ;;  %v15465_v35 = vadd.f32 -1.0, %v16332_v63 }
 0x2ca   : > { %v19001_v12 = vmul.f32 %v21925_v33, %v7548_v25  ;;  %v19005_v14 = vmul.f32 %v21925_v33, %v18985_v11  ;;  %v16336_v41 = vpop.eup %16335  ;;  %v6274_v39 = vcombine.high %v6164_v55, %v6164_v55  ;;  %v6281_v0 = vrot.slane %v6164_v55, %v22017_v51  ;;  %v22075_v25 = vld [vmem:[#allocation47_spill] sm:$0xff] }
 0x2cb   : > { %v15468_v45 = vadd.f32 -1.0, %v16334_v29  ;;  %v19008_v23 = vadd.f32 %v8838_v19, %v8778_v27  ;;  %v6162_v2 = vsel %vm6127_vm2, %v18856_v9, %v15465_v35  ;;  %v15466_v26 = vadd.f32 -1.0, %v16336_v41  ;;  %v19021_v29 = vld [vmem:[#allocation2 + $0x46] sm:$0xff] }
 0x2cc   : > { %v19013_v63 = vadd.f32 %v7222_v60, %v7138_v58  ;;  %v19016_v47 = vadd.f32 %v22075_v25, %v7384_v30  ;;  %v6288_v46 = vrot.slane %v6274_v39, %v22017_v51  ;;  %v6289_v53 = vcombine.high %v6281_v0, %v6281_v0  ;;  %22076 = vst [vmem:[#allocation62_spill] sm:$0xff] %v19021_v29 }
 0x2cd   : > { %v6176_v22 = vcombine.high %v6162_v2, %v6162_v2  ;;  %v19019_v7 = vadd.f32 %v7345_v48, %v7261_v24  ;;  %v6297_v27 = vrot.slane %v6281_v0, %v22017_v51  ;;  %v6183_v19 = vrot.slane %v6162_v2, %v22017_v51 }
 0x2ce   : > { %v6165_v9 = vsel %vm6130_vm12, %v18859_v32, %v15468_v45  ;;  %v19029_v58 = vmul.f32 %v21926_v40, %v7672_v8  ;;  %v6290_v60 = vcombine.high %v6288_v46, %v6288_v46  ;;  %v6304_v30 = vrot.slane %v6288_v46, %v22017_v51  ;;  %v16338_v48 = vpop.eup %16337 }
 0x2cf   : > { %v6311_v55 = vrot.slane %v6289_v53, %v22017_v51  ;;  %v6190_v24 = vrot.slane %v6176_v22, %v22017_v51  ;;  %v6191_v35 = vcombine.high %v6183_v19, %v6183_v19  ;;  %v6199_v41 = vrot.slane %v6183_v19, %v22017_v51 }
 0x2d0   : > { %v6163_v39 = vsel %vm6128_vm3, %v18880_v50, %v15466_v26  ;;  %v19040_v32 = vmul.f32 %v21926_v40, %v19021_v29  ;;  %v6318_v8 = vrot.slane %v6290_v60, %v22017_v51  ;;  %v6323_v46 = vcombine.high %v6165_v9, %v6165_v9 }
 0x2d1   : > { %v15474_v0 = vcombine.high %v6297_v27, %v6311_v55  ;;  %v6330_v53 = vrot.slane %v6165_v9, %v22017_v51  ;;  %v6320_v45 = vcombine.high %v6304_v30, %v6304_v30  ;;  %v6192_v22 = vcombine.high %v6190_v24, %v6190_v24 }
 0x2d2   : > { %v6206_v2 = vrot.slane %v6190_v24, %v22017_v51  ;;  %v6213_v25 = vrot.slane %v6191_v35, %v22017_v51  ;;  %v6616_v19 = vcombine.low %v6297_v27, %v6311_v55  ;;  %v6645_v54 = vrot.slane %v6304_v30, %v22017_v51 }
 0x2d3   : > { %v6322_v50 = vcombine.high %v6318_v8, %v6318_v8  ;;  %v15471_v26 = vadd.f32 -1.0, %v16338_v48  ;;  %v19047_v33 = vpop.eup %16339  ;;  %v6220_v40 = vrot.slane %v6192_v22, %v22017_v51  ;;  %vm6133_vm4 = vcmp.gt.f32.partialorder %v18894_v5, 0.0 }
 0x2d4   : > { %v6222_v60 = vcombine.high %v6206_v2, %v6206_v2  ;;  %v6519_v29 = vcombine.low %v6199_v41, %v6213_v25  ;;  %v15472_v49 = vcombine.high %v6199_v41, %v6213_v25  ;;  %v19051_v9 = vpop.eup %16341  ;;  %v6638_v24 = vrot.slane %v15474_v0, %v22017_v51 }
 0x2d5   : > { %v6337_v27 = vrot.slane %v6323_v46, %v22017_v51  ;;  %v6338_v55 = vcombine.high %v6330_v53, %v6330_v53  ;;  %v6346_v30 = vrot.slane %v6330_v53, %v22017_v51  ;;  %v6663_v48 = vcombine.low %v6318_v8, %v6320_v45 }
 0x2d6   : > { %v6521_v35 = vcombine.low %v6206_v2, %v6220_v40  ;;  %v6528_v18 = vrot.slane %v6519_v29, %v22017_v51  ;;  %v6535_v22 = vrot.slane %v15472_v49, %v22017_v51  ;;  %v19059_v41 = vrot.slane %v6616_v19, %v22017_v51 }
 0x2d7   : > { %v6549_v25 = vrot.slane %v6222_v60, %v22017_v51  ;;  %v6339_v11 = vcombine.high %v6337_v27, %v6337_v27  ;;  %v6360_v0 = vrot.slane %v6338_v55, %v22017_v51  ;;  %v6368_v57 = vcombine.high %v6346_v30, %v6346_v30 }
 0x2d8   : > { %v6542_v15 = vrot.slane %v6521_v35, %v22017_v51  ;;  %v6550_v46 = vcombine.low %v6528_v18, %v6535_v22  ;;  %v6664_v1 = vcombine.low %v6322_v50, %v6346_v30  ;;  %v19064_v53 = vcombine.low %v6638_v24, %v6645_v54 }
 0x2d9   : > { %v6353_v8 = vrot.slane %v6337_v27, %v22017_v51  ;;  %v6367_v29 = vrot.slane %v6339_v11, %v22017_v51  ;;  %v6370_v49 = vcombine.high %v6360_v0, %v6360_v0  ;;  %v6665_v2 = vcombine.low %v6360_v0, %v6368_v57 }
 0x2da   : > { %v6551_v45 = vcombine.low %v6542_v15, %v6549_v25  ;;  %v6672_v19 = vrot.slane %v6663_v48, %v22017_v51  ;;  %v6679_v60 = vrot.slane %v6664_v1, %v22017_v51  ;;  %v6558_v55 = vrot.slane %v6550_v46, %v22017_v51 }
 0x2db   : > { %v6693_v35 = vrot.slane %v6370_v49, %v22017_v51  ;;  %v6711_v18 = vcombine.low %v6353_v8, %v6367_v29  ;;  %v6225_v22 = vcombine.high %v6163_v39, %v6163_v39  ;;  %v6686_v50 = vrot.slane %v6665_v2, %v22017_v51 }
 0x2dc   : > { %v6565_v54 = vrot.slane %v6551_v45, %v22017_v51  ;;  %v6694_v24 = vcombine.low %v6672_v19, %v6679_v60  ;;  %v6232_v11 = vrot.slane %v6163_v39, %v22017_v51  ;;  %v6661_v15 = vrot.slane %v19064_v53, %v22017_v51 }
 0x2dd   : > { %v6224_v57 = vcombine.high %v6220_v40, %v6220_v40  ;;  %v6239_v27 = vrot.slane %v6225_v22, %v22017_v51  ;;  %v6168_v1 = vsel %vm6133_vm4, %v18894_v5, %v15471_v26  ;;  %v6695_v48 = vcombine.low %v6686_v50, %v6693_v35 }
 0x2de   : > { %v6566_v30 = vcombine.low %v6558_v55, %v6565_v54  ;;  %v6702_v25 = vrot.slane %v6694_v24, %v22017_v51  ;;  %v6240_v0 = vcombine.high %v6232_v11, %v6232_v11  ;;  %v15475_v46 = vcombine.high %v6353_v8, %v6367_v29 }
 0x2df   : > { %v19083_v49 = vrot.slane %v6711_v18, %v22017_v51  ;;  %v6241_v39 = vcombine.high %v6239_v27, %v6239_v27  ;;  %v6248_v45 = vrot.slane %v6232_v11, %v22017_v51  ;;  %v6709_v40 = vrot.slane %v6695_v48, %v22017_v51 }
 0x2e0   : > { %6912 = vst.msk [vmem:[#allocation2 + $0x31] sm:$0x7f] %vm6911_vm5, %v6566_v30  ;;  %v6262_v53 = vrot.slane %v6240_v0, %v22017_v51  ;;  %v6470_v2 = vcombine.high %v6168_v1, %v6168_v1  ;;  %v6477_v5 = vrot.slane %v6168_v1, %v22017_v51  ;;  %vm6131_vm6 = vcmp.gt.f32.partialorder %v18903_v17, 0.0 }
 0x2e1   : > { %v6255_v26 = vrot.slane %v6239_v27, %v22017_v51  ;;  %v6269_v8 = vrot.slane %v6241_v39, %v22017_v51  ;;  %v6270_v29 = vcombine.high %v6248_v45, %v6248_v45  ;;  %v6567_v19 = vcombine.low %v6224_v57, %v6248_v45 }
 0x2e2   : > { %v6710_v60 = vcombine.low %v6702_v25, %v6709_v40  ;;  %v6272_v55 = vcombine.high %v6262_v53, %v6262_v53  ;;  %v6484_v35 = vrot.slane %v6470_v2, %v22017_v51  ;;  %v6485_v18 = vcombine.high %v6477_v5, %v6477_v5 }
 0x2e3   : > { %v6568_v22 = vcombine.low %v6262_v53, %v6270_v29  ;;  %v6576_v54 = vrot.slane %v6567_v19, %v22017_v51  ;;  %v6597_v50 = vrot.slane %v6269_v8, %v22017_v51  ;;  %v15473_v24 = vcombine.high %v6255_v26, %v6269_v8 }
 0x2e4   : > { %6915 = vst.msk [vmem:[#allocation2 + $0xd9] sm:$0x7f] %vm6911_vm5, %v6710_v60  ;;  %v6569_v11 = vcombine.low %v6272_v55, %v6255_v26  ;;  %v6486_v1 = vcombine.high %v6484_v35, %v6484_v35  ;;  %v19098_v27 = vrot.slane %v6477_v5, %v22017_v51  ;;  %v6500_v57 = vrot.slane %v6484_v35, %v22017_v51 }
 0x2e5   : > { %v6583_v30 = vrot.slane %v6568_v22, %v22017_v51  ;;  %v6624_v48 = vrot.slane %v15473_v24, %v22017_v51  ;;  %v6507_v25 = vrot.slane %v6485_v18, %v22017_v51  ;;  %v15469_v0 = vadd.f32 -1.0, %v19047_v33 }
 0x2e6   : > { %vm6132_vm7 = vcmp.gt.f32.partialorder %v18905_v37, 0.0  ;;  %v6590_v39 = vrot.slane %v6569_v11, %v22017_v51  ;;  %v6514_v45 = vrot.slane %v6486_v1, %v22017_v51  ;;  %v6515_v40 = vcombine.high %v19098_v27, %v19098_v27 }
 0x2e7   : > { %v6516_v53 = vcombine.high %v6500_v57, %v6500_v57  ;;  %v19111_v2 = vrot.slane %v15475_v46, %v22017_v51  ;;  %v6598_v5 = vcombine.low %v6576_v54, %v6583_v30  ;;  %v6646_v26 = vcombine.low %v6624_v48, %v19059_v41  ;;  %v8915_v24 = vld [vmem:[#allocation2 + $0x2a] sm:$0xff] }
 0x2e8   : > { %v6517_v8 = vcombine.high %v6507_v25, %v6507_v25  ;;  %v6599_v29 = vcombine.low %v6590_v39, %v6597_v50  ;;  %v6518_v19 = vcombine.high %v6514_v45, %v6514_v45  ;;  %v6855_v33 = vcombine.low %v6507_v25, %v6515_v40 }
 0x2e9   : > { %v6857_v60 = vcombine.low %v6514_v45, %v6516_v53  ;;  %v6606_v55 = vrot.slane %v6598_v5, %v22017_v51  ;;  %v6654_v35 = vrot.slane %v6646_v26, %v22017_v51  ;;  %v6166_v22 = vsel %vm6131_vm6, %v18903_v17, %v15469_v0 }
 0x2ea   : > { %v6856_v18 = vcombine.low %v6517_v8, %v6500_v57  ;;  %v6613_v46 = vrot.slane %v6599_v29, %v22017_v51  ;;  %v6864_v54 = vrot.slane %v6855_v33, %v22017_v51  ;;  %v6885_v50 = vrot.slane %v6518_v19, %v22017_v51 }
 0x2eb   : > { %v6878_v41 = vrot.slane %v6857_v60, %v22017_v51  ;;  %v6662_v11 = vcombine.low %v6654_v35, %v6661_v15  ;;  %v6372_v30 = vcombine.high %v6166_v22, %v6166_v22  ;;  %v6379_v48 = vrot.slane %v6166_v22, %v22017_v51  ;;  %v9015_v60 = vld [vmem:[#allocation2 + $0x2b] sm:$0xff] }
 0x2ec   : > { %v6871_v1 = vrot.slane %v6856_v18, %v22017_v51  ;;  %v6614_v57 = vcombine.low %v6606_v55, %v6613_v46  ;;  %v15470_v39 = vadd.f32 -1.0, %v19051_v9  ;;  %v8938_v17 = vmul.f32 %v22006_v20, %v8915_v24 }
 0x2ed   : > { %v6887_v25 = vcombine.low %v6878_v41, %v6885_v50  ;;  %6914 = vst.msk [vmem:[#allocation2 + $0xa1] sm:$0x7f] %vm6911_vm5, %v6662_v11  ;;  %v6386_v45 = vrot.slane %v6372_v30, %v22017_v51  ;;  %v6387_v40 = vcombine.high %v6379_v48, %v6379_v48  ;;  %v6395_v53 = vrot.slane %v6379_v48, %v22017_v51 }
 0x2ee   : > { %v6886_v0 = vcombine.low %v6864_v54, %v6871_v1  ;;  %v6742_v15 = vcombine.low %v19083_v49, %v19111_v2  ;;  %6913 = vst.msk [vmem:[#allocation2 + $0x69] sm:$0x7f] %vm6911_vm5, %v6614_v57  ;;  %v6167_v9 = vsel %vm6132_vm7, %v18905_v37, %v15470_v39  ;;  %v7632_v26 = vadd.f32 %v19001_v12, %v19016_v47  ;;  %v19145_v47 = vpop.f32.mrf.mxu1 }
 0x2ef   : > { %v6901_v5 = vrot.slane %v6887_v25, %v22017_v51  ;;  %v6388_v29 = vcombine.high %v6386_v45, %v6386_v45  ;;  %v6402_v19 = vrot.slane %v6386_v45, %v22017_v51  ;;  %v6409_v33 = vrot.slane %v6387_v40, %v22017_v51  ;;  %22077 = vst [vmem:[#allocation63_spill] sm:$0xff] %v19145_v47 }
 0x2f0   : > { %v6894_v8 = vrot.slane %v6886_v0, %v22017_v51  ;;  %v6417_v49 = vcombine.high %v6395_v53, %v6395_v53  ;;  %v6421_v2 = vcombine.high %v6167_v9, %v6167_v9  ;;  %v6428_v55 = vrot.slane %v6167_v9, %v22017_v51  ;;  %v15860_v30 = vpop.f32.mrf.mxu1 }
 0x2f1   : > { %v8978_v35 = vadd.f32 %v8938_v17, %v19008_v23  ;;  %v6416_v37 = vrot.slane %v6388_v29, %v22017_v51  ;;  %v6418_v22 = vcombine.high %v6402_v19, %v6402_v19  ;;  %v6419_v24 = vcombine.high %v6409_v33, %v6409_v33  ;;  %v7796_v30 = vld [vmem:[#allocation2 + $0x3f] sm:$0xff] }
 0x2f2   : > { %v6902_v18 = vcombine.low %v6894_v8, %v6901_v5  ;;  %v6713_v12 = vcombine.low %v6395_v53, %v6409_v33  ;;  %v6435_v46 = vrot.slane %v6421_v2, %v22017_v51  ;;  %v6436_v54 = vcombine.high %v6428_v55, %v6428_v55 }
 0x2f3   : > { %v9038_v41 = vmul.f32 %v22012_v13, %v9015_v60  ;;  %v6759_v50 = vcombine.low %v6419_v24, %v6402_v19  ;;  %v6760_v11 = vcombine.low %v6416_v37, %v6418_v22  ;;  %v6420_v1 = vcombine.high %v6416_v37, %v6416_v37 }
 0x2f4   : > { %6919 = vst.msk [vmem:[#allocation2 + $0x1b9] sm:$0x7f] %vm6911_vm5, %v6902_v18  ;;  %v6444_v23 = vrot.slane %v6428_v55, %v22017_v51  ;;  %v6734_v48 = vrot.slane %v6713_v12, %v22017_v51  ;;  %v6741_v57 = vrot.slane %v6417_v49, %v22017_v51  ;;  %v6437_v25 = vcombine.high %v6435_v46, %v6435_v46 }
 0x2f5   : > { %v6458_v39 = vrot.slane %v6436_v54, %v22017_v51  ;;  %v6768_v17 = vrot.slane %v6759_v50, %v22017_v51  ;;  %v6775_v0 = vrot.slane %v6760_v11, %v22017_v51  ;;  %v9078_v40 = vadd.f32 %v9038_v41, %v8978_v35 }
 0x2f6   : > { %v6761_v45 = vcombine.low %v6420_v1, %v6444_v23  ;;  %v6743_v53 = vcombine.low %v6734_v48, %v6741_v57  ;;  %v6451_v5 = vrot.slane %v6435_v46, %v22017_v51  ;;  %v6465_v9 = vrot.slane %v6437_v25, %v22017_v51  ;;  %v19176_v48 = vld [vmem:[#allocation2 + $0x47] sm:$0xff] }
 0x2f7   : > { %v15476_v8 = vcombine.high %v6444_v23, %v6458_v39  ;;  %v6790_v29 = vcombine.low %v6768_v17, %v6775_v0  ;;  %v6789_v33 = vrot.slane %v6458_v39, %v22017_v51  ;;  %v7509_v60 = vadd.f32 %v18995_v44, %v19019_v7 }
 0x2f8   : > { %v6782_v19 = vrot.slane %v6761_v45, %v22017_v51  ;;  %v6750_v49 = vrot.slane %v6742_v15, %v22017_v51  ;;  %v6757_v2 = vrot.slane %v6743_v53, %v22017_v51  ;;  %v6808_v55 = vcombine.low %v6451_v5, %v6465_v9 }
 0x2f9   : > { %v15477_v35 = vcombine.high %v6451_v5, %v6465_v9  ;;  %v6837_v18 = vrot.slane %v19098_v27, %v22017_v51  ;;  %v6816_v22 = vrot.slane %v15476_v8, %v22017_v51  ;;  %v9302_v24 = vcombine.high %v9078_v40, %v9078_v40 }
 0x2fa   : > { %v6791_v37 = vcombine.low %v6782_v19, %v6789_v33  ;;  %v6758_v12 = vcombine.low %v6750_v49, %v6757_v2  ;;  %v6823_v46 = vrot.slane %v6808_v55, %v22017_v51  ;;  %v9309_v7 = vrot.slane %v9078_v40, %v22017_v51 }
 0x2fb   : > { %v6830_v54 = vrot.slane %v15477_v35, %v22017_v51  ;;  %v6798_v44 = vrot.slane %v6790_v29, %v22017_v51  ;;  %v9316_v41 = vrot.slane %v9302_v24, %v22017_v51  ;;  %v7633_v50 = vadd.f32 %v19005_v14, %v7509_v60  ;;  %v19193_v60 = vld [vmem:[#allocation2 + $0x4b] sm:$0xff] }
 0x2fc   : > { %v6805_v15 = vrot.slane %v6791_v37, %v22017_v51  ;;  %6916 = vst.msk [vmem:[#allocation2 + $0x111] sm:$0x7f] %vm6911_vm5, %v6758_v12  ;;  %v6838_v27 = vcombine.low %v6816_v22, %v6823_v46  ;;  %v9317_v1 = vcombine.high %v9309_v7, %v9309_v7  ;;  %v7756_v23 = vadd.f32 %v19029_v58, %v7632_v26  ;;  %v8316_v37 = vld [vmem:[#allocation2 + $0x2c] sm:$0x1f] }
 0x2fd   : > { %v6839_v11 = vcombine.low %v6830_v54, %v6837_v18  ;;  %v9318_v25 = vcombine.high %v9316_v41, %v9316_v41  ;;  %v9325_v39 = vrot.slane %v9309_v7, %v22017_v51  ;;  %v9332_v17 = vrot.slane %v9316_v41, %v22017_v51  ;;  %v22079_v41 = vld [vmem:[#allocation58_spill] sm:$0xff] }
 0x2fe   : > { %v6806_v57 = vcombine.low %v6798_v44, %v6805_v15  ;;  %v6846_v0 = vrot.slane %v6838_v27, %v22017_v51  ;;  %v9339_v45 = vrot.slane %v9317_v1, %v22017_v51  ;;  %v7757_v40 = vadd.f32 %v19040_v32, %v7633_v50  ;;  %v22078_v15 = vld [vmem:[#allocation13_spill] sm:$0xff]  ;;  %v8328_v50 = vld [vmem:[#allocation2 + $0x17c] sm:$0x1f] }
 0x2ff   : > { %v6853_v14 = vrot.slane %v6839_v11, %v22017_v51  ;;  %v9346_v58 = vrot.slane %v9318_v25, %v22017_v51  ;;  %v7840_v26 = vmul.f32 %v21932_v4, %v7796_v30  ;;  %v7841_v53 = vmul.f32 %v21932_v4, %v19176_v48  ;;  %v7426_v11 = vld [vmem:[#allocation2 + $0x4c] sm:$0xff] }
 0x300   : > { %6917 = vst.msk [vmem:[#allocation2 + $0x149] sm:$0x7f] %vm6911_vm5, %v6806_v57  ;;  %v7940_v5 = vmul.f32 %v17534_v10, %v18924_v59  ;;  %v11188_v8 = vcombine.low %v9325_v39, %v9339_v45  ;;  %v15485_v29 = vcombine.high %v9325_v39, %v9339_v45  ;;  %v7941_v19 = vmul.f32 %v17534_v10, %v18948_v36  ;;  %v8416_v57 = vld [vmem:[#allocation2 + $0x2d] sm:$0x1f] }
 0x301   : > { %v6854_v9 = vcombine.low %v6846_v0, %v6853_v14  ;;  %v11190_v33 = vcombine.low %v9332_v17, %v9346_v58  ;;  %v15486_v32 = vcombine.high %v9332_v17, %v9346_v58  ;;  %v7880_v49 = vadd.f32 %v7840_v26, %v7756_v23  ;;  %v22080_v17 = vld [vmem:[#allocation56_spill] sm:$0xff] }
 0x302   : > { %v7881_v2 = vadd.f32 %v7841_v53, %v7757_v40  ;;  %v11198_v55 = vrot.slane %v11188_v8, %v22017_v51  ;;  %v11205_v35 = vrot.slane %v15485_v29, %v22017_v51  ;;  %v8040_v59 = vmul.f32 %v17538_v42, %v18926_v43  ;;  %v8516_v26 = vld [vmem:[#allocation2 + $0x2e] sm:$0x1f]  ;;  %v7086_v8 = vld [vmem:[#allocation2 + $0x1a9] sm:$0x1f] }
 0x303   : > { %6918 = vst.msk [vmem:[#allocation2 + $0x181] sm:$0x7f] %vm6911_vm5, %v6854_v9  ;;  %v8041_v18 = vmul.f32 %v17538_v42, %v18938_v38  ;;  %v11212_v22 = vrot.slane %v11190_v33, %v22017_v51  ;;  %v11219_v24 = vrot.slane %v15486_v32, %v22017_v51  ;;  %v7980_v12 = vadd.f32 %v7940_v5, %v7880_v49  ;;  %v6962_v5 = vld [vmem:[#allocation2 + $0x1a8] sm:$0x1f] }
 0x304   : > { %v7981_v46 = vadd.f32 %v7941_v19, %v7881_v2  ;;  %v11220_v54 = vcombine.low %v11198_v55, %v11205_v35  ;;  %v7346_v7 = vmul.f32 %v17492_v6, %v19193_v60  ;;  %v8140_v44 = vmul.f32 %v21937_v28, %v18961_v62  ;;  %v19224_v19 = vld [vmem:[#allocation2 + $0x4d] sm:$0xff] }
 0x305   : > { %v8179_v43 = vadd.f32 %v22079_v41, %v22078_v15  ;;  %v11221_v27 = vcombine.low %v11212_v22, %v11219_v24  ;;  %v8080_v1 = vadd.f32 %v8040_v59, %v7980_v12  ;;  %v8141_v30 = vmul.f32 %v21937_v28, %v18975_v61  ;;  %v8616_v2 = vld [vmem:[#allocation2 + $0x2f] sm:$0x1f] }
 0x306   : > { %v8081_v23 = vadd.f32 %v8041_v18, %v7981_v46  ;;  %v7386_v25 = vadd.f32 %v7346_v7, %v19013_v63  ;;  %v8240_v39 = vmul.f32 %v21938_v3, %v18977_v16  ;;  %v8339_v62 = vmul.f32 %v21995_v56, %v8316_v37  ;;  %v22082_v55 = vld [vmem:[#allocation64_spill] sm:$0xff]  ;;  %v22084_v37 = vld [vmem:[#allocation42_spill] sm:$0xff]  ;;  %v8716_v15 = vld [vmem:[#allocation2 + $0x30] sm:$0x1f] }
 0x307   : > { %v8279_v0 = vadd.f32 %v22080_v17, %v8179_v43  ;;  %v11228_v14 = vrot.slane %v11220_v54, %v22017_v51  ;;  %v11235_v45 = vrot.slane %v11221_v27, %v22017_v51  ;;  %v8180_v40 = vadd.f32 %v8140_v44, %v8080_v1  ;;  %v22085_v24 = vld [vmem:[#allocation4_spill] sm:$0xff]  ;;  %v22088_v41 = vld [vmem:[#allocation5_spill] sm:$0xff] }
 0x308   : > { %v8181_v58 = vadd.f32 %v8141_v30, %v8081_v23  ;;  %v19220_v53 = vmul.f32 %v21995_v56, %v8328_v50  ;;  %v7470_v63 = vmul.f32 %v17496_v31, %v7426_v11  ;;  %v8439_v16 = vmul.f32 %v21996_v34, %v8416_v57  ;;  %v7210_v46 = vld [vmem:[#allocation2 + $0x1aa] sm:$0x1f]  ;;  %v22092_v23 = vld [vmem:[#allocation49_spill] sm:$0xff]  ;;  %v22093_v57 = vld [vmem:[#allocation79_spill] sm:$0xff] }
 0x309   : > { %v8379_v9 = vadd.f32 %v8339_v62, %v8279_v0  ;;  %v11236_v29 = vcombine.low %v11228_v14, %v11235_v45  ;;  %v8241_v33 = vmul.f32 %v21938_v3, %v19193_v60  ;;  %v8280_v32 = vadd.f32 %v8240_v39, %v8180_v40  ;;  %v22087_v44 = vld [vmem:[#allocation24_spill] sm:$0xff]  ;;  %v22096_v62 = vld [vmem:[#allocation62_spill] sm:$0xff]  ;;  %v8816_v45 = vld [vmem:[#allocation2 + $0x31] sm:$0x1f] }
 0x30a   : > { %22081 = vst [vmem:[#allocation18_spill] sm:$0xff] %v19220_v53  ;;  %v8340_v49 = vmul.f32 %v21995_v56, %v18979_v21  ;;  %v19232_v35 = vadd.f32 %v22082_v55, %v18930_v52  ;;  %v7510_v59 = vadd.f32 %v7470_v63, %v7386_v25  ;;  %v8539_v22 = vmul.f32 %v22084_v37, %v8516_v26  ;;  %v22091_v50 = vld [vmem:[#allocation8_spill] sm:$0xff]  ;;  %v19256_v40 = vld [vmem:[#allocation2 + $0x50] sm:$0xff] }
 0x30b   : > { %v8479_v18 = vadd.f32 %v8439_v16, %v8379_v9  ;;  %v19236_v12 = vmul.f32 %v22085_v24, %v6962_v5  ;;  %15868 = vmatmul.mubr.msk.f32.gmra.mxu1 %vm4504_vm9, %v11236_v29  ;;  %v8281_v54 = vadd.f32 %v8241_v33, %v8181_v58  ;;  %v8440_v21 = vmul.f32 %v21996_v34, %v22087_v44  ;;  %v22094_v25 = vld [vmem:[#allocation88_spill] sm:$0xff]  ;;  %v22097_v58 = vld [vmem:[#allocation6_spill] sm:$0xff]  ;;  %v9016_v55 = vld [vmem:[#allocation2 + $0x33] sm:$0x1f] }
 0x30c   : > { %22083 = vst [vmem:[#allocation75_spill] sm:$0xff] %v19232_v35  ;;  %v8380_v7 = vadd.f32 %v8340_v49, %v8280_v32  ;;  %v19242_v43 = vmul.f32 %v22088_v41, %v7086_v8  ;;  %v22090_v52 = vmov 0.0   ;;  %v7594_v27 = vmul.f32 %v22091_v50, %v19224_v19  ;;  %v22099_v9 = vld [vmem:[#allocation52_spill] sm:$0xff]  ;;  %v8916_v8 = vld [vmem:[#allocation2 + $0x32] sm:$0x1f] }
 0x30d   : > { %22086 = vst [vmem:[#allocation32_spill] sm:$0xff] %v19236_v12  ;;  %15870 = vmatprep.mubr.msk.f32.mxu1 %vm16438_vm11, %v22090_v52  ;;  %v8579_v1 = vadd.f32 %v8539_v22, %v8479_v18  ;;  %v8639_v30 = vmul.f32 %v22092_v23, %v8616_v2  ;;  %v19251_v39 = vadd.f32 %v22094_v25, %v22093_v57  ;;  %v19262_v29 = vld [vmem:[#allocation2 + $0x51] sm:$0xff]  ;;  %v22100_v22 = vld [vmem:[#allocation55_spill] sm:$0xff] }
 0x30e   : > { %22089 = vst [vmem:[#allocation26_spill] sm:$0xff] %v19242_v43  ;;  %v8341_v17 = vmul.f32 %v21995_v56, %v7426_v11  ;;  %v8480_v0 = vadd.f32 %v8440_v21, %v8380_v7  ;;  %v8540_v14 = vmul.f32 %v22084_v37, %v22096_v62  ;;  %v19259_v26 = vmul.f32 %v22097_v58, %v7210_v46  ;;  %v19264_v33 = vld [vmem:[#allocation2 + $0x52] sm:$0xff] }
 0x30f   : > { %22095 = vst [vmem:[#allocation85_spill] sm:$0xff] %v19251_v39  ;;  %v7634_v5 = vadd.f32 %v7594_v27, %v7510_v59  ;;  %v8679_v63 = vadd.f32 %v8639_v30, %v8579_v1  ;;  %v8739_v16 = vmul.f32 %v22099_v9, %v8716_v15  ;;  %v8640_v49 = vmul.f32 %v22092_v23, %v19176_v48  ;;  %v7303_v44 = vld [vmem:[#allocation2 + $0x53] sm:$0xff]  ;;  %v22108_v39 = vld [vmem:[#allocation51_spill] sm:$0xff] }
 0x310   : > { %22098 = vst [vmem:[#allocation39_spill] sm:$0xff] %v19259_v26  ;;  %v8381_v11 = vadd.f32 %v8341_v17, %v8281_v54  ;;  %v8580_v32 = vadd.f32 %v8540_v14, %v8480_v0  ;;  %v8740_v2 = vmul.f32 %v22099_v9, %v18948_v36  ;;  %v8839_v59 = vmul.f32 %v22100_v22, %v8816_v45  ;;  %v7674_v21 = vld [vmem:[#allocation2 + $0x4e] sm:$0xff]  ;;  %v7677_v43 = vld [vmem:[#allocation2 + $0x76] sm:$0xff] }
 0x311   : > { %v8779_v18 = vadd.f32 %v8739_v16, %v8679_v63  ;;  %v8840_v46 = vmul.f32 %v22100_v22, %v18938_v38  ;;  %v6975_v7 = vmul.f32 %v22085_v24, %v19256_v40  ;;  %v8939_v15 = vmul.f32 %v22006_v20, %v8916_v8  ;;  %v7427_v27 = vld [vmem:[#allocation2 + $0x54] sm:$0xff] }
 0x312   : > { %v8680_v54 = vadd.f32 %v8640_v49, %v8580_v32  ;;  %v7099_v48 = vmul.f32 %v22088_v41, %v19262_v29  ;;  %v7223_v36 = vmul.f32 %v22097_v58, %v19264_v33  ;;  %v19280_v1 = vld [vmem:[#allocation2 + $0x55] sm:$0xff]  ;;  %v8940_v38 = vmul.f32 %v22006_v20, %v18975_v61 }
 0x313   : > { %v7798_v30 = vld [vmem:[#allocation2 + $0x4f] sm:$0xff]  ;;  %v8879_v57 = vadd.f32 %v8839_v59, %v8779_v18  ;;  %v9039_v25 = vmul.f32 %v22012_v13, %v9016_v55  ;;  %v9040_v17 = vmul.f32 %v22012_v13, %v19193_v60  ;;  %v7347_v14 = vmul.f32 %v17492_v6, %v7303_v44 }
 0x314   : > { %v8780_v0 = vadd.f32 %v8740_v2, %v8680_v54  ;;  %v7139_v62 = vadd.f32 %v7099_v48, %v6975_v7  ;;  %v22101_v45 = vld [vmem:[#allocation9_spill] sm:$0xff]  ;;  %v7471_v8 = vmul.f32 %v17496_v31, %v7427_v27  ;;  %v7595_v32 = vmul.f32 %v22091_v50, %v19280_v1 }
 0x315   : > { %v7718_v63 = vmul.f32 %v22101_v45, %v7674_v21  ;;  %v8979_v16 = vadd.f32 %v8939_v15, %v8879_v57  ;;  %v7842_v49 = vmul.f32 %v21932_v4, %v7798_v30  ;;  %v7942_v60 = vmul.f32 %v17534_v10, %v19256_v40 }
 0x316   : > { %v8880_v61 = vadd.f32 %v8840_v46, %v8780_v0  ;;  %v7263_v18 = vadd.f32 %v7223_v36, %v7139_v62  ;;  %v8042_v59 = vmul.f32 %v17538_v42, %v19262_v29  ;;  %v8142_v7 = vmul.f32 %v21937_v28, %v19264_v33 }
 0x317   : > { %v7758_v55 = vadd.f32 %v7718_v63, %v7634_v5  ;;  %v9079_v2 = vadd.f32 %v9039_v25, %v8979_v16  ;;  %v8242_v54 = vmul.f32 %v21938_v3, %v7303_v44  ;;  %v8342_v47 = vmul.f32 %v21995_v56, %v7427_v27 }
 0x318   : > { %v8980_v15 = vadd.f32 %v8940_v38, %v8880_v61  ;;  %v7387_v48 = vadd.f32 %v7347_v14, %v7263_v18  ;;  %v8441_v36 = vmul.f32 %v21996_v34, %v19224_v19  ;;  %v8541_v25 = vmul.f32 %v22084_v37, %v7674_v21 }
 0x319   : > { %v7882_v57 = vadd.f32 %v7842_v49, %v7758_v55  ;;  %v9351_v46 = vcombine.high %v9079_v2, %v9079_v2  ;;  %v9358_v5 = vrot.slane %v9079_v2, %v22017_v51  ;;  %v8641_v16 = vmul.f32 %v22092_v23, %v7798_v30 }
 0x31a   : > { %v9080_v0 = vadd.f32 %v9040_v17, %v8980_v15  ;;  %v7511_v62 = vadd.f32 %v7471_v8, %v7387_v48  ;;  %v8481_v49 = vadd.f32 %v8441_v36, %v8381_v11  ;;  %v8741_v19 = vmul.f32 %v22099_v9, %v19256_v40 }
 0x31b   : > { %v7982_v63 = vadd.f32 %v7942_v60, %v7882_v57  ;;  %v9365_v53 = vrot.slane %v9351_v46, %v22017_v51  ;;  %v9366_v38 = vcombine.high %v9358_v5, %v9358_v5  ;;  %v9373_v14 = vrot.slane %v9358_v5, %v22017_v51  ;;  %v7675_v5 = vld [vmem:[#allocation2 + $0x56] sm:$0xff] }
 0x31c   : > { %v9397_v27 = vrot.slane %v9080_v0, %v22017_v51  ;;  %v7635_v61 = vadd.f32 %v7595_v32, %v7511_v62  ;;  %v8581_v8 = vadd.f32 %v8541_v25, %v8481_v49  ;;  %v8841_v30 = vmul.f32 %v22100_v22, %v19262_v29  ;;  %v7799_v62 = vld [vmem:[#allocation2 + $0x57] sm:$0xff] }
 0x31d   : > { %v8082_v18 = vadd.f32 %v8042_v59, %v7982_v63  ;;  %v9380_v21 = vrot.slane %v9365_v53, %v22017_v51  ;;  %v9387_v17 = vrot.slane %v9366_v38, %v22017_v51  ;;  %v8941_v11 = vmul.f32 %v22006_v20, %v19264_v33  ;;  %v7917_v63 = vld [vmem:[#allocation2 + $0x58] sm:$0xff] }
 0x31e   : > { %v9405_v55 = vcombine.high %v9397_v27, %v9397_v27  ;;  %v9413_v60 = vrot.slane %v9397_v27, %v22017_v51  ;;  %v8681_v15 = vadd.f32 %v8641_v16, %v8581_v8  ;;  %v9041_v40 = vmul.f32 %v22012_v13, %v7303_v44  ;;  %v8017_v33 = vld [vmem:[#allocation2 + $0x59] sm:$0xff] }
 0x31f   : > { %v8182_v2 = vadd.f32 %v8142_v7, %v8082_v18  ;;  %v11237_v32 = vcombine.low %v9373_v14, %v9387_v17  ;;  %v15487_v59 = vcombine.high %v9373_v14, %v9387_v17  ;;  %v9390_v7 = vcombine.high %v9080_v0, %v9080_v0  ;;  %v8217_v17 = vld [vmem:[#allocation2 + $0x5b] sm:$0xff] }
 0x320   : > { %v9427_v53 = vrot.slane %v9405_v55, %v22017_v51  ;;  %v9435_v48 = vcombine.high %v9413_v60, %v9413_v60  ;;  %v11239_v57 = vcombine.low %v9380_v21, %v9413_v60  ;;  %v8781_v25 = vadd.f32 %v8741_v19, %v8681_v15  ;;  %v8117_v21 = vld [vmem:[#allocation2 + $0x5a] sm:$0xff] }
 0x321   : > { %v8282_v46 = vadd.f32 %v8242_v54, %v8182_v2  ;;  %v11247_v29 = vrot.slane %v11237_v32, %v22017_v51  ;;  %v11254_v36 = vrot.slane %v15487_v59, %v22017_v51  ;;  %v9404_v18 = vrot.slane %v9390_v7, %v22017_v51  ;;  %v8317_v32 = vld [vmem:[#allocation2 + $0x5c] sm:$0xff] }
 0x322   : > { %v11240_v38 = vcombine.low %v9427_v53, %v9435_v48  ;;  %v11261_v16 = vrot.slane %v11239_v57, %v22017_v51  ;;  %v9437_v44 = vcombine.high %v9427_v53, %v9427_v53  ;;  %v8881_v27 = vadd.f32 %v8841_v30, %v8781_v25  ;;  %v8417_v25 = vld [vmem:[#allocation2 + $0x5d] sm:$0xff] }
 0x323   : > { %v8382_v14 = vadd.f32 %v8342_v47, %v8282_v46  ;;  %v11269_v49 = vcombine.low %v11247_v29, %v11254_v36  ;;  %v7719_v54 = vmul.f32 %v22101_v45, %v7675_v5  ;;  %v7843_v0 = vmul.f32 %v21932_v4, %v7799_v62 }
 0x324   : > { %v11268_v8 = vrot.slane %v11240_v38, %v22017_v51  ;;  %v7943_v19 = vmul.f32 %v17534_v10, %v7917_v63  ;;  %v8043_v55 = vmul.f32 %v17538_v42, %v8017_v33  ;;  %v8981_v47 = vadd.f32 %v8941_v11, %v8881_v27 }
 0x325   : > { %v11277_v60 = vrot.slane %v11269_v49, %v22017_v51  ;;  %v9406_v2 = vcombine.high %v9404_v18, %v9404_v18  ;;  %v9420_v30 = vrot.slane %v9404_v18, %v22017_v51  ;;  %v7759_v15 = vadd.f32 %v7719_v54, %v7635_v61 }
 0x326   : > { %v11270_v59 = vcombine.low %v11261_v16, %v11268_v8  ;;  %v8143_v53 = vmul.f32 %v21937_v28, %v8117_v21  ;;  %v8243_v48 = vmul.f32 %v21938_v3, %v8217_v17  ;;  %v9081_v57 = vadd.f32 %v9041_v40, %v8981_v47 }
 0x327   : > { %v9434_v46 = vrot.slane %v9406_v2, %v22017_v51  ;;  %v9436_v29 = vcombine.high %v9420_v30, %v9420_v30  ;;  %v11286_v36 = vcombine.low %v9437_v44, %v9420_v30  ;;  %v7883_v38 = vadd.f32 %v7843_v0, %v7759_v15 }
 0x328   : > { %v11284_v7 = vrot.slane %v11270_v59, %v22017_v51  ;;  %v8343_v11 = vmul.f32 %v21995_v56, %v8317_v32  ;;  %v8442_v49 = vmul.f32 %v21996_v34, %v19280_v1  ;;  %v9446_v61 = vrot.slane %v9081_v57, %v22017_v51 }
 0x329   : > { %v9438_v16 = vcombine.high %v9434_v46, %v9434_v46  ;;  %v11287_v27 = vcombine.low %v9434_v46, %v9436_v29  ;;  %v11296_v18 = vrot.slane %v11286_v36, %v22017_v51  ;;  %v7983_v54 = vadd.f32 %v7943_v19, %v7883_v38  ;;  %v8517_v29 = vld [vmem:[#allocation2 + $0x5e] sm:$0xff] }
 0x32a   : > { %v11285_v40 = vcombine.low %v11277_v60, %v11284_v7  ;;  %v8443_v8 = vmul.f32 %v21996_v34, %v8417_v25  ;;  %v8482_v44 = vadd.f32 %v8442_v49, %v8382_v14  ;;  %v9454_v47 = vcombine.high %v9446_v61, %v9446_v61  ;;  %v8717_v7 = vld [vmem:[#allocation2 + $0x60] sm:$0xff] }
 0x32b   : > { %v9462_v2 = vrot.slane %v9446_v61, %v22017_v51  ;;  %v11303_v0 = vrot.slane %v11287_v27, %v22017_v51  ;;  %v8542_v30 = vmul.f32 %v22084_v37, %v7675_v5  ;;  %v8083_v1 = vadd.f32 %v8043_v55, %v7983_v54  ;;  %v8817_v61 = vld [vmem:[#allocation2 + $0x61] sm:$0xff] }
 0x32c   : > { %15871 = vmatmul.mubr.msk.f32.gmra.mxu1 %vm4504_vm9, %v11285_v40  ;;  %v8642_v32 = vmul.f32 %v22092_v23, %v7799_v62  ;;  %v8742_v59 = vmul.f32 %v22099_v9, %v7917_v63  ;;  %v8842_v60 = vmul.f32 %v22100_v22, %v8017_v33  ;;  %v9476_v14 = vrot.slane %v9454_v47, %v22017_v51  ;;  %v8617_v62 = vld [vmem:[#allocation2 + $0x5f] sm:$0xff] }
 0x32d   : > { %15873 = vmatprep.mubr.msk.f32.mxu1 %vm16438_vm11, %v22090_v52  ;;  %v9484_v19 = vcombine.high %v9462_v2, %v9462_v2  ;;  %v11288_v15 = vcombine.low %v9438_v16, %v9462_v2  ;;  %v11318_v46 = vcombine.low %v11296_v18, %v11303_v0  ;;  %v8183_v36 = vadd.f32 %v8143_v53, %v8083_v1  ;;  %v8917_v27 = vld [vmem:[#allocation2 + $0x62] sm:$0xff] }
 0x32e   : > { %v8582_v5 = vadd.f32 %v8542_v30, %v8482_v44  ;;  %v8942_v25 = vmul.f32 %v22006_v20, %v8117_v21  ;;  %v9042_v55 = vmul.f32 %v22012_v13, %v8217_v17  ;;  %v9439_v49 = vcombine.high %v9081_v57, %v9081_v57  ;;  %v9017_v54 = vld [vmem:[#allocation2 + $0x63] sm:$0xff] }
 0x32f   : > { %v11289_v63 = vcombine.low %v9476_v14, %v9484_v19  ;;  %v11310_v33 = vrot.slane %v11288_v15, %v22017_v51  ;;  %v11326_v38 = vrot.slane %v11318_v46, %v22017_v51  ;;  %v8283_v40 = vadd.f32 %v8243_v48, %v8183_v36  ;;  %v8318_v44 = vld [vmem:[#allocation2 + $0x64] sm:$0x1f]  ;;  %v22102_v36 = vld [vmem:[#allocation14_spill] sm:$0xff] }
 0x330   : > { %v8682_v16 = vadd.f32 %v8642_v32, %v8582_v5  ;;  %v9486_v18 = vcombine.high %v9476_v14, %v9476_v14  ;;  %v8543_v53 = vmul.f32 %v22084_v37, %v8517_v29  ;;  %v9453_v17 = vrot.slane %v9439_v49, %v22017_v51  ;;  %v8418_v15 = vld [vmem:[#allocation2 + $0x65] sm:$0x1f] }
 0x331   : > { %v11317_v21 = vrot.slane %v11289_v63, %v22017_v51  ;;  %v8643_v47 = vmul.f32 %v22092_v23, %v8617_v62  ;;  %v8743_v2 = vmul.f32 %v22099_v9, %v8717_v7  ;;  %v8383_v0 = vadd.f32 %v8343_v11, %v8283_v40  ;;  %v22103_v5 = vld [vmem:[#allocation11_spill] sm:$0xff]  ;;  %v22104_v40 = vld [vmem:[#allocation12_spill] sm:$0xff] }
 0x332   : > { %v8782_v30 = vadd.f32 %v8742_v59, %v8682_v16  ;;  %v8843_v57 = vmul.f32 %v22100_v22, %v8817_v61  ;;  %v8943_v48 = vmul.f32 %v22006_v20, %v8917_v27  ;;  %v9455_v32 = vcombine.high %v9453_v17, %v9453_v17  ;;  %v8518_v49 = vld [vmem:[#allocation2 + $0x66] sm:$0x1f] }
 0x333   : > { %v11319_v1 = vcombine.low %v11310_v33, %v11317_v21  ;;  %v9469_v14 = vrot.slane %v9453_v17, %v22017_v51  ;;  %v19364_v19 = vmul.f32 %v22012_v13, %v9017_v54  ;;  %v8483_v46 = vadd.f32 %v8443_v8, %v8383_v0  ;;  %v8618_v8 = vld [vmem:[#allocation2 + $0x67] sm:$0x1f] }
 0x334   : > { %v8882_v29 = vadd.f32 %v8842_v60, %v8782_v30  ;;  %v8184_v62 = vadd.f32 %v22103_v5, %v22102_v36  ;;  %v8344_v11 = vmul.f32 %v21995_v56, %v8318_v44  ;;  %v9483_v7 = vrot.slane %v9455_v32, %v22017_v51  ;;  %v8718_v60 = vld [vmem:[#allocation2 + $0x68] sm:$0x1f] }
 0x335   : > { %v11333_v59 = vrot.slane %v11319_v1, %v22017_v51  ;;  %v9485_v63 = vcombine.high %v9469_v14, %v9469_v14  ;;  %v11335_v33 = vcombine.low %v9486_v18, %v9469_v14  ;;  %v8583_v27 = vadd.f32 %v8543_v53, %v8483_v46  ;;  %v8818_v21 = vld [vmem:[#allocation2 + $0x69] sm:$0x1f]  ;;  %v19375_v53 = vld [vmem:[#allocation2 + $0x78] sm:$0xff] }
 0x336   : > { %v8982_v61 = vadd.f32 %v8942_v25, %v8882_v29  ;;  %v8284_v16 = vadd.f32 %v22104_v40, %v8184_v62  ;;  %v8444_v54 = vmul.f32 %v21996_v34, %v8418_v15  ;;  %v9487_v0 = vcombine.high %v9483_v7, %v9483_v7  ;;  %v8918_v14 = vld [vmem:[#allocation2 + $0x6a] sm:$0x1f] }
 0x337   : > { %v11334_v17 = vcombine.low %v11326_v38, %v11333_v59  ;;  %v11336_v30 = vcombine.low %v9483_v7, %v9485_v63  ;;  %v11345_v44 = vrot.slane %v11335_v33, %v22017_v51  ;;  %v8683_v36 = vadd.f32 %v8643_v47, %v8583_v27  ;;  %v9018_v25 = vld [vmem:[#allocation2 + $0x6b] sm:$0x1f]  ;;  %v19387_v59 = vld [vmem:[#allocation2 + $0x79] sm:$0xff] }
 0x338   : > { %v9082_v1 = vadd.f32 %v9042_v55, %v8982_v61  ;;  %v8384_v32 = vadd.f32 %v8344_v11, %v8284_v16  ;;  %v8544_v18 = vmul.f32 %v22084_v37, %v8518_v49  ;;  %v8644_v46 = vmul.f32 %v22092_v23, %v8618_v8  ;;  %v19385_v11 = vld [vmem:[#allocation2 + $0x80] sm:$0xff] }
 0x339   : > { %15874 = vmatmul.mubr.msk.f32.gmra.mxu1 %vm4504_vm9, %v11334_v17  ;;  %v11352_v15 = vrot.slane %v11336_v30, %v22017_v51  ;;  %v8744_v38 = vmul.f32 %v22099_v9, %v8718_v60  ;;  %v8844_v29 = vmul.f32 %v22100_v22, %v8818_v21  ;;  %v8783_v47 = vadd.f32 %v8743_v2, %v8683_v36  ;;  %v19395_v16 = vld [vmem:[#allocation2 + $0x81] sm:$0xff] }
 0x33a   : > { %15876 = vmatprep.mubr.msk.f32.mxu1 %vm16438_vm11, %v22090_v52  ;;  %v9495_v55 = vrot.slane %v9082_v1, %v22017_v51  ;;  %v9488_v5 = vcombine.high %v9082_v1, %v9082_v1  ;;  %v8484_v62 = vadd.f32 %v8444_v54, %v8384_v32  ;;  %v8944_v63 = vmul.f32 %v22006_v20, %v8918_v14 }
 0x33b   : > { %v11367_v7 = vcombine.low %v11345_v44, %v11352_v15  ;;  %v9044_v33 = vmul.f32 %v22012_v13, %v9018_v25  ;;  %v6978_v49 = vmul.f32 %v22085_v24, %v19375_v53  ;;  %v8883_v40 = vadd.f32 %v8843_v57, %v8783_v47 }
 0x33c   : > { %v9503_v61 = vcombine.high %v9495_v55, %v9495_v55  ;;  %v9511_v27 = vrot.slane %v9495_v55, %v22017_v51  ;;  %v9502_v2 = vrot.slane %v9488_v5, %v22017_v51  ;;  %v8584_v8 = vadd.f32 %v8544_v18, %v8484_v62 }
 0x33d   : > { %v11375_v54 = vrot.slane %v11367_v7, %v22017_v51  ;;  %v6979_v60 = vmul.f32 %v22085_v24, %v19385_v11  ;;  %v7102_v21 = vmul.f32 %v22088_v41, %v19387_v59  ;;  %v8983_v1 = vadd.f32 %v8943_v48, %v8883_v40 }
 0x33e   : > { %v9525_v17 = vrot.slane %v9503_v61, %v22017_v51  ;;  %v9533_v30 = vcombine.high %v9511_v27, %v9511_v27  ;;  %v11337_v44 = vcombine.low %v9487_v0, %v9511_v27  ;;  %v9504_v36 = vcombine.high %v9502_v2, %v9502_v2  ;;  %v19411_v27 = vld [vmem:[#allocation2 + $0x7a] sm:$0xff] }
 0x33f   : > { %v9518_v57 = vrot.slane %v9502_v2, %v22017_v51  ;;  %v8684_v32 = vadd.f32 %v8644_v46, %v8584_v8  ;;  %v7103_v14 = vmul.f32 %v22088_v41, %v19395_v16  ;;  %v9083_v15 = vadd.f32 %v19364_v19, %v8983_v1 }
 0x340   : > { %v11338_v25 = vcombine.low %v9525_v17, %v9533_v30  ;;  %v11359_v18 = vrot.slane %v11337_v44, %v22017_v51  ;;  %v9535_v55 = vcombine.high %v9525_v17, %v9525_v17  ;;  %v9532_v47 = vrot.slane %v9504_v36, %v22017_v51 }
 0x341   : > { %v9534_v5 = vcombine.high %v9518_v57, %v9518_v57  ;;  %v8784_v62 = vadd.f32 %v8744_v38, %v8684_v32  ;;  %v7142_v7 = vadd.f32 %v7102_v21, %v6978_v49  ;;  %v9544_v0 = vrot.slane %v9083_v15, %v22017_v51 }
 0x342   : > { %v11366_v48 = vrot.slane %v11338_v25, %v22017_v51  ;;  %v11384_v61 = vcombine.low %v9535_v55, %v9518_v57  ;;  %v9537_v46 = vcombine.high %v9083_v15, %v9083_v15  ;;  %v9536_v40 = vcombine.high %v9532_v47, %v9532_v47  ;;  %v19424_v55 = vld [vmem:[#allocation2 + $0x82] sm:$0xff] }
 0x343   : > { %v11385_v2 = vcombine.low %v9532_v47, %v9534_v5  ;;  %v8884_v8 = vadd.f32 %v8844_v29, %v8784_v62  ;;  %v7143_v30 = vadd.f32 %v7103_v14, %v6979_v60  ;;  %v9552_v19 = vcombine.high %v9544_v0, %v9544_v0 }
 0x344   : > { %v11368_v44 = vcombine.low %v11359_v18, %v11366_v48  ;;  %v9560_v17 = vrot.slane %v9544_v0, %v22017_v51  ;;  %v11394_v1 = vrot.slane %v11384_v61, %v22017_v51  ;;  %v9551_v21 = vrot.slane %v9537_v46, %v22017_v51 }
 0x345   : > { %v11401_v38 = vrot.slane %v11385_v2, %v22017_v51  ;;  %v8984_v49 = vadd.f32 %v8944_v63, %v8884_v8  ;;  %v7226_v36 = vmul.f32 %v22097_v58, %v19411_v27  ;;  %v9574_v32 = vrot.slane %v9552_v19, %v22017_v51 }
 0x346   : > { %v11382_v57 = vrot.slane %v11368_v44, %v22017_v51  ;;  %v9582_v29 = vcombine.high %v9560_v17, %v9560_v17  ;;  %v11386_v60 = vcombine.low %v9536_v40, %v9560_v17  ;;  %v9553_v18 = vcombine.high %v9551_v21, %v9551_v21 }
 0x347   : > { %v11416_v14 = vcombine.low %v11394_v1, %v11401_v38  ;;  %v19421_v25 = vadd.f32 %v9044_v33, %v8984_v49  ;;  %v9567_v15 = vrot.slane %v9551_v21, %v22017_v51  ;;  %v9584_v62 = vcombine.high %v9574_v32, %v9574_v32  ;;  %v19431_v33 = vld [vmem:[#allocation2 + $0x7b] sm:$0xff]  ;;  %v19440_v38 = vld [vmem:[#allocation2 + $0x83] sm:$0xff]  ;;  %v7334_v49 = vld [vmem:[#allocation2 + $0x1ab] sm:$0x1f] }
 0x348   : > { %v11383_v63 = vcombine.low %v11375_v54, %v11382_v57  ;;  %v11387_v47 = vcombine.low %v9574_v32, %v9582_v29  ;;  %v11408_v5 = vrot.slane %v11386_v60, %v22017_v51  ;;  %v9581_v0 = vrot.slane %v9553_v18, %v22017_v51  ;;  %v7430_v60 = vld [vmem:[#allocation2 + $0x7c] sm:$0xff] }
 0x349   : > { %v11424_v48 = vrot.slane %v11416_v14, %v22017_v51  ;;  %v9583_v61 = vcombine.high %v9567_v15, %v9567_v15  ;;  %v9593_v46 = vrot.slane %v19421_v25, %v22017_v51  ;;  %v11433_v2 = vcombine.low %v9584_v62, %v9567_v15  ;;  %v7431_v15 = vld [vmem:[#allocation2 + $0x84] sm:$0xff]  ;;  %v22105_v62 = vld [vmem:[#allocation53_spill] sm:$0xff] }
 0x34a   : > { %15877 = vmatmul.mubr.msk.f32.gmra.mxu1 %vm4504_vm9, %v11383_v63  ;;  %v11415_v40 = vrot.slane %v11387_v47, %v22017_v51  ;;  %v7227_v54 = vmul.f32 %v22097_v58, %v19424_v55  ;;  %v7266_v8 = vadd.f32 %v7226_v36, %v7142_v7  ;;  %v9585_v44 = vcombine.high %v9581_v0, %v9581_v0  ;;  %v7553_v63 = vld [vmem:[#allocation2 + $0x75] sm:$0xff] }
 0x34b   : > { %15879 = vmatprep.mubr.msk.f32.mxu1 %vm16438_vm11, %v22090_v52  ;;  %v9601_v19 = vcombine.high %v9593_v46, %v9593_v46  ;;  %v9608_v17 = vrot.slane %v9593_v46, %v22017_v51  ;;  %v11434_v1 = vcombine.low %v9581_v0, %v9583_v61  ;;  %v11443_v57 = vrot.slane %v11433_v2, %v22017_v51 }
 0x34c   : > { %v11417_v21 = vcombine.low %v11408_v5, %v11415_v40  ;;  %v7267_v32 = vadd.f32 %v7227_v54, %v7143_v30  ;;  %v7350_v29 = vmul.f32 %v17492_v6, %v19431_v33  ;;  %v7351_v5 = vmul.f32 %v17492_v6, %v19440_v38  ;;  %v22106_v30 = vld [vmem:[#allocation50_spill] sm:$0xff] }
 0x34d   : > { %v19446_v7 = vrot.slane %v9601_v19, %v22017_v51  ;;  %v9623_v36 = vcombine.high %v9608_v17, %v9608_v17  ;;  %v11435_v14 = vcombine.low %v9585_v44, %v9608_v17  ;;  %v11450_v18 = vrot.slane %v11434_v1, %v22017_v51  ;;  %v7554_v44 = vld [vmem:[#allocation2 + $0x7d] sm:$0xff]  ;;  %v19459_v19 = vld [vmem:[#allocation2 + $0x85] sm:$0xff] }
 0x34e   : > { %v11431_v47 = vrot.slane %v11417_v21, %v22017_v51  ;;  %v7389_v0 = vadd.f32 %v22106_v30, %v22105_v62  ;;  %v7390_v61 = vadd.f32 %v7350_v29, %v7266_v8  ;;  %v19455_v46 = vmul.f32 %v17492_v6, %v7334_v49  ;;  %v7678_v62 = vld [vmem:[#allocation2 + $0x7e] sm:$0xff] }
 0x34f   : > { %v11436_v40 = vcombine.low %v19446_v7, %v9623_v36  ;;  %v11465_v2 = vcombine.low %v11443_v57, %v11450_v18  ;;  %v7474_v54 = vmul.f32 %v17496_v31, %v7430_v60  ;;  %v7391_v1 = vadd.f32 %v7351_v5, %v7267_v32  ;;  %v7801_v36 = vld [vmem:[#allocation2 + $0x77] sm:$0xff]  ;;  %v7802_v18 = vld [vmem:[#allocation2 + $0x7f] sm:$0xff] }
 0x350   : > { %22107 = vst [vmem:[#allocation54_spill] sm:$0xff] %v19455_v46  ;;  %v11432_v17 = vcombine.low %v11424_v48, %v11431_v47  ;;  %v7475_v21 = vmul.f32 %v17496_v31, %v7431_v15  ;;  %v7513_v26 = vadd.f32 %v22108_v39, %v7389_v0  ;;  %v11457_v8 = vrot.slane %v11435_v14, %v22017_v51 }
 0x351   : > { %v11464_v49 = vrot.slane %v11436_v40, %v22017_v51  ;;  %v7514_v29 = vadd.f32 %v7474_v54, %v7390_v61  ;;  %v7597_v57 = vmul.f32 %v22091_v50, %v7553_v63  ;;  %v11473_v48 = vrot.slane %v11465_v2, %v22017_v51 }
 0x352   : > { %15880 = vmatmul.mubr.msk.f32.gmra.mxu1 %vm4504_vm9, %v11432_v17  ;;  %v7515_v32 = vadd.f32 %v7475_v21, %v7391_v1  ;;  %v7598_v47 = vmul.f32 %v22091_v50, %v7554_v44  ;;  %v7599_v39 = vmul.f32 %v22091_v50, %v19459_v19  ;;  %v7721_v30 = vmul.f32 %v22101_v45, %v7677_v43 }
 0x353   : > { %15882 = vmatprep.mubr.msk.f32.mxu1 %vm16438_vm11, %v22090_v52  ;;  %v11466_v14 = vcombine.low %v11457_v8, %v11464_v49  ;;  %v7637_v5 = vadd.f32 %v7597_v57, %v7513_v26  ;;  %v7722_v63 = vmul.f32 %v22101_v45, %v7678_v62  ;;  %v7845_v40 = vmul.f32 %v21932_v4, %v7801_v36 }
 0x354   : > { %v7638_v0 = vadd.f32 %v7598_v47, %v7514_v29  ;;  %v7639_v61 = vadd.f32 %v7599_v39, %v7515_v32  ;;  %v7846_v2 = vmul.f32 %v21932_v4, %v7802_v18  ;;  %v7945_v1 = vmul.f32 %v17534_v10, %v19375_v53 }
 0x355   : > { %v11480_v54 = vrot.slane %v11466_v14, %v22017_v51  ;;  %v7761_v17 = vadd.f32 %v7721_v30, %v7637_v5  ;;  %v7946_v21 = vmul.f32 %v17534_v10, %v19385_v11  ;;  %v8045_v43 = vmul.f32 %v17538_v42, %v19387_v59  ;;  %v6936_v14 = vld [vmem:[#allocation2 + $0x88] sm:$0xff] }
 0x356   : > { %v7762_v26 = vadd.f32 %v7722_v63, %v7638_v0  ;;  %v8046_v8 = vmul.f32 %v17538_v42, %v19395_v16  ;;  %v8145_v49 = vmul.f32 %v21937_v28, %v19411_v27  ;;  %v8146_v36 = vmul.f32 %v21937_v28, %v19424_v55  ;;  %v7184_v63 = vld [vmem:[#allocation2 + $0x8a] sm:$0xff] }
 0x357   : > { %v11481_v29 = vcombine.low %v11473_v48, %v11480_v54  ;;  %v7885_v57 = vadd.f32 %v7845_v40, %v7761_v17  ;;  %v8245_v53 = vmul.f32 %v21938_v3, %v19431_v33  ;;  %v8246_v47 = vmul.f32 %v21938_v3, %v19440_v38  ;;  %v7060_v33 = vld [vmem:[#allocation2 + $0x89] sm:$0xff] }
 0x358   : > { %v7886_v32 = vadd.f32 %v7846_v2, %v7762_v26  ;;  %v8345_v59 = vmul.f32 %v21995_v56, %v7430_v60  ;;  %v8346_v39 = vmul.f32 %v21995_v56, %v7431_v15  ;;  %v8445_v48 = vmul.f32 %v21996_v34, %v7554_v44  ;;  %v19523_v17 = vld [vmem:[#allocation2 + $0x8d] sm:$0xff] }
 0x359   : > { %15883 = vmatmul.mubr.msk.f32.gmra.mxu1 %vm4504_vm9, %v11481_v29  ;;  %v7985_v27 = vadd.f32 %v7945_v1, %v7885_v57  ;;  %v8545_v5 = vmul.f32 %v22084_v37, %v7678_v62  ;;  %v19500_v30 = vmul.f32 %v22092_v23, %v7802_v18  ;;  %v19506_v60 = vmul.f32 %v22099_v9, %v19385_v11  ;;  %v7308_v62 = vld [vmem:[#allocation2 + $0x8b] sm:$0xff] }
 0x35a   : > { %15885 = vmatprep.mubr.msk.f32.mxu1 %vm16438_vm11, %v22090_v52  ;;  %v7986_v0 = vadd.f32 %v7946_v21, %v7886_v32  ;;  %v19510_v15 = vmul.f32 %v22100_v22, %v19395_v16  ;;  %v19514_v44 = vmul.f32 %v22006_v20, %v19424_v55  ;;  %v7432_v18 = vld [vmem:[#allocation2 + $0x8c] sm:$0xff]  ;;  %v19518_v2 = vmul.f32 %v22012_v13, %v19440_v38 }
 0x35b   : > { %v8085_v40 = vadd.f32 %v8045_v43, %v7985_v27  ;;  %v9586_v54 = vcombine.high %v19421_v25, %v19421_v25  ;;  %v6980_v11 = vmul.f32 %v22085_v24, %v6936_v14  ;;  %v7679_v16 = vld [vmem:[#allocation2 + $0x86] sm:$0xff]  ;;  %v9624_v55 = vcombine.high %v19446_v7, %v19446_v7 }
 0x35c   : > { %v8086_v1 = vadd.f32 %v8046_v8, %v7986_v0  ;;  %v7104_v21 = vmul.f32 %v22088_v41, %v7060_v33  ;;  %v7228_v26 = vmul.f32 %v22097_v58, %v7184_v63  ;;  %v7803_v43 = vld [vmem:[#allocation2 + $0x87] sm:$0xff]  ;;  %v7352_v57 = vmul.f32 %v17492_v6, %v7308_v62 }
 0x35d   : > { %v8185_v29 = vadd.f32 %v8145_v49, %v8085_v40  ;;  %v9600_v38 = vrot.slane %v9586_v54, %v22017_v51  ;;  %v7476_v25 = vmul.f32 %v17496_v31, %v7432_v18  ;;  %v7600_v8 = vmul.f32 %v22091_v50, %v19523_v17 }
 0x35e   : > { %v8186_v32 = vadd.f32 %v8146_v36, %v8086_v1  ;;  %v7144_v27 = vadd.f32 %v7104_v21, %v6980_v11  ;;  %v7723_v0 = vmul.f32 %v22101_v45, %v7679_v16  ;;  %v7847_v12 = vmul.f32 %v21932_v4, %v7803_v43 }
 0x35f   : > { %v8285_v7 = vadd.f32 %v8245_v53, %v8185_v29  ;;  %v9615_v46 = vrot.slane %v9600_v38, %v22017_v51  ;;  %v7947_v49 = vmul.f32 %v17534_v10, %v6936_v14  ;;  %v8047_v52 = vmul.f32 %v17538_v42, %v7060_v33 }
 0x360   : > { %v8286_v40 = vadd.f32 %v8246_v47, %v8186_v32  ;;  %v7268_v54 = vadd.f32 %v7228_v26, %v7144_v27  ;;  %v7763_v35 = vadd.f32 %v7723_v0, %v7639_v61  ;;  %v8147_v11 = vmul.f32 %v21937_v28, %v7184_v63 }
 0x361   : > { %v8385_v31 = vadd.f32 %v8345_v59, %v8285_v7  ;;  %v19539_v36 = vcombine.low %v9624_v55, %v9615_v46  ;;  %v8247_v1 = vmul.f32 %v21938_v3, %v7308_v62  ;;  %v8446_v38 = vmul.f32 %v21996_v34, %v19459_v19  ;;  %v7680_v46 = vld [vmem:[#allocation2 + $0x8e] sm:$0xff] }
 0x362   : > { %v8386_v21 = vadd.f32 %v8346_v39, %v8286_v40  ;;  %v7392_v53 = vadd.f32 %v7352_v57, %v7268_v54  ;;  %v7887_v29 = vadd.f32 %v7847_v12, %v7763_v35  ;;  %v8347_v61 = vmul.f32 %v21995_v56, %v7432_v18  ;;  %v7804_v39 = vld [vmem:[#allocation2 + $0x8f] sm:$0xff] }
 0x363   : > { %v8485_v50 = vadd.f32 %v8445_v48, %v8385_v31  ;;  %v11492_v47 = vrot.slane %v19539_v36, %v22017_v51  ;;  %v8546_v59 = vmul.f32 %v22084_v37, %v7679_v16  ;;  %v8646_v27 = vmul.f32 %v22092_v23, %v7803_v43  ;;  %v7919_v57 = vld [vmem:[#allocation2 + $0x90] sm:$0xff] }
 0x364   : > { %v7516_v55 = vadd.f32 %v7476_v25, %v7392_v53  ;;  %v7987_v26 = vadd.f32 %v7947_v49, %v7887_v29  ;;  %v8486_v32 = vadd.f32 %v8446_v38, %v8386_v21  ;;  %v8746_v12 = vmul.f32 %v22099_v9, %v6936_v14  ;;  %v8019_v48 = vld [vmem:[#allocation2 + $0x91] sm:$0xff] }
 0x365   : > { %v8585_v35 = vadd.f32 %v8545_v5, %v8485_v50  ;;  %v8846_v31 = vmul.f32 %v22100_v22, %v7060_v33  ;;  %v8946_v19 = vmul.f32 %v22006_v20, %v7184_v63  ;;  %v7724_v16 = vmul.f32 %v22101_v45, %v7680_v46  ;;  %v8119_v25 = vld [vmem:[#allocation2 + $0x92] sm:$0xff] }
 0x366   : > { %v7640_v0 = vadd.f32 %v7600_v8, %v7516_v55  ;;  %v8087_v18 = vadd.f32 %v8047_v52, %v7987_v26  ;;  %v8586_v7 = vadd.f32 %v8546_v59, %v8486_v32  ;;  %v8219_v49 = vld [vmem:[#allocation2 + $0x93] sm:$0xff]  ;;  %v9046_v54 = vmul.f32 %v22012_v13, %v7308_v62 }
 0x367   : > { %v8319_v40 = vld [vmem:[#allocation2 + $0x94] sm:$0xff]  ;;  %v8685_v43 = vadd.f32 %v19500_v30, %v8585_v35  ;;  %v7848_v50 = vmul.f32 %v21932_v4, %v7804_v39  ;;  %v7948_v14 = vmul.f32 %v17534_v10, %v7919_v57  ;;  %v8048_v8 = vmul.f32 %v17538_v42, %v8019_v48 }
 0x368   : > { %v8187_v5 = vadd.f32 %v8147_v11, %v8087_v18  ;;  %v8686_v33 = vadd.f32 %v8646_v27, %v8586_v7  ;;  %v7764_v63 = vadd.f32 %v7724_v16, %v7640_v0  ;;  %v8419_v52 = vld [vmem:[#allocation2 + $0x95] sm:$0xff]  ;;  %v8148_v53 = vmul.f32 %v21937_v28, %v8119_v25 }
 0x369   : > { %v8785_v21 = vadd.f32 %v19506_v60, %v8685_v43  ;;  %v8248_v29 = vmul.f32 %v21938_v3, %v8219_v49  ;;  %v8348_v30 = vmul.f32 %v21995_v56, %v8319_v40  ;;  %v8447_v55 = vmul.f32 %v21996_v34, %v19523_v17  ;;  %v8519_v27 = vld [vmem:[#allocation2 + $0x96] sm:$0xff] }
 0x36a   : > { %v8287_v38 = vadd.f32 %v8247_v1, %v8187_v5  ;;  %v8786_v62 = vadd.f32 %v8746_v12, %v8686_v33  ;;  %v7888_v59 = vadd.f32 %v7848_v50, %v7764_v63  ;;  %v8448_v26 = vmul.f32 %v21996_v34, %v8419_v52  ;;  %v8619_v1 = vld [vmem:[#allocation2 + $0x97] sm:$0xff] }
 0x36b   : > { %v8885_v11 = vadd.f32 %v19510_v15, %v8785_v21  ;;  %v8547_v32 = vmul.f32 %v22084_v37, %v7680_v46  ;;  %v8647_v60 = vmul.f32 %v22092_v23, %v7804_v39  ;;  %v8747_v7 = vmul.f32 %v22099_v9, %v7919_v57  ;;  %v8719_v12 = vld [vmem:[#allocation2 + $0x98] sm:$0xff]  ;;  %v19577_v57 = vld [vmem:[#allocation2 + $0xb0] sm:$0xff] }
 0x36c   : > { %v8387_v35 = vadd.f32 %v8347_v61, %v8287_v38  ;;  %v8886_v0 = vadd.f32 %v8846_v31, %v8786_v62  ;;  %v7988_v18 = vadd.f32 %v7948_v14, %v7888_v59  ;;  %v8819_v16 = vld [vmem:[#allocation2 + $0x99] sm:$0xff]  ;;  %v8847_v17 = vmul.f32 %v22100_v22, %v8019_v48 }
 0x36d   : > { %v8985_v40 = vadd.f32 %v19514_v44, %v8885_v11  ;;  %v8947_v15 = vmul.f32 %v22006_v20, %v8119_v25  ;;  %v19574_v43 = vmul.f32 %v22012_v13, %v8219_v49  ;;  %v8919_v46 = vld [vmem:[#allocation2 + $0x9a] sm:$0xff]  ;;  %v8548_v31 = vmul.f32 %v22084_v37, %v8519_v27 }
 0x36e   : > { %v8986_v39 = vadd.f32 %v8946_v19, %v8886_v0  ;;  %v8088_v50 = vadd.f32 %v8048_v8, %v7988_v18  ;;  %v8487_v61 = vadd.f32 %v8447_v55, %v8387_v35  ;;  %v9019_v14 = vld [vmem:[#allocation2 + $0x9b] sm:$0xff]  ;;  %v8648_v44 = vmul.f32 %v22092_v23, %v8619_v1  ;;  %v19590_v8 = vld [vmem:[#allocation2 + $0xb1] sm:$0xff] }
 0x36f   : > { %v9085_v5 = vadd.f32 %v19518_v2, %v8985_v40  ;;  %v19582_v48 = vmul.f32 %v22099_v9, %v8719_v12  ;;  %v19585_v25 = vmul.f32 %v22100_v22, %v8819_v16  ;;  %v19588_v63 = vmul.f32 %v22006_v20, %v8919_v46 }
 0x370   : > { %v9086_v49 = vadd.f32 %v9046_v54, %v8986_v39  ;;  %v8188_v33 = vadd.f32 %v8148_v53, %v8088_v50  ;;  %v8587_v19 = vadd.f32 %v8547_v32, %v8487_v61  ;;  %v19594_v2 = vmul.f32 %v22012_v13, %v9019_v14 }
 0x371   : > { %v9625_v52 = vcombine.high %v9085_v5, %v9085_v5  ;;  %v9632_v21 = vrot.slane %v9085_v5, %v22017_v51  ;;  %v6983_v38 = vmul.f32 %v22085_v24, %v19577_v57  ;;  %v7107_v27 = vmul.f32 %v22088_v41, %v19590_v8 }
 0x372   : > { %v9674_v62 = vcombine.high %v9086_v49, %v9086_v49  ;;  %v9681_v59 = vrot.slane %v9086_v49, %v22017_v51  ;;  %v8288_v54 = vadd.f32 %v8248_v29, %v8188_v33  ;;  %v8687_v53 = vadd.f32 %v8647_v60, %v8587_v19 }
 0x373   : > { %v9639_v55 = vrot.slane %v9625_v52, %v22017_v51  ;;  %v9640_v11 = vcombine.high %v9632_v21, %v9632_v21  ;;  %v9648_v32 = vrot.slane %v9632_v21, %v22017_v51 }
 0x374   : > { %v9688_v35 = vrot.slane %v9674_v62, %v22017_v51  ;;  %v9689_v0 = vcombine.high %v9681_v59, %v9681_v59  ;;  %v9697_v18 = vrot.slane %v9681_v59, %v22017_v51  ;;  %v8388_v1 = vadd.f32 %v8348_v30, %v8288_v54  ;;  %v19613_v54 = vld [vmem:[#allocation2 + $0xb9] sm:$0xff] }
 0x375   : > { %v9641_v12 = vcombine.high %v9639_v55, %v9639_v55  ;;  %v9655_v16 = vrot.slane %v9639_v55, %v22017_v51  ;;  %v9662_v29 = vrot.slane %v9640_v11, %v22017_v51  ;;  %v8787_v60 = vadd.f32 %v8747_v7, %v8687_v53 }
 0x376   : > { %v9690_v40 = vcombine.high %v9688_v35, %v9688_v35  ;;  %v9704_v46 = vrot.slane %v9688_v35, %v22017_v51  ;;  %v9711_v39 = vrot.slane %v9689_v0, %v22017_v51  ;;  %v8488_v50 = vadd.f32 %v8448_v26, %v8388_v1 }
 0x377   : > { %v9669_v61 = vrot.slane %v9641_v12, %v22017_v51  ;;  %v11483_v14 = vcombine.low %v9648_v32, %v9662_v29  ;;  %v15488_v5 = vcombine.high %v9648_v32, %v9662_v29  ;;  %v8887_v49 = vadd.f32 %v8847_v17, %v8787_v60  ;;  %v19617_v17 = vld [vmem:[#allocation2 + $0xb8] sm:$0xff] }
 0x378   : > { %v9718_v33 = vrot.slane %v9690_v40, %v22017_v51  ;;  %v11532_v30 = vcombine.low %v9697_v18, %v9711_v39  ;;  %v15490_v19 = vcombine.high %v9697_v18, %v9711_v39  ;;  %v8588_v52 = vadd.f32 %v8548_v31, %v8488_v50  ;;  %v19633_v50 = vld [vmem:[#allocation2 + $0xb2] sm:$0xff] }
 0x379   : > { %v11485_v21 = vcombine.low %v9655_v16, %v9669_v61  ;;  %v11499_v62 = vrot.slane %v11483_v14, %v22017_v51  ;;  %v11506_v7 = vrot.slane %v15488_v5, %v22017_v51  ;;  %v15489_v59 = vcombine.high %v9655_v16, %v9669_v61 }
 0x37a   : > { %v11534_v53 = vcombine.low %v9704_v46, %v9718_v33  ;;  %v11548_v26 = vrot.slane %v11532_v30, %v22017_v51  ;;  %v11555_v55 = vrot.slane %v15490_v19, %v22017_v51  ;;  %v8987_v11 = vadd.f32 %v8947_v15, %v8887_v49 }
 0x37b   : > { %v11513_v32 = vrot.slane %v11485_v21, %v22017_v51  ;;  %v11514_v31 = vcombine.low %v11492_v47, %v11499_v62  ;;  %v11541_v35 = vrot.slane %v15489_v59, %v22017_v51  ;;  %v15491_v0 = vcombine.high %v9704_v46, %v9718_v33 }
 0x37c   : > { %v11562_v18 = vrot.slane %v11534_v53, %v22017_v51  ;;  %v9087_v1 = vadd.f32 %v19574_v43, %v8987_v11  ;;  %v8688_v12 = vadd.f32 %v8648_v44, %v8588_v52  ;;  %v7108_v16 = vmul.f32 %v22088_v41, %v19613_v54  ;;  %v19635_v43 = vld [vmem:[#allocation2 + $0xba] sm:$0xff] }
 0x37d   : > { %v11515_v15 = vcombine.low %v11506_v7, %v11513_v32  ;;  %v11522_v29 = vrot.slane %v11514_v31, %v22017_v51  ;;  %v11563_v60 = vcombine.low %v11541_v35, %v11548_v26  ;;  %v6984_v40 = vmul.f32 %v22085_v24, %v19617_v17  ;;  %v19642_v52 = vld [vmem:[#allocation2 + $0xb3] sm:$0xff]  ;;  %v19651_v26 = vld [vmem:[#allocation2 + $0xbb] sm:$0xff] }
 0x37e   : > { %v11564_v36 = vcombine.low %v11555_v55, %v11562_v18  ;;  %v9723_v47 = vcombine.high %v9087_v1, %v9087_v1  ;;  %v9730_v39 = vrot.slane %v9087_v1, %v22017_v51  ;;  %v8788_v46 = vadd.f32 %v19582_v48, %v8688_v12  ;;  %v19657_v31 = vld [vmem:[#allocation2 + $0xb4] sm:$0xff] }
 0x37f   : > { %v11529_v44 = vrot.slane %v11515_v15, %v22017_v51  ;;  %v11590_v61 = vrot.slane %v15491_v0, %v22017_v51  ;;  %v7147_v14 = vadd.f32 %v7107_v27, %v6983_v38  ;;  %v7148_v5 = vadd.f32 %v7108_v16, %v6984_v40  ;;  %v22110_v15 = vld [vmem:[#allocation73_spill] sm:$0xff] }
 0x380   : > { %v11571_v49 = vrot.slane %v11563_v60, %v22017_v51  ;;  %v11578_v33 = vrot.slane %v11564_v36, %v22017_v51  ;;  %v9737_v30 = vrot.slane %v9723_v47, %v22017_v51  ;;  %v9738_v19 = vcombine.high %v9730_v39, %v9730_v39  ;;  %v19668_v36 = vld [vmem:[#allocation2 + $0xbc] sm:$0xff] }
 0x381   : > { %v11530_v48 = vcombine.low %v11522_v29, %v11529_v44  ;;  %v8888_v21 = vadd.f32 %v19585_v25, %v8788_v46  ;;  %v7231_v62 = vmul.f32 %v22097_v58, %v19633_v50  ;;  %v7232_v7 = vmul.f32 %v22097_v58, %v19635_v43  ;;  %v22111_v29 = vld [vmem:[#allocation67_spill] sm:$0xff] }
 0x382   : > { %v11579_v38 = vcombine.low %v11571_v49, %v11578_v33  ;;  %v9739_v27 = vcombine.high %v9737_v30, %v9737_v30  ;;  %v9746_v59 = vrot.slane %v9730_v39, %v22017_v51  ;;  %v9760_v53 = vrot.slane %v9738_v19, %v22017_v51  ;;  %v22112_v44 = vld [vmem:[#allocation7_spill] sm:$0xff] }
 0x383   : > { %15886 = vmatmul.mubr.msk.f32.gmra.mxu1 %vm4504_vm9, %v11530_v48  ;;  %v8988_v55 = vadd.f32 %v19588_v63, %v8888_v21  ;;  %v7271_v11 = vadd.f32 %v7231_v62, %v7147_v14  ;;  %v7272_v25 = vadd.f32 %v7232_v7, %v7148_v5  ;;  %v7355_v32 = vmul.f32 %v17492_v6, %v19642_v52  ;;  %v7558_v5 = vld [vmem:[#allocation2 + $0xad] sm:$0xff] }
 0x384   : > { %v22109_v35 = vmov 0.0   ;;  %v9753_v0 = vrot.slane %v9737_v30, %v22017_v51  ;;  %v9767_v18 = vrot.slane %v9739_v27, %v22017_v51  ;;  %v11581_v1 = vcombine.low %v9746_v59, %v9760_v53  ;;  %v22113_v62 = vld [vmem:[#allocation17_spill] sm:$0xff] }
 0x385   : > { %15888 = vmatprep.mubr.msk.f32.mxu1 %vm16438_vm11, %v22109_v35  ;;  %v15492_v12 = vcombine.high %v9746_v59, %v9760_v53  ;;  %v9088_v16 = vadd.f32 %v19594_v2, %v8988_v55  ;;  %v7356_v63 = vmul.f32 %v17492_v6, %v19651_v26  ;;  %v7394_v60 = vadd.f32 %v22111_v29, %v22110_v15  ;;  %v19682_v27 = vld [vmem:[#allocation2 + $0xb5] sm:$0xff] }
 0x386   : > { %v7395_v40 = vadd.f32 %v7355_v32, %v7271_v11  ;;  %v11583_v47 = vcombine.low %v9753_v0, %v9767_v18  ;;  %v11597_v39 = vrot.slane %v11581_v1, %v22017_v51  ;;  %v7479_v14 = vmul.f32 %v22112_v44, %v19657_v31  ;;  %v19686_v11 = vld [vmem:[#allocation2 + $0xbd] sm:$0xff] }
 0x387   : > { %v11604_v46 = vrot.slane %v15492_v12, %v22017_v51  ;;  %15889 = vmatmul.mubr.msk.f32.gmra.mxu1 %vm4504_vm9, %v11579_v38  ;;  %v9772_v2 = vcombine.high %v9088_v16, %v9088_v16  ;;  %v9779_v49 = vrot.slane %v9088_v16, %v22017_v51  ;;  %v15493_v33 = vcombine.high %v9753_v0, %v9767_v18  ;;  %v22114_v18 = vld [vmem:[#allocation8_spill] sm:$0xff]  ;;  %v7683_v29 = vld [vmem:[#allocation2 + $0xb6] sm:$0xff] }
 0x388   : > { %v7396_v30 = vadd.f32 %v7356_v63, %v7272_v25  ;;  %15891 = vmatprep.mubr.msk.f32.mxu1 %vm16438_vm11, %v22109_v35  ;;  %v11611_v19 = vrot.slane %v11583_v47, %v22017_v51  ;;  %v11612_v48 = vcombine.low %v11590_v61, %v11597_v39  ;;  %v7480_v21 = vmul.f32 %v22112_v44, %v19668_v36  ;;  %v7682_v25 = vld [vmem:[#allocation2 + $0xae] sm:$0xff] }
 0x389   : > { %v7518_v7 = vadd.f32 %v22113_v62, %v7394_v60  ;;  %v9786_v38 = vrot.slane %v9772_v2, %v22017_v51  ;;  %v9787_v59 = vcombine.high %v9779_v49, %v9779_v49  ;;  %v9795_v53 = vrot.slane %v9779_v49, %v22017_v51 }
 0x38a   : > { %v7519_v55 = vadd.f32 %v7479_v14, %v7395_v40  ;;  %v11613_v32 = vcombine.low %v11604_v46, %v11611_v19  ;;  %v11620_v0 = vrot.slane %v11612_v48, %v22017_v51  ;;  %v7520_v61 = vadd.f32 %v7480_v21, %v7396_v30  ;;  %v7806_v46 = vld [vmem:[#allocation2 + $0xaf] sm:$0xff]  ;;  %v7807_v30 = vld [vmem:[#allocation2 + $0xb7] sm:$0xff] }
 0x38b   : > { %v7602_v1 = vmul.f32 %v22114_v18, %v7558_v5  ;;  %v9788_v12 = vcombine.high %v9786_v38, %v9786_v38  ;;  %v19691_v16 = vrot.slane %v9786_v38, %v22017_v51  ;;  %v9809_v63 = vrot.slane %v9787_v59, %v22017_v51 }
 0x38c   : > { %v7603_v15 = vmul.f32 %v22114_v18, %v19682_v27  ;;  %v11627_v60 = vrot.slane %v11613_v32, %v22017_v51  ;;  %v7604_v40 = vmul.f32 %v22114_v18, %v19686_v11  ;;  %v7726_v39 = vmul.f32 %v22101_v45, %v7682_v25 }
 0x38d   : > { %v7642_v47 = vadd.f32 %v7602_v1, %v7518_v7  ;;  %v19701_v14 = vrot.slane %v9788_v12, %v22017_v51  ;;  %v11630_v5 = vcombine.low %v9795_v53, %v9809_v63  ;;  %v15494_v2 = vcombine.high %v9795_v53, %v9809_v63  ;;  %v8320_v63 = vld [vmem:[#allocation2 + $0x9c] sm:$0x1f] }
 0x38e   : > { %v7643_v49 = vadd.f32 %v7603_v15, %v7519_v55  ;;  %v11628_v19 = vcombine.low %v11620_v0, %v11627_v60  ;;  %v11639_v48 = vrot.slane %v15493_v33, %v22017_v51  ;;  %v7727_v21 = vmul.f32 %v22101_v45, %v7683_v29 }
 0x38f   : > { %v7766_v62 = vadd.f32 %v7726_v39, %v7642_v47  ;;  %v11632_v38 = vcombine.low %v19691_v16, %v19701_v14  ;;  %v11646_v7 = vrot.slane %v11630_v5, %v22017_v51  ;;  %v19708_v59 = vadd.f32 %v7604_v40, %v7520_v61  ;;  %v22115_v5 = vld [vmem:[#allocation15_spill] sm:$0xff] }
 0x390   : > { %v7850_v25 = vmul.f32 %v21932_v4, %v7806_v46  ;;  %15892 = vmatmul.mubr.msk.f32.gmra.mxu1 %vm4504_vm9, %v11628_v19  ;;  %v11653_v53 = vrot.slane %v15494_v2, %v22017_v51  ;;  %v7767_v55 = vadd.f32 %v7727_v21, %v7643_v49  ;;  %v7851_v32 = vmul.f32 %v21932_v4, %v7807_v30  ;;  %v22116_v2 = vld [vmem:[#allocation35_spill] sm:$0xff] }
 0x391   : > { %v7950_v33 = vmul.f32 %v17534_v10, %v19577_v57  ;;  %15894 = vmatprep.mubr.msk.f32.mxu1 %vm16438_vm11, %v22109_v35  ;;  %v11660_v0 = vrot.slane %v11632_v38, %v22017_v51  ;;  %v11661_v1 = vcombine.low %v11639_v48, %v11646_v7  ;;  %v7951_v12 = vmul.f32 %v17534_v10, %v19617_v17  ;;  %v8420_v19 = vld [vmem:[#allocation2 + $0x9d] sm:$0x1f]  ;;  %v22117_v7 = vld [vmem:[#allocation40_spill] sm:$0xff] }
 0x392   : > { %v7890_v61 = vadd.f32 %v7850_v25, %v7766_v62  ;;  %v7891_v15 = vadd.f32 %v7851_v32, %v7767_v55  ;;  %v8050_v60 = vmul.f32 %v17538_v42, %v19590_v8  ;;  %v8051_v40 = vmul.f32 %v17538_v42, %v19613_v54  ;;  %v8520_v55 = vld [vmem:[#allocation2 + $0x9e] sm:$0x1f] }
 0x393   : > { %v8150_v57 = vmul.f32 %v21937_v28, %v19633_v50  ;;  %v11662_v47 = vcombine.low %v11653_v53, %v11660_v0  ;;  %v8151_v46 = vmul.f32 %v21937_v28, %v19635_v43  ;;  %v8189_v49 = vadd.f32 %v22116_v2, %v22115_v5  ;;  %v8620_v32 = vld [vmem:[#allocation2 + $0x9f] sm:$0x1f] }
 0x394   : > { %v7990_v39 = vadd.f32 %v7950_v33, %v7890_v61  ;;  %v11669_v48 = vrot.slane %v11661_v1, %v22017_v51  ;;  %v7991_v21 = vadd.f32 %v7951_v12, %v7891_v15  ;;  %v8250_v8 = vmul.f32 %v21938_v3, %v19642_v52  ;;  %v8720_v61 = vld [vmem:[#allocation2 + $0xa0] sm:$0x1f] }
 0x395   : > { %v8251_v62 = vmul.f32 %v21938_v3, %v19651_v26  ;;  %v11676_v50 = vrot.slane %v11662_v47, %v22017_v51  ;;  %v8289_v25 = vadd.f32 %v22117_v7, %v8189_v49  ;;  %v8349_v53 = vmul.f32 %v21995_v56, %v8320_v63  ;;  %v8920_v2 = vld [vmem:[#allocation2 + $0xa2] sm:$0x1f] }
 0x396   : > { %v8090_v38 = vadd.f32 %v8050_v60, %v7990_v39  ;;  %v8091_v33 = vadd.f32 %v8051_v40, %v7991_v21  ;;  %v8350_v0 = vmul.f32 %v21995_v56, %v19657_v31  ;;  %v8351_v1 = vmul.f32 %v21995_v56, %v19668_v36  ;;  %v8820_v39 = vld [vmem:[#allocation2 + $0xa1] sm:$0x1f] }
 0x397   : > { %v8449_v52 = vmul.f32 %v21996_v34, %v8420_v19  ;;  %v11677_v12 = vcombine.low %v11669_v48, %v11676_v50  ;;  %v8389_v47 = vadd.f32 %v8349_v53, %v8289_v25  ;;  %v8450_v60 = vmul.f32 %v21996_v34, %v19682_v27  ;;  %v9020_v48 = vld [vmem:[#allocation2 + $0xa3] sm:$0x1f]  ;;  %v19752_v27 = vpop.f32.mrf.mxu1 }
 0x398   : > { %v8190_v15 = vadd.f32 %v8150_v57, %v8090_v38  ;;  %v8191_v63 = vadd.f32 %v8151_v46, %v8091_v33  ;;  %v8549_v5 = vmul.f32 %v22084_v37, %v8520_v55  ;;  %v8550_v40 = vmul.f32 %v22084_v37, %v7683_v29  ;;  %v6941_v21 = vld [vmem:[#allocation2 + $0xc0] sm:$0xff]  ;;  %22118 = vst [vmem:[#allocation21_spill] sm:$0xff] %v19752_v27 }
 0x399   : > { %v8649_v31 = vmul.f32 %v22092_v23, %v8620_v32  ;;  %15895 = vmatmul.mubr.msk.f32.gmra.mxu1 %vm4504_vm9, %v11677_v12  ;;  %v8489_v49 = vadd.f32 %v8449_v52, %v8389_v47  ;;  %v8650_v19 = vmul.f32 %v22092_v23, %v7807_v30  ;;  %v8749_v57 = vmul.f32 %v22099_v9, %v8720_v61  ;;  %v7065_v38 = vld [vmem:[#allocation2 + $0xc1] sm:$0xff] }
 0x39a   : > { %v8290_v36 = vadd.f32 %v8250_v8, %v8190_v15  ;;  %15897 = vmatprep.mubr.msk.f32.mxu1 %vm16438_vm11, %v22109_v35  ;;  %v8291_v46 = vadd.f32 %v8251_v62, %v8191_v63  ;;  %v8750_v29 = vmul.f32 %v22099_v9, %v19617_v17  ;;  %v8849_v50 = vmul.f32 %v22100_v22, %v8820_v39  ;;  %v7189_v30 = vld [vmem:[#allocation2 + $0xc2] sm:$0xff]  ;;  %v15863_v62 = vpop.f32.mrf.mxu1 }
 0x39b   : > { %v8850_v8 = vmul.f32 %v22100_v22, %v19613_v54  ;;  %v8589_v25 = vadd.f32 %v8549_v5, %v8489_v49  ;;  %v8949_v53 = vmul.f32 %v22006_v20, %v8920_v2  ;;  %v8950_v55 = vmul.f32 %v22006_v20, %v19635_v43  ;;  %v7313_v32 = vld [vmem:[#allocation2 + $0xc3] sm:$0xff] }
 0x39c   : > { %v8390_v7 = vadd.f32 %v8350_v0, %v8290_v36  ;;  %v7437_v33 = vld [vmem:[#allocation2 + $0xc4] sm:$0xff]  ;;  %v8391_v52 = vadd.f32 %v8351_v1, %v8291_v46  ;;  %v9049_v17 = vmul.f32 %v22012_v13, %v9020_v48  ;;  %v15495_v61 = vcombine.high %v19691_v16, %v19701_v14 }
 0x39d   : > { %v6985_v54 = vmul.f32 %v22085_v24, %v6941_v21  ;;  %v7684_v12 = vld [vmem:[#allocation2 + $0xbe] sm:$0xff]  ;;  %v8689_v0 = vadd.f32 %v8649_v31, %v8589_v25  ;;  %v7109_v47 = vmul.f32 %v22088_v41, %v7065_v38  ;;  %v7233_v39 = vmul.f32 %v22097_v58, %v7189_v30 }
 0x39e   : > { %v8490_v15 = vadd.f32 %v8450_v60, %v8390_v7  ;;  %v19770_v63 = vld [vmem:[#allocation2 + $0xc5] sm:$0xff]  ;;  %v9050_v1 = vmul.f32 %v22012_v13, %v19651_v26  ;;  %v19775_v5 = vrot.slane %v15495_v61, %v22017_v51  ;;  %v7357_v16 = vmul.f32 %v17492_v6, %v7313_v32 }
 0x39f   : > { %v7808_v43 = vld [vmem:[#allocation2 + $0xbf] sm:$0xff]  ;;  %v7481_v14 = vmul.f32 %v22112_v44, %v7437_v33  ;;  %v8789_v60 = vadd.f32 %v8749_v57, %v8689_v0  ;;  %v7149_v31 = vadd.f32 %v7109_v47, %v6985_v54  ;;  %v7728_v36 = vmul.f32 %v22101_v45, %v7684_v12 }
 0x3a0   : > { %v8590_v2 = vadd.f32 %v8550_v40, %v8490_v15  ;;  %v7605_v49 = vmul.f32 %v22114_v18, %v19770_v63  ;;  %v7852_v48 = vmul.f32 %v21932_v4, %v7808_v43  ;;  %v7952_v46 = vmul.f32 %v17534_v10, %v6941_v21 }
 0x3a1   : > { %v8052_v26 = vmul.f32 %v17538_v42, %v7065_v38  ;;  %v8889_v25 = vadd.f32 %v8849_v50, %v8789_v60  ;;  %v7273_v62 = vadd.f32 %v7233_v39, %v7149_v31  ;;  %v7768_v61 = vadd.f32 %v7728_v36, %v19708_v59  ;;  %v19798_v36 = vld [vmem:[#allocation2 + $0xc7] sm:$0xff] }
 0x3a2   : > { %v8690_v7 = vadd.f32 %v8650_v19, %v8590_v2  ;;  %v8152_v40 = vmul.f32 %v21937_v28, %v7189_v30  ;;  %v8252_v57 = vmul.f32 %v21938_v3, %v7313_v32  ;;  %v19789_v54 = vmul.f32 %v21995_v56, %v7437_v33  ;;  %v19796_v33 = vld [vmem:[#allocation2 + $0xc6] sm:$0xff] }
 0x3a3   : > { %v8451_v15 = vmul.f32 %v21996_v34, %v19686_v11  ;;  %v8989_v47 = vadd.f32 %v8949_v53, %v8889_v25  ;;  %v7397_v27 = vadd.f32 %v7357_v16, %v7273_v62  ;;  %v7892_v18 = vadd.f32 %v7852_v48, %v7768_v61  ;;  %v19819_v61 = vld [vmem:[#allocation2 + $0xca] sm:$0xff] }
 0x3a4   : > { %v8790_v0 = vadd.f32 %v8750_v29, %v8690_v7  ;;  %v8551_v19 = vmul.f32 %v22084_v37, %v7684_v12  ;;  %v8651_v50 = vmul.f32 %v22092_v23, %v7808_v43  ;;  %v8751_v59 = vmul.f32 %v22099_v9, %v6941_v21  ;;  %v19803_v12 = vld [vmem:[#allocation2 + $0xc8] sm:$0xff] }
 0x3a5   : > { %v8491_v44 = vadd.f32 %v8451_v15, %v8391_v52  ;;  %v9089_v2 = vadd.f32 %v9049_v17, %v8989_v47  ;;  %v7521_v60 = vadd.f32 %v7481_v14, %v7397_v27  ;;  %v7992_v31 = vadd.f32 %v7952_v46, %v7892_v18 }
 0x3a6   : > { %v8890_v39 = vadd.f32 %v8850_v8, %v8790_v0  ;;  %v8851_v29 = vmul.f32 %v22100_v22, %v7065_v38  ;;  %v8951_v53 = vmul.f32 %v22006_v20, %v7189_v30  ;;  %v9051_v52 = vmul.f32 %v22012_v13, %v7313_v32 }
 0x3a7   : > { %v8591_v11 = vadd.f32 %v8551_v19, %v8491_v44  ;;  %v9821_v16 = vcombine.high %v9089_v2, %v9089_v2  ;;  %v9828_v21 = vrot.slane %v9089_v2, %v22017_v51  ;;  %v7645_v8 = vadd.f32 %v7605_v49, %v7521_v60 }
 0x3a8   : > { %v8990_v43 = vadd.f32 %v8950_v55, %v8890_v39  ;;  %v8092_v27 = vadd.f32 %v8052_v26, %v7992_v31  ;;  %v7729_v17 = vmul.f32 %v22101_v45, %v19796_v33  ;;  %v7853_v44 = vmul.f32 %v21932_v4, %v19798_v36  ;;  %v19813_v55 = vld [vmem:[#allocation2 + $0xc9] sm:$0xff] }
 0x3a9   : > { %v8691_v18 = vadd.f32 %v8651_v50, %v8591_v11  ;;  %v9835_v30 = vrot.slane %v9821_v16, %v22017_v51  ;;  %v9836_v14 = vcombine.high %v9828_v21, %v9828_v21  ;;  %v7953_v32 = vmul.f32 %v17534_v10, %v19803_v12 }
 0x3aa   : > { %v9090_v38 = vadd.f32 %v9050_v1, %v8990_v43  ;;  %v9843_v48 = vrot.slane %v9828_v21, %v22017_v51  ;;  %v8192_v49 = vadd.f32 %v8152_v40, %v8092_v27  ;;  %v7769_v26 = vadd.f32 %v7729_v17, %v7645_v8 }
 0x3ab   : > { %v8791_v46 = vadd.f32 %v8751_v59, %v8691_v18  ;;  %v9850_v7 = vrot.slane %v9835_v30, %v22017_v51  ;;  %v9857_v25 = vrot.slane %v9836_v14, %v22017_v51  ;;  %v8053_v19 = vmul.f32 %v17538_v42, %v19813_v55 }
 0x3ac   : > { %v9867_v62 = vrot.slane %v9090_v38, %v22017_v51  ;;  %v9860_v1 = vcombine.high %v9090_v38, %v9090_v38  ;;  %v8292_v15 = vadd.f32 %v8252_v57, %v8192_v49  ;;  %v7893_v47 = vadd.f32 %v7853_v44, %v7769_v26  ;;  %v8221_v49 = vld [vmem:[#allocation2 + $0xcb] sm:$0xff] }
 0x3ad   : > { %v8891_v0 = vadd.f32 %v8851_v29, %v8791_v46  ;;  %v11679_v40 = vcombine.low %v9843_v48, %v9857_v25  ;;  %v15496_v59 = vcombine.high %v9843_v48, %v9857_v25  ;;  %v8153_v11 = vmul.f32 %v21937_v28, %v19819_v61  ;;  %v8321_v25 = vld [vmem:[#allocation2 + $0xcc] sm:$0xff] }
 0x3ae   : > { %v9883_v50 = vrot.slane %v9867_v62, %v22017_v51  ;;  %v9874_v39 = vrot.slane %v9860_v1, %v22017_v51  ;;  %v9875_v60 = vcombine.high %v9867_v62, %v9867_v62  ;;  %v7993_v31 = vadd.f32 %v7953_v32, %v7893_v47  ;;  %v22119_v47 = vld [vmem:[#allocation75_spill] sm:$0xff] }
 0x3af   : > { %v8991_v2 = vadd.f32 %v8951_v53, %v8891_v0  ;;  %v11695_v57 = vrot.slane %v11679_v40, %v22017_v51  ;;  %v11702_v29 = vrot.slane %v15496_v59, %v22017_v51  ;;  %v8392_v26 = vadd.f32 %v19789_v54, %v8292_v15 }
 0x3b0   : > { %v11681_v43 = vcombine.low %v9850_v7, %v9883_v50  ;;  %v9876_v16 = vcombine.high %v9874_v39, %v9874_v39  ;;  %v9890_v8 = vrot.slane %v9874_v39, %v22017_v51  ;;  %v9897_v27 = vrot.slane %v9875_v60, %v22017_v51  ;;  %v8421_v39 = vld [vmem:[#allocation2 + $0xcd] sm:$0xff] }
 0x3b1   : > { %v9091_v21 = vadd.f32 %v9051_v52, %v8991_v2  ;;  %v9905_v18 = vcombine.high %v9883_v50, %v9883_v50  ;;  %v11710_v53 = vcombine.low %v19775_v5, %v11695_v57  ;;  %v8093_v38 = vadd.f32 %v8053_v19, %v7993_v31  ;;  %v22120_v19 = vld [vmem:[#allocation65_spill] sm:$0xff] }
 0x3b2   : > { %v11709_v17 = vrot.slane %v11681_v43, %v22017_v51  ;;  %v9904_v44 = vrot.slane %v9876_v16, %v22017_v51  ;;  %v9906_v30 = vcombine.high %v9890_v8, %v9890_v8  ;;  %v9907_v14 = vcombine.high %v9897_v27, %v9897_v27 }
 0x3b3   : > { %v9916_v32 = vrot.slane %v9091_v21, %v22017_v51  ;;  %v11727_v48 = vcombine.low %v9897_v27, %v9905_v18  ;;  %v11718_v52 = vrot.slane %v11710_v53, %v22017_v51  ;;  %v8193_v7 = vadd.f32 %v8153_v11, %v8093_v38  ;;  %v8521_v38 = vld [vmem:[#allocation2 + $0xce] sm:$0xff] }
 0x3b4   : > { %v11711_v46 = vcombine.low %v11702_v29, %v11709_v17  ;;  %v9908_v62 = vcombine.high %v9904_v44, %v9904_v44  ;;  %v11728_v5 = vcombine.low %v9907_v14, %v9890_v8  ;;  %v11729_v0 = vcombine.low %v9904_v44, %v9906_v30 }
 0x3b5   : > { %v9932_v1 = vrot.slane %v9916_v32, %v22017_v51  ;;  %v19840_v50 = vadd.f32 %v22120_v19, %v22119_v47  ;;  %v8253_v59 = vmul.f32 %v21938_v3, %v8221_v49  ;;  %v8452_v2 = vmul.f32 %v21996_v34, %v19770_v63  ;;  %v8821_v19 = vld [vmem:[#allocation2 + $0xd1] sm:$0xff] }
 0x3b6   : > { %v11725_v40 = vrot.slane %v11711_v46, %v22017_v51  ;;  %v11737_v15 = vrot.slane %v11727_v48, %v22017_v51  ;;  %v11744_v60 = vrot.slane %v11728_v5, %v22017_v51  ;;  %v8353_v31 = vmul.f32 %v21995_v56, %v8321_v25  ;;  %v8621_v46 = vld [vmem:[#allocation2 + $0xcf] sm:$0xff] }
 0x3b7   : > { %v11730_v54 = vcombine.low %v9908_v62, %v9932_v1  ;;  %v8293_v43 = vadd.f32 %v8253_v59, %v8193_v7  ;;  %v8492_v57 = vadd.f32 %v8452_v2, %v8392_v26  ;;  %v8552_v29 = vmul.f32 %v22084_v37, %v19796_v33 }
 0x3b8   : > { %v11726_v11 = vcombine.low %v11718_v52, %v11725_v40  ;;  %v11751_v16 = vrot.slane %v11729_v0, %v22017_v51  ;;  %v11759_v27 = vcombine.low %v11737_v15, %v11744_v60  ;;  %v8453_v63 = vmul.f32 %v21996_v34, %v8421_v39  ;;  %v8721_v0 = vld [vmem:[#allocation2 + $0xd0] sm:$0xff] }
 0x3b9   : > { %v11758_v8 = vrot.slane %v11730_v54, %v22017_v51  ;;  %v8393_v18 = vadd.f32 %v8353_v31, %v8293_v43  ;;  %v8592_v17 = vadd.f32 %v8552_v29, %v8492_v57  ;;  %v8652_v53 = vmul.f32 %v22092_v23, %v19798_v36  ;;  %v8921_v39 = vld [vmem:[#allocation2 + $0xd2] sm:$0xff] }
 0x3ba   : > { %15898 = vmatmul.mubr.msk.f32.gmra.mxu1 %vm4504_vm9, %v11726_v11  ;;  %v8752_v44 = vmul.f32 %v22099_v9, %v19803_v12  ;;  %v8852_v30 = vmul.f32 %v22100_v22, %v19813_v55  ;;  %v8952_v14 = vmul.f32 %v22006_v20, %v19819_v61  ;;  %v9909_v48 = vcombine.high %v9091_v21, %v9091_v21  ;;  %v9021_v31 = vld [vmem:[#allocation2 + $0xd3] sm:$0xff] }
 0x3bb   : > { %15900 = vmatprep.mubr.msk.f32.mxu1 %vm16438_vm11, %v22109_v35  ;;  %v11760_v33 = vcombine.low %v11751_v16, %v11758_v8  ;;  %v8493_v52 = vadd.f32 %v8453_v63, %v8393_v18  ;;  %v8692_v26 = vadd.f32 %v8652_v53, %v8592_v17  ;;  %v9924_v7 = vcombine.high %v9916_v32, %v9916_v32  ;;  %v8322_v29 = vld [vmem:[#allocation2 + $0xd4] sm:$0x1f]  ;;  %v22122_v18 = vld [vmem:[#allocation16_spill] sm:$0xff] }
 0x3bc   : > { %v9954_v36 = vcombine.high %v9932_v1, %v9932_v1  ;;  %v11767_v25 = vrot.slane %v11759_v27, %v22017_v51  ;;  %v9923_v62 = vrot.slane %v9909_v48, %v22017_v51  ;;  %v8553_v5 = vmul.f32 %v22084_v37, %v8521_v38  ;;  %v22121_v63 = vld [vmem:[#allocation61_spill] sm:$0xff] }
 0x3bd   : > { %v11774_v12 = vrot.slane %v11760_v33, %v22017_v51  ;;  %v8792_v47 = vadd.f32 %v8752_v44, %v8692_v26  ;;  %v9052_v55 = vmul.f32 %v22012_v13, %v8221_v49  ;;  %v9946_v61 = vrot.slane %v9924_v7, %v22017_v51  ;;  %v8422_v53 = vld [vmem:[#allocation2 + $0xd5] sm:$0x1f]  ;;  %v22123_v7 = vld [vmem:[#allocation60_spill] sm:$0xff] }
 0x3be   : > { %v8653_v21 = vmul.f32 %v22092_v23, %v8621_v46  ;;  %v9925_v32 = vcombine.high %v9923_v62, %v9923_v62  ;;  %v9939_v1 = vrot.slane %v9923_v62, %v22017_v51  ;;  %v8593_v59 = vadd.f32 %v8553_v5, %v8493_v52  ;;  %v8522_v48 = vld [vmem:[#allocation2 + $0xd6] sm:$0x1f] }
 0x3bf   : > { %v11775_v40 = vcombine.low %v11767_v25, %v11774_v12  ;;  %v8892_v2 = vadd.f32 %v8852_v30, %v8792_v47  ;;  %v9956_v54 = vcombine.high %v9946_v61, %v9946_v61  ;;  %v11776_v15 = vcombine.low %v9946_v61, %v9954_v36  ;;  %v8622_v36 = vld [vmem:[#allocation2 + $0xd7] sm:$0x1f] }
 0x3c0   : > { %v8753_v60 = vmul.f32 %v22099_v9, %v8721_v0  ;;  %v9953_v49 = vrot.slane %v9925_v32, %v22017_v51  ;;  %v9955_v11 = vcombine.high %v9939_v1, %v9939_v1  ;;  %v8693_v43 = vadd.f32 %v8653_v21, %v8593_v59  ;;  %v8722_v25 = vld [vmem:[#allocation2 + $0xd8] sm:$0x1f] }
 0x3c1   : > { %15901 = vmatmul.mubr.msk.f32.gmra.mxu1 %vm4504_vm9, %v11775_v40  ;;  %v8853_v57 = vmul.f32 %v22100_v22, %v8821_v19  ;;  %v8992_v16 = vadd.f32 %v8952_v14, %v8892_v2  ;;  %v11777_v8 = vcombine.low %v9956_v54, %v9939_v1  ;;  %v8953_v27 = vmul.f32 %v22006_v20, %v8921_v39  ;;  %v8822_v47 = vld [vmem:[#allocation2 + $0xd9] sm:$0x1f] }
 0x3c2   : > { %15903 = vmatprep.mubr.msk.f32.mxu1 %vm16438_vm11, %v22109_v35  ;;  %v8194_v17 = vadd.f32 %v22122_v18, %v22121_v63  ;;  %v11778_v44 = vcombine.low %v9953_v49, %v9955_v11  ;;  %v11786_v38 = vrot.slane %v11776_v15, %v22017_v51  ;;  %v8793_v33 = vadd.f32 %v8753_v60, %v8693_v43  ;;  %v8922_v40 = vld [vmem:[#allocation2 + $0xda] sm:$0x1f] }
 0x3c3   : > { %v9053_v30 = vmul.f32 %v22012_v13, %v9021_v31  ;;  %v9092_v46 = vadd.f32 %v9052_v55, %v8992_v16  ;;  %v9957_v52 = vcombine.high %v9953_v49, %v9953_v49  ;;  %v11793_v26 = vrot.slane %v11777_v8, %v22017_v51 }
 0x3c4   : > { %v8294_v14 = vadd.f32 %v22123_v7, %v8194_v17  ;;  %v11800_v12 = vrot.slane %v11778_v44, %v22017_v51  ;;  %v8893_v62 = vadd.f32 %v8853_v57, %v8793_v33  ;;  %v8354_v5 = vmul.f32 %v21995_v56, %v8322_v29 }
 0x3c5   : > { %v8454_v0 = vmul.f32 %v21996_v34, %v8422_v53  ;;  %v9965_v61 = vrot.slane %v9092_v46, %v22017_v51  ;;  %v11808_v21 = vcombine.low %v11786_v38, %v11793_v26  ;;  %v9958_v19 = vcombine.high %v9092_v46, %v9092_v46 }
 0x3c6   : > { %v8554_v55 = vmul.f32 %v22084_v37, %v8522_v48  ;;  %v8993_v32 = vadd.f32 %v8953_v27, %v8893_v62  ;;  %v8394_v1 = vadd.f32 %v8354_v5, %v8294_v14  ;;  %v8654_v59 = vmul.f32 %v22092_v23, %v8622_v36 }
 0x3c7   : > { %v8754_v39 = vmul.f32 %v22099_v9, %v8722_v25  ;;  %v9981_v2 = vrot.slane %v9965_v61, %v22017_v51  ;;  %v9972_v54 = vrot.slane %v9958_v19, %v22017_v51  ;;  %v9973_v15 = vcombine.high %v9965_v61, %v9965_v61 }
 0x3c8   : > { %v8854_v60 = vmul.f32 %v22100_v22, %v8822_v47  ;;  %v11816_v31 = vrot.slane %v11808_v21, %v22017_v51  ;;  %v9093_v49 = vadd.f32 %v9053_v30, %v8993_v32  ;;  %v8494_v11 = vadd.f32 %v8454_v0, %v8394_v1  ;;  %v9022_v30 = vld [vmem:[#allocation2 + $0xdb] sm:$0x1f] }
 0x3c9   : > { %v8954_v43 = vmul.f32 %v22006_v20, %v8922_v40  ;;  %v11779_v57 = vcombine.low %v9957_v52, %v9981_v2  ;;  %v9974_v29 = vcombine.high %v9972_v54, %v9972_v54  ;;  %v9988_v16 = vrot.slane %v9972_v54, %v22017_v51 }
 0x3ca   : > { %v9995_v8 = vrot.slane %v9973_v15, %v22017_v51  ;;  %v10003_v27 = vcombine.high %v9981_v2, %v9981_v2  ;;  %v10014_v63 = vrot.slane %v9093_v49, %v22017_v51  ;;  %v8594_v18 = vadd.f32 %v8554_v55, %v8494_v11 }
 0x3cb   : > { %v10007_v17 = vcombine.high %v9093_v49, %v9093_v49  ;;  %v11807_v53 = vrot.slane %v11779_v57, %v22017_v51  ;;  %v10002_v44 = vrot.slane %v9974_v29, %v22017_v51  ;;  %v10004_v38 = vcombine.high %v9988_v16, %v9988_v16  ;;  %v19915_v49 = vld [vmem:[#allocation2 + $0xe9] sm:$0xff] }
 0x3cc   : > { %v10005_v33 = vcombine.high %v9995_v8, %v9995_v8  ;;  %v10030_v48 = vrot.slane %v10014_v63, %v22017_v51  ;;  %v11825_v46 = vcombine.low %v9995_v8, %v10003_v27  ;;  %v8694_v52 = vadd.f32 %v8654_v59, %v8594_v18  ;;  %v19912_v59 = vld [vmem:[#allocation2 + $0xe8] sm:$0xff]  ;;  %v19918_v8 = vld [vmem:[#allocation2 + $0xf0] sm:$0xff]  ;;  %v22126_v18 = vld [vmem:[#allocation26_spill] sm:$0xff] }
 0x3cd   : > { %v10021_v26 = vrot.slane %v10007_v17, %v22017_v51  ;;  %v11809_v7 = vcombine.low %v11800_v12, %v11807_v53  ;;  %v10006_v14 = vcombine.high %v10002_v44, %v10002_v44  ;;  %v11827_v25 = vcombine.low %v10002_v44, %v10004_v38  ;;  %v22124_v27 = vld [vmem:[#allocation69_spill] sm:$0xff] }
 0x3ce   : > { %v11826_v36 = vcombine.low %v10005_v33, %v9988_v16  ;;  %v8794_v62 = vadd.f32 %v8754_v39, %v8694_v52  ;;  %v9054_v5 = vmul.f32 %v22012_v13, %v9022_v30  ;;  %v10022_v0 = vcombine.high %v10014_v63, %v10014_v63  ;;  %v19933_v44 = vld [vmem:[#allocation2 + $0xea] sm:$0xff] }
 0x3cf   : > { %v10023_v47 = vcombine.high %v10021_v26, %v10021_v26  ;;  %v11823_v61 = vrot.slane %v11809_v7, %v22017_v51  ;;  %v11828_v21 = vcombine.low %v10006_v14, %v10030_v48  ;;  %v11835_v19 = vrot.slane %v11825_v46, %v22017_v51  ;;  %v19949_v14 = vld [vmem:[#allocation2 + $0xeb] sm:$0xff] }
 0x3d0   : > { %v11842_v55 = vrot.slane %v11826_v36, %v22017_v51  ;;  %v11849_v40 = vrot.slane %v11827_v25, %v22017_v51  ;;  %v8894_v32 = vadd.f32 %v8854_v60, %v8794_v62  ;;  %v10037_v12 = vrot.slane %v10021_v26, %v22017_v51  ;;  %v19920_v60 = vld [vmem:[#allocation2 + $0xf1] sm:$0xff] }
 0x3d1   : > { %v10044_v1 = vrot.slane %v10022_v0, %v22017_v51  ;;  %v11824_v39 = vcombine.low %v11816_v31, %v11823_v61  ;;  %v11856_v2 = vrot.slane %v11828_v21, %v22017_v51  ;;  %v10052_v15 = vcombine.high %v10030_v48, %v10030_v48  ;;  %v22125_v31 = vld [vmem:[#allocation32_spill] sm:$0xff]  ;;  %v19942_v48 = vld [vmem:[#allocation2 + $0xf2] sm:$0xff] }
 0x3d2   : > { %v11857_v54 = vcombine.low %v11835_v19, %v11842_v55  ;;  %v8994_v11 = vadd.f32 %v8954_v43, %v8894_v32  ;;  %v10051_v57 = vrot.slane %v10023_v47, %v22017_v51  ;;  %v10053_v29 = vcombine.high %v10037_v12, %v10037_v12  ;;  %v19957_v0 = vld [vmem:[#allocation2 + $0xf3] sm:$0xff] }
 0x3d3   : > { %v10054_v16 = vcombine.high %v10044_v1, %v10044_v1  ;;  %v19924_v63 = vadd.f32 %v22124_v27, %v19840_v50  ;;  %v19928_v17 = vadd.f32 %v22126_v18, %v22125_v31  ;;  %15904 = vmatmul.mubr.msk.f32.gmra.mxu1 %vm4504_vm9, %v11824_v39  ;;  %v11858_v53 = vcombine.low %v11849_v40, %v11856_v2  ;;  %v19961_v55 = vld [vmem:[#allocation2 + $0xec] sm:$0xff]  ;;  %v19970_v2 = vld [vmem:[#allocation2 + $0xf4] sm:$0xff] }
 0x3d4   : > { %v6988_v43 = vmul.f32 %v22085_v24, %v19912_v59  ;;  %15906 = vmatprep.mubr.msk.f32.mxu1 %vm16438_vm11, %v22109_v35  ;;  %v11865_v38 = vrot.slane %v11857_v54, %v22017_v51  ;;  %v19938_v33 = vadd.f32 %v9054_v5, %v8994_v11  ;;  %v7112_v30 = vmul.f32 %v22088_v41, %v19915_v49  ;;  %v7563_v40 = vld [vmem:[#allocation2 + $0xe5] sm:$0xff]  ;;  %v7564_v27 = vld [vmem:[#allocation2 + $0xed] sm:$0xff] }
 0x3d5   : > { %22127 = vst [vmem:[#allocation10_spill] sm:$0xff] %v19928_v17  ;;  %v11875_v50 = vcombine.low %v10054_v16, %v10037_v12  ;;  %v11872_v46 = vrot.slane %v11858_v53, %v22017_v51  ;;  %v11874_v52 = vcombine.low %v10044_v1, %v10052_v15  ;;  %v6989_v26 = vmul.f32 %v22085_v24, %v19918_v8  ;;  %v7458_v31 = vld [vmem:[#allocation2 + $0x1ac] sm:$0x1f] }
 0x3d6   : > { %v7113_v7 = vmul.f32 %v22088_v41, %v19920_v60  ;;  %v19953_v36 = vrot.slane %v19938_v33, %v22017_v51  ;;  %v11876_v25 = vcombine.low %v10051_v57, %v10053_v29  ;;  %v7152_v62 = vadd.f32 %v7112_v30, %v6988_v43  ;;  %v22129_v29 = vld [vmem:[#allocation74_spill] sm:$0xff]  ;;  %v7687_v30 = vld [vmem:[#allocation2 + $0xe6] sm:$0xff] }
 0x3d7   : > { %v7236_v5 = vmul.f32 %v22097_v58, %v19933_v44  ;;  %v11873_v47 = vcombine.low %v11865_v38, %v11872_v46  ;;  %v10055_v61 = vcombine.high %v10051_v57, %v10051_v57  ;;  %v7237_v19 = vmul.f32 %v22097_v58, %v19942_v48  ;;  %v22128_v57 = vld [vmem:[#allocation77_spill] sm:$0xff]  ;;  %v22130_v38 = vld [vmem:[#allocation7_spill] sm:$0xff]  ;;  %v19984_v46 = vpop.f32.mrf.mxu1 }
 0x3d8   : > { %v7153_v21 = vadd.f32 %v7113_v7, %v6989_v26  ;;  %v19965_v32 = vrot.slane %v19953_v36, %v22017_v51  ;;  %v11891_v12 = vrot.slane %v11875_v50, %v22017_v51  ;;  %v7360_v39 = vmul.f32 %v17492_v6, %v19949_v14  ;;  %22131 = vst [vmem:[#allocation36_spill] sm:$0xff] %v19984_v46 }
 0x3d9   : > { %v7276_v1 = vadd.f32 %v7236_v5, %v7152_v62  ;;  %15907 = vmatmul.mubr.msk.f32.gmra.mxu1 %vm4504_vm9, %v11873_v47  ;;  %v11884_v54 = vrot.slane %v11874_v52, %v22017_v51  ;;  %v7361_v11 = vmul.f32 %v17492_v6, %v19957_v0  ;;  %v7399_v16 = vadd.f32 %v22129_v29, %v22128_v57  ;;  %v19986_v52 = vld [vmem:[#allocation2 + $0x1a5] sm:$0xff]  ;;  %v22132_v62 = vld [vmem:[#allocation78_spill] sm:$0xff]  ;;  %v15866_v46 = vpop.f32.mrf.mxu1 }
 0x3da   : > { %v7277_v15 = vadd.f32 %v7237_v19, %v7153_v21  ;;  %15909 = vmatprep.mubr.msk.f32.mxu1 %vm16438_vm11, %v22109_v35  ;;  %v11877_v18 = vcombine.low %v10055_v61, %v19965_v32  ;;  %v11898_v53 = vrot.slane %v11876_v25, %v22017_v51  ;;  %v7484_v50 = vmul.f32 %v22130_v38, %v19961_v55  ;;  %v22133_v47 = vld [vmem:[#allocation8_spill] sm:$0xff] }
 0x3db   : > { %v7400_v43 = vadd.f32 %v7360_v39, %v7276_v1  ;;  %v7485_v7 = vmul.f32 %v22130_v38, %v19970_v2  ;;  %v7523_v5 = vadd.f32 %v22132_v62, %v7399_v16  ;;  %v7607_v21 = vmul.f32 %v22133_v47, %v7563_v40  ;;  %v7688_v61 = vld [vmem:[#allocation2 + $0xee] sm:$0xff] }
 0x3dc   : > { %v7401_v26 = vadd.f32 %v7361_v11, %v7277_v15  ;;  %v11905_v25 = vrot.slane %v11877_v18, %v22017_v51  ;;  %v11906_v19 = vcombine.low %v11884_v54, %v11891_v12  ;;  %v19993_v39 = vld [vmem:[#allocation2 + $0xf5] sm:$0xff]  ;;  %v7608_v57 = vmul.f32 %v22133_v47, %v7564_v27  ;;  %v7811_v29 = vld [vmem:[#allocation2 + $0xe7] sm:$0xff] }
 0x3dd   : > { %v7524_v1 = vadd.f32 %v7484_v50, %v7400_v43  ;;  %v19997_v15 = vmul.f32 %v22130_v38, %v7458_v31  ;;  %v7647_v17 = vadd.f32 %v7607_v21, %v7523_v5  ;;  %v7731_v16 = vmul.f32 %v22101_v45, %v7687_v30  ;;  %v7812_v62 = vld [vmem:[#allocation2 + $0xef] sm:$0xff]  ;;  %v22136_v43 = vld [vmem:[#allocation71_spill] sm:$0xff] }
 0x3de   : > { %v7525_v11 = vadd.f32 %v7485_v7, %v7401_v26  ;;  %v20002_v40 = vmul.f32 %v22133_v47, %v19986_v52  ;;  %v11907_v12 = vcombine.low %v11898_v53, %v11905_v25  ;;  %v7732_v18 = vmul.f32 %v22101_v45, %v7688_v61 }
 0x3df   : > { %22134 = vst [vmem:[#allocation29_spill] sm:$0xff] %v19997_v15  ;;  %v7648_v54 = vadd.f32 %v7608_v57, %v7524_v1  ;;  %v20007_v50 = vadd.f32 %v22136_v43, %v19924_v63  ;;  %v7609_v31 = vmul.f32 %v22133_v47, %v19993_v39  ;;  %v7771_v46 = vadd.f32 %v7731_v16, %v7647_v17 }
 0x3e0   : > { %22135 = vst [vmem:[#allocation28_spill] sm:$0xff] %v20002_v40  ;;  %v7855_v26 = vmul.f32 %v21932_v4, %v7811_v29  ;;  %v11914_v30 = vrot.slane %v11906_v19, %v22017_v51  ;;  %v11921_v7 = vrot.slane %v11907_v12, %v22017_v51  ;;  %v7856_v53 = vmul.f32 %v21932_v4, %v7812_v62  ;;  %v20029_v12 = vld [vmem:[#allocation2 + $0xf8] sm:$0xff] }
 0x3e1   : > { %v7772_v5 = vadd.f32 %v7732_v18, %v7648_v54  ;;  %v7649_v21 = vadd.f32 %v7609_v31, %v7525_v11  ;;  %v7955_v1 = vmul.f32 %v17534_v10, %v19912_v59  ;;  %v7956_v63 = vmul.f32 %v17534_v10, %v19918_v8  ;;  %v20031_v54 = vld [vmem:[#allocation2 + $0xf9] sm:$0xff] }
 0x3e2   : > { %v7895_v25 = vadd.f32 %v7855_v26, %v7771_v46  ;;  %v11922_v57 = vcombine.low %v11914_v30, %v11921_v7  ;;  %v8055_v17 = vmul.f32 %v17538_v42, %v19915_v49  ;;  %v8056_v19 = vmul.f32 %v17538_v42, %v19920_v60  ;;  %v20033_v18 = vld [vmem:[#allocation2 + $0xfa] sm:$0xff] }
 0x3e3   : > { %v7896_v43 = vadd.f32 %v7856_v53, %v7772_v5  ;;  %v8155_v16 = vmul.f32 %v21937_v28, %v19933_v44  ;;  %v8156_v11 = vmul.f32 %v21937_v28, %v19942_v48  ;;  %v8255_v59 = vmul.f32 %v21938_v3, %v19949_v14 }
 0x3e4   : > { %v7995_v29 = vadd.f32 %v7955_v1, %v7895_v25  ;;  %15910 = vmatmul.mubr.msk.f32.gmra.mxu1 %vm4504_vm9, %v11922_v57  ;;  %v8256_v31 = vmul.f32 %v21938_v3, %v19957_v0  ;;  %v8355_v44 = vmul.f32 %v21995_v56, %v19961_v55  ;;  %v8356_v46 = vmul.f32 %v21995_v56, %v19970_v2 }
 0x3e5   : > { %v7996_v49 = vadd.f32 %v7956_v63, %v7896_v43  ;;  %15912 = vmatprep.mubr.msk.f32.mxu1 %vm16438_vm11, %v22109_v35  ;;  %v8455_v26 = vmul.f32 %v21996_v34, %v7564_v27  ;;  %v10056_v30 = vcombine.high %v19938_v33, %v19938_v33  ;;  %v10071_v7 = vcombine.high %v19953_v36, %v19953_v36  ;;  %v20059_v63 = vld [vmem:[#allocation2 + $0xfb] sm:$0xff] }
 0x3e6   : > { %v8095_v14 = vadd.f32 %v8055_v17, %v7995_v29  ;;  %v6990_v53 = vmul.f32 %v22085_v24, %v20029_v12  ;;  %v7114_v55 = vmul.f32 %v22088_v41, %v20031_v54  ;;  %v7238_v2 = vmul.f32 %v22097_v58, %v20033_v18  ;;  %v7689_v36 = vld [vmem:[#allocation2 + $0xf6] sm:$0xff] }
 0x3e7   : > { %v8096_v5 = vadd.f32 %v8056_v19, %v7996_v49  ;;  %v10070_v1 = vrot.slane %v10056_v30, %v22017_v51  ;;  %v10092_v27 = vrot.slane %v10071_v7, %v22017_v51  ;;  %v10093_v33 = vcombine.high %v19965_v32, %v19965_v32  ;;  %v7442_v29 = vld [vmem:[#allocation2 + $0xfc] sm:$0xff] }
 0x3e8   : > { %v8195_v25 = vadd.f32 %v8155_v16, %v8095_v14  ;;  %v8555_v43 = vmul.f32 %v22084_v37, %v7688_v61  ;;  %v8655_v17 = vmul.f32 %v22092_v23, %v7812_v62  ;;  %v7154_v19 = vadd.f32 %v7114_v55, %v6990_v53  ;;  %v7813_v7 = vld [vmem:[#allocation2 + $0xf7] sm:$0xff] }
 0x3e9   : > { %v8196_v57 = vadd.f32 %v8156_v11, %v8096_v5  ;;  %v8755_v16 = vmul.f32 %v22099_v9, %v19918_v8  ;;  %v10085_v14 = vrot.slane %v10070_v1, %v22017_v51  ;;  %v10094_v30 = vcombine.high %v10092_v27, %v10092_v27  ;;  %v20068_v11 = vld [vmem:[#allocation2 + $0xfd] sm:$0xff] }
 0x3ea   : > { %v8295_v49 = vadd.f32 %v8255_v59, %v8195_v25  ;;  %v7278_v32 = vadd.f32 %v7238_v2, %v7154_v19  ;;  %v7362_v15 = vmul.f32 %v17492_v6, %v20059_v63  ;;  %v7733_v61 = vmul.f32 %v22101_v45, %v7689_v36 }
 0x3eb   : > { %v8296_v40 = vadd.f32 %v8256_v31, %v8196_v57  ;;  %v11923_v5 = vcombine.low %v10092_v27, %v10093_v33  ;;  %v11924_v53 = vcombine.low %v10094_v30, %v10085_v14  ;;  %v7486_v59 = vmul.f32 %v22130_v38, %v7442_v29 }
 0x3ec   : > { %v8395_v62 = vadd.f32 %v8355_v44, %v8295_v49  ;;  %v7402_v8 = vadd.f32 %v7362_v15, %v7278_v32  ;;  %v7773_v25 = vadd.f32 %v7733_v61, %v7649_v21  ;;  %v7857_v1 = vmul.f32 %v21932_v4, %v7813_v7 }
 0x3ed   : > { %v8396_v55 = vadd.f32 %v8356_v46, %v8296_v40  ;;  %v8855_v31 = vmul.f32 %v22100_v22, %v19920_v60  ;;  %v11940_v2 = vrot.slane %v11924_v53, %v22017_v51  ;;  %v7610_v57 = vmul.f32 %v22133_v47, %v20068_v11 }
 0x3ee   : > { %v8495_v58 = vadd.f32 %v8455_v26, %v8395_v62  ;;  %v7526_v19 = vadd.f32 %v7486_v59, %v7402_v8  ;;  %v7897_v44 = vadd.f32 %v7857_v1, %v7773_v25  ;;  %v7957_v27 = vmul.f32 %v17534_v10, %v20029_v12  ;;  %v7690_v26 = vld [vmem:[#allocation2 + $0xfe] sm:$0xff] }
 0x3ef   : > { %v8456_v15 = vmul.f32 %v21996_v34, %v19993_v39  ;;  %v11933_v21 = vrot.slane %v11923_v5, %v22017_v51  ;;  %v8057_v46 = vmul.f32 %v17538_v42, %v20031_v54  ;;  %v8157_v60 = vmul.f32 %v21937_v28, %v20033_v18 }
 0x3f0   : > { %v8595_v40 = vadd.f32 %v8555_v43, %v8495_v58  ;;  %v7650_v33 = vadd.f32 %v7610_v57, %v7526_v19  ;;  %v7997_v49 = vadd.f32 %v7957_v27, %v7897_v44  ;;  %v8556_v30 = vmul.f32 %v22084_v37, %v7689_v36  ;;  %v7814_v43 = vld [vmem:[#allocation2 + $0xff] sm:$0xff] }
 0x3f1   : > { %v8496_v14 = vadd.f32 %v8456_v15, %v8396_v55  ;;  %v8955_v61 = vmul.f32 %v22006_v20, %v19942_v48  ;;  %v9055_v58 = vmul.f32 %v22012_v13, %v19957_v0  ;;  %v20092_v39 = vcombine.low %v11933_v21, %v11940_v2  ;;  %v7923_v55 = vld [vmem:[#allocation2 + $0x100] sm:$0xff] }
 0x3f2   : > { %v8695_v32 = vadd.f32 %v8655_v17, %v8595_v40  ;;  %v8097_v62 = vadd.f32 %v8057_v46, %v7997_v49  ;;  %v8656_v53 = vmul.f32 %v22092_v23, %v7813_v7  ;;  %v7734_v59 = vmul.f32 %v22101_v45, %v7690_v26  ;;  %v8023_v57 = vld [vmem:[#allocation2 + $0x101] sm:$0xff] }
 0x3f3   : > { %v8596_v5 = vadd.f32 %v8556_v30, %v8496_v14  ;;  %v8257_v36 = vmul.f32 %v21938_v3, %v20059_v63  ;;  %v8357_v17 = vmul.f32 %v21995_v56, %v7442_v29  ;;  %v8756_v48 = vmul.f32 %v22099_v9, %v20029_v12  ;;  %v8123_v19 = vld [vmem:[#allocation2 + $0x102] sm:$0xff] }
 0x3f4   : > { %v8795_v8 = vadd.f32 %v8755_v16, %v8695_v32  ;;  %v8197_v0 = vadd.f32 %v8157_v60, %v8097_v62  ;;  %v7774_v1 = vadd.f32 %v7734_v59, %v7650_v33  ;;  %v7858_v2 = vmul.f32 %v21932_v4, %v7814_v43  ;;  %v8223_v21 = vld [vmem:[#allocation2 + $0x103] sm:$0xff] }
 0x3f5   : > { %v8696_v25 = vadd.f32 %v8656_v53, %v8596_v5  ;;  %v11963_v16 = vrot.slane %v20092_v39, %v22017_v51  ;;  %v8856_v44 = vmul.f32 %v22100_v22, %v20031_v54  ;;  %v8956_v29 = vmul.f32 %v22006_v20, %v20033_v18  ;;  %v8323_v46 = vld [vmem:[#allocation2 + $0x104] sm:$0xff] }
 0x3f6   : > { %v8895_v7 = vadd.f32 %v8855_v31, %v8795_v8  ;;  %v8297_v27 = vadd.f32 %v8257_v36, %v8197_v0  ;;  %v7898_v15 = vadd.f32 %v7858_v2, %v7774_v1  ;;  %v7958_v40 = vmul.f32 %v17534_v10, %v7923_v55  ;;  %v8423_v60 = vld [vmem:[#allocation2 + $0x105] sm:$0xff] }
 0x3f7   : > { %v8796_v12 = vadd.f32 %v8756_v48, %v8696_v25  ;;  %v9056_v31 = vmul.f32 %v22012_v13, %v20059_v63  ;;  %v8058_v49 = vmul.f32 %v17538_v42, %v8023_v57  ;;  %v8158_v14 = vmul.f32 %v21937_v28, %v8123_v19 }
 0x3f8   : > { %v8995_v33 = vadd.f32 %v8955_v61, %v8895_v7  ;;  %v8397_v54 = vadd.f32 %v8357_v17, %v8297_v27  ;;  %v7998_v32 = vadd.f32 %v7958_v40, %v7898_v15  ;;  %v8457_v18 = vmul.f32 %v21996_v34, %v20068_v11  ;;  %v8523_v7 = vld [vmem:[#allocation2 + $0x106] sm:$0xff] }
 0x3f9   : > { %v8896_v30 = vadd.f32 %v8856_v44, %v8796_v12  ;;  %v8258_v5 = vmul.f32 %v21938_v3, %v8223_v21  ;;  %v8358_v53 = vmul.f32 %v21995_v56, %v8323_v46  ;;  %v8458_v61 = vmul.f32 %v21996_v34, %v8423_v60 }
 0x3fa   : > { %v9095_v62 = vadd.f32 %v9055_v58, %v8995_v33  ;;  %v8098_v8 = vadd.f32 %v8058_v49, %v7998_v32  ;;  %v8497_v63 = vadd.f32 %v8457_v18, %v8397_v54  ;;  %v8557_v36 = vmul.f32 %v22084_v37, %v7690_v26 }
 0x3fb   : > { %v8996_v59 = vadd.f32 %v8956_v29, %v8896_v30  ;;  %v8657_v0 = vmul.f32 %v22092_v23, %v7814_v43  ;;  %v8757_v25 = vmul.f32 %v22099_v9, %v7923_v55  ;;  %v8857_v2 = vmul.f32 %v22100_v22, %v8023_v57 }
 0x3fc   : > { %v10102_v48 = vrot.slane %v9095_v62, %v22017_v51  ;;  %v10095_v17 = vcombine.high %v9095_v62, %v9095_v62  ;;  %v8198_v58 = vadd.f32 %v8158_v14, %v8098_v8  ;;  %v8597_v1 = vadd.f32 %v8557_v36, %v8497_v63 }
 0x3fd   : > { %v9096_v11 = vadd.f32 %v9056_v31, %v8996_v59  ;;  %v8957_v27 = vmul.f32 %v22006_v20, %v8123_v19  ;;  %v9057_v26 = vmul.f32 %v22012_v13, %v8223_v21  ;;  %v8558_v57 = vmul.f32 %v22084_v37, %v8523_v7 }
 0x3fe   : > { %v10110_v44 = vcombine.high %v10102_v48, %v10102_v48  ;;  %v10109_v29 = vrot.slane %v10095_v17, %v22017_v51  ;;  %v8298_v15 = vadd.f32 %v8258_v5, %v8198_v58  ;;  %v8697_v40 = vadd.f32 %v8657_v0, %v8597_v1 }
 0x3ff   : > { %v10151_v12 = vrot.slane %v9096_v11, %v22017_v51  ;;  %v10144_v43 = vcombine.high %v9096_v11, %v9096_v11  ;;  %v10118_v55 = vrot.slane %v10102_v48, %v22017_v51 }
 0x400   : > { %v10132_v46 = vrot.slane %v10110_v44, %v22017_v51  ;;  %v10111_v60 = vcombine.high %v10109_v29, %v10109_v29  ;;  %v10125_v33 = vrot.slane %v10109_v29, %v22017_v51  ;;  %v8398_v49 = vadd.f32 %v8358_v53, %v8298_v15 }
 0x401   : > { %v10159_v31 = vcombine.high %v10151_v12, %v10151_v12  ;;  %v8797_v14 = vadd.f32 %v8757_v25, %v8697_v40  ;;  %v10158_v30 = vrot.slane %v10144_v43, %v22017_v51  ;;  %v10167_v32 = vrot.slane %v10151_v12, %v22017_v51  ;;  %v8623_v25 = vld [vmem:[#allocation2 + $0x107] sm:$0xff] }
 0x402   : > { %v11925_v19 = vcombine.low %v10118_v55, %v10132_v46  ;;  %v15497_v54 = vcombine.high %v10118_v55, %v10132_v46  ;;  %v10139_v21 = vrot.slane %v10111_v60, %v22017_v51  ;;  %v8498_v62 = vadd.f32 %v8458_v61, %v8398_v49  ;;  %v8723_v12 = vld [vmem:[#allocation2 + $0x108] sm:$0xff] }
 0x403   : > { %v10181_v18 = vrot.slane %v10159_v31, %v22017_v51  ;;  %v8897_v5 = vadd.f32 %v8857_v2, %v8797_v14  ;;  %v10160_v0 = vcombine.high %v10158_v30, %v10158_v30  ;;  %v10174_v7 = vrot.slane %v10158_v30, %v22017_v51  ;;  %v8823_v55 = vld [vmem:[#allocation2 + $0x109] sm:$0xff] }
 0x404   : > { %v11947_v59 = vrot.slane %v11925_v19, %v22017_v51  ;;  %v11954_v8 = vrot.slane %v15497_v54, %v22017_v51  ;;  %v11972_v63 = vcombine.low %v10125_v33, %v10139_v21  ;;  %v15498_v36 = vcombine.high %v10125_v33, %v10139_v21  ;;  %v8923_v49 = vld [vmem:[#allocation2 + $0x10a] sm:$0xff] }
 0x405   : > { %v11974_v53 = vcombine.low %v10167_v32, %v10181_v18  ;;  %v15499_v48 = vcombine.high %v10167_v32, %v10181_v18  ;;  %v8997_v17 = vadd.f32 %v8957_v27, %v8897_v5  ;;  %v10188_v29 = vrot.slane %v10160_v0, %v22017_v51  ;;  %v22137_v14 = vld [vmem:[#allocation72_spill] sm:$0xff] }
 0x406   : > { %v11956_v11 = vcombine.low %v11947_v59, %v11954_v8  ;;  %v11982_v58 = vrot.slane %v11972_v63, %v22017_v51  ;;  %v11989_v1 = vrot.slane %v15498_v36, %v22017_v51  ;;  %v8598_v40 = vadd.f32 %v8558_v57, %v8498_v62  ;;  %v9023_v59 = vld [vmem:[#allocation2 + $0x10b] sm:$0xff] }
 0x407   : > { %v11996_v61 = vrot.slane %v11974_v53, %v22017_v51  ;;  %v12003_v2 = vrot.slane %v15499_v48, %v22017_v51  ;;  %v9097_v44 = vadd.f32 %v9057_v26, %v8997_v17  ;;  %v8658_v43 = vmul.f32 %v22092_v23, %v8623_v25  ;;  %v22138_v53 = vld [vmem:[#allocation89_spill] sm:$0xff]  ;;  %v22139_v48 = vld [vmem:[#allocation23_spill] sm:$0xff]  ;;  %v22140_v25 = vld [vmem:[#allocation76_spill] sm:$0xff] }
 0x408   : > { %v11970_v15 = vrot.slane %v11956_v11, %v22017_v51  ;;  %v12004_v27 = vcombine.low %v11982_v58, %v11989_v1  ;;  %v12021_v33 = vcombine.low %v10174_v7, %v10188_v29  ;;  %v15500_v31 = vcombine.high %v10174_v7, %v10188_v29  ;;  %v8424_v0 = vld [vmem:[#allocation2 + $0x10d] sm:$0x1f]  ;;  %v22141_v29 = vld [vmem:[#allocation38_spill] sm:$0xff] }
 0x409   : > { %v12005_v46 = vcombine.low %v11996_v61, %v12003_v2  ;;  %v10200_v60 = vrot.slane %v9097_v44, %v22017_v51  ;;  %v7909_v19 = vadd.f32 %v22137_v14, %v20007_v50  ;;  %v8698_v54 = vadd.f32 %v8658_v43, %v8598_v40 }
 0x40a   : > { %v11971_v26 = vcombine.low %v11963_v16, %v11970_v15  ;;  %v8758_v21 = vmul.f32 %v22099_v9, %v8723_v12  ;;  %v12012_v57 = vrot.slane %v12004_v27, %v22017_v51  ;;  %v8858_v18 = vmul.f32 %v22100_v22, %v8823_v55  ;;  %v8324_v16 = vld [vmem:[#allocation2 + $0x10c] sm:$0x1f] }
 0x40b   : > { %v12019_v30 = vrot.slane %v12005_v46, %v22017_v51  ;;  %v10208_v32 = vcombine.high %v10200_v60, %v10200_v60  ;;  %v10216_v62 = vrot.slane %v10200_v60, %v22017_v51  ;;  %v8958_v50 = vmul.f32 %v22006_v20, %v8923_v49  ;;  %v7705_v15 = vld [vmem:[#allocation2 + $0x1a6] sm:$0xff]  ;;  %v22142_v46 = vld [vmem:[#allocation10_spill] sm:$0xff] }
 0x40c   : > { %15913 = vmatmul.mubr.msk.f32.gmra.mxu1 %vm4504_vm9, %v11971_v26  ;;  %v8798_v5 = vadd.f32 %v8758_v21, %v8698_v54  ;;  %v10193_v39 = vcombine.high %v9097_v44, %v9097_v44  ;;  %v12031_v63 = vrot.slane %v12021_v33, %v22017_v51  ;;  %v12038_v36 = vrot.slane %v15500_v31, %v22017_v51  ;;  %v22143_v60 = vld [vmem:[#allocation39_spill] sm:$0xff] }
 0x40d   : > { %15915 = vmatprep.mubr.msk.f32.mxu1 %vm16438_vm11, %v22109_v35  ;;  %v10230_v8 = vrot.slane %v10208_v32, %v22017_v51  ;;  %v8199_v17 = vadd.f32 %v22139_v48, %v22138_v53  ;;  %v8009_v11 = vadd.f32 %v22140_v25, %v7909_v19  ;;  %v12020_v58 = vcombine.low %v12012_v57, %v12019_v30  ;;  %v8524_v57 = vld [vmem:[#allocation2 + $0x10e] sm:$0x1f]  ;;  %v22145_v32 = vld [vmem:[#allocation3_spill] sm:$0xff] }
 0x40e   : > { %v8898_v1 = vadd.f32 %v8858_v18, %v8798_v5  ;;  %v10207_v7 = vrot.slane %v10193_v39, %v22017_v51  ;;  %v9058_v44 = vmul.f32 %v22012_v13, %v9023_v59  ;;  %v8359_v43 = vmul.f32 %v21995_v56, %v8324_v16  ;;  %v22144_v30 = vld [vmem:[#allocation85_spill] sm:$0xff] }
 0x40f   : > { %v12023_v61 = vcombine.low %v10216_v62, %v10230_v8  ;;  %v15501_v2 = vcombine.high %v10216_v62, %v10230_v8  ;;  %v8299_v12 = vadd.f32 %v22141_v29, %v8199_v17  ;;  %v8459_v55 = vmul.f32 %v21996_v34, %v8424_v0  ;;  %v22146_v62 = vld [vmem:[#allocation80_spill] sm:$0xff]  ;;  %v8724_v25 = vld [vmem:[#allocation2 + $0x110] sm:$0x1f] }
 0x410   : > { %15916 = vmatmul.mubr.msk.f32.gmra.mxu1 %vm4504_vm9, %v12020_v58  ;;  %v8998_v27 = vadd.f32 %v8958_v50, %v8898_v1  ;;  %v10209_v40 = vcombine.high %v10207_v7, %v10207_v7  ;;  %v7294_v33 = vadd.f32 %v22143_v60, %v22142_v46  ;;  %v12053_v14 = vcombine.low %v12031_v63, %v12038_v36  ;;  %v8624_v36 = vld [vmem:[#allocation2 + $0x10f] sm:$0x1f] }
 0x411   : > { %15918 = vmatprep.mubr.msk.f32.mxu1 %vm16438_vm11, %v22109_v35  ;;  %v12045_v31 = vrot.slane %v12023_v61, %v22017_v51  ;;  %v12052_v49 = vrot.slane %v15501_v2, %v22017_v51  ;;  %v10223_v26 = vrot.slane %v10207_v7, %v22017_v51  ;;  %v8399_v21 = vadd.f32 %v8359_v43, %v8299_v12  ;;  %v8824_v2 = vld [vmem:[#allocation2 + $0x111] sm:$0x1f] }
 0x412   : > { %v9098_v19 = vadd.f32 %v9058_v44, %v8998_v27  ;;  %v10237_v54 = vrot.slane %v10209_v40, %v22017_v51  ;;  %v20182_v18 = vadd.f32 %v22145_v32, %v22144_v30  ;;  %v8109_v5 = vadd.f32 %v22146_v62, %v8009_v11  ;;  %v22149_v11 = vld [vmem:[#allocation54_spill] sm:$0xff]  ;;  %v8924_v44 = vld [vmem:[#allocation2 + $0x112] sm:$0x1f] }
 0x413   : > { %v20186_v50 = vmul.f32 %v22101_v45, %v7705_v15  ;;  %v12054_v59 = vcombine.low %v12045_v31, %v12052_v49  ;;  %v8499_v63 = vadd.f32 %v8459_v55, %v8399_v21  ;;  %v20191_v53 = vmul.f32 %v21996_v34, %v19986_v52  ;;  %v9024_v29 = vld [vmem:[#allocation2 + $0x113] sm:$0x1f]  ;;  %v22150_v52 = vld [vmem:[#allocation19_spill] sm:$0xff]  ;;  %v20210_v31 = vld [vmem:[#allocation2 + $0x128] sm:$0xff] }
 0x414   : > { %v10249_v39 = vrot.slane %v9098_v19, %v22017_v51  ;;  %v12070_v16 = vcombine.low %v10223_v26, %v10237_v54  ;;  %v15502_v8 = vcombine.high %v10223_v26, %v10237_v54  ;;  %v12061_v48 = vrot.slane %v12053_v14, %v22017_v51  ;;  %v20212_v49 = vld [vmem:[#allocation2 + $0x121] sm:$0xff] }
 0x415   : > { %22147 = vst [vmem:[#allocation84_spill] sm:$0xff] %v20186_v50  ;;  %22148 = vst [vmem:[#allocation48_spill] sm:$0xff] %v20191_v53  ;;  %v12068_v17 = vrot.slane %v12054_v59, %v22017_v51  ;;  %v8559_v0 = vmul.f32 %v22084_v37, %v8524_v57  ;;  %v20197_v58 = vadd.f32 %v22149_v11, %v7294_v33  ;;  %v20208_v33 = vld [vmem:[#allocation2 + $0x120] sm:$0xff]  ;;  %v20218_v57 = vld [vmem:[#allocation2 + $0x129] sm:$0xff] }
 0x416   : > { %v10257_v1 = vcombine.high %v10249_v39, %v10249_v39  ;;  %v12080_v7 = vrot.slane %v12070_v16, %v22017_v51  ;;  %v12087_v61 = vrot.slane %v15502_v8, %v22017_v51  ;;  %v20202_v12 = vadd.f32 %v22150_v52, %v8109_v5  ;;  %v20223_v59 = vld [vmem:[#allocation2 + $0x122] sm:$0xff]  ;;  %v20240_v11 = vld [vmem:[#allocation2 + $0x12b] sm:$0xff] }
 0x417   : > { %v12069_v15 = vcombine.low %v12061_v48, %v12068_v17  ;;  %v8599_v27 = vadd.f32 %v8559_v0, %v8499_v63  ;;  %v8659_v40 = vmul.f32 %v22092_v23, %v8624_v36  ;;  %v10265_v43 = vrot.slane %v10249_v39, %v22017_v51  ;;  %v20225_v39 = vld [vmem:[#allocation2 + $0x12a] sm:$0xff] }
 0x418   : > { %v10279_v55 = vrot.slane %v10257_v1, %v22017_v51  ;;  %v12102_v46 = vcombine.low %v12080_v7, %v12087_v61  ;;  %v8759_v60 = vmul.f32 %v22099_v9, %v8724_v25  ;;  %v8859_v26 = vmul.f32 %v22100_v22, %v8824_v2  ;;  %v20238_v25 = vld [vmem:[#allocation2 + $0x123] sm:$0xff]  ;;  %v22151_v61 = vld [vmem:[#allocation6_spill] sm:$0xff] }
 0x419   : > { %15919 = vmatmul.mubr.msk.f32.gmra.mxu1 %vm4504_vm9, %v12069_v15  ;;  %v8699_v14 = vadd.f32 %v8659_v40, %v8599_v27  ;;  %v8959_v54 = vmul.f32 %v22006_v20, %v8924_v44  ;;  %v9059_v21 = vmul.f32 %v22012_v13, %v9024_v29  ;;  %v10242_v5 = vcombine.high %v9098_v19, %v9098_v19  ;;  %v20247_v40 = vld [vmem:[#allocation2 + $0x124] sm:$0xff]  ;;  %v20306_v13 = vld [vmem:[#allocation2 + $0x12e] sm:$0xff] }
 0x41a   : > { %15921 = vmatprep.mubr.msk.f32.mxu1 %vm16438_vm11, %v22109_v35  ;;  %v12072_v30 = vcombine.low %v10265_v43, %v10279_v55  ;;  %v15503_v32 = vcombine.high %v10265_v43, %v10279_v55  ;;  %v12110_v62 = vrot.slane %v12102_v46, %v22017_v51  ;;  %v6993_v8 = vmul.f32 %v22085_v24, %v20208_v33 }
 0x41b   : > { %v8799_v16 = vadd.f32 %v8759_v60, %v8699_v14  ;;  %v6994_v63 = vmul.f32 %v22085_v24, %v20210_v31  ;;  %v7117_v36 = vmul.f32 %v22088_v41, %v20212_v49  ;;  %v10256_v19 = vrot.slane %v10242_v5, %v22017_v51  ;;  %v7568_v14 = vld [vmem:[#allocation2 + $0x11d] sm:$0xff]  ;;  %v22152_v5 = vld [vmem:[#allocation81_spill] sm:$0xff] }
 0x41c   : > { %v12094_v48 = vrot.slane %v12072_v30, %v22017_v51  ;;  %v12101_v17 = vrot.slane %v15503_v32, %v22017_v51  ;;  %v7118_v0 = vmul.f32 %v22088_v41, %v20218_v57  ;;  %v7241_v2 = vmul.f32 %v22151_v61, %v20223_v59 }
 0x41d   : > { %v8899_v1 = vadd.f32 %v8859_v26, %v8799_v16  ;;  %v7157_v7 = vadd.f32 %v7117_v36, %v6993_v8  ;;  %v7242_v44 = vmul.f32 %v22151_v61, %v20225_v39  ;;  %v10258_v52 = vcombine.high %v10256_v19, %v10256_v19  ;;  %v22153_v16 = vld [vmem:[#allocation82_spill] sm:$0xff] }
 0x41e   : > { %v12103_v29 = vcombine.low %v12094_v48, %v12101_v17  ;;  %v10272_v15 = vrot.slane %v10256_v19, %v22017_v51  ;;  %v7158_v27 = vadd.f32 %v7118_v0, %v6994_v63  ;;  %v7365_v46 = vmul.f32 %v17492_v6, %v20238_v25  ;;  %v22154_v63 = vld [vmem:[#allocation90_spill] sm:$0xff]  ;;  %v20265_v0 = vld [vmem:[#allocation2 + $0x125] sm:$0xff] }
 0x41f   : > { %v8999_v43 = vadd.f32 %v8959_v54, %v8899_v1  ;;  %v7281_v55 = vadd.f32 %v7241_v2, %v7157_v7  ;;  %v7366_v60 = vmul.f32 %v17492_v6, %v20240_v11  ;;  %v10286_v30 = vrot.slane %v10258_v52, %v22017_v51  ;;  %v7582_v54 = vld [vmem:[#allocation2 + $0x1ad] sm:$0x1f] }
 0x420   : > { %v12117_v26 = vrot.slane %v12103_v29, %v22017_v51  ;;  %v7282_v32 = vadd.f32 %v7242_v44, %v7158_v27  ;;  %v7404_v8 = vadd.f32 %v22153_v16, %v22152_v5  ;;  %v20259_v36 = vadd.f32 %v22154_v63, %v20182_v18  ;;  %v7706_v1 = vld [vmem:[#allocation2 + $0x1ae] sm:$0x1f]  ;;  %v22156_v27 = vld [vmem:[#allocation83_spill] sm:$0xff]  ;;  %v22157_v16 = vld [vmem:[#allocation22_spill] sm:$0xff] }
 0x421   : > { %v20261_v48 = vadd.f32 %v9059_v21, %v8999_v43  ;;  %v7405_v17 = vadd.f32 %v7365_v46, %v7281_v55  ;;  %v7489_v19 = vmul.f32 %v22130_v38, %v20247_v40  ;;  %v12119_v2 = vcombine.low %v10272_v15, %v10286_v30  ;;  %v20267_v52 = vld [vmem:[#allocation2 + $0x12c] sm:$0xff]  ;;  %v7692_v55 = vld [vmem:[#allocation2 + $0x11e] sm:$0xff] }
 0x422   : > { %22155 = vst [vmem:[#allocation37_spill] sm:$0xff] %v20259_v36  ;;  %v12118_v7 = vcombine.low %v12110_v62, %v12117_v26  ;;  %v15504_v44 = vcombine.high %v10272_v15, %v10286_v30  ;;  %v7406_v29 = vadd.f32 %v7366_v60, %v7282_v32  ;;  %v7528_v5 = vadd.f32 %v22156_v27, %v7404_v8  ;;  %v20273_v46 = vld [vmem:[#allocation2 + $0x126] sm:$0xff]  ;;  %v22159_v62 = vld [vmem:[#allocation29_spill] sm:$0xff] }
 0x423   : > { %v10298_v18 = vrot.slane %v20261_v48, %v22017_v51  ;;  %v7529_v21 = vadd.f32 %v7489_v19, %v7405_v17  ;;  %v7612_v43 = vmul.f32 %v22133_v47, %v7568_v14  ;;  %v20277_v63 = vadd.f32 %v22157_v16, %v20202_v12  ;;  %v7816_v8 = vld [vmem:[#allocation2 + $0x11f] sm:$0xff]  ;;  %v20290_v17 = vld [vmem:[#allocation2 + $0x127] sm:$0xff]  ;;  %v7830_v36 = vld [vmem:[#allocation2 + $0x1af] sm:$0x1f] }
 0x424   : > { %v7542_v15 = vadd.f32 %v22159_v62, %v20197_v58  ;;  %v7626_v60 = vmul.f32 %v22133_v47, %v7582_v54  ;;  %15922 = vmatmul.mubr.msk.f32.gmra.mxu1 %vm4504_vm9, %v12118_v7  ;;  %v7613_v26 = vmul.f32 %v22133_v47, %v20265_v0  ;;  %v7750_v30 = vmul.f32 %v22101_v45, %v7706_v1  ;;  %v20293_v54 = vld [vmem:[#allocation2 + $0x12d] sm:$0xff] }
 0x425   : > { %22158 = vst [vmem:[#allocation30_spill] sm:$0xff] %v20277_v63  ;;  %15924 = vmatprep.mubr.msk.f32.mxu1 %vm16438_vm11, %v22109_v35  ;;  %v10306_v14 = vcombine.high %v10298_v18, %v10298_v18  ;;  %v7490_v12 = vmul.f32 %v22130_v38, %v20267_v52  ;;  %v7652_v32 = vadd.f32 %v7612_v43, %v7528_v5 }
 0x426   : > { %v12129_v58 = vrot.slane %v12119_v2, %v22017_v51  ;;  %v7653_v19 = vadd.f32 %v7613_v26, %v7529_v21  ;;  %v7736_v7 = vmul.f32 %v22101_v45, %v7692_v55  ;;  %v7737_v1 = vmul.f32 %v22101_v45, %v20273_v46 }
 0x427   : > { %v10313_v27 = vrot.slane %v10298_v18, %v22017_v51  ;;  %v10327_v16 = vrot.slane %v10306_v14, %v22017_v51  ;;  %v12136_v62 = vrot.slane %v15504_v44, %v22017_v51  ;;  %v7530_v5 = vadd.f32 %v7490_v12, %v7406_v29  ;;  %v7930_v18 = vld [vmem:[#allocation2 + $0x1b0] sm:$0x1f] }
 0x428   : > { %v7776_v43 = vadd.f32 %v7736_v7, %v7652_v32  ;;  %v7777_v53 = vadd.f32 %v7737_v1, %v7653_v19  ;;  %v7860_v50 = vmul.f32 %v21932_v4, %v7816_v8  ;;  %v7861_v2 = vmul.f32 %v21932_v4, %v20290_v17 }
 0x429   : > { %v7666_v21 = vadd.f32 %v7626_v60, %v7542_v15  ;;  %v12121_v26 = vcombine.low %v10313_v27, %v10327_v16  ;;  %v15505_v55 = vcombine.high %v10313_v27, %v10327_v16  ;;  %v7614_v63 = vmul.f32 %v22133_v47, %v20293_v54 }
 0x42a   : > { %v7900_v14 = vadd.f32 %v7860_v50, %v7776_v43  ;;  %v7901_v44 = vadd.f32 %v7861_v2, %v7777_v53  ;;  %v7960_v29 = vmul.f32 %v17534_v10, %v20208_v33  ;;  %v7961_v12 = vmul.f32 %v17534_v10, %v20210_v31 }
 0x42b   : > { %v12143_v32 = vrot.slane %v12121_v26, %v22017_v51  ;;  %v12150_v15 = vrot.slane %v15505_v55, %v22017_v51  ;;  %v12151_v60 = vcombine.low %v12129_v58, %v12136_v62  ;;  %v7654_v8 = vadd.f32 %v7614_v63, %v7530_v5  ;;  %v20328_v55 = vld [vmem:[#allocation2 + $0x131] sm:$0xff] }
 0x42c   : > { %v8000_v19 = vadd.f32 %v7960_v29, %v7900_v14  ;;  %v8001_v7 = vadd.f32 %v7961_v12, %v7901_v44  ;;  %v8060_v1 = vmul.f32 %v17538_v42, %v20212_v49  ;;  %v8061_v50 = vmul.f32 %v17538_v42, %v20218_v57  ;;  %v6951_v49 = vld [vmem:[#allocation2 + $0x130] sm:$0xff] }
 0x42d   : > { %v7874_v53 = vmul.f32 %v21932_v4, %v7830_v36  ;;  %v7974_v33 = vmul.f32 %v17534_v10, %v7930_v18  ;;  %v12152_v27 = vcombine.low %v12143_v32, %v12150_v15  ;;  %v7738_v16 = vmul.f32 %v22101_v45, %v20306_v13  ;;  %v20330_v18 = vld [vmem:[#allocation2 + $0x132] sm:$0xff] }
 0x42e   : > { %v8100_v43 = vadd.f32 %v8060_v1, %v8000_v19  ;;  %v8101_v2 = vadd.f32 %v8061_v50, %v8001_v7  ;;  %v8160_v63 = vmul.f32 %v21937_v28, %v20223_v59  ;;  %v8161_v58 = vmul.f32 %v21937_v28, %v20225_v39  ;;  %v8030_v14 = vld [vmem:[#allocation2 + $0x1b1] sm:$0x1f] }
 0x42f   : > { %v7790_v62 = vadd.f32 %v7750_v30, %v7666_v21  ;;  %v12159_v5 = vrot.slane %v12151_v60, %v22017_v51  ;;  %v12166_v36 = vrot.slane %v12152_v27, %v22017_v51  ;;  %v7778_v26 = vadd.f32 %v7738_v16, %v7654_v8  ;;  %v7818_v32 = vld [vmem:[#allocation2 + $0x12f] sm:$0xff] }
 0x430   : > { %v8200_v44 = vadd.f32 %v8160_v63, %v8100_v43  ;;  %v8201_v29 = vadd.f32 %v8161_v58, %v8101_v2  ;;  %v8260_v59 = vmul.f32 %v21938_v3, %v20238_v25  ;;  %v8261_v12 = vmul.f32 %v21938_v3, %v20240_v11  ;;  %v7323_v27 = vld [vmem:[#allocation2 + $0x133] sm:$0xff] }
 0x431   : > { %v12167_v30 = vcombine.low %v12159_v5, %v12166_v36  ;;  %v8360_v21 = vmul.f32 %v21995_v56, %v20247_v40  ;;  %v8361_v15 = vmul.f32 %v21995_v56, %v20267_v52  ;;  %v6995_v60 = vmul.f32 %v22085_v24, %v6951_v49 }
 0x432   : > { %v8300_v8 = vadd.f32 %v8260_v59, %v8200_v44  ;;  %v8301_v19 = vadd.f32 %v8261_v12, %v8201_v29  ;;  %v7119_v7 = vmul.f32 %v22088_v41, %v20328_v55  ;;  %v7243_v25 = vmul.f32 %v22151_v61, %v20330_v18 }
 0x433   : > { %v7914_v1 = vadd.f32 %v7874_v53, %v7790_v62  ;;  %v8074_v50 = vmul.f32 %v17538_v42, %v8030_v14  ;;  %15925 = vmatmul.mubr.msk.f32.gmra.mxu1 %vm4504_vm9, %v12167_v30  ;;  %v8460_v40 = vmul.f32 %v21996_v34, %v20265_v0  ;;  %v7862_v52 = vmul.f32 %v21932_v4, %v7818_v32  ;;  %v7447_v53 = vld [vmem:[#allocation2 + $0x134] sm:$0xff] }
 0x434   : > { %15927 = vmatprep.mubr.msk.f32.mxu1 %vm16438_vm11, %v22109_v35  ;;  %v8400_v16 = vadd.f32 %v8360_v21, %v8300_v8  ;;  %v8401_v43 = vadd.f32 %v8361_v15, %v8301_v19  ;;  %v8461_v2 = vmul.f32 %v21996_v34, %v20293_v54  ;;  %v7159_v63 = vadd.f32 %v7119_v7, %v6995_v60 }
 0x435   : > { %v8560_v58 = vmul.f32 %v22084_v37, %v20273_v46  ;;  %v8660_v62 = vmul.f32 %v22092_v23, %v20290_v17  ;;  %v7902_v0 = vadd.f32 %v7862_v52, %v7778_v26  ;;  %v7962_v5 = vmul.f32 %v17534_v10, %v6951_v49 }
 0x436   : > { %v8500_v36 = vadd.f32 %v8460_v40, %v8400_v16  ;;  %v8501_v14 = vadd.f32 %v8461_v2, %v8401_v43  ;;  %v7283_v44 = vadd.f32 %v7243_v25, %v7159_v63  ;;  %v7367_v29 = vmul.f32 %v17492_v6, %v7323_v27  ;;  %v7819_v2 = vld [vmem:[#allocation2 + $0x137] sm:$0xff] }
 0x437   : > { %v8002_v59 = vadd.f32 %v7962_v5, %v7902_v0  ;;  %v8062_v54 = vmul.f32 %v17538_v42, %v20328_v55  ;;  %v8162_v12 = vmul.f32 %v21937_v28, %v20330_v18  ;;  %v8561_v46 = vmul.f32 %v22084_v37, %v20306_v13  ;;  %v22160_v63 = vld [vmem:[#allocation41_spill] sm:$0xff]  ;;  %v7925_v5 = vld [vmem:[#allocation2 + $0x138] sm:$0xff] }
 0x438   : > { %v8600_v30 = vadd.f32 %v8560_v58, %v8500_v36  ;;  %v10291_v17 = vcombine.high %v20261_v48, %v20261_v48  ;;  %v7407_v26 = vadd.f32 %v7367_v29, %v7283_v44  ;;  %v7491_v21 = vmul.f32 %v22130_v38, %v7447_v53 }
 0x439   : > { %v8014_v15 = vadd.f32 %v7974_v33, %v7914_v1  ;;  %v8102_v60 = vadd.f32 %v8062_v54, %v8002_v59  ;;  %v8601_v8 = vadd.f32 %v8561_v46, %v8501_v14  ;;  %v8661_v19 = vmul.f32 %v22092_v23, %v7818_v32  ;;  %v22161_v14 = vld [vmem:[#allocation57_spill] sm:$0xff] }
 0x43a   : > { %v8700_v7 = vadd.f32 %v8660_v62, %v8600_v30  ;;  %v8760_v25 = vmul.f32 %v22099_v9, %v20210_v31  ;;  %v8860_v40 = vmul.f32 %v22100_v22, %v20218_v57  ;;  %v7531_v13 = vadd.f32 %v7491_v21, %v7407_v26  ;;  %v20393_v30 = vld [vmem:[#allocation2 + $0x13a] sm:$0xff] }
 0x43b   : > { %v8202_v52 = vadd.f32 %v8162_v12, %v8102_v60  ;;  %v8262_v16 = vmul.f32 %v21938_v3, %v7323_v27  ;;  %v8701_v48 = vadd.f32 %v8661_v19, %v8601_v8  ;;  %v8761_v43 = vmul.f32 %v22099_v9, %v6951_v49  ;;  %v20397_v21 = vld [vmem:[#allocation2 + $0x13b] sm:$0xff] }
 0x43c   : > { %v8800_v33 = vadd.f32 %v8760_v25, %v8700_v7  ;;  %v10305_v1 = vrot.slane %v10291_v17, %v22017_v51  ;;  %v7655_v32 = vadd.f32 %v22160_v63, %v7531_v13  ;;  %v8362_v58 = vmul.f32 %v21995_v56, %v7447_v53  ;;  %v22162_v53 = vld [vmem:[#allocation59_spill] sm:$0xff]  ;;  %v22163_v8 = vld [vmem:[#allocation86_spill] sm:$0xff] }
 0x43d   : > { %v8302_v62 = vadd.f32 %v8262_v16, %v8202_v52  ;;  %v8801_v31 = vadd.f32 %v8761_v43, %v8701_v48  ;;  %v8861_v57 = vmul.f32 %v22100_v22, %v20328_v55  ;;  %v8961_v0 = vmul.f32 %v22006_v20, %v20330_v18  ;;  %v20391_v55 = vld [vmem:[#allocation2 + $0x139] sm:$0xff] }
 0x43e   : > { %v8900_v36 = vadd.f32 %v8860_v40, %v8800_v33  ;;  %v8960_v49 = vmul.f32 %v22006_v20, %v20225_v39  ;;  %v7779_v44 = vadd.f32 %v22161_v14, %v7655_v32  ;;  %v7863_v29 = vmul.f32 %v21932_v4, %v7819_v2  ;;  %v16423_v19 = vld [vmem:[#allocation2 + $0x136] sm:$0xff] }
 0x43f   : > { %v20387_v59 = vadd.f32 %v8074_v50, %v8014_v15  ;;  %v9060_v54 = vmul.f32 %v22162_v53, %v20240_v11  ;;  %v8402_v12 = vadd.f32 %v8362_v58, %v8302_v62  ;;  %v8901_v46 = vadd.f32 %v8861_v57, %v8801_v31  ;;  %v8325_v15 = vld [vmem:[#allocation2 + $0x13c] sm:$0xff] }
 0x440   : > { %v9000_v18 = vadd.f32 %v8960_v49, %v8900_v36  ;;  %v10320_v17 = vrot.slane %v10305_v1, %v22017_v51  ;;  %v7903_v26 = vadd.f32 %v7863_v29, %v7779_v44  ;;  %v7963_v39 = vmul.f32 %v17534_v10, %v7925_v5 }
 0x441   : > { %v9001_v60 = vadd.f32 %v8961_v0, %v8901_v46  ;;  %v9061_v50 = vmul.f32 %v22162_v53, %v7323_v27  ;;  %v8502_v11 = vadd.f32 %v22163_v8, %v8402_v12  ;;  %v8562_v7 = vmul.f32 %v16423_v19, %v22084_v37 }
 0x442   : > { %v9100_v25 = vadd.f32 %v9060_v54, %v9000_v18  ;;  %v8003_v40 = vadd.f32 %v7963_v39, %v7903_v26  ;;  %v8063_v13 = vmul.f32 %v17538_v42, %v20391_v55  ;;  %v8163_v52 = vmul.f32 %v21937_v28, %v20393_v30 }
 0x443   : > { %v9101_v16 = vadd.f32 %v9061_v50, %v9001_v60  ;;  %v8263_v48 = vmul.f32 %v21938_v3, %v20397_v21  ;;  %v8602_v43 = vadd.f32 %v8562_v7, %v8502_v11  ;;  %v8662_v27 = vmul.f32 %v22092_v23, %v7819_v2 }
 0x444   : > { %v10330_v33 = vcombine.high %v9100_v25, %v9100_v25  ;;  %v10337_v1 = vrot.slane %v9100_v25, %v22017_v51  ;;  %v8103_v63 = vadd.f32 %v8063_v13, %v8003_v40  ;;  %v8363_v32 = vmul.f32 %v21995_v56, %v8325_v15 }
 0x445   : > { %v10379_v58 = vcombine.high %v9101_v16, %v9101_v16  ;;  %v10386_v62 = vrot.slane %v9101_v16, %v22017_v51  ;;  %v8702_v31 = vadd.f32 %v8662_v27, %v8602_v43  ;;  %v8762_v57 = vmul.f32 %v22099_v9, %v7925_v5 }
 0x446   : > { %v10344_v0 = vrot.slane %v10330_v33, %v22017_v51  ;;  %v10345_v36 = vcombine.high %v10337_v1, %v10337_v1  ;;  %v10353_v49 = vrot.slane %v10337_v1, %v22017_v51  ;;  %v8203_v14 = vadd.f32 %v8163_v52, %v8103_v63 }
 0x447   : > { %v10393_v2 = vrot.slane %v10379_v58, %v22017_v51  ;;  %v10394_v44 = vcombine.high %v10386_v62, %v10386_v62  ;;  %v10402_v29 = vrot.slane %v10386_v62, %v22017_v51  ;;  %v8802_v54 = vadd.f32 %v8762_v57, %v8702_v31  ;;  %v8425_v58 = vld [vmem:[#allocation2 + $0x13d] sm:$0xff] }
 0x448   : > { %v10346_v12 = vcombine.high %v10344_v0, %v10344_v0  ;;  %v10360_v46 = vrot.slane %v10344_v0, %v22017_v51  ;;  %v10367_v18 = vrot.slane %v10345_v36, %v22017_v51  ;;  %v10375_v26 = vcombine.high %v10353_v49, %v10353_v49  ;;  %v8130_v36 = vld [vmem:[#allocation2 + $0x1b2] sm:$0x1f] }
 0x449   : > { %v12168_v39 = vcombine.low %v10320_v17, %v10353_v49  ;;  %v10395_v5 = vcombine.high %v10393_v2, %v10393_v2  ;;  %v10409_v60 = vrot.slane %v10393_v2, %v22017_v51  ;;  %v10416_v50 = vrot.slane %v10394_v44, %v22017_v51 }
 0x44a   : > { %v10374_v15 = vrot.slane %v10346_v12, %v22017_v51  ;;  %v10376_v8 = vcombine.high %v10360_v46, %v10360_v46  ;;  %v10377_v11 = vcombine.high %v10367_v18, %v10367_v18  ;;  %v12169_v19 = vcombine.low %v10367_v18, %v10375_v26 }
 0x44b   : > { %v12178_v7 = vrot.slane %v12168_v39, %v22017_v51  ;;  %v20424_v25 = vrot.slane %v10395_v5, %v22017_v51  ;;  %v10424_v40 = vcombine.high %v10402_v29, %v10402_v29  ;;  %v10425_v13 = vcombine.high %v10409_v60, %v10409_v60  ;;  %v8230_v39 = vld [vmem:[#allocation2 + $0x1b3] sm:$0x1f] }
 0x44c   : > { %v10378_v52 = vcombine.high %v10374_v15, %v10374_v15  ;;  %v12170_v16 = vcombine.low %v10377_v11, %v10360_v46  ;;  %v12171_v17 = vcombine.low %v10374_v15, %v10376_v8  ;;  %v12185_v43 = vrot.slane %v12169_v19, %v22017_v51  ;;  %v8525_v46 = vld [vmem:[#allocation2 + $0x13e] sm:$0xff]  ;;  %v8330_v5 = vld [vmem:[#allocation2 + $0x1b4] sm:$0x1f] }
 0x44d   : > { %v10426_v27 = vcombine.high %v10416_v50, %v10416_v50  ;;  %v12218_v33 = vcombine.low %v10416_v50, %v10424_v40  ;;  %v12220_v1 = vcombine.low %v20424_v25, %v10425_v13  ;;  %v8303_v63 = vadd.f32 %v8263_v48, %v8203_v14 }
 0x44e   : > { %v12192_v62 = vrot.slane %v12170_v16, %v22017_v51  ;;  %v12199_v31 = vrot.slane %v12171_v17, %v22017_v51  ;;  %v12200_v57 = vcombine.low %v12178_v7, %v12185_v43  ;;  %v12217_v0 = vcombine.low %v10378_v52, %v10402_v29  ;;  %v8625_v7 = vld [vmem:[#allocation2 + $0x13f] sm:$0xff] }
 0x44f   : > { %v12219_v49 = vcombine.low %v10426_v27, %v10409_v60  ;;  %v12234_v2 = vrot.slane %v12218_v33, %v22017_v51  ;;  %v12248_v44 = vrot.slane %v12220_v1, %v22017_v51  ;;  %v8862_v12 = vmul.f32 %v22100_v22, %v20391_v55  ;;  %v8725_v16 = vld [vmem:[#allocation2 + $0x140] sm:$0xff]  ;;  %v20454_v33 = vld [vmem:[#allocation2 + $0x158] sm:$0xff] }
 0x450   : > { %v12201_v18 = vcombine.low %v12192_v62, %v12199_v31  ;;  %v12208_v48 = vrot.slane %v12200_v57, %v22017_v51  ;;  %v12227_v14 = vrot.slane %v12217_v0, %v22017_v51  ;;  %v8403_v26 = vadd.f32 %v8363_v32, %v8303_v63  ;;  %v8825_v17 = vld [vmem:[#allocation2 + $0x141] sm:$0xff]  ;;  %v20460_v31 = vld [vmem:[#allocation2 + $0x159] sm:$0xff] }
 0x451   : > { %v12241_v29 = vrot.slane %v12219_v49, %v22017_v51  ;;  %v8463_v60 = vmul.f32 %v21996_v34, %v8425_v58  ;;  %v8902_v50 = vadd.f32 %v8862_v12, %v8802_v54  ;;  %v8962_v15 = vmul.f32 %v22006_v20, %v20393_v30  ;;  %v20458_v62 = vld [vmem:[#allocation2 + $0x160] sm:$0xff] }
 0x452   : > { %v8174_v8 = vmul.f32 %v21937_v28, %v8130_v36  ;;  %v12215_v55 = vrot.slane %v12201_v18, %v22017_v51  ;;  %v12249_v11 = vcombine.low %v12227_v14, %v12234_v2  ;;  %v9062_v19 = vmul.f32 %v22162_v53, %v20397_v21 }
 0x453   : > { %v12250_v32 = vcombine.low %v12241_v29, %v12248_v44  ;;  %v8503_v40 = vadd.f32 %v8463_v60, %v8403_v26  ;;  %v9002_v13 = vadd.f32 %v8962_v15, %v8902_v50  ;;  %v8563_v52 = vmul.f32 %v22084_v37, %v8525_v46  ;;  %v8925_v46 = vld [vmem:[#allocation2 + $0x142] sm:$0xff] }
 0x454   : > { %v20446_v54 = vadd.f32 %v8174_v8, %v20387_v59  ;;  %v20449_v30 = vmul.f32 %v21938_v3, %v8230_v39  ;;  %v20452_v43 = vmul.f32 %v21995_v56, %v8330_v5  ;;  %v12216_v27 = vcombine.low %v12208_v48, %v12215_v55  ;;  %v20462_v59 = vld [vmem:[#allocation2 + $0x161] sm:$0xff] }
 0x455   : > { %v12264_v21 = vrot.slane %v12250_v32, %v22017_v51  ;;  %v9102_v1 = vadd.f32 %v9062_v19, %v9002_v13  ;;  %v8603_v63 = vadd.f32 %v8563_v52, %v8503_v40  ;;  %v8663_v58 = vmul.f32 %v22092_v23, %v8625_v7  ;;  %v20475_v48 = vld [vmem:[#allocation2 + $0x15a] sm:$0xff]  ;;  %v20485_v15 = vld [vmem:[#allocation2 + $0x162] sm:$0xff] }
 0x456   : > { %22164 = vst [vmem:[#allocation25_spill] sm:$0xff] %v20452_v43  ;;  %15928 = vmatmul.mubr.msk.f32.gmra.mxu1 %vm4504_vm9, %v12216_v27  ;;  %v12257_v57 = vrot.slane %v12249_v11, %v22017_v51  ;;  %v10427_v0 = vcombine.high %v20424_v25, %v20424_v25  ;;  %v8763_v36 = vmul.f32 %v22099_v9, %v8725_v16  ;;  %v9025_v52 = vld [vmem:[#allocation2 + $0x143] sm:$0xff]  ;;  %v20495_v16 = vld [vmem:[#allocation2 + $0x15b] sm:$0xff]  ;;  %v22167_v43 = vld [vmem:[#allocation33_spill] sm:$0xff] }
 0x457   : > { %v8863_v49 = vmul.f32 %v22100_v22, %v8825_v17  ;;  %15930 = vmatprep.mubr.msk.f32.mxu1 %vm16438_vm11, %v22109_v35  ;;  %v10428_v2 = vcombine.high %v9102_v1, %v9102_v1  ;;  %v10435_v44 = vrot.slane %v9102_v1, %v22017_v51  ;;  %v8703_v12 = vadd.f32 %v8663_v58, %v8603_v63 }
 0x458   : > { %v6998_v18 = vmul.f32 %v22085_v24, %v20454_v33  ;;  %v12265_v14 = vcombine.low %v12257_v57, %v12264_v21  ;;  %v6999_v25 = vmul.f32 %v22085_v24, %v20458_v62  ;;  %v7122_v26 = vmul.f32 %v22088_v41, %v20460_v31 }
 0x459   : > { %v7123_v39 = vmul.f32 %v22088_v41, %v20462_v59  ;;  %v10442_v5 = vrot.slane %v10428_v2, %v22017_v51  ;;  %v10443_v29 = vcombine.high %v10435_v44, %v10435_v44  ;;  %v10451_v60 = vrot.slane %v10435_v44, %v22017_v51  ;;  %v20500_v2 = vld [vmem:[#allocation2 + $0x163] sm:$0xff] }
 0x45a   : > { %v8803_v50 = vadd.f32 %v8763_v36, %v8703_v12  ;;  %15931 = vmatmul.mubr.msk.f32.gmra.mxu1 %vm4504_vm9, %v12265_v14  ;;  %v8963_v8 = vmul.f32 %v22006_v20, %v8925_v46  ;;  %v7162_v55 = vadd.f32 %v7122_v26, %v6998_v18  ;;  %v7246_v19 = vmul.f32 %v22151_v61, %v20475_v48  ;;  %v20502_v44 = vld [vmem:[#allocation2 + $0x15c] sm:$0xff] }
 0x45b   : > { %v7163_v11 = vadd.f32 %v7123_v39, %v6999_v25  ;;  %15933 = vmatprep.mubr.msk.f32.mxu1 %vm16438_vm11, %v22109_v35  ;;  %v10444_v7 = vcombine.high %v10442_v5, %v10442_v5  ;;  %v10458_v32 = vrot.slane %v10442_v5, %v22017_v51  ;;  %v10465_v40 = vrot.slane %v10443_v29, %v22017_v51 }
 0x45c   : > { %v10473_v13 = vcombine.high %v10451_v60, %v10451_v60  ;;  %v12266_v17 = vcombine.low %v10427_v0, %v10451_v60  ;;  %v8903_v27 = vadd.f32 %v8863_v49, %v8803_v50  ;;  %v7247_v21 = vmul.f32 %v22151_v61, %v20485_v15  ;;  %v20511_v60 = vld [vmem:[#allocation2 + $0x164] sm:$0xff] }
 0x45d   : > { %v7286_v1 = vadd.f32 %v7246_v19, %v7162_v55  ;;  %v10472_v63 = vrot.slane %v10444_v7, %v22017_v51  ;;  %v10474_v58 = vcombine.high %v10458_v32, %v10458_v32  ;;  %v10475_v57 = vcombine.high %v10465_v40, %v10465_v40 }
 0x45e   : > { %v12267_v36 = vcombine.low %v10465_v40, %v10473_v13  ;;  %v9003_v12 = vadd.f32 %v8963_v8, %v8903_v27  ;;  %v9063_v46 = vmul.f32 %v22162_v53, %v9025_v52  ;;  %v7287_v18 = vadd.f32 %v7247_v21, %v7163_v11  ;;  %v20515_v8 = vld [vmem:[#allocation2 + $0x15d] sm:$0xff] }
 0x45f   : > { %v7370_v0 = vmul.f32 %v17492_v6, %v20495_v16  ;;  %v12268_v49 = vcombine.low %v10475_v57, %v10458_v32  ;;  %v12269_v14 = vcombine.low %v10472_v63, %v10474_v58  ;;  %v12276_v25 = vrot.slane %v12266_v17, %v22017_v51  ;;  %v20519_v32 = vld [vmem:[#allocation2 + $0x165] sm:$0xff] }
 0x460   : > { %v12283_v26 = vrot.slane %v12267_v36, %v22017_v51  ;;  %v9103_v39 = vadd.f32 %v9063_v46, %v9003_v12  ;;  %v7371_v5 = vmul.f32 %v17492_v6, %v20500_v2  ;;  %v7494_v50 = vmul.f32 %v22130_v38, %v20502_v44  ;;  %v20531_v46 = vld [vmem:[#allocation2 + $0x15e] sm:$0xff] }
 0x461   : > { %v7410_v29 = vadd.f32 %v7370_v0, %v7286_v1  ;;  %v12290_v55 = vrot.slane %v12268_v49, %v22017_v51  ;;  %v12297_v11 = vrot.slane %v12269_v14, %v22017_v51  ;;  %v10476_v7 = vcombine.high %v10472_v63, %v10472_v63  ;;  %v22165_v49 = vld [vmem:[#allocation34_spill] sm:$0xff]  ;;  %v22166_v14 = vld [vmem:[#allocation31_spill] sm:$0xff] }
 0x462   : > { %v12298_v19 = vcombine.low %v12276_v25, %v12283_v26  ;;  %v10477_v40 = vcombine.high %v9103_v39, %v9103_v39  ;;  %v10484_v13 = vrot.slane %v9103_v39, %v22017_v51  ;;  %v7411_v52 = vadd.f32 %v7371_v5, %v7287_v18  ;;  %v7821_v39 = vld [vmem:[#allocation2 + $0x157] sm:$0xff] }
 0x463   : > { %v7534_v17 = vadd.f32 %v7494_v50, %v7410_v29  ;;  %v12299_v27 = vcombine.low %v12290_v55, %v12297_v11  ;;  %v7495_v1 = vmul.f32 %v22130_v38, %v20511_v60  ;;  %v7618_v58 = vmul.f32 %v22133_v47, %v20515_v8  ;;  %v7822_v11 = vld [vmem:[#allocation2 + $0x15f] sm:$0xff] }
 0x464   : > { %v12306_v21 = vrot.slane %v12298_v19, %v22017_v51  ;;  %v10491_v57 = vrot.slane %v10477_v40, %v22017_v51  ;;  %v10492_v36 = vcombine.high %v10484_v13, %v10484_v13  ;;  %v10500_v63 = vrot.slane %v10484_v13, %v22017_v51 }
 0x465   : > { %v7619_v12 = vmul.f32 %v22133_v47, %v20519_v32  ;;  %v12313_v18 = vrot.slane %v12299_v27, %v22017_v51  ;;  %v7535_v0 = vadd.f32 %v7495_v1, %v7411_v52  ;;  %v7657_v25 = vadd.f32 %v22166_v14, %v22165_v49 }
 0x466   : > { %v7658_v26 = vadd.f32 %v7618_v58, %v7534_v17  ;;  %v10493_v5 = vcombine.high %v10491_v57, %v10491_v57  ;;  %v10507_v29 = vrot.slane %v10491_v57, %v22017_v51  ;;  %v10514_v50 = vrot.slane %v10492_v36, %v22017_v51 }
 0x467   : > { %v10522_v55 = vcombine.high %v10500_v63, %v10500_v63  ;;  %v12314_v19 = vcombine.low %v12306_v21, %v12313_v18  ;;  %v12315_v40 = vcombine.low %v10476_v7, %v10500_v63  ;;  %v7742_v13 = vmul.f32 %v22101_v45, %v20531_v46 }
 0x468   : > { %v7781_v27 = vadd.f32 %v22167_v43, %v7657_v25  ;;  %v20542_v52 = vrot.slane %v10493_v5, %v22017_v51  ;;  %v10523_v1 = vcombine.high %v10507_v29, %v10507_v29  ;;  %v10524_v17 = vcombine.high %v10514_v50, %v10514_v50 }
 0x469   : > { %v12316_v58 = vcombine.low %v10514_v50, %v10522_v55  ;;  %15934 = vmatmul.mubr.msk.f32.gmra.mxu1 %vm4504_vm9, %v12314_v19  ;;  %v20545_v57 = vadd.f32 %v7619_v12, %v7535_v0  ;;  %v7782_v36 = vadd.f32 %v7742_v13, %v7658_v26  ;;  %v7865_v49 = vmul.f32 %v21932_v4, %v7821_v39 }
 0x46a   : > { %v7866_v7 = vmul.f32 %v21932_v4, %v7822_v11  ;;  %15936 = vmatprep.mubr.msk.f32.mxu1 %vm16438_vm11, %v22109_v35  ;;  %v12317_v21 = vcombine.low %v10524_v17, %v10507_v29  ;;  %v12318_v43 = vcombine.low %v20542_v52, %v10523_v1  ;;  %v12325_v63 = vrot.slane %v12315_v40, %v22017_v51 }
 0x46b   : > { %v12332_v18 = vrot.slane %v12316_v58, %v22017_v51  ;;  %v7905_v14 = vadd.f32 %v7865_v49, %v7781_v27  ;;  %v7965_v12 = vmul.f32 %v17534_v10, %v20454_v33  ;;  %v7966_v0 = vmul.f32 %v17534_v10, %v20458_v62  ;;  %v8426_v33 = vld [vmem:[#allocation2 + $0x145] sm:$0x1f] }
 0x46c   : > { %v7906_v25 = vadd.f32 %v7866_v7, %v7782_v36  ;;  %v12339_v26 = vrot.slane %v12317_v21, %v22017_v51  ;;  %v12346_v39 = vrot.slane %v12318_v43, %v22017_v51  ;;  %v8065_v29 = vmul.f32 %v17538_v42, %v20460_v31  ;;  %v8526_v58 = vld [vmem:[#allocation2 + $0x146] sm:$0x1f] }
 0x46d   : > { %v12347_v5 = vcombine.low %v12325_v63, %v12332_v18  ;;  %v8005_v50 = vadd.f32 %v7965_v12, %v7905_v14  ;;  %v8066_v19 = vmul.f32 %v17538_v42, %v20462_v59  ;;  %v8165_v40 = vmul.f32 %v21937_v28, %v20475_v48  ;;  %v8626_v48 = vld [vmem:[#allocation2 + $0x147] sm:$0x1f]  ;;  %v22168_v63 = vld [vmem:[#allocation37_spill] sm:$0xff] }
 0x46e   : > { %v8006_v55 = vadd.f32 %v7966_v0, %v7906_v25  ;;  %v12348_v13 = vcombine.low %v12339_v26, %v12346_v39  ;;  %v8166_v1 = vmul.f32 %v21937_v28, %v20485_v15  ;;  %v8265_v17 = vmul.f32 %v21938_v3, %v20495_v16  ;;  %v22169_v18 = vld [vmem:[#allocation91_spill] sm:$0xff]  ;;  %v8726_v25 = vld [vmem:[#allocation2 + $0x148] sm:$0x1f] }
 0x46f   : > { %v12355_v27 = vrot.slane %v12347_v5, %v22017_v51  ;;  %v8105_v31 = vadd.f32 %v8065_v29, %v8005_v50  ;;  %v8266_v49 = vmul.f32 %v21938_v3, %v20500_v2  ;;  %v8365_v7 = vmul.f32 %v21995_v56, %v20502_v44  ;;  %v8826_v44 = vld [vmem:[#allocation2 + $0x149] sm:$0x1f] }
 0x470   : > { %v8106_v36 = vadd.f32 %v8066_v19, %v8006_v55  ;;  %v12362_v21 = vrot.slane %v12348_v13, %v22017_v51  ;;  %v8366_v43 = vmul.f32 %v21995_v56, %v20511_v60  ;;  %v8404_v14 = vadd.f32 %v22169_v18, %v22168_v63  ;;  %v8926_v55 = vld [vmem:[#allocation2 + $0x14a] sm:$0x1f] }
 0x471   : > { %v8464_v16 = vmul.f32 %v21996_v34, %v8426_v33  ;;  %v8205_v12 = vadd.f32 %v8165_v40, %v8105_v31  ;;  %v8465_v26 = vmul.f32 %v21996_v34, %v20515_v8  ;;  %v8564_v39 = vmul.f32 %v22084_v37, %v8526_v58  ;;  %v6956_v31 = vld [vmem:[#allocation2 + $0x168] sm:$0xff] }
 0x472   : > { %v8206_v0 = vadd.f32 %v8166_v1, %v8106_v36  ;;  %v12363_v5 = vcombine.low %v12355_v27, %v12362_v21  ;;  %v8565_v50 = vmul.f32 %v22084_v37, %v20531_v46  ;;  %v8664_v60 = vmul.f32 %v22092_v23, %v8626_v48  ;;  %v9026_v1 = vld [vmem:[#allocation2 + $0x14b] sm:$0x1f] }
 0x473   : > { %v8504_v29 = vadd.f32 %v8464_v16, %v8404_v14  ;;  %v8305_v19 = vadd.f32 %v8265_v17, %v8205_v12  ;;  %v8665_v33 = vmul.f32 %v22092_v23, %v7822_v11  ;;  %v8764_v40 = vmul.f32 %v22099_v9, %v8726_v25  ;;  %v7080_v36 = vld [vmem:[#allocation2 + $0x169] sm:$0xff] }
 0x474   : > { %v8306_v13 = vadd.f32 %v8266_v49, %v8206_v0  ;;  %15937 = vmatmul.mubr.msk.f32.gmra.mxu1 %vm4504_vm9, %v12363_v5  ;;  %v8765_v27 = vmul.f32 %v22099_v9, %v20458_v62  ;;  %v8864_v58 = vmul.f32 %v22100_v22, %v8826_v44  ;;  %v8865_v46 = vmul.f32 %v22100_v22, %v20462_v59  ;;  %v7204_v17 = vld [vmem:[#allocation2 + $0x16a] sm:$0xff] }
 0x475   : > { %v8604_v8 = vadd.f32 %v8564_v39, %v8504_v29  ;;  %v7452_v49 = vld [vmem:[#allocation2 + $0x16c] sm:$0xff]  ;;  %15939 = vmatprep.mubr.msk.f32.mxu1 %vm16438_vm11, %v22109_v35  ;;  %v8405_v11 = vadd.f32 %v8365_v7, %v8305_v19  ;;  %v8964_v21 = vmul.f32 %v22006_v20, %v8926_v55  ;;  %v8965_v63 = vmul.f32 %v22006_v20, %v20485_v15 }
 0x476   : > { %v8406_v48 = vadd.f32 %v8366_v43, %v8306_v13  ;;  %v7328_v18 = vld [vmem:[#allocation2 + $0x16b] sm:$0xff]  ;;  %v9064_v16 = vmul.f32 %v22162_v53, %v9026_v1  ;;  %v9065_v59 = vmul.f32 %v22162_v53, %v20500_v2  ;;  %v7000_v25 = vmul.f32 %v22085_v24, %v6956_v31 }
 0x477   : > { %v7699_v62 = vld [vmem:[#allocation2 + $0x166] sm:$0xff]  ;;  %v8704_v14 = vadd.f32 %v8664_v60, %v8604_v8  ;;  %v8505_v0 = vadd.f32 %v8465_v26, %v8405_v11  ;;  %v10525_v7 = vcombine.high %v20542_v52, %v20542_v52  ;;  %v7124_v43 = vmul.f32 %v22088_v41, %v7080_v36 }
 0x478   : > { %v7823_v12 = vld [vmem:[#allocation2 + $0x167] sm:$0xff]  ;;  %v7248_v39 = vmul.f32 %v22151_v61, %v7204_v17  ;;  %v7372_v44 = vmul.f32 %v17492_v6, %v7328_v18  ;;  %v7496_v5 = vmul.f32 %v22130_v38, %v7452_v49  ;;  %v7743_v29 = vmul.f32 %v22101_v45, %v7699_v62 }
 0x479   : > { %v8804_v15 = vadd.f32 %v8764_v40, %v8704_v14  ;;  %v8605_v60 = vadd.f32 %v8565_v50, %v8505_v0  ;;  %v7164_v2 = vadd.f32 %v7124_v43, %v7000_v25  ;;  %v7867_v55 = vmul.f32 %v21932_v4, %v7823_v12 }
 0x47a   : > { %v7967_v26 = vmul.f32 %v17534_v10, %v6956_v31  ;;  %v7783_v52 = vadd.f32 %v7743_v29, %v20545_v57  ;;  %v8067_v13 = vmul.f32 %v17538_v42, %v7080_v36  ;;  %v8167_v1 = vmul.f32 %v21937_v28, %v7204_v17 }
 0x47b   : > { %v8904_v19 = vadd.f32 %v8864_v58, %v8804_v15  ;;  %v8705_v40 = vadd.f32 %v8665_v33, %v8605_v60  ;;  %v7288_v8 = vadd.f32 %v7248_v39, %v7164_v2  ;;  %v8267_v11 = vmul.f32 %v21938_v3, %v7328_v18  ;;  %v20624_v60 = vld [vmem:[#allocation2 + $0x16f] sm:$0xff] }
 0x47c   : > { %v8466_v14 = vmul.f32 %v21996_v34, %v20519_v32  ;;  %v7907_v25 = vadd.f32 %v7867_v55, %v7783_v52  ;;  %v8367_v0 = vmul.f32 %v21995_v56, %v7452_v49  ;;  %v8566_v43 = vmul.f32 %v22084_v37, %v7699_v62  ;;  %v20626_v32 = vpop.f32.mrf.mxu1 }
 0x47d   : > { %v9004_v50 = vadd.f32 %v8964_v21, %v8904_v19  ;;  %v8805_v58 = vadd.f32 %v8765_v27, %v8705_v40  ;;  %v7412_v15 = vadd.f32 %v7372_v44, %v7288_v8  ;;  %v8666_v29 = vmul.f32 %v22092_v23, %v7823_v12  ;;  %22170 = vst [vmem:[#allocation27_spill] sm:$0xff] %v20626_v32  ;;  %v20631_v12 = vld [vmem:[#allocation2 + $0x170] sm:$0xff] }
 0x47e   : > { %v8506_v57 = vadd.f32 %v8466_v14, %v8406_v48  ;;  %v8007_v47 = vadd.f32 %v7967_v26, %v7907_v25  ;;  %v8766_v33 = vmul.f32 %v22099_v9, %v6956_v31  ;;  %v8866_v39 = vmul.f32 %v22100_v22, %v7080_v36  ;;  %v15869_v31 = vpop.f32.mrf.mxu1  ;;  %v22171_v36 = vld [vmem:[#allocation68_spill] sm:$0xff] }
 0x47f   : > { %v9104_v45 = vadd.f32 %v9064_v16, %v9004_v50  ;;  %v8905_v21 = vadd.f32 %v8865_v46, %v8805_v58  ;;  %v7536_v2 = vadd.f32 %v7496_v5, %v7412_v15  ;;  %v8966_v62 = vmul.f32 %v22006_v20, %v7204_v17  ;;  %v20636_v5 = vld [vmem:[#allocation2 + $0x171] sm:$0xff] }
 0x480   : > { %v8606_v49 = vadd.f32 %v8566_v43, %v8506_v57  ;;  %v8107_v44 = vadd.f32 %v8067_v13, %v8007_v47  ;;  %v9066_v16 = vmul.f32 %v22162_v53, %v7328_v18  ;;  %v7868_v46 = vmul.f32 %v21932_v4, %v20624_v60  ;;  %v22172_v18 = vld [vmem:[#allocation70_spill] sm:$0xff] }
 0x481   : > { %v10526_v27 = vcombine.high %v9104_v45, %v9104_v45  ;;  %v10533_v48 = vrot.slane %v9104_v45, %v22017_v51  ;;  %v9005_v55 = vadd.f32 %v8965_v63, %v8905_v21  ;;  %v7660_v26 = vadd.f32 %v22171_v36, %v7536_v2  ;;  %v8127_v2 = vld [vmem:[#allocation2 + $0x172] sm:$0xff] }
 0x482   : > { %v8706_v19 = vadd.f32 %v8666_v29, %v8606_v49  ;;  %v8207_v47 = vadd.f32 %v8167_v1, %v8107_v44  ;;  %v7968_v63 = vmul.f32 %v17534_v10, %v20631_v12  ;;  %v8068_v43 = vmul.f32 %v17538_v42, %v20636_v5  ;;  %v8227_v44 = vld [vmem:[#allocation2 + $0x173] sm:$0xff] }
 0x483   : > { %v10540_v17 = vrot.slane %v10526_v27, %v22017_v51  ;;  %v10541_v52 = vcombine.high %v10533_v48, %v10533_v48  ;;  %v10548_v45 = vrot.slane %v10533_v48, %v22017_v51  ;;  %v9105_v13 = vadd.f32 %v9065_v59, %v9005_v55 }
 0x484   : > { %v7784_v40 = vadd.f32 %v22172_v18, %v7660_v26  ;;  %v8806_v8 = vadd.f32 %v8766_v33, %v8706_v19  ;;  %v8307_v15 = vadd.f32 %v8267_v11, %v8207_v47 }
 0x485   : > { %v10562_v14 = vrot.slane %v10541_v52, %v22017_v51  ;;  %v10563_v50 = vcombine.high %v10548_v45, %v10548_v45  ;;  %v12364_v25 = vcombine.low %v10525_v7, %v10548_v45  ;;  %v10572_v58 = vrot.slane %v9105_v13, %v22017_v51  ;;  %v8427_v52 = vld [vmem:[#allocation2 + $0x175] sm:$0xff] }
 0x486   : > { %v8906_v57 = vadd.f32 %v8866_v39, %v8806_v8  ;;  %v10565_v29 = vcombine.high %v9105_v13, %v9105_v13  ;;  %v10555_v59 = vrot.slane %v10540_v17, %v22017_v51  ;;  %v7908_v33 = vadd.f32 %v7868_v46, %v7784_v40  ;;  %v8327_v17 = vld [vmem:[#allocation2 + $0x174] sm:$0xff] }
 0x487   : > { %v10564_v1 = vcombine.high %v10562_v14, %v10562_v14  ;;  %v12365_v21 = vcombine.low %v10562_v14, %v10563_v50  ;;  %v10580_v49 = vcombine.high %v10572_v58, %v10572_v58  ;;  %v10588_v27 = vrot.slane %v10572_v58, %v22017_v51 }
 0x488   : > { %v12374_v48 = vrot.slane %v12364_v25, %v22017_v51  ;;  %v9006_v7 = vadd.f32 %v8966_v62, %v8906_v57  ;;  %v10579_v11 = vrot.slane %v10565_v29, %v22017_v51  ;;  %v8008_v39 = vadd.f32 %v7968_v63, %v7908_v33  ;;  %v20664_v29 = vpop.f32.mrf.mxu1 }
 0x489   : > { %v12366_v31 = vcombine.low %v10564_v1, %v10555_v59  ;;  %v12381_v55 = vrot.slane %v12365_v21, %v22017_v51  ;;  %v10602_v36 = vrot.slane %v10580_v49, %v22017_v51  ;;  %v8407_v26 = vadd.f32 %v8367_v0, %v8307_v15  ;;  %v22173_v21 = vld [vmem:[#allocation66_spill] sm:$0xff] }
 0x48a   : > { %v9106_v19 = vadd.f32 %v9066_v16, %v9006_v7  ;;  %v8168_v46 = vmul.f32 %v21937_v28, %v8127_v2  ;;  %v10581_v13 = vcombine.high %v10579_v11, %v10579_v11  ;;  %v8268_v62 = vmul.f32 %v21938_v3, %v8227_v44  ;;  %v16424_v7 = vld [vmem:[#allocation2 + $0x16e] sm:$0xff] }
 0x48b   : > { %v12388_v45 = vrot.slane %v12366_v31, %v22017_v51  ;;  %v12396_v47 = vcombine.low %v12374_v48, %v12381_v55  ;;  %v12367_v18 = vcombine.low %v10588_v27, %v10602_v36  ;;  %v15506_v8 = vcombine.high %v10588_v27, %v10602_v36  ;;  %v15872_v55 = vpop.f32.mrf.mxu1 }
 0x48c   : > { %v10621_v40 = vrot.slane %v9106_v19, %v22017_v51  ;;  %v8108_v14 = vadd.f32 %v8068_v43, %v8008_v39  ;;  %v10595_v0 = vrot.slane %v10579_v11, %v22017_v51  ;;  %v10609_v16 = vrot.slane %v10581_v13, %v22017_v51 }
 0x48d   : > { %v12404_v63 = vrot.slane %v12396_v47, %v22017_v51  ;;  %v8368_v50 = vmul.f32 %v21995_v56, %v8327_v17  ;;  %v12395_v25 = vrot.slane %v12367_v18, %v22017_v51  ;;  %v8468_v57 = vmul.f32 %v21996_v34, %v8427_v52 }
 0x48e   : > { %v10629_v58 = vcombine.high %v10621_v40, %v10621_v40  ;;  %v10637_v15 = vrot.slane %v10621_v40, %v22017_v51  ;;  %v12414_v59 = vcombine.low %v10595_v0, %v10609_v16  ;;  %v15507_v1 = vcombine.high %v10595_v0, %v10609_v16 }
 0x48f   : > { %v8208_v43 = vadd.f32 %v8168_v46, %v8108_v14  ;;  %v8507_v33 = vadd.f32 %v22173_v21, %v8407_v26  ;;  %v12397_v49 = vcombine.low %v12388_v45, %v12395_v25  ;;  %v12423_v48 = vrot.slane %v15506_v8, %v22017_v51  ;;  %v8527_v46 = vld [vmem:[#allocation2 + $0x176] sm:$0xff]  ;;  %v20680_v14 = vpop.f32.mrf.mxu1 }
 0x490   : > { %v10651_v27 = vrot.slane %v10629_v58, %v22017_v51  ;;  %v8567_v31 = vmul.f32 %v16424_v7, %v22084_v37  ;;  %v12430_v11 = vrot.slane %v12414_v59, %v22017_v51  ;;  %v12437_v39 = vrot.slane %v15507_v1, %v22017_v51  ;;  %22174 = vst [vmem:[#allocation87_spill] sm:$0xff] %v20680_v14  ;;  %v8627_v25 = vld [vmem:[#allocation2 + $0x177] sm:$0xff] }
 0x491   : > { %v8308_v36 = vadd.f32 %v8268_v62, %v8208_v43  ;;  %v8667_v17 = vmul.f32 %v22092_v23, %v20624_v60  ;;  %v12411_v26 = vrot.slane %v12397_v49, %v22017_v51  ;;  %v8767_v47 = vmul.f32 %v22099_v9, %v20631_v12  ;;  %v8727_v58 = vld [vmem:[#allocation2 + $0x178] sm:$0xff]  ;;  %v15875_v21 = vpop.f32.mrf.mxu1 }
 0x492   : > { %v12416_v52 = vcombine.low %v10637_v15, %v10651_v27  ;;  %v8607_v45 = vadd.f32 %v8567_v31, %v8507_v33  ;;  %v12445_v13 = vcombine.low %v12423_v48, %v12430_v11  ;;  %v8867_v40 = vmul.f32 %v22100_v22, %v20636_v5  ;;  %v8827_v43 = vld [vmem:[#allocation2 + $0x179] sm:$0xff]  ;;  %v9028_v21 = vld [vmem:[#allocation2 + $0x183] sm:$0x1f] }
 0x493   : > { %v8408_v18 = vadd.f32 %v8368_v50, %v8308_v36  ;;  %v8967_v8 = vmul.f32 %v22006_v20, %v8127_v2  ;;  %v12412_v62 = vcombine.low %v12404_v63, %v12411_v26  ;;  %v10614_v16 = vcombine.high %v9106_v19, %v9106_v19  ;;  %v8927_v49 = vld [vmem:[#allocation2 + $0x17a] sm:$0xff]  ;;  %v20695_v48 = vpop.f32.mrf.mxu1 }
 0x494   : > { %v12444_v60 = vrot.slane %v12416_v52, %v22017_v51  ;;  %v8707_v0 = vadd.f32 %v8667_v17, %v8607_v45  ;;  %v9067_v1 = vmul.f32 %v22162_v53, %v8227_v44  ;;  %v15508_v12 = vcombine.high %v10637_v15, %v10651_v27  ;;  %v8428_v27 = vld [vmem:[#allocation2 + $0x17d] sm:$0x1f]  ;;  %22175 = vst [vmem:[#allocation45_spill] sm:$0xff] %v20695_v48 }
 0x495   : > { %v8508_v59 = vadd.f32 %v8468_v57, %v8408_v18  ;;  %v8568_v50 = vmul.f32 %v22084_v37, %v8527_v46  ;;  %15940 = vmatmul.mubr.msk.f32.gmra.mxu1 %vm4504_vm9, %v12412_v62  ;;  %v12453_v2 = vrot.slane %v12445_v13, %v22017_v51  ;;  %v10628_v33 = vrot.slane %v10614_v16, %v22017_v51  ;;  %v8528_v36 = vld [vmem:[#allocation2 + $0x17e] sm:$0x1f]  ;;  %v15878_v18 = vpop.f32.mrf.mxu1 }
 0x496   : > { %v12446_v5 = vcombine.low %v12437_v39, %v12444_v60  ;;  %v8807_v63 = vadd.f32 %v8767_v47, %v8707_v0  ;;  %15942 = vmatprep.mubr.msk.f32.mxu1 %vm16438_vm11, %v22109_v35  ;;  %v20691_v19 = vrot.slane %v15508_v12, %v22017_v51  ;;  %v8668_v15 = vmul.f32 %v22092_v23, %v8627_v25  ;;  %v9027_v39 = vld [vmem:[#allocation2 + $0x17b] sm:$0xff] }
 0x497   : > { %v8608_v44 = vadd.f32 %v8568_v50, %v8508_v59  ;;  %v8768_v57 = vmul.f32 %v22099_v9, %v8727_v58  ;;  %v10630_v55 = vcombine.high %v10628_v33, %v10628_v33  ;;  %v8868_v11 = vmul.f32 %v22100_v22, %v8827_v43  ;;  %v8628_v17 = vld [vmem:[#allocation2 + $0x17f] sm:$0x1f]  ;;  %v7827_v48 = vld [vmem:[#allocation2 + $0x197] sm:$0xff] }
 0x498   : > { %v12460_v7 = vrot.slane %v12446_v5, %v22017_v51  ;;  %v8907_v31 = vadd.f32 %v8867_v40, %v8807_v63  ;;  %v10644_v46 = vrot.slane %v10628_v33, %v22017_v51  ;;  %v8968_v52 = vmul.f32 %v22006_v20, %v8927_v49  ;;  %v22176_v45 = vld [vmem:[#allocation30_spill] sm:$0xff]  ;;  %v8728_v16 = vld [vmem:[#allocation2 + $0x180] sm:$0x1f]  ;;  %v20708_v5 = vpop.f32.mrf.mxu1  ;;  %v20711_v49 = vld [vmem:[#allocation2 + $0x190] sm:$0xff] }
 0x499   : > { %v8708_v26 = vadd.f32 %v8668_v15, %v8608_v44  ;;  %v22177_v47 = vld [vmem:[#allocation18_spill] sm:$0xff]  ;;  %v10658_v0 = vrot.slane %v10630_v55, %v22017_v51  ;;  %v8469_v40 = vmul.f32 %v21996_v34, %v8428_v27  ;;  %v8828_v25 = vld [vmem:[#allocation2 + $0x181] sm:$0x1f]  ;;  %v9068_v12 = vmul.f32 %v22162_v53, %v9027_v39  ;;  %22178 = vst [vmem:[#allocation46_spill] sm:$0xff] %v20708_v5 }
 0x49a   : > { %v8409_v13 = vadd.f32 %v22177_v47, %v22176_v45  ;;  %v12461_v62 = vcombine.low %v12453_v2, %v12460_v7  ;;  %v9007_v60 = vadd.f32 %v8967_v8, %v8907_v31  ;;  %v8928_v58 = vld [vmem:[#allocation2 + $0x182] sm:$0x1f]  ;;  %v8569_v50 = vmul.f32 %v22084_v37, %v8528_v36  ;;  %v20718_v7 = vld [vmem:[#allocation2 + $0x198] sm:$0xff]  ;;  %v15881_v31 = vpop.f32.mrf.mxu1 }
 0x49b   : > { %v8808_v59 = vadd.f32 %v8768_v57, %v8708_v26  ;;  %v8669_v43 = vmul.f32 %v22092_v23, %v8628_v17  ;;  %v12463_v2 = vcombine.low %v10644_v46, %v10658_v0  ;;  %v15509_v63 = vcombine.high %v10644_v46, %v10658_v0  ;;  %v20723_v17 = vld [vmem:[#allocation2 + $0x191] sm:$0xff]  ;;  %v20725_v46 = vld [vmem:[#allocation2 + $0x199] sm:$0xff] }
 0x49c   : > { %15943 = vmatmul.mubr.msk.f32.gmra.mxu1 %vm4504_vm9, %v12461_v62  ;;  %v9107_v8 = vadd.f32 %v9067_v1, %v9007_v60  ;;  %v8509_v33 = vadd.f32 %v8469_v40, %v8409_v13  ;;  %v8769_v15 = vmul.f32 %v22099_v9, %v8728_v16  ;;  %v8869_v57 = vmul.f32 %v22100_v22, %v8828_v25  ;;  %v20730_v13 = vpop.f32.mrf.mxu1 }
 0x49d   : > { %15945 = vmatprep.mubr.msk.f32.mxu1 %vm16438_vm11, %v22109_v35  ;;  %v8908_v44 = vadd.f32 %v8868_v11, %v8808_v59  ;;  %v8969_v27 = vmul.f32 %v22006_v20, %v8928_v58  ;;  %v12479_v55 = vrot.slane %v12463_v2, %v22017_v51  ;;  %v9069_v36 = vmul.f32 %v22162_v53, %v9028_v21 }
 0x49e   : > { %v10670_v1 = vrot.slane %v9107_v8, %v22017_v51  ;;  %v10663_v39 = vcombine.high %v9107_v8, %v9107_v8  ;;  %v12486_v11 = vrot.slane %v15509_v63, %v22017_v51  ;;  %v8609_v45 = vadd.f32 %v8569_v50, %v8509_v33  ;;  %22179 = vst [vmem:[#allocation47_spill] sm:$0xff] %v20730_v13  ;;  %v15884_v58 = vpop.f32.mrf.mxu1 }
 0x49f   : > { %v9008_v26 = vadd.f32 %v8968_v52, %v8908_v44  ;;  %v7003_v47 = vmul.f32 %v22085_v24, %v20711_v49  ;;  %v12494_v62 = vcombine.low %v20691_v19, %v12479_v55  ;;  %v7004_v0 = vmul.f32 %v22085_v24, %v20718_v7 }
 0x4a0   : > { %v10678_v18 = vcombine.high %v10670_v1, %v10670_v1  ;;  %v10677_v60 = vrot.slane %v10663_v39, %v22017_v51  ;;  %v8709_v16 = vadd.f32 %v8669_v43, %v8609_v45  ;;  %v7127_v25 = vmul.f32 %v22088_v41, %v20723_v17  ;;  %v20745_v63 = vpop.f32.mrf.mxu1 }
 0x4a1   : > { %v9108_v40 = vadd.f32 %v9068_v12, %v9008_v26  ;;  %v7128_v52 = vmul.f32 %v22088_v41, %v20725_v46  ;;  %v10686_v59 = vrot.slane %v10670_v1, %v22017_v51  ;;  %v12502_v19 = vrot.slane %v12494_v62, %v22017_v51  ;;  %22180 = vst [vmem:[#allocation13_spill] sm:$0xff] %v20745_v63 }
 0x4a2   : > { %v10700_v50 = vrot.slane %v10678_v18, %v22017_v51  ;;  %v10679_v21 = vcombine.high %v10677_v60, %v10677_v60  ;;  %v10693_v8 = vrot.slane %v10677_v60, %v22017_v51  ;;  %v8809_v12 = vadd.f32 %v8769_v15, %v8709_v16  ;;  %v15887_v18 = vpop.f32.mrf.mxu1 }
 0x4a3   : > { %v10719_v2 = vrot.slane %v9108_v40, %v22017_v51  ;;  %v10712_v43 = vcombine.high %v9108_v40, %v9108_v40  ;;  %v7167_v55 = vadd.f32 %v7127_v25, %v7003_v47  ;;  %v7168_v45 = vadd.f32 %v7128_v52, %v7004_v0  ;;  %v20755_v47 = vld [vmem:[#allocation2 + $0x19a] sm:$0xff] }
 0x4a4   : > { %v12465_v33 = vcombine.low %v10686_v59, %v10700_v50  ;;  %v10707_v44 = vrot.slane %v10679_v21, %v22017_v51  ;;  %v15510_v31 = vcombine.high %v10686_v59, %v10700_v50  ;;  %v8909_v1 = vadd.f32 %v8869_v57, %v8809_v12  ;;  %v20753_v59 = vld [vmem:[#allocation2 + $0x192] sm:$0xff]  ;;  %v20757_v57 = vpop.f32.mrf.mxu1  ;;  %v20775_v18 = vld [vmem:[#allocation2 + $0x19b] sm:$0xff] }
 0x4a5   : > { %v10727_v39 = vcombine.high %v10719_v2, %v10719_v2  ;;  %v10726_v26 = vrot.slane %v10712_v43, %v22017_v51  ;;  %v10735_v60 = vrot.slane %v10719_v2, %v22017_v51  ;;  %22181 = vst [vmem:[#allocation58_spill] sm:$0xff] %v20757_v57  ;;  %v22188_v57 = vld [vmem:[#allocation43_spill] sm:$0xff] }
 0x4a6   : > { %v12493_v62 = vrot.slane %v12465_v33, %v22017_v51  ;;  %v12512_v58 = vcombine.low %v10693_v8, %v10707_v44  ;;  %v15511_v15 = vcombine.high %v10693_v8, %v10707_v44  ;;  %v12521_v16 = vrot.slane %v15510_v31, %v22017_v51  ;;  %v15890_v43 = vpop.f32.mrf.mxu1 }
 0x4a7   : > { %v10749_v40 = vrot.slane %v10727_v39, %v22017_v51  ;;  %v9009_v13 = vadd.f32 %v8969_v27, %v8909_v1  ;;  %v10728_v21 = vcombine.high %v10726_v26, %v10726_v26  ;;  %v10742_v50 = vrot.slane %v10726_v26, %v22017_v51  ;;  %v20773_v26 = vld [vmem:[#allocation2 + $0x193] sm:$0xff] }
 0x4a8   : > { %v12495_v0 = vcombine.low %v12486_v11, %v12493_v62  ;;  %v12528_v25 = vrot.slane %v12512_v58, %v22017_v51  ;;  %v12535_v52 = vrot.slane %v15511_v15, %v22017_v51  ;;  %v7251_v31 = vmul.f32 %v22151_v61, %v20753_v59  ;;  %v20777_v62 = vpop.f32.mrf.mxu1 }
 0x4a9   : > { %v12514_v8 = vcombine.low %v10735_v60, %v10749_v40  ;;  %v20762_v2 = vadd.f32 %v9069_v36, %v9009_v13  ;;  %v10756_v12 = vrot.slane %v10728_v21, %v22017_v51  ;;  %v15512_v27 = vcombine.high %v10735_v60, %v10749_v40  ;;  %22182 = vst [vmem:[#allocation56_spill] sm:$0xff] %v20777_v62 }
 0x4aa   : > { %v12509_v33 = vrot.slane %v12495_v0, %v22017_v51  ;;  %v12543_v44 = vcombine.low %v12521_v16, %v12528_v25  ;;  %v7252_v11 = vmul.f32 %v22151_v61, %v20755_v47  ;;  %v20781_v60 = vadd.f32 %v20449_v30, %v20446_v54 }
 0x4ab   : > { %v12542_v39 = vrot.slane %v12514_v8, %v22017_v51  ;;  %v10768_v1 = vrot.slane %v20762_v2, %v22017_v51  ;;  %v12561_v36 = vcombine.low %v10742_v50, %v10756_v12  ;;  %v15513_v13 = vcombine.high %v10742_v50, %v10756_v12  ;;  %v7455_v50 = vld [vmem:[#allocation2 + $0x194] sm:$0xff]  ;;  %v7456_v8 = vld [vmem:[#allocation2 + $0x19c] sm:$0xff]  ;;  %v15893_v12 = vpop.f32.mrf.mxu1 }
 0x4ac   : > { %v12510_v58 = vcombine.low %v12502_v19, %v12509_v33  ;;  %v7291_v15 = vadd.f32 %v7251_v31, %v7167_v55  ;;  %v7292_v40 = vadd.f32 %v7252_v11, %v7168_v45  ;;  %v12570_v0 = vrot.slane %v15512_v27, %v22017_v51  ;;  %v7579_v19 = vld [vmem:[#allocation2 + $0x195] sm:$0xff]  ;;  %v20801_v33 = vld [vmem:[#allocation2 + $0x19d] sm:$0xff] }
 0x4ad   : > { %v12544_v16 = vcombine.low %v12535_v52, %v12542_v39  ;;  %v10776_v21 = vcombine.high %v10768_v1, %v10768_v1  ;;  %v12577_v25 = vrot.slane %v12561_v36, %v22017_v51  ;;  %v12551_v43 = vrot.slane %v12543_v44, %v22017_v51  ;;  %v20803_v44 = vpop.f32.mrf.mxu1  ;;  %v7826_v31 = vld [vmem:[#allocation2 + $0x18f] sm:$0xff] }
 0x4ae   : > { %15946 = vmatmul.mubr.msk.f32.gmra.mxu1 %vm4504_vm9, %v12510_v58  ;;  %v20788_v62 = vrot.slane %v10768_v1, %v22017_v51  ;;  %v7375_v54 = vmul.f32 %v17492_v6, %v20773_v26  ;;  %v7376_v30 = vmul.f32 %v17492_v6, %v20775_v18  ;;  %v12584_v52 = vrot.slane %v15513_v13, %v22017_v51  ;;  %v7703_v58 = vld [vmem:[#allocation2 + $0x196] sm:$0xff]  ;;  %v22185_v13 = vld [vmem:[#allocation44_spill] sm:$0xff] }
 0x4af   : > { %15948 = vmatprep.mubr.msk.f32.mxu1 %vm16438_vm11, %v22109_v35  ;;  %v12558_v55 = vrot.slane %v12544_v16, %v22017_v51  ;;  %v20798_v45 = vrot.slane %v10776_v21, %v22017_v51  ;;  %v12592_v27 = vcombine.low %v12570_v0, %v12577_v25  ;;  %22183 = vst [vmem:[#allocation64_spill] sm:$0xff] %v20803_v44  ;;  %v22184_v21 = vld [vmem:[#allocation8_spill] sm:$0xff]  ;;  %v15896_v32 = vpop.f32.mrf.mxu1 }
 0x4b0   : > { %v7415_v11 = vadd.f32 %v7375_v54, %v7291_v15  ;;  %v7416_v39 = vadd.f32 %v7376_v30, %v7292_v40  ;;  %v7499_v1 = vmul.f32 %v22130_v38, %v7455_v50  ;;  %v7500_v36 = vmul.f32 %v22130_v38, %v7456_v8  ;;  %v22186_v0 = vld [vmem:[#allocation20_spill] sm:$0xff]  ;;  %v22187_v30 = vld [vmem:[#allocation9_spill] sm:$0xff] }
 0x4b1   : > { %v12559_v12 = vcombine.low %v12551_v43, %v12558_v55  ;;  %v12563_v16 = vcombine.low %v20788_v62, %v20798_v45  ;;  %v7623_v5 = vmul.f32 %v22184_v21, %v7579_v19  ;;  %v7662_v25 = vadd.f32 %v22186_v0, %v22185_v13  ;;  %v20820_v13 = vpop.f32.mrf.mxu1 }
 0x4b2   : > { %v12600_v44 = vrot.slane %v12592_v27, %v22017_v51  ;;  %v7539_v15 = vadd.f32 %v7499_v1, %v7415_v11  ;;  %v7540_v40 = vadd.f32 %v7500_v36, %v7416_v39  ;;  %v7624_v54 = vmul.f32 %v22184_v21, %v20801_v33 }
 0x4b3   : > { %15949 = vmatmul.mubr.msk.f32.gmra.mxu1 %vm4504_vm9, %v12559_v12  ;;  %v12591_v43 = vrot.slane %v12563_v16, %v22017_v51  ;;  %v7747_v55 = vmul.f32 %v22187_v30, %v7703_v58  ;;  %v7786_v63 = vadd.f32 %v22188_v57, %v7662_v25  ;;  %v7870_v14 = vmul.f32 %v21932_v4, %v7826_v31  ;;  %v15899_v12 = vpop.f32.mrf.mxu1 }
 0x4b4   : > { %15951 = vmatprep.mubr.msk.f32.mxu1 %vm16438_vm11, %v22109_v35  ;;  %v7663_v32 = vadd.f32 %v7623_v5, %v7539_v15  ;;  %v20824_v27 = vadd.f32 %v7624_v54, %v7540_v40  ;;  %v7871_v11 = vmul.f32 %v21932_v4, %v7827_v48  ;;  %v7970_v39 = vmul.f32 %v17534_v10, %v20711_v49  ;;  %v20849_v54 = vld [vmem:[#allocation2 + $0x1a0] sm:$0xff] }
 0x4b5   : > { %v12593_v1 = vcombine.low %v12584_v52, %v12591_v43  ;;  %v7910_v36 = vadd.f32 %v7870_v14, %v7786_v63  ;;  %v7971_v57 = vmul.f32 %v17534_v10, %v20718_v7  ;;  %v8070_v31 = vmul.f32 %v17538_v42, %v20723_v17  ;;  %v20844_v52 = vpop.f32.mrf.mxu1  ;;  %v20851_v43 = vld [vmem:[#allocation2 + $0x1a1] sm:$0xff] }
 0x4b6   : > { %v7787_v16 = vadd.f32 %v7747_v55, %v7663_v32  ;;  %v8071_v5 = vmul.f32 %v17538_v42, %v20725_v46  ;;  %v8170_v21 = vmul.f32 %v21937_v28, %v20753_v59  ;;  %v8171_v0 = vmul.f32 %v21937_v28, %v20755_v47  ;;  %v7704_v12 = vld [vmem:[#allocation2 + $0x19e] sm:$0xff] }
 0x4b7   : > { %v12607_v49 = vrot.slane %v12593_v1, %v22017_v51  ;;  %v8010_v14 = vadd.f32 %v7970_v39, %v7910_v36  ;;  %v8270_v63 = vmul.f32 %v21938_v3, %v20773_v26  ;;  %v8271_v17 = vmul.f32 %v21938_v3, %v20775_v18  ;;  %v20855_v1 = vld [vmem:[#allocation2 + $0x1a2] sm:$0xff]  ;;  %v15902_v36 = vpop.f32.mrf.mxu1 }
 0x4b8   : > { %v7911_v25 = vadd.f32 %v7871_v11, %v7787_v16  ;;  %v8370_v15 = vmul.f32 %v21995_v56, %v7455_v50  ;;  %v8371_v40 = vmul.f32 %v21995_v56, %v7456_v8  ;;  %v8470_v59 = vmul.f32 %v21996_v34, %v7579_v19 }
 0x4b9   : > { %v12608_v55 = vcombine.low %v12600_v44, %v12607_v49  ;;  %v8110_v32 = vadd.f32 %v8070_v31, %v8010_v14  ;;  %v8570_v26 = vmul.f32 %v22084_v37, %v7703_v58  ;;  %v8670_v39 = vmul.f32 %v22092_v23, %v7827_v48  ;;  %v7333_v44 = vld [vmem:[#allocation2 + $0x1a3] sm:$0xff] }
 0x4ba   : > { %v8011_v11 = vadd.f32 %v7971_v57, %v7911_v25  ;;  %v20859_v50 = vmul.f32 %v22099_v9, %v20718_v7  ;;  %v20863_v8 = vmul.f32 %v22100_v22, %v20725_v46  ;;  %v10761_v19 = vcombine.high %v20762_v2, %v20762_v2  ;;  %v7457_v31 = vld [vmem:[#allocation2 + $0x1a4] sm:$0xff]  ;;  %v20874_v46 = vpop.f32.mrf.mxu1 }
 0x4bb   : > { %15952 = vmatmul.mubr.msk.f32.gmra.mxu1 %vm4504_vm9, %v12608_v55  ;;  %v8210_v48 = vadd.f32 %v8170_v21, %v8110_v32  ;;  %v15514_v58 = vcombine.high %v20788_v62, %v20798_v45  ;;  %v7005_v57 = vmul.f32 %v22085_v24, %v20849_v54  ;;  %v7129_v7 = vmul.f32 %v22088_v41, %v20851_v43  ;;  %v7828_v62 = vld [vmem:[#allocation2 + $0x19f] sm:$0xff] }
 0x4bc   : > { %15954 = vmatprep.mubr.msk.f32.mxu1 %vm16438_vm11, %v22109_v35  ;;  %v8111_v2 = vadd.f32 %v8071_v5, %v8011_v11  ;;  %v20880_v16 = vmul.f32 %v22006_v20, %v20755_v47  ;;  %v20883_v21 = vrot.slane %v10761_v19, %v22017_v51  ;;  %v7253_v24 = vmul.f32 %v22151_v61, %v20855_v1  ;;  %v15905_v5 = vpop.f32.mrf.mxu1 }
 0x4bd   : > { %v8310_v45 = vadd.f32 %v8270_v63, %v8210_v48  ;;  %v20889_v41 = vmul.f32 %v22162_v53, %v20775_v18  ;;  %v7169_v49 = vadd.f32 %v7129_v7, %v7005_v57  ;;  %v7377_v14 = vmul.f32 %v17492_v6, %v7333_v44  ;;  %v7929_v5 = vld [vmem:[#allocation2 + $0x1a8] sm:$0xff] }
 0x4be   : > { %v8211_v25 = vadd.f32 %v8171_v0, %v8111_v2  ;;  %v20893_v47 = vrot.slane %v15514_v58, %v22017_v51  ;;  %v7501_v55 = vmul.f32 %v22130_v38, %v7457_v31  ;;  %v7748_v32 = vmul.f32 %v22187_v30, %v7704_v12  ;;  %v20900_v11 = vpop.f32.mrf.mxu1 }
 0x4bf   : > { %v8410_v36 = vadd.f32 %v8370_v15, %v8310_v45  ;;  %v10790_v61 = vrot.slane %v20883_v21, %v22017_v51  ;;  %v7293_v63 = vadd.f32 %v7253_v24, %v7169_v49  ;;  %v7872_v18 = vmul.f32 %v21932_v4, %v7828_v62 }
 0x4c0   : > { %v8311_v19 = vadd.f32 %v8271_v17, %v8211_v25  ;;  %v7788_v6 = vadd.f32 %v7748_v32, %v20824_v27  ;;  %v7972_v0 = vmul.f32 %v17534_v10, %v20849_v54  ;;  %v8072_v38 = vmul.f32 %v17538_v42, %v20851_v43  ;;  %v15908_v57 = vpop.f32.mrf.mxu1 }
 0x4c1   : > { %v8510_v48 = vadd.f32 %v8470_v59, %v8410_v36  ;;  %v7417_v30 = vadd.f32 %v7377_v14, %v7293_v63  ;;  %v8172_v15 = vmul.f32 %v21937_v28, %v20855_v1  ;;  %v8272_v58 = vmul.f32 %v21938_v3, %v7333_v44  ;;  %v7829_v14 = vld [vmem:[#allocation2 + $0x1a7] sm:$0xff] }
 0x4c2   : > { %v8411_v7 = vadd.f32 %v8371_v40, %v8311_v19  ;;  %v7912_v2 = vadd.f32 %v7872_v18, %v7788_v6  ;;  %v8372_v17 = vmul.f32 %v21995_v56, %v7457_v31  ;;  %v8471_v27 = vmul.f32 %v21996_v34, %v20801_v33  ;;  %v20915_v25 = vpop.f32.mrf.mxu1  ;;  %v8029_v63 = vld [vmem:[#allocation2 + $0x1a9] sm:$0xff] }
 0x4c3   : > { %v8610_v24 = vadd.f32 %v8570_v26, %v8510_v48  ;;  %v7541_v45 = vadd.f32 %v7501_v55, %v7417_v30  ;;  %v8571_v49 = vmul.f32 %v22084_v37, %v7704_v12  ;;  %v8671_v59 = vmul.f32 %v22092_v23, %v7828_v62  ;;  %v8129_v33 = vld [vmem:[#allocation2 + $0x1aa] sm:$0xff] }
 0x4c4   : > { %v8012_v32 = vadd.f32 %v7972_v0, %v7912_v2  ;;  %v8511_v36 = vadd.f32 %v8471_v27, %v8411_v7  ;;  %v8771_v40 = vmul.f32 %v22099_v9, %v20849_v54  ;;  %v8871_v31 = vmul.f32 %v22100_v22, %v20851_v43  ;;  %v22189_v55 = vld [vmem:[#allocation28_spill] sm:$0xff]  ;;  %v15911_v0 = vpop.f32.mrf.mxu1 }
 0x4c5   : > { %v8710_v26 = vadd.f32 %v8670_v39, %v8610_v24  ;;  %v7665_v18 = vadd.f32 %v22189_v55, %v7541_v45  ;;  %v8971_v12 = vmul.f32 %v22006_v20, %v20855_v1  ;;  %v9071_v62 = vmul.f32 %v22162_v53, %v7333_v44  ;;  %v8229_v19 = vld [vmem:[#allocation2 + $0x1ab] sm:$0xff] }
 0x4c6   : > { %v8329_v6 = vld [vmem:[#allocation2 + $0x1ac] sm:$0xff]  ;;  %v8112_v30 = vadd.f32 %v8072_v38, %v8012_v32  ;;  %v8611_v57 = vadd.f32 %v8571_v49, %v8511_v36  ;;  %v7873_v54 = vmul.f32 %v21932_v4, %v7829_v14  ;;  %v7973_v43 = vmul.f32 %v17534_v10, %v7929_v5 }
 0x4c7   : > { %v8429_v48 = vld [vmem:[#allocation2 + $0x1ad] sm:$0xff]  ;;  %v8810_v7 = vadd.f32 %v20859_v50, %v8710_v26  ;;  %v8073_v27 = vmul.f32 %v17538_v42, %v8029_v63  ;;  %v8173_v1 = vmul.f32 %v21937_v28, %v8129_v33  ;;  %v8273_v45 = vmul.f32 %v21938_v3, %v8229_v19 }
 0x4c8   : > { %v22190_v39 = vld [vmem:[#allocation84_spill] sm:$0xff]  ;;  %v8212_v24 = vadd.f32 %v8172_v15, %v8112_v30  ;;  %v8711_v44 = vadd.f32 %v8671_v59, %v8611_v57  ;;  %v20933_v55 = vmul.f32 %v21995_v56, %v8329_v6  ;;  %v20937_v10 = vmul.f32 %v21996_v34, %v8429_v48  ;;  %v8729_v56 = vld [vmem:[#allocation2 + $0x1b0] sm:$0xff] }
 0x4c9   : > { %v7789_v2 = vadd.f32 %v22190_v39, %v7665_v18  ;;  %v8529_v38 = vld [vmem:[#allocation2 + $0x1ae] sm:$0xff]  ;;  %v8910_v4 = vadd.f32 %v20863_v8, %v8810_v7  ;;  %v16425_v50 = vld [vmem:[#allocation2 + $0x1a6] sm:$0xff]  ;;  %v8672_v28 = vmul.f32 %v22092_v23, %v7829_v14  ;;  %v20942_v15 = vmul.f32 %v22099_v9, %v7929_v5  ;;  %v8630_v57 = vld [vmem:[#allocation2 + $0x1b7] sm:$0x1f] }
 0x4ca   : > { %v8572_v32 = vmul.f32 %v16425_v50, %v22084_v37  ;;  %v8312_v42 = vadd.f32 %v8272_v58, %v8212_v24  ;;  %v8811_v36 = vadd.f32 %v8771_v40, %v8711_v44  ;;  %v8629_v3 = vld [vmem:[#allocation2 + $0x1af] sm:$0xff]  ;;  %v20946_v8 = vmul.f32 %v22100_v22, %v8029_v63 }
 0x4cb   : > { %v7913_v49 = vadd.f32 %v7873_v54, %v7789_v2  ;;  %v9010_v59 = vadd.f32 %v20880_v16, %v8910_v4  ;;  %v20949_v18 = vmul.f32 %v22006_v20, %v8129_v33  ;;  %v8829_v6 = vld [vmem:[#allocation2 + $0x1b1] sm:$0xff]  ;;  %v20952_v40 = vmul.f32 %v22162_v53, %v8229_v19  ;;  %v22191_v19 = vld [vmem:[#allocation48_spill] sm:$0xff] }
 0x4cc   : > { %v8412_v0 = vadd.f32 %v8372_v17, %v8312_v42  ;;  %v8911_v58 = vadd.f32 %v8871_v31, %v8811_v36  ;;  %v20955_v14 = vmul.f32 %v22084_v37, %v8529_v38  ;;  %v8430_v5 = vld [vmem:[#allocation2 + $0x1b5] sm:$0x1f]  ;;  %v20959_v30 = vmul.f32 %v22092_v23, %v8629_v3  ;;  %v20964_v17 = vpop.f32.mrf.mxu1 }
 0x4cd   : > { %v8013_v26 = vadd.f32 %v7973_v43, %v7913_v49  ;;  %v9110_v48 = vadd.f32 %v20889_v41, %v9010_v59  ;;  %v20962_v63 = vmul.f32 %v22099_v9, %v8729_v56  ;;  %v8530_v33 = vld [vmem:[#allocation2 + $0x1b6] sm:$0x1f]  ;;  %v20968_v43 = vmul.f32 %v22100_v22, %v8829_v6 }
 0x4ce   : > { %v9011_v31 = vadd.f32 %v8971_v12, %v8911_v58  ;;  %v8512_v54 = vadd.f32 %v22191_v19, %v8412_v0  ;;  %v22192_v7 = vld [vmem:[#allocation25_spill] sm:$0xff]  ;;  %v8474_v24 = vmul.f32 %v21996_v34, %v8430_v5  ;;  %v15914_v44 = vpop.f32.mrf.mxu1  ;;  %v8574_v49 = vmul.f32 %v22084_v37, %v8530_v33 }
 0x4cf   : > { %v8113_v16 = vadd.f32 %v8073_v27, %v8013_v26  ;;  %v8414_v41 = vadd.f32 %v22192_v7, %v20781_v60  ;;  %v10800_v39 = vcombine.high %v9110_v48, %v9110_v48  ;;  %v10807_v2 = vrot.slane %v9110_v48, %v22017_v51 }
 0x4d0   : > { %v9111_v38 = vadd.f32 %v9071_v62, %v9011_v31  ;;  %v8612_v4 = vadd.f32 %v8572_v32, %v8512_v54  ;;  %v8674_v12 = vmul.f32 %v22092_v23, %v8630_v57  ;;  %v20978_v60 = vpop.f32.mrf.mxu1 }
 0x4d1   : > { %v8213_v27 = vadd.f32 %v8173_v1, %v8113_v16  ;;  %v10814_v50 = vrot.slane %v10800_v39, %v22017_v51  ;;  %v10815_v42 = vcombine.high %v10807_v2, %v10807_v2  ;;  %v10823_v36 = vrot.slane %v10807_v2, %v22017_v51 }
 0x4d2   : > { %v10849_v56 = vcombine.high %v9111_v38, %v9111_v38  ;;  %v10856_v1 = vrot.slane %v9111_v38, %v22017_v51  ;;  %v8712_v59 = vadd.f32 %v8672_v28, %v8612_v4  ;;  %v8514_v34 = vadd.f32 %v8474_v24, %v8414_v41  ;;  %v15917_v26 = vpop.f32.mrf.mxu1 }
 0x4d3   : > { %v8313_v3 = vadd.f32 %v8273_v45, %v8213_v27  ;;  %v10830_v62 = vrot.slane %v10814_v50, %v22017_v51  ;;  %v10837_v32 = vrot.slane %v10815_v42, %v22017_v51  ;;  %v10845_v37 = vcombine.high %v10823_v36, %v10823_v36 }
 0x4d4   : > { %v12610_v23 = vcombine.low %v10790_v61, %v10823_v36  ;;  %v10816_v6 = vcombine.high %v10814_v50, %v10814_v50  ;;  %v10863_v45 = vrot.slane %v10849_v56, %v22017_v51  ;;  %v10864_v0 = vcombine.high %v10856_v1, %v10856_v1  ;;  %v8730_v56 = vld [vmem:[#allocation2 + $0x1b8] sm:$0x1f] }
 0x4d5   : > { %v10872_v58 = vrot.slane %v10856_v1, %v22017_v51  ;;  %v10847_v5 = vcombine.high %v10837_v32, %v10837_v32  ;;  %v12611_v48 = vcombine.low %v10837_v32, %v10845_v37  ;;  %v10846_v16 = vcombine.high %v10830_v62, %v10830_v62 }
 0x4d6   : > { %v12626_v28 = vrot.slane %v12610_v23, %v22017_v51  ;;  %v10844_v33 = vrot.slane %v10816_v6, %v22017_v51  ;;  %v10879_v57 = vrot.slane %v10863_v45, %v22017_v51  ;;  %v10886_v31 = vrot.slane %v10864_v0, %v22017_v51 }
 0x4d7   : > { %v10894_v21 = vcombine.high %v10872_v58, %v10872_v58  ;;  %v12612_v61 = vcombine.low %v10847_v5, %v10830_v62  ;;  %v12633_v19 = vrot.slane %v12611_v48, %v22017_v51  ;;  %v8413_v7 = vadd.f32 %v20933_v55, %v8313_v3 }
 0x4d8   : > { %v12641_v54 = vcombine.low %v20893_v47, %v12626_v28  ;;  %v10848_v41 = vcombine.high %v10844_v33, %v10844_v33  ;;  %v10896_v39 = vcombine.high %v10886_v31, %v10886_v31  ;;  %v12658_v2 = vcombine.low %v10844_v33, %v10846_v16  ;;  %v8830_v16 = vld [vmem:[#allocation2 + $0x1b9] sm:$0x1f] }
 0x4d9   : > { %v12660_v27 = vcombine.low %v10886_v31, %v10894_v21  ;;  %v12640_v24 = vrot.slane %v12612_v61, %v22017_v51  ;;  %v8513_v38 = vadd.f32 %v20937_v10, %v8413_v7  ;;  %v8812_v4 = vadd.f32 %v20942_v15, %v8712_v59  ;;  %v21001_v55 = vpop.f32.mrf.mxu1  ;;  %v8929_v59 = vld [vmem:[#allocation2 + $0x1b2] sm:$0xff] }
 0x4da   : > { %v12649_v44 = vrot.slane %v12641_v54, %v22017_v51  ;;  %v12659_v50 = vcombine.low %v10848_v41, %v10872_v58  ;;  %v12661_v42 = vcombine.low %v10896_v39, %v10879_v57  ;;  %v12668_v36 = vrot.slane %v12658_v2, %v22017_v51 }
 0x4db   : > { %v12682_v47 = vrot.slane %v12660_v27, %v22017_v51  ;;  %v12642_v3 = vcombine.low %v12633_v19, %v12640_v24  ;;  %v8912_v1 = vadd.f32 %v20946_v8, %v8812_v4  ;;  %v10865_v62 = vcombine.high %v10863_v45, %v10863_v45  ;;  %v15920_v26 = vpop.f32.mrf.mxu1  ;;  %v8930_v19 = vld [vmem:[#allocation2 + $0x1ba] sm:$0x1f] }
 0x4dc   : > { %v10895_v32 = vcombine.high %v10879_v57, %v10879_v57  ;;  %v12675_v37 = vrot.slane %v12659_v50, %v22017_v51  ;;  %v12689_v10 = vrot.slane %v12661_v42, %v22017_v51  ;;  %v8613_v15 = vadd.f32 %v20955_v14, %v8513_v38  ;;  %v9030_v27 = vld [vmem:[#allocation2 + $0x1bb] sm:$0x1f] }
 0x4dd   : > { %v8614_v23 = vadd.f32 %v8574_v49, %v8514_v34  ;;  %v12656_v6 = vrot.slane %v12642_v3, %v22017_v51  ;;  %v9012_v0 = vadd.f32 %v20949_v18, %v8912_v1  ;;  %v10893_v58 = vrot.slane %v10865_v62, %v22017_v51 }
 0x4de   : > { %v8774_v5 = vmul.f32 %v22099_v9, %v8730_v56  ;;  %v12690_v8 = vcombine.low %v12668_v36, %v12675_v37  ;;  %v12691_v45 = vcombine.low %v12682_v47, %v12689_v10  ;;  %v8713_v48 = vadd.f32 %v20959_v30, %v8613_v15 }
 0x4df   : > { %v8714_v28 = vadd.f32 %v8674_v12, %v8614_v23  ;;  %v12657_v33 = vcombine.low %v12649_v44, %v12656_v6  ;;  %v9112_v14 = vadd.f32 %v20952_v40, %v9012_v0  ;;  %v12707_v57 = vcombine.low %v10893_v58, %v10895_v32  ;;  %v9029_v12 = vld [vmem:[#allocation2 + $0x1b3] sm:$0xff] }
 0x4e0   : > { %v8973_v49 = vmul.f32 %v22006_v20, %v8929_v59  ;;  %v12698_v34 = vrot.slane %v12690_v8, %v22017_v51  ;;  %v12705_v18 = vrot.slane %v12691_v45, %v22017_v51  ;;  %v8813_v31 = vadd.f32 %v20962_v63, %v8713_v48 }
 0x4e1   : > { %v8814_v21 = vadd.f32 %v8774_v5, %v8714_v28  ;;  %15955 = vmatmul.mubr.msk.f32.gmra.mxu1 %vm4504_vm9, %v12657_v33  ;;  %v10898_v9 = vcombine.high %v9112_v14, %v9112_v14  ;;  %v10905_v30 = vrot.slane %v9112_v14, %v22017_v51  ;;  %v8874_v61 = vmul.f32 %v22100_v22, %v8830_v16 }
 0x4e2   : > { %15957 = vmatprep.mubr.msk.f32.mxu1 %vm16438_vm11, %v22109_v35  ;;  %v12706_v40 = vcombine.low %v12698_v34, %v12705_v18  ;;  %v10897_v54 = vcombine.high %v10893_v58, %v10893_v58  ;;  %v8913_v7 = vadd.f32 %v20968_v43, %v8813_v31  ;;  %v12717_v24 = vrot.slane %v12707_v57, %v22017_v51 }
 0x4e3   : > { %v10912_v41 = vrot.slane %v10898_v9, %v22017_v51  ;;  %v10913_v63 = vcombine.high %v10905_v30, %v10905_v30  ;;  %v10921_v39 = vrot.slane %v10905_v30, %v22017_v51  ;;  %v8914_v2 = vadd.f32 %v8874_v61, %v8814_v21 }
 0x4e4   : > { %v9013_v44 = vadd.f32 %v8973_v49, %v8913_v7  ;;  %v9073_v22 = vmul.f32 %v22162_v53, %v9029_v12  ;;  %v8974_v38 = vmul.f32 %v22006_v20, %v8930_v19  ;;  %v21031_v36 = vpop.f32.mrf.mxu1  ;;  %v9074_v1 = vmul.f32 %v22162_v53, %v9030_v27 }
 0x4e5   : > { %15958 = vmatmul.mubr.msk.f32.gmra.mxu1 %vm4504_vm9, %v12706_v40  ;;  %v10928_v4 = vrot.slane %v10912_v41, %v22017_v51  ;;  %v10935_v43 = vrot.slane %v10913_v63, %v22017_v51  ;;  %v10943_v50 = vcombine.high %v10921_v39, %v10921_v39  ;;  %v12708_v42 = vcombine.low %v10897_v54, %v10921_v39 }
 0x4e6   : > { %15960 = vmatprep.mubr.msk.f32.mxu1 %vm16438_vm11, %v22109_v35  ;;  %v9113_v47 = vadd.f32 %v9073_v22, %v9013_v44  ;;  %v10914_v56 = vcombine.high %v10912_v41, %v10912_v41  ;;  %v9014_v3 = vadd.f32 %v8974_v38, %v8914_v2  ;;  %v15923_v10 = vpop.f32.mrf.mxu1 }
 0x4e7   : > { %v10945_v62 = vcombine.high %v10935_v43, %v10935_v43  ;;  %v12709_v20 = vcombine.low %v10935_v43, %v10943_v50  ;;  %v12724_v32 = vrot.slane %v12708_v42, %v22017_v51  ;;  %v10944_v37 = vcombine.high %v10928_v4, %v10928_v4 }
 0x4e8   : > { %v10942_v15 = vrot.slane %v10914_v56, %v22017_v51  ;;  %v10947_v59 = vcombine.high %v9113_v47, %v9113_v47  ;;  %v10954_v23 = vrot.slane %v9113_v47, %v22017_v51  ;;  %v9114_v26 = vadd.f32 %v9074_v1, %v9014_v3 }
 0x4e9   : > { %v12710_v6 = vcombine.low %v10945_v62, %v10928_v4  ;;  %v12739_v0 = vcombine.low %v12717_v24, %v12724_v32  ;;  %v12731_v45 = vrot.slane %v12709_v20, %v22017_v51 }
 0x4ea   : > { %v10946_v58 = vcombine.high %v10942_v15, %v10942_v15  ;;  %v10961_v5 = vrot.slane %v10947_v59, %v22017_v51  ;;  %v10962_v8 = vcombine.high %v10954_v23, %v10954_v23  ;;  %v10970_v53 = vrot.slane %v10954_v23, %v22017_v51 }
 0x4eb   : > { %v12738_v48 = vrot.slane %v12710_v6, %v22017_v51  ;;  %v12756_v28 = vcombine.low %v10942_v15, %v10944_v37  ;;  %v10996_v16 = vcombine.high %v9114_v26, %v9114_v26  ;;  %v12747_v18 = vrot.slane %v12739_v0, %v22017_v51 }
 0x4ec   : > { %v10977_v33 = vrot.slane %v10961_v5, %v22017_v51  ;;  %v10984_v14 = vrot.slane %v10962_v8, %v22017_v51  ;;  %v10992_v57 = vcombine.high %v10970_v53, %v10970_v53  ;;  %v12757_v49 = vcombine.low %v10946_v58, %v10970_v53  ;;  %v21077_v53 = vld [vmem:[%s21757_s9 + $0x1] ss:$0 sm:$0xff] }
 0x4ed   : > { %v12740_v34 = vcombine.low %v12731_v45, %v12738_v48  ;;  %v10963_v31 = vcombine.high %v10961_v5, %v10961_v5  ;;  %v11003_v21 = vrot.slane %v9114_v26, %v22017_v51  ;;  %v11010_v54 = vrot.slane %v10996_v16, %v22017_v51 }
 0x4ee   : > { %v10994_v9 = vcombine.high %v10984_v14, %v10984_v14  ;;  %v12758_v30 = vcombine.low %v10984_v14, %v10992_v57  ;;  %v12773_v12 = vrot.slane %v12757_v49, %v22017_v51  ;;  %v10993_v61 = vcombine.high %v10977_v33, %v10977_v33 }
 0x4ef   : > { %v12754_v19 = vrot.slane %v12740_v34, %v22017_v51  ;;  %v10991_v40 = vrot.slane %v10963_v31, %v22017_v51  ;;  %v11011_v7 = vcombine.high %v11003_v21, %v11003_v21  ;;  %v12766_v63 = vrot.slane %v12756_v28, %v22017_v51 }
 0x4f0   : > { %v12759_v41 = vcombine.low %v10994_v9, %v10977_v33  ;;  %v11018_v39 = vrot.slane %v11003_v21, %v22017_v51  ;;  %v12780_v27 = vrot.slane %v12758_v30, %v22017_v51  ;;  %v11025_v50 = vrot.slane %v11010_v54, %v22017_v51 }
 0x4f1   : > { %v12755_v2 = vcombine.low %v12747_v18, %v12754_v19  ;;  %v10995_v24 = vcombine.high %v10991_v40, %v10991_v40  ;;  %v11032_v44 = vrot.slane %v11011_v7, %v22017_v51  ;;  %v12788_v38 = vcombine.low %v12766_v63, %v12773_v12 }
 0x4f2   : > { %v12787_v22 = vrot.slane %v12759_v41, %v22017_v51  ;;  %v11033_v4 = vcombine.high %v11018_v39, %v11018_v39  ;;  %v12805_v43 = vcombine.low %v10991_v40, %v10993_v61  ;;  %v13060_v45 = vadd.f32 %v21077_v53, %v20820_v13  ;;  %v22193_v61 = vld [vmem:[#allocation63_spill] sm:$0xff] }
 0x4f3   : > { %15961 = vmatmul.mubr.msk.f32.gmra.mxu1 %vm4504_vm9, %v12755_v2  ;;  %v11034_v42 = vcombine.high %v11032_v44, %v11032_v44  ;;  %v12806_v47 = vcombine.low %v10995_v24, %v11018_v39  ;;  %v21060_v1 = vpop.f32.mrf.mxu1  ;;  %v12796_v37 = vrot.slane %v12788_v38, %v22017_v51  ;;  %v13065_v28 = vadd.f32 %v21077_v53, %v20844_v52 }
 0x4f4   : > { %15963 = vmatprep.mubr.msk.f32.mxu1 %vm16438_vm11, %v22109_v35  ;;  %v12789_v56 = vcombine.low %v12780_v27, %v12787_v22  ;;  %v12807_v3 = vcombine.low %v11032_v44, %v11033_v4  ;;  %v12815_v20 = vrot.slane %v12805_v43, %v22017_v51  ;;  %v13228_v48 = vmin.f32 %v13060_v45, 0.0  ;;  %v22194_v22 = vld [vmem:[#allocation87_spill] sm:$0xff] }
 0x4f5   : > { %v12808_v62 = vcombine.low %v11034_v42, %v11025_v50  ;;  %v12822_v32 = vrot.slane %v12806_v47, %v22017_v51  ;;  %v15926_v15 = vpop.f32.mrf.mxu1  ;;  %v13229_v33 = vmin.f32 %v13065_v28, 0.0  ;;  %v21091_v52 = vadd.f32 %v21077_v53, %v20664_v29 }
 0x4f6   : > { %v12803_v10 = vrot.slane %v12789_v56, %v22017_v51  ;;  %v12829_v59 = vrot.slane %v12807_v3, %v22017_v51  ;;  %v13278_v16 = vmul.f32 1.442695, %v13228_v48  ;;  %v21096_v19 = vadd.f32 %v21077_v53, %v22193_v61 }
 0x4f7   : > { %v12836_v23 = vrot.slane %v12808_v62, %v22017_v51  ;;  %v12837_v26 = vcombine.low %v12815_v20, %v12822_v32  ;;  %v13280_v14 = vmul.f32 1.442695, %v13229_v33  ;;  %vm13192_vm8 = vcmp.gt.f32.partialorder %v13065_v28, 0.0 }
 0x4f8   : > { %v12804_v6 = vcombine.low %v12796_v37, %v12803_v10  ;;  %16343 = vpow2.f32 %v13278_v16  ;;  %v13219_v41 = vmin.f32 %v21091_v52, 0.0  ;;  %v13215_v29 = vmin.f32 %v21096_v19, 0.0  ;;  %v22195_v37 = vld [vmem:[#allocation13_spill] sm:$0xff] }
 0x4f9   : > { %v12838_v0 = vcombine.low %v12829_v59, %v12836_v23  ;;  %v12845_v58 = vrot.slane %v12837_v26, %v22017_v51  ;;  %16345 = vpow2.f32 %v13280_v14  ;;  %v21105_v38 = vadd.f32 %v21077_v53, %v22194_v22 }
 0x4fa   : > { %15964 = vmatmul.mubr.msk.f32.gmra.mxu1 %vm4504_vm9, %v12804_v6  ;;  %v13260_v43 = vmul.f32 1.442695, %v13219_v41  ;;  %v13252_v47 = vmul.f32 1.442695, %v13215_v29  ;;  %v21112_v56 = vadd.f32 %v21077_v53, %v20964_v17  ;;  %v21117_v10 = vadd.f32 %v21077_v53, %v22195_v37 }
 0x4fb   : > { %15966 = vmatprep.mubr.msk.f32.mxu1 %vm16438_vm11, %v22109_v35  ;;  %v12852_v5 = vrot.slane %v12838_v0, %v22017_v51  ;;  %vm13191_vm11 = vcmp.gt.f32.partialorder %v13060_v45, 0.0  ;;  %v13220_v32 = vmin.f32 %v21105_v38, 0.0  ;;  %v21128_v26 = vadd.f32 %v21077_v53, %v21031_v36 }
 0x4fc   : > { %16347 = vpow2.f32 %v13260_v43  ;;  %v13233_v23 = vmin.f32 %v21112_v56, 0.0  ;;  %v13224_v0 = vmin.f32 %v21117_v10, 0.0  ;;  %v21135_v36 = vadd.f32 %v21077_v53, %v21060_v1 }
 0x4fd   : > { %v12853_v8 = vcombine.low %v12845_v58, %v12852_v5  ;;  %16349 = vpow2.f32 %v13252_v47  ;;  %v13262_v6 = vmul.f32 1.442695, %v13220_v32  ;;  %v13236_v5 = vmin.f32 %v21128_v26, 0.0 }
 0x4fe   : > { %v13288_v58 = vmul.f32 1.442695, %v13233_v23  ;;  %v13270_v48 = vmul.f32 1.442695, %v13224_v0  ;;  %vm13182_vm10 = vcmp.gt.f32.partialorder %v21091_v52, 0.0  ;;  %vm13178_vm13 = vcmp.gt.f32.partialorder %v21096_v19, 0.0 }
 0x4ff   : > { %15967 = vmatmul.mubr.msk.f32.gmra.mxu1 %vm4504_vm9, %v12853_v8  ;;  %16351 = vpow2.f32 %v13262_v6  ;;  %vm13183_vm14 = vcmp.gt.f32.partialorder %v21105_v38, 0.0  ;;  %vm13199_vm15 = vcmp.gt.f32.partialorder %v21128_v26, 0.0  ;;  %vm13196_vm0 = vcmp.gt.f32.partialorder %v21112_v56, 0.0 }
 0x500   : > { %16353 = vpow2.f32 %v13288_v58  ;;  %vm13187_vm2 = vcmp.gt.f32.partialorder %v21117_v10, 0.0  ;;  %vm13200_vm4 = vcmp.gt.f32.partialorder %v21135_v36, 0.0 }
 0x505   : > { %v16344_v34 = vpop.eup %16343 }
 0x506   : > { %v15565_v21 = vadd.f32 -1.0, %v16344_v34  ;;  %v16346_v13 = vpop.eup %16345 }
 0x507   : > { %v15566_v40 = vadd.f32 -1.0, %v16346_v13 }
 0x508   : > { %v21085_v9 = vsel %vm13191_vm11, %v13060_v45, %v15565_v21  ;;  %v13237_v21 = vmin.f32 %v21135_v36, 0.0 }
 0x509   : > { %v13817_v30 = vcombine.high %v21085_v9, %v21085_v9  ;;  %v13377_v7 = vsel %vm13192_vm8, %v13065_v28, %v15566_v40  ;;  %v13294_v28 = vmul.f32 1.442695, %v13236_v5 }
 0x50a   : > { %v13848_v39 = vcombine.high %v13377_v7, %v13377_v7  ;;  %v13855_v2 = vrot.slane %v13377_v7, %v22017_v51 }
 0x50b   : > { %v13831_v12 = vrot.slane %v13817_v30, %v22017_v51  ;;  %16355 = vpow2.f32 %v13294_v28  ;;  %v22196_v30 = vld [vmem:[#allocation58_spill] sm:$0xff] }
 0x50c   : > { %v13862_v24 = vrot.slane %v13848_v39, %v22017_v51  ;;  %v13863_v44 = vcombine.high %v13855_v2, %v13855_v2  ;;  %16357 = vpow2.f32 %v13270_v48  ;;  %v21148_v1 = vadd.f32 %v21077_v53, %v22196_v30  ;;  %v22199_v30 = vld [vmem:[#allocation27_spill] sm:$0xff] }
 0x50d   : > { %v13832_v54 = vcombine.high %v13831_v12, %v13831_v12 }
 0x50e   : > { %v13864_v50 = vcombine.high %v13862_v24, %v13862_v24  ;;  %v13871_v42 = vrot.slane %v13863_v44, %v22017_v51  ;;  %v13225_v7 = vmin.f32 %v21148_v1, 0.0  ;;  %vm13188_vm3 = vcmp.gt.f32.partialorder %v21148_v1, 0.0 }
 0x50f   : > { %v13846_v63 = vrot.slane %v13832_v54, %v22017_v51  ;;  %v13296_v54 = vmul.f32 1.442695, %v13237_v21 }
 0x510   : > { %v13879_v62 = vcombine.high %v13871_v42, %v13871_v42  ;;  %v21120_v15 = vrot.slane %v13864_v50, %v22017_v51  ;;  %v13272_v44 = vmul.f32 1.442695, %v13225_v7 }
 0x511   : > { %v13847_v27 = vcombine.high %v13846_v63, %v13846_v63 }
 0x513   : > { %v14661_v20 = vadd.f32 %v13871_v42, %v13847_v27  ;;  %v22197_v42 = vld [vmem:[#allocation21_spill] sm:$0xff] }
 0x514   : > { %v21159_v47 = vadd.f32 %v21077_v53, %v22197_v42 }
 0x515   : > { %v14693_v59 = vadd.f32 %v14661_v20, %v13879_v62  ;;  %v22198_v62 = vld [vmem:[#allocation36_spill] sm:$0xff] }
 0x516   : > { %v13109_v57 = vpop.f32.mrf.mxu1  ;;  %v21163_v20 = vadd.f32 %v21077_v53, %v22198_v62  ;;  %v13216_v0 = vmin.f32 %v21159_v47, 0.0  ;;  %vm13179_vm6 = vcmp.gt.f32.partialorder %v21159_v47, 0.0 }
 0x517   : > { %v21124_v17 = vadd.f32 %v14693_v59, %v21120_v15  ;;  %v13110_v45 = vadd.f32 %v21077_v53, %v13109_v57  ;;  %v16348_v57 = vpop.eup %16347 }
 0x518   : > { %v15929_v49 = vpop.f32.mrf.mxu1  ;;  %v15556_v12 = vadd.f32 -1.0, %v16348_v57  ;;  %v13254_v21 = vmul.f32 1.442695, %v13216_v0  ;;  %vm13180_vm7 = vcmp.gt.f32.partialorder %v21163_v20, 0.0 }
 0x519   : > { %v13238_v33 = vmin.f32 %v13110_v45, 0.0  ;;  %v21139_v49 = vadd.f32 %v21077_v53, %v20978_v60  ;;  %vm13201_vm1 = vcmp.gt.f32.partialorder %v13110_v45, 0.0 }
 0x51a   : > { %v21083_v18 = vpop.f32.mrf.mxu1  ;;  %v13367_v41 = vsel %vm13182_vm10, %v21091_v52, %v15556_v12  ;;  %v21191_v12 = vadd.f32 %v21077_v53, %v22199_v30 }
 0x51b   : > { %v13298_v14 = vmul.f32 1.442695, %v13238_v33  ;;  %v13234_v61 = vmin.f32 %v21139_v49, 0.0  ;;  %v13561_v24 = vcombine.high %v13367_v41, %v13367_v41  ;;  %vm13197_vm5 = vcmp.gt.f32.partialorder %v21139_v49, 0.0 }
 0x51c   : > { %v15932_v31 = vpop.f32.mrf.mxu1  ;;  %vm13181_vm10 = vcmp.gt.f32.partialorder %v21191_v12, 0.0 }
 0x51d   : > { %16359 = vpow2.f32 %v13298_v14  ;;  %v16350_v31 = vpop.eup %16349  ;;  %v13290_v63 = vmul.f32 1.442695, %v13234_v61  ;;  %v13568_v32 = vrot.slane %v13561_v24, %v22017_v51  ;;  %v13218_v24 = vmin.f32 %v21191_v12, 0.0 }
 0x51e   : > { %v15552_v60 = vadd.f32 -1.0, %v16350_v31  ;;  %v16352_v39 = vpop.eup %16351 }
 0x51f   : > { %v16354_v29 = vpop.eup %16353  ;;  %v15557_v43 = vadd.f32 -1.0, %v16352_v39 }
 0x520   : > { %v13363_v2 = vsel %vm13178_vm13, %v21096_v19, %v15552_v60  ;;  %v16356_v27 = vpop.eup %16355  ;;  %v15570_v19 = vadd.f32 -1.0, %v16354_v29 }
 0x521   : > { %v13444_v22 = vrot.slane %v13363_v2, %v22017_v51  ;;  %v16358_v50 = vpop.eup %16357  ;;  %v21169_v23 = vsel %vm13183_vm14, %v21105_v38, %v15557_v43  ;;  %v13437_v5 = vcombine.high %v13363_v2, %v13363_v2 }
 0x522   : > { %v15561_v6 = vadd.f32 -1.0, %v16358_v50  ;;  %v13381_v48 = vsel %vm13196_vm0, %v21112_v56, %v15570_v19  ;;  %v13585_v38 = vrot.slane %v21169_v23, %v22017_v51 }
 0x523   : > { %v13458_v59 = vrot.slane %v13444_v22, %v22017_v51  ;;  %v21187_v56 = vrot.slane %v13437_v5, %v22017_v51 }
 0x524   : > { %v13372_v57 = vsel %vm13187_vm2, %v21117_v10, %v15561_v6  ;;  %v13593_v60 = vcombine.high %v13585_v38, %v13585_v38 }
 0x525   : > { %v13466_v14 = vcombine.high %v13458_v59, %v13458_v59  ;;  %v13693_v10 = vcombine.high %v13372_v57, %v13372_v57  ;;  %v13700_v2 = vrot.slane %v13372_v57, %v22017_v51 }
 0x526   : > { %v21203_v50 = vrot.slane %v13593_v60, %v22017_v51 }
 0x527   : > { %v21194_v7 = vadd.f32 %v13466_v14, %v13458_v59  ;;  %v13707_v42 = vrot.slane %v13693_v10, %v22017_v51 }
 0x529   : > { %v21107_v4 = vpop.f32.mrf.mxu1 }
 0x52a   : > { %v16360_v52 = vpop.eup %16359 }
 0x52b   : > { %v15935_v3 = vpop.f32.mrf.mxu1  ;;  %v15575_v37 = vadd.f32 -1.0, %v16360_v52 }
 0x52c   : > { %v15573_v3 = vadd.f32 -1.0, %v16356_v27 }
 0x52d   : > { %v13386_v28 = vsel %vm13201_vm1, %v13110_v45, %v15575_v37  ;;  %v13714_v37 = vrot.slane %v13700_v2, %v22017_v51 }
 0x52e   : > { %v21175_v58 = vsel %vm13199_vm15, %v21128_v26, %v15573_v3  ;;  %v14110_v31 = vrot.slane %v13386_v28, %v22017_v51  ;;  %v14103_v22 = vcombine.high %v13386_v28, %v13386_v28 }
 0x52f   : > { %v14057_v26 = vcombine.high %v21175_v58, %v21175_v58 }
 0x531   : > { %v14071_v41 = vrot.slane %v14057_v26, %v22017_v51 }
 0x533   : > { %v14085_v19 = vrot.slane %v14071_v41, %v22017_v51 }
 0x534   : > { %v13124_v8 = vpop.f32.mrf.mxu1 }
 0x535   : > { %v21142_v34 = vadd.f32 %v21077_v53, %v13124_v8  ;;  %v13217_v8 = vmin.f32 %v21163_v20, 0.0  ;;  %v14087_v26 = vcombine.high %v14085_v19, %v14085_v19 }
 0x536   : > { %v15938_v16 = vpop.f32.mrf.mxu1 }
 0x537   : > { %v13241_v13 = vmin.f32 %v21142_v34, 0.0  ;;  %v13569_v16 = vcombine.high %v13568_v32, %v13568_v32  ;;  %v13256_v45 = vmul.f32 1.442695, %v13217_v8  ;;  %vm13204_vm12 = vcmp.gt.f32.partialorder %v21142_v34, 0.0 }
 0x538   : > { %v14117_v8 = vrot.slane %v14103_v22, %v22017_v51  ;;  %v14668_v2 = vadd.f32 %v14087_v26, %v14085_v19  ;;  %v13465_v19 = vrot.slane %v21187_v56, %v22017_v51 }
 0x539   : > { %v13304_v40 = vmul.f32 1.442695, %v13241_v13  ;;  %v13979_v13 = vcombine.high %v13381_v48, %v13381_v48 }
 0x53b   : > { %16361 = vpow2.f32 %v13304_v40  ;;  %v13576_v40 = vrot.slane %v13569_v16, %v22017_v51  ;;  %v13986_v29 = vrot.slane %v13979_v13, %v22017_v51  ;;  %v13721_v16 = vrot.slane %v13707_v42, %v22017_v51 }
 0x53c   : > { %16363 = vpow2.f32 %v13296_v54 }
 0x53d   : > { %16365 = vpow2.f32 %v13290_v63  ;;  %v14118_v63 = vcombine.high %v14110_v31, %v14110_v31  ;;  %v13577_v43 = vcombine.high %v13576_v40, %v13576_v40  ;;  %v13993_v59 = vrot.slane %v13986_v29, %v22017_v51 }
 0x53e   : > { %16367 = vpow2.f32 %v13272_v44 }
 0x53f   : > { %16369 = vpow2.f32 %v13254_v21  ;;  %v14653_v14 = vadd.f32 %v13577_v43, %v13576_v40  ;;  %v13994_v21 = vcombine.high %v13993_v59, %v13993_v59  ;;  %v13723_v40 = vcombine.high %v13721_v16, %v13721_v16 }
 0x540   : > { %16371 = vpow2.f32 %v13256_v45 }
 0x541   : > { %v14665_v43 = vadd.f32 %v13994_v21, %v13993_v59 }
 0x548   : > { %v16362_v33 = vpop.eup %16361 }
 0x549   : > { %v16364_v61 = vpop.eup %16363  ;;  %v15578_v54 = vadd.f32 -1.0, %v16362_v33 }
 0x54a   : > { %v16366_v39 = vpop.eup %16365  ;;  %v15574_v44 = vadd.f32 -1.0, %v16364_v61  ;;  %v14119_v61 = vcombine.high %v14117_v8, %v14117_v8 }
 0x54b   : > { %v13389_v27 = vsel %vm13204_vm12, %v21142_v34, %v15578_v54  ;;  %v16368_v52 = vpop.eup %16367  ;;  %v15571_v62 = vadd.f32 -1.0, %v16366_v39  ;;  %v14126_v34 = vrot.slane %v14118_v63, %v22017_v51 }
 0x54c   : > { %v14202_v32 = vcombine.high %v13389_v27, %v13389_v27  ;;  %v14209_v6 = vrot.slane %v13389_v27, %v22017_v51  ;;  %v13385_v5 = vsel %vm13200_vm4, %v21135_v36, %v15574_v44  ;;  %v15562_v38 = vadd.f32 -1.0, %v16368_v52  ;;  %v16370_v52 = vpop.eup %16369 }
 0x54d   : > { %v21222_v57 = vsel %vm13197_vm5, %v21139_v49, %v15571_v62  ;;  %v14134_v31 = vcombine.high %v14126_v34, %v14126_v34  ;;  %v13722_v36 = vcombine.high %v13714_v37, %v13714_v37  ;;  %v14094_v13 = vrot.slane %v13385_v5, %v22017_v51  ;;  %v16372_v37 = vpop.eup %16371 }
 0x54e   : > { %v14216_v48 = vrot.slane %v14202_v32, %v22017_v51  ;;  %v14217_v33 = vcombine.high %v14209_v6, %v14209_v6  ;;  %v21233_v49 = vsel %vm13188_vm3, %v21148_v1, %v15562_v38  ;;  %v14002_v41 = vrot.slane %v21222_v57, %v22017_v51 }
 0x54f   : > { %v14669_v29 = vadd.f32 %v14134_v31, %v14126_v34  ;;  %v14657_v22 = vadd.f32 %v13722_v36, %v13721_v16  ;;  %v14101_v42 = vrot.slane %v14094_v13, %v22017_v51  ;;  %v14133_v62 = vrot.slane %v14119_v61, %v22017_v51  ;;  %v22200_v13 = vld [vmem:[#allocation45_spill] sm:$0xff] }
 0x550   : > { %v14225_v45 = vrot.slane %v14217_v33, %v22017_v51  ;;  %v14218_v60 = vcombine.high %v14216_v48, %v14216_v48  ;;  %v14685_v34 = vadd.f32 %v14653_v14, %v21203_v50  ;;  %v13731_v6 = vrot.slane %v21233_v49, %v22017_v51 }
 0x551   : > { %v14016_v59 = vrot.slane %v14002_v41, %v22017_v51  ;;  %v14701_v5 = vadd.f32 %v14669_v29, %v14133_v62  ;;  %v14681_v48 = vadd.f32 %v21194_v7, %v13465_v19  ;;  %v13258_v16 = vmul.f32 1.442695, %v13218_v24 }
 0x552   : > { %v14233_v63 = vcombine.high %v14225_v45, %v14225_v45  ;;  %v14232_v1 = vrot.slane %v14218_v60, %v22017_v51  ;;  %v13609_v38 = vcombine.high %v21203_v50, %v21203_v50  ;;  %v14689_v56 = vadd.f32 %v14657_v22, %v13723_v40  ;;  %v14995_v22 = vld [vmem:[%s21756_s8 + $0x30] sm:$0xff] }
 0x553   : > { %v14697_v33 = vadd.f32 %v14665_v43, %v14016_v59  ;;  %v14102_v14 = vcombine.high %v14101_v42, %v14101_v42  ;;  %v14135_v26 = vcombine.high %v14133_v62, %v14133_v62  ;;  %v13467_v36 = vcombine.high %v13465_v19, %v13465_v19 }
 0x554   : > { %v14234_v31 = vcombine.high %v14232_v1, %v14232_v1  ;;  %v14717_v21 = vadd.f32 %v14685_v34, %v13609_v38  ;;  %v14024_v7 = vcombine.high %v14016_v59, %v14016_v59 }
 0x555   : > { %v13129_v3 = vpop.f32.mrf.mxu1  ;;  %v21259_v61 = vadd.f32 %v14701_v5, %v14135_v26  ;;  %v14713_v60 = vadd.f32 %v14681_v48, %v13467_v36 }
 0x556   : > { %v21217_v28 = vadd.f32 %v21077_v53, %v13129_v3  ;;  %v14672_v3 = vadd.f32 %v14233_v63, %v14225_v45  ;;  %v21254_v45 = vadd.f32 %v21077_v53, %v22200_v13  ;;  %v21266_v40 = vadd.f32 %v14697_v33, %v14024_v7 }
 0x557   : > { %v15941_v0 = vpop.f32.mrf.mxu1  ;;  %v15553_v63 = vadd.f32 -1.0, %v16370_v52  ;;  %v14753_v43 = vcombine.low %v14713_v60, %v14717_v21 }
 0x558   : > { %v13242_v10 = vmin.f32 %v21217_v28, 0.0  ;;  %v14700_v0 = vadd.f32 %v14668_v2, %v14101_v42  ;;  %v14704_v8 = vadd.f32 %v14672_v3, %v14232_v1  ;;  %v22201_v2 = vld [vmem:[#allocation46_spill] sm:$0xff]  ;;  %vm13205_vm11 = vcmp.gt.f32.partialorder %v21217_v28, 0.0 }
 0x559   : > { %v21272_v29 = vadd.f32 %v21077_v53, %v22201_v2  ;;  %v21288_v52 = vrot.slane %v14753_v43, %v22017_v51  ;;  %vm13184_vm13 = vcmp.gt.f32.partialorder %v21254_v45, 0.0 }
 0x55a   : > { %v13306_v27 = vmul.f32 1.442695, %v13242_v10  ;;  %v21261_v24 = vadd.f32 %v14700_v0, %v14102_v14  ;;  %v21263_v50 = vadd.f32 %v14704_v8, %v14234_v31 }
 0x55b   : > { %vm13185_vm15 = vcmp.gt.f32.partialorder %v21272_v29, 0.0 }
 0x55c   : > { %v13134_v30 = vpop.f32.mrf.mxu1  ;;  %16373 = vpow2.f32 %v13306_v27  ;;  %v13221_v27 = vmin.f32 %v21254_v45, 0.0 }
 0x55d   : > { %v21228_v54 = vadd.f32 %v21077_v53, %v13134_v30  ;;  %v21257_v30 = vrot.slane %v13731_v6, %v22017_v51 }
 0x55e   : > { %v15944_v39 = vpop.f32.mrf.mxu1  ;;  %v13264_v34 = vmul.f32 1.442695, %v13221_v27 }
 0x55f   : > { %v13243_v44 = vmin.f32 %v21228_v54, 0.0  ;;  %v14721_v10 = vadd.f32 %v14689_v56, %v21257_v30  ;;  %v15554_v39 = vadd.f32 -1.0, %v16372_v37  ;;  %v13222_v37 = vmin.f32 %v21272_v29, 0.0  ;;  %v22202_v56 = vld [vmem:[#allocation47_spill] sm:$0xff] }
 0x560   : > { %v21309_v33 = vadd.f32 %v21077_v53, %v22202_v56  ;;  %vm13206_vm8 = vcmp.gt.f32.partialorder %v21228_v54, 0.0 }
 0x561   : > { %v13308_v32 = vmul.f32 1.442695, %v13243_v44  ;;  %v14996_v44 = vld [vmem:[%s21756_s8 + $0x38] sm:$0xff]  ;;  %v14754_v42 = vcombine.low %v14721_v10, %v21124_v17  ;;  %v13365_v17 = vsel %vm13180_vm7, %v21163_v20, %v15554_v39  ;;  %v13266_v26 = vmul.f32 1.442695, %v13222_v37 }
 0x562   : > { %15970 = vmatpush3.msra.mxu0 %v14996_v44  ;;  %v13506_v38 = vrot.slane %v13365_v17, %v22017_v51  ;;  %v13499_v27 = vcombine.high %v13365_v17, %v13365_v17  ;;  %vm13186_vm1 = vcmp.gt.f32.partialorder %v21309_v33, 0.0 }
 0x563   : > { %16375 = vpow2.f32 %v13308_v32  ;;  %15971 = vmatprep.subr.mxu0 %v22109_v35  ;;  %v21291_v62 = vrot.slane %v14754_v42, %v22017_v51  ;;  %v13364_v32 = vsel %vm13179_vm6, %v21159_v47, %v15553_v63  ;;  %v21320_v63 = vadd.f32 %v21077_v53, %v20874_v46 }
 0x564   : > { %16377 = vpow2.f32 %v13258_v16  ;;  %15972 = vmatpush3.msra.mxu0 %v14995_v22  ;;  %v13475_v20 = vrot.slane %v13364_v32, %v22017_v51  ;;  %v13468_v10 = vcombine.high %v13364_v32, %v13364_v32  ;;  %v13520_v43 = vrot.slane %v13506_v38, %v22017_v51  ;;  %v22204_v38 = vld [vmem:[#allocation64_spill] sm:$0xff] }
 0x565   : > { %15973 = vmatprep.subr.mxu0 %v22109_v35  ;;  %16379 = vpow2.f32 %v13264_v34  ;;  %v13230_v17 = vmin.f32 %v21320_v63, 0.0  ;;  %v21339_v56 = vadd.f32 %v21077_v53, %v22204_v38  ;;  %vm13193_vm2 = vcmp.gt.f32.partialorder %v21320_v63, 0.0 }
 0x567   : > { %vm13190_vm4 = vcmp.gt.f32.partialorder %v21339_v56, 0.0 }
 0x569   : > { %v16374_v1 = vpop.eup %16373 }
 0x56a   : > { %v15579_v6 = vadd.f32 -1.0, %v16374_v1  ;;  %v13223_v1 = vmin.f32 %v21309_v33, 0.0 }
 0x56c   : > { %v13390_v8 = vsel %vm13205_vm11, %v21217_v28, %v15579_v6 }
 0x56d   : > { %v14235_v14 = vcombine.high %v13390_v8, %v13390_v8 }
 0x56e   : > { %v13139_v19 = vpop.f32.mrf.mxu1 }
 0x56f   : > { %v21297_v59 = vadd.f32 %v21077_v53, %v13139_v19  ;;  %v14242_v28 = vrot.slane %v14235_v14, %v22017_v51  ;;  %v13482_v19 = vrot.slane %v13468_v10, %v22017_v51  ;;  %v21351_v10 = vadd.f32 %v21077_v53, %v20900_v11 }
 0x570   : > { %v16376_v5 = vpop.eup %16375  ;;  %v15947_v47 = vpop.f32.mrf.mxu1 }
 0x571   : > { %v15580_v48 = vadd.f32 -1.0, %v16376_v5  ;;  %v13244_v16 = vmin.f32 %v21297_v59, 0.0  ;;  %v16378_v2 = vpop.eup %16377  ;;  %v14249_v44 = vrot.slane %v14242_v28, %v22017_v51  ;;  %v13513_v47 = vrot.slane %v13499_v27, %v22017_v51 }
 0x572   : > { %v15555_v34 = vadd.f32 -1.0, %v16378_v2  ;;  %v21346_v28 = vrot.slane %v13482_v19, %v22017_v51  ;;  %vm13207_vm14 = vcmp.gt.f32.partialorder %v21297_v59, 0.0  ;;  %vm13194_vm5 = vcmp.gt.f32.partialorder %v21351_v10, 0.0 }
 0x573   : > { %v13391_v31 = vsel %vm13206_vm8, %v21228_v54, %v15580_v48  ;;  %v13310_v36 = vmul.f32 1.442695, %v13244_v16  ;;  %v13144_v21 = vpop.f32.mrf.mxu1  ;;  %v13489_v54 = vrot.slane %v13475_v20, %v22017_v51  ;;  %v14250_v32 = vcombine.high %v14249_v44, %v14249_v44  ;;  %v22203_v20 = vld [vmem:[#allocation56_spill] sm:$0xff] }
 0x574   : > { %v14251_v13 = vcombine.high %v13391_v31, %v13391_v31  ;;  %v14258_v7 = vrot.slane %v13391_v31, %v22017_v51  ;;  %v21316_v60 = vadd.f32 %v21077_v53, %v13144_v21  ;;  %v21334_v8 = vadd.f32 %v21077_v53, %v22203_v20 }
 0x575   : > { %16381 = vpow2.f32 %v13310_v36  ;;  %v15950_v39 = vpop.f32.mrf.mxu1  ;;  %v13497_v5 = vcombine.high %v13489_v54, %v13489_v54  ;;  %v13528_v16 = vcombine.high %v13520_v43, %v13520_v43 }
 0x576   : > { %v14272_v22 = vrot.slane %v14258_v7, %v22017_v51  ;;  %16383 = vpow2.f32 %v13266_v26  ;;  %v13245_v42 = vmin.f32 %v21316_v60, 0.0  ;;  %v14265_v46 = vrot.slane %v14251_v13, %v22017_v51 }
 0x577   : > { %v13268_v26 = vmul.f32 1.442695, %v13223_v1  ;;  %v13366_v13 = vsel %vm13181_vm10, %v21191_v12, %v15555_v34  ;;  %v13282_v7 = vmul.f32 1.442695, %v13230_v17  ;;  %v14650_v2 = vadd.f32 %v13497_v5, %v13489_v54  ;;  %v16380_v12 = vpop.eup %16379 }
 0x578   : > { %v14280_v37 = vcombine.high %v14272_v22, %v14272_v22  ;;  %v13312_v6 = vmul.f32 1.442695, %v13245_v42  ;;  %v14673_v48 = vadd.f32 %v14272_v22, %v14250_v32  ;;  %v14279_v31 = vrot.slane %v14265_v46, %v22017_v51 }
 0x579   : > { %v13226_v27 = vmin.f32 %v21334_v8, 0.0  ;;  %v21358_v42 = vrot.slane %v13513_v47, %v22017_v51  ;;  %v14651_v1 = vadd.f32 %v13528_v16, %v13520_v43  ;;  %v13227_v32 = vmin.f32 %v21339_v56, 0.0 }
 0x57a   : > { %16385 = vpow2.f32 %v13312_v6  ;;  %v14705_v36 = vadd.f32 %v14673_v48, %v14280_v37  ;;  %v13530_v46 = vcombine.high %v13366_v13, %v13366_v13  ;;  %v13537_v11 = vrot.slane %v13366_v13, %v22017_v51 }
 0x57b   : > { %v13149_v14 = vpop.f32.mrf.mxu1  ;;  %16387 = vpow2.f32 %v13268_v26  ;;  %v13231_v54 = vmin.f32 %v21351_v10, 0.0  ;;  %v21366_v17 = vadd.f32 %v14650_v2, %v21346_v28  ;;  %v13274_v6 = vmul.f32 1.442695, %v13226_v27 }
 0x57c   : > { %v21343_v21 = vadd.f32 %v21077_v53, %v13149_v14  ;;  %v21354_v44 = vadd.f32 %v14705_v36, %v14279_v31  ;;  %16389 = vpow2.f32 %v13282_v7  ;;  %v21371_v5 = vadd.f32 %v14651_v1, %v21358_v42 }
 0x57d   : > { %v15953_v39 = vpop.f32.mrf.mxu1  ;;  %v13276_v47 = vmul.f32 1.442695, %v13227_v32  ;;  %v13544_v16 = vrot.slane %v13530_v46, %v22017_v51  ;;  %v15558_v38 = vadd.f32 -1.0, %v16380_v12  ;;  %v13551_v14 = vrot.slane %v13537_v11, %v22017_v51 }
 0x57e   : > { %v13246_v22 = vmin.f32 %v21343_v21, 0.0  ;;  %v13284_v26 = vmul.f32 1.442695, %v13231_v54  ;;  %v21379_v36 = vadd.f32 %v21077_v53, %v20915_v25  ;;  %v14281_v7 = vcombine.high %v14279_v31, %v14279_v31 }
 0x57f   : > { %v13578_v27 = vcombine.high %v21169_v23, %v21169_v23  ;;  %v21387_v32 = vrot.slane %v13544_v16, %v22017_v51  ;;  %v13369_v25 = vsel %vm13184_vm13, %v21254_v45, %v15558_v38  ;;  %v13559_v12 = vcombine.high %v13551_v14, %v13551_v14 }
 0x580   : > { %v13314_v37 = vmul.f32 1.442695, %v13246_v22  ;;  %v13232_v23 = vmin.f32 %v21379_v36, 0.0  ;;  %vm13208_vm0 = vcmp.gt.f32.partialorder %v21316_v60, 0.0  ;;  %vm13209_vm12 = vcmp.gt.f32.partialorder %v21343_v21, 0.0 }
 0x581   : > { %vm13189_vm3 = vcmp.gt.f32.partialorder %v21334_v8, 0.0  ;;  %vm13195_vm6 = vcmp.gt.f32.partialorder %v21379_v36, 0.0 }
 0x582   : > { %v16382_v19 = vpop.eup %16381  ;;  %16391 = vpow2.f32 %v13314_v37 }
 0x583   : > { %v15581_v20 = vadd.f32 -1.0, %v16382_v19  ;;  %v16384_v48 = vpop.eup %16383  ;;  %16393 = vpow2.f32 %v13274_v6  ;;  %v13592_v19 = vrot.slane %v13578_v27, %v22017_v51  ;;  %v13611_v6 = vcombine.high %v13369_v25, %v13369_v25 }
 0x584   : > { %v15559_v22 = vadd.f32 -1.0, %v16384_v48  ;;  %16395 = vpow2.f32 %v13276_v47 }
 0x585   : > { %v13392_v13 = vsel %vm13207_vm14, %v21297_v59, %v15581_v20  ;;  %16397 = vpow2.f32 %v13284_v26 }
 0x586   : > { %v14282_v39 = vcombine.high %v13392_v13, %v13392_v13  ;;  %v14289_v2 = vrot.slane %v13392_v13, %v22017_v51  ;;  %v13370_v45 = vsel %vm13185_vm15, %v21272_v29, %v15559_v22 }
 0x587   : > { %v16386_v1 = vpop.eup %16385 }
 0x588   : > { %v14296_v59 = vrot.slane %v14282_v39, %v22017_v51  ;;  %v14303_v31 = vrot.slane %v14289_v2, %v22017_v51  ;;  %v15582_v46 = vadd.f32 -1.0, %v16386_v1  ;;  %v16388_v26 = vpop.eup %16387  ;;  %v14652_v2 = vadd.f32 %v13559_v12, %v13551_v14 }
 0x589   : > { %v16390_v39 = vpop.eup %16389  ;;  %v13594_v1 = vcombine.high %v13592_v19, %v13592_v19  ;;  %v13651_v14 = vrot.slane %v13370_v45, %v22017_v51  ;;  %v15560_v12 = vadd.f32 -1.0, %v16388_v26  ;;  %v21419_v19 = vadd.f32 %v21077_v53, %v21001_v55 }
 0x58a   : > { %v14310_v37 = vrot.slane %v14296_v59, %v22017_v51  ;;  %v14311_v11 = vcombine.high %v14303_v31, %v14303_v31  ;;  %v14674_v54 = vadd.f32 %v14303_v31, %v14281_v7  ;;  %v13393_v47 = vsel %vm13208_vm0, %v21316_v60, %v15582_v46 }
 0x58b   : > { %v14313_v16 = vcombine.high %v13393_v47, %v13393_v47  ;;  %v14320_v38 = vrot.slane %v13393_v47, %v22017_v51  ;;  %v13618_v7 = vrot.slane %v13369_v25, %v22017_v51  ;;  %v13625_v59 = vrot.slane %v13611_v6, %v22017_v51 }
 0x58c   : > { %v14706_v20 = vadd.f32 %v14674_v54, %v14311_v11  ;;  %v14312_v48 = vcombine.high %v14310_v37, %v14310_v37  ;;  %v13644_v31 = vcombine.high %v13370_v45, %v13370_v45  ;;  %v13286_v46 = vmul.f32 1.442695, %v13232_v23 }
 0x58d   : > { %v14327_v29 = vrot.slane %v14313_v16, %v22017_v51  ;;  %v14334_v60 = vrot.slane %v14320_v38, %v22017_v51  ;;  %v13626_v41 = vcombine.high %v13618_v7, %v13618_v7  ;;  %v13608_v7 = vrot.slane %v13594_v1, %v22017_v51 }
 0x58e   : > { %v21410_v27 = vadd.f32 %v14706_v20, %v14310_v37  ;;  %v15567_v37 = vadd.f32 -1.0, %v16390_v39  ;;  %v13658_v55 = vrot.slane %v13644_v31, %v22017_v51  ;;  %16399 = vpow2.f32 %v13286_v46 }
 0x58f   : > { %v16392_v22 = vpop.eup %16391  ;;  %v14341_v25 = vrot.slane %v14327_v29, %v22017_v51  ;;  %v14342_v11 = vcombine.high %v14334_v60, %v14334_v60  ;;  %v14675_v54 = vadd.f32 %v14334_v60, %v14312_v48  ;;  %v21425_v48 = vadd.f32 %v21077_v53, %v21083_v18 }
 0x590   : > { %v15583_v47 = vadd.f32 -1.0, %v16392_v22  ;;  %v16394_v20 = vpop.eup %16393  ;;  %v21435_v29 = vadd.f32 %v21077_v53, %v21107_v4  ;;  %v13371_v1 = vsel %vm13186_vm1, %v21309_v33, %v15560_v12  ;;  %v13235_v31 = vmin.f32 %v21419_v19, 0.0 }
 0x591   : > { %v14707_v6 = vadd.f32 %v14675_v54, %v14342_v11  ;;  %v14343_v45 = vcombine.high %v14341_v25, %v14341_v25  ;;  %v16396_v26 = vpop.eup %16395  ;;  %v13659_v11 = vcombine.high %v13651_v14, %v13651_v14  ;;  %v15563_v46 = vadd.f32 -1.0, %v16394_v20 }
 0x592   : > { %v13394_v23 = vsel %vm13209_vm12, %v21343_v21, %v15583_v47  ;;  %v13627_v21 = vcombine.high %v13625_v59, %v13625_v59  ;;  %v16398_v22 = vpop.eup %16397  ;;  %v13378_v59 = vsel %vm13193_vm2, %v21320_v63, %v15567_v37  ;;  %v13239_v4 = vmin.f32 %v21425_v48, 0.0 }
 0x593   : > { %v14344_v16 = vcombine.high %v13394_v23, %v13394_v23  ;;  %v14351_v38 = vrot.slane %v13394_v23, %v22017_v51  ;;  %v21430_v39 = vadd.f32 %v14707_v6, %v14341_v25  ;;  %v13610_v47 = vcombine.high %v13608_v7, %v13608_v7 }
 0x594   : > { %v13660_v6 = vcombine.high %v13658_v55, %v13658_v55  ;;  %v13724_v14 = vcombine.high %v21233_v49, %v21233_v49  ;;  %v15564_v23 = vadd.f32 -1.0, %v16396_v26  ;;  %v13240_v33 = vmin.f32 %v21435_v29, 0.0 }
 0x595   : > { %v14358_v18 = vrot.slane %v14344_v16, %v22017_v51  ;;  %v14365_v60 = vrot.slane %v14351_v38, %v22017_v51  ;;  %v13881_v16 = vcombine.high %v13378_v59, %v13378_v59  ;;  %v21452_v63 = vadd.f32 %v14652_v2, %v21387_v32 }
 0x596   : > { %v21455_v37 = vrot.slane %v13626_v41, %v22017_v51  ;;  %v15568_v20 = vadd.f32 -1.0, %v16398_v22  ;;  %v13683_v55 = vrot.slane %v13371_v1, %v22017_v51  ;;  %v13374_v49 = vsel %vm13189_vm3, %v21334_v8, %v15563_v46 }
 0x597   : > { %v14373_v25 = vcombine.high %v14365_v60, %v14365_v60  ;;  %v14676_v54 = vadd.f32 %v14365_v60, %v14343_v45  ;;  %v14372_v12 = vrot.slane %v14358_v18, %v22017_v51  ;;  %v13292_v45 = vmul.f32 1.442695, %v13235_v31 }
 0x598   : > { %v13300_v26 = vmul.f32 1.442695, %v13239_v4  ;;  %v13641_v18 = vrot.slane %v13627_v21, %v22017_v51  ;;  %v21465_v2 = vrot.slane %v13659_v11, %v22017_v51  ;;  %v13375_v41 = vsel %vm13190_vm4, %v21339_v56, %v15564_v23 }
 0x599   : > { %v14708_v38 = vadd.f32 %v14676_v54, %v14373_v25  ;;  %v14654_v25 = vadd.f32 %v13610_v47, %v13608_v7  ;;  %v13674_v22 = vrot.slane %v13660_v6, %v22017_v51  ;;  %v13738_v1 = vrot.slane %v13724_v14, %v22017_v51 }
 0x59a   : > { %v13895_v31 = vrot.slane %v13881_v16, %v22017_v51  ;;  %v13302_v8 = vmul.f32 1.442695, %v13240_v33  ;;  %v13755_v46 = vcombine.high %v13374_v49, %v13374_v49  ;;  %v13762_v4 = vrot.slane %v13374_v49, %v22017_v51 }
 0x59b   : > { %v21461_v60 = vadd.f32 %v14708_v38, %v14372_v12  ;;  %v13379_v7 = vsel %vm13194_vm5, %v21351_v10, %v15568_v20  ;;  %16401 = vpow2.f32 %v13292_v45  ;;  %v13786_v11 = vcombine.high %v13375_v41, %v13375_v41  ;;  %v16400_v23 = vpop.eup %16399 }
 0x59c   : > { %v13793_v56 = vrot.slane %v13375_v41, %v22017_v51  ;;  %16403 = vpow2.f32 %v13300_v26  ;;  %v13643_v54 = vcombine.high %v13641_v18, %v13641_v18  ;;  %v21482_v47 = vadd.f32 %v14654_v25, %v21455_v37 }
 0x59d   : > { %v13675_v6 = vcombine.high %v21465_v2, %v21465_v2  ;;  %v13684_v14 = vcombine.high %v13683_v55, %v13683_v55  ;;  %v13752_v10 = vrot.slane %v13738_v1, %v22017_v51  ;;  %v13897_v16 = vcombine.high %v13895_v31, %v13895_v31 }
 0x59e   : > { %v13921_v33 = vrot.slane %v13379_v7, %v22017_v51  ;;  %16405 = vpow2.f32 %v13302_v8  ;;  %v13676_v38 = vcombine.high %v13674_v22, %v13674_v22  ;;  %v13769_v20 = vrot.slane %v13755_v46, %v22017_v51 }
 0x59f   : > { %v13776_v45 = vrot.slane %v13762_v4, %v22017_v51  ;;  %v13753_v26 = vcombine.high %v21257_v30, %v21257_v30  ;;  %v13800_v55 = vrot.slane %v13786_v11, %v22017_v51  ;;  %v21497_v25 = vrot.slane %v13793_v56, %v22017_v51 }
 0x5a0   : > { %v13914_v41 = vcombine.high %v13379_v7, %v13379_v7  ;;  %v21500_v31 = vrot.slane %v13684_v14, %v22017_v51  ;;  %v13888_v8 = vrot.slane %v13378_v59, %v22017_v51  ;;  %v15569_v46 = vadd.f32 -1.0, %v16400_v23 }
 0x5a1   : > { %v13154_v12 = vpop.f32.mrf.mxu1  ;;  %v13754_v13 = vcombine.high %v13752_v10, %v13752_v10  ;;  %v21505_v0 = vrot.slane %v13897_v16, %v22017_v51  ;;  %v13929_v30 = vcombine.high %v13921_v33, %v13921_v33  ;;  %v13783_v56 = vrot.slane %v13769_v20, %v22017_v51 }
 0x5a2   : > { %v21491_v49 = vadd.f32 %v21077_v53, %v13154_v12  ;;  %v14655_v12 = vadd.f32 %v13643_v54, %v13641_v18  ;;  %v13784_v21 = vcombine.high %v13776_v45, %v13776_v45  ;;  %v14658_v14 = vadd.f32 %v13753_v26, %v13752_v10 }
 0x5a3   : > { %v15956_v1 = vpop.f32.mrf.mxu1  ;;  %v13814_v59 = vrot.slane %v13800_v55, %v22017_v51  ;;  %v13815_v23 = vcombine.high %v21497_v25, %v21497_v25  ;;  %v13928_v18 = vrot.slane %v13914_v41, %v22017_v51  ;;  %v13896_v16 = vcombine.high %v13888_v8, %v13888_v8 }
 0x5a4   : > { %v13247_v4 = vmin.f32 %v21491_v49, 0.0  ;;  %v13380_v33 = vsel %vm13195_vm6, %v21379_v36, %v15569_v46  ;;  %v14656_v10 = vadd.f32 %v13676_v38, %v13674_v22  ;;  %v13913_v26 = vcombine.high %v21505_v0, %v21505_v0 }
 0x5a5   : > { %v13159_v11 = vpop.f32.mrf.mxu1  ;;  %v13937_v55 = vrot.slane %v13929_v30, %v22017_v51  ;;  %v14687_v41 = vadd.f32 %v14655_v12, %v21465_v2  ;;  %v14659_v8 = vadd.f32 %v13784_v21, %v13783_v56  ;;  %v14690_v3 = vadd.f32 %v14658_v14, %v13754_v13 }
 0x5a6   : > { %v13316_v7 = vmul.f32 1.442695, %v13247_v4  ;;  %v21509_v1 = vadd.f32 %v21077_v53, %v13159_v11  ;;  %v13785_v4 = vcombine.high %v13783_v56, %v13783_v56  ;;  %v13930_v36 = vcombine.high %v13928_v18, %v13928_v18 }
 0x5a7   : > { %v15959_v54 = vpop.f32.mrf.mxu1  ;;  %v13947_v46 = vcombine.high %v13380_v33, %v13380_v33  ;;  %v13816_v34 = vcombine.high %v13814_v59, %v13814_v59  ;;  %v14660_v53 = vadd.f32 %v13815_v23, %v13814_v59  ;;  %v13904_v22 = vrot.slane %v13896_v16, %v22017_v51 }
 0x5a8   : > { %16407 = vpow2.f32 %v13316_v7  ;;  %v13248_v20 = vmin.f32 %v21509_v1, 0.0  ;;  %v16402_v54 = vpop.eup %16401  ;;  %v13954_v7 = vrot.slane %v13380_v33, %v22017_v51  ;;  %v21528_v38 = vadd.f32 %v14656_v10, %v21500_v31 }
 0x5a9   : > { %v16404_v43 = vpop.eup %16403  ;;  %v13880_v2 = vcombine.high %v21120_v15, %v21120_v15  ;;  %v13945_v21 = vcombine.high %v13937_v55, %v13937_v55  ;;  %v14663_v12 = vadd.f32 %v13937_v55, %v13913_v26  ;;  %v21532_v13 = vadd.f32 %v14687_v41, %v13675_v6 }
 0x5aa   : > { %v13318_v11 = vmul.f32 1.442695, %v13248_v20  ;;  %v14691_v56 = vadd.f32 %v14659_v8, %v13785_v4  ;;  %v13824_v14 = vrot.slane %v21085_v9, %v22017_v51  ;;  %v15572_v18 = vadd.f32 -1.0, %v16402_v54 }
 0x5ab   : > { %v16406_v30 = vpop.eup %16405  ;;  %v13944_v59 = vrot.slane %v13930_v36, %v22017_v51  ;;  %v13961_v23 = vrot.slane %v13947_v46, %v22017_v51  ;;  %v13962_v16 = vcombine.high %v13954_v7, %v13954_v7  ;;  %v15576_v33 = vadd.f32 -1.0, %v16404_v43 }
 0x5ac   : > { %16409 = vpow2.f32 %v13318_v11  ;;  %v21538_v20 = vadd.f32 %v14690_v3, %v13776_v45  ;;  %v14692_v10 = vadd.f32 %v14660_v53, %v13816_v34  ;;  %v13912_v15 = vcombine.high %v13904_v22, %v13904_v22 }
 0x5ad   : > { %v13995_v26 = vcombine.high %v21222_v57, %v21222_v57  ;;  %v14662_v6 = vadd.f32 %v13904_v22, %v13880_v2  ;;  %v14695_v55 = vadd.f32 %v14663_v12, %v13945_v21  ;;  %vm13198_vm7 = vcmp.gt.f32.partialorder %v21419_v19, 0.0 }
 0x5ae   : > { %v15577_v41 = vadd.f32 -1.0, %v16406_v30  ;;  %v21544_v9 = vadd.f32 %v14691_v56, %v21497_v25  ;;  %v13839_v4 = vrot.slane %v13824_v14, %v22017_v51  ;;  %v21548_v8 = vsel %vm13198_vm7, %v21419_v19, %v15572_v18  ;;  %v16426_v19 = vld [vmem:[%s21757_s9 + $0x1] ss:$0 sm:$0xff] }
 0x5af   : > { %vm13202_vm11 = vcmp.gt.f32.partialorder %v21425_v48, 0.0  ;;  %v13946_v3 = vcombine.high %v13944_v59, %v13944_v59  ;;  %v13963_v34 = vcombine.high %v13961_v23, %v13961_v23  ;;  %v21552_v43 = vrot.slane %v13962_v16, %v22017_v51 }
 0x5b0   : > { %v13387_v57 = vsel %vm13202_vm11, %v21425_v48, %v15576_v33  ;;  %v21555_v53 = vadd.f32 %v14692_v10, %v13839_v4  ;;  %v14009_v25 = vrot.slane %v13995_v26, %v22017_v51  ;;  %vm13203_vm8 = vcmp.gt.f32.partialorder %v21435_v29, 0.0 }
 0x5b1   : > { %v21564_v36 = vadd.f32 %v14662_v6, %v13912_v15  ;;  %v21566_v46 = vadd.f32 %v14695_v55, %v13944_v59  ;;  %v14026_v48 = vcombine.high %v21548_v8, %v21548_v8  ;;  %v13388_v7 = vsel %vm13203_vm8, %v21435_v29, %v15577_v41 }
 0x5b2   : > { %v14143_v2 = vrot.slane %v13387_v57, %v22017_v51  ;;  %v22205_v30 = vcombine.high %v21346_v28, %v21346_v28  ;;  %v21580_v14 = vrot.slane %v13963_v34, %v22017_v51  ;;  %v13978_v18 = vcombine.high %v21552_v43, %v21552_v43 }
 0x5b3   : > { %v13164_v45 = vpop.f32.mrf.mxu1  ;;  %v14664_v29 = vadd.f32 %v21552_v43, %v13946_v3  ;;  %vm13210_vm10 = vcmp.gt.f32.partialorder %v21491_v49, 0.0  ;;  %v14023_v59 = vrot.slane %v14009_v25, %v22017_v51  ;;  %v14176_v23 = vrot.slane %v13388_v7, %v22017_v51 }
 0x5b4   : > { %v21562_v11 = vadd.f32 %v16426_v19, %v13164_v45  ;;  %v21577_v56 = vadd.f32 %v21366_v17, %v22205_v30  ;;  %v14033_v17 = vrot.slane %v21548_v8, %v22017_v51  ;;  %v14040_v10 = vrot.slane %v14026_v48, %v22017_v51 }
 0x5b5   : > { %v16408_v54 = vpop.eup %16407  ;;  %v15962_v22 = vpop.f32.mrf.mxu1  ;;  %v14064_v6 = vrot.slane %v21175_v58, %v22017_v51  ;;  %v14151_v55 = vcombine.high %v14143_v2, %v14143_v2  ;;  %vm13211_vm13 = vcmp.gt.f32.partialorder %v21509_v1, 0.0  ;;  %v14025_v8 = vcombine.high %v14023_v59, %v14023_v59 }
 0x5b6   : > { %v15584_v21 = vadd.f32 -1.0, %v16408_v54  ;;  %v13249_v12 = vmin.f32 %v21562_v11, 0.0  ;;  %v14136_v43 = vcombine.high %v13387_v57, %v13387_v57  ;;  %v14184_v45 = vcombine.high %v14176_v23, %v14176_v23 }
 0x5b7   : > { %v14169_v30 = vcombine.high %v13388_v7, %v13388_v7  ;;  %vm13212_vm14 = vcmp.gt.f32.partialorder %v21562_v11, 0.0  ;;  %vm14984_vm1 = vcmask 261120   ;;  %vm14986_vm2 = vcmask 392192  }
 0x5b8   : > { %v13395_v16 = vsel %vm13210_vm10, %v21491_v49, %v15584_v21  ;;  %v13320_v28 = vmul.f32 1.442695, %v13249_v12  ;;  %v14054_v21 = vrot.slane %v14040_v10, %v22017_v51  ;;  %v14159_v12 = vrot.slane %v14151_v55, %v22017_v51 }
 0x5b9   : > { %v16410_v33 = vpop.eup %16409  ;;  %v14374_v15 = vcombine.high %v13395_v16, %v13395_v16  ;;  %v14381_v26 = vrot.slane %v13395_v16, %v22017_v51  ;;  %vm15001_vm12 = vcmask 523264   ;;  %vm15075_vm3 = vcmask 39936  }
 0x5ba   : > { %v15585_v41 = vadd.f32 -1.0, %v16410_v33  ;;  %16411 = vpow2.f32 %v13320_v28  ;;  %v13169_v4 = vpop.f32.mrf.mxu1 }
 0x5bb   : > { %v14388_v3 = vrot.slane %v14374_v15, %v22017_v51  ;;  %v14389_v49 = vcombine.high %v14381_v26, %v14381_v26  ;;  %v21597_v34 = vadd.f32 %v16426_v19, %v13169_v4  ;;  %v14150_v15 = vrot.slane %v14136_v43, %v22017_v51 }
 0x5bc   : > { %v13396_v25 = vsel %vm13211_vm13, %v21509_v1, %v15585_v41  ;;  %v15965_v54 = vpop.f32.mrf.mxu1  ;;  %v14192_v26 = vrot.slane %v14184_v45, %v22017_v51  ;;  %v14078_v43 = vrot.slane %v14064_v6, %v22017_v51 }
 0x5bd   : > { %v14390_v48 = vcombine.high %v14388_v3, %v14388_v3  ;;  %v14397_v58 = vrot.slane %v14389_v49, %v22017_v51  ;;  %v14407_v22 = vcombine.high %v13396_v25, %v13396_v25  ;;  %v14414_v2 = vrot.slane %v13396_v25, %v22017_v51 }
 0x5be   : > { %v13250_v16 = vmin.f32 %v21597_v34, 0.0  ;;  %v14167_v25 = vcombine.high %v14159_v12, %v14159_v12  ;;  %v14183_v54 = vrot.slane %v14169_v30, %v22017_v51  ;;  %vm13213_vm15 = vcmp.gt.f32.partialorder %v21597_v34, 0.0 }
 0x5bf   : > { %v14404_v28 = vrot.slane %v14390_v48, %v22017_v51  ;;  %v14405_v57 = vcombine.high %v14397_v58, %v14397_v58  ;;  %v14421_v23 = vrot.slane %v14407_v22, %v22017_v51  ;;  %v14422_v1 = vcombine.high %v14414_v2, %v14414_v2  ;;  %v13174_v33 = vpop.f32.mrf.mxu1 }
 0x5c0   : > { %v13322_v41 = vmul.f32 1.442695, %v13250_v16  ;;  %v21609_v4 = vadd.f32 %v16426_v19, %v13174_v33  ;;  %v14056_v58 = vcombine.high %v14054_v21, %v14054_v21  ;;  %v14666_v22 = vadd.f32 %v14025_v8, %v14023_v59 }
 0x5c1   : > { %v14406_v10 = vcombine.high %v14404_v28, %v14404_v28  ;;  %v14677_v3 = vadd.f32 %v14405_v57, %v14404_v28  ;;  %v14423_v55 = vcombine.high %v14421_v23, %v14421_v23  ;;  %v14430_v7 = vrot.slane %v14422_v1, %v22017_v51  ;;  %v15968_v49 = vpop.f32.mrf.mxu1 }
 0x5c2   : > { %16413 = vpow2.f32 %v13322_v41  ;;  %v13251_v48 = vmin.f32 %v21609_v4, 0.0  ;;  %v21615_v2 = vadd.f32 %v14664_v29, %v13978_v18  ;;  %v14152_v19 = vcombine.high %v14150_v15, %v14150_v15 }
 0x5c3   : > { %v14709_v45 = vadd.f32 %v14677_v3, %v14406_v10  ;;  %v14200_v16 = vcombine.high %v14192_v26, %v14192_v26  ;;  %v14047_v57 = vrot.slane %v14033_v17, %v22017_v51  ;;  %v14437_v23 = vrot.slane %v14423_v55, %v22017_v51 }
 0x5c4   : > { %v13324_v28 = vmul.f32 1.442695, %v13251_v48  ;;  %v14438_v1 = vcombine.high %v14430_v7, %v14430_v7  ;;  %v14670_v30 = vadd.f32 %v14167_v25, %v14159_v12  ;;  %v14185_v41 = vcombine.high %v14183_v54, %v14183_v54 }
 0x5c5   : > { %v14741_v33 = vadd.f32 %v14709_v45, %v14430_v7  ;;  %v22206_v59 = vcombine.high %v21358_v42, %v21358_v42  ;;  %v14698_v29 = vadd.f32 %v14666_v22, %v14047_v57  ;;  %v14086_v8 = vcombine.high %v14078_v43, %v14078_v43 }
 0x5c6   : > { %16415 = vpow2.f32 %v13324_v28  ;;  %v14667_v15 = vadd.f32 %v14056_v58, %v14054_v21  ;;  %v14166_v17 = vrot.slane %v14152_v19, %v22017_v51  ;;  %v14671_v3 = vadd.f32 %v14200_v16, %v14192_v26 }
 0x5c7   : > { %v21623_v6 = vadd.f32 %v21371_v5, %v22206_v59  ;;  %v16412_v18 = vpop.eup %16411  ;;  %v14756_v10 = vcombine.low %v21354_v44, %v14741_v33  ;;  %v22207_v12 = vcombine.low %v21266_v40, %v21259_v61  ;;  %v14439_v49 = vcombine.high %v14437_v23, %v14437_v23 }
 0x5c8   : > { %v15586_v55 = vadd.f32 -1.0, %v16412_v18  ;;  %v14678_v42 = vadd.f32 %v14438_v1, %v14437_v23  ;;  %v14702_v25 = vadd.f32 %v14670_v30, %v14166_v17  ;;  %v14199_v21 = vrot.slane %v14185_v41, %v22017_v51 }
 0x5c9   : > { %v14777_v7 = vrot.slane %v22207_v12, %v22017_v51  ;;  %v14784_v5 = vrot.slane %v14756_v10, %v22017_v51  ;;  %v14726_v26 = vadd.f32 %v21564_v36, %v21505_v0  ;;  %v14699_v54 = vadd.f32 %v14667_v15, %v14078_v43 }
 0x5ca   : > { %v13397_v44 = vsel %vm13212_vm14, %v21562_v11, %v15586_v55  ;;  %v14168_v40 = vcombine.high %v14166_v17, %v14166_v17  ;;  %v14703_v22 = vadd.f32 %v14671_v3, %v14199_v21  ;;  %v22208_v45 = vcombine.high %v21455_v37, %v21455_v37 }
 0x5cb   : > { %v14440_v48 = vcombine.high %v13397_v44, %v13397_v44  ;;  %v14447_v58 = vrot.slane %v13397_v44, %v22017_v51  ;;  %v14786_v61 = vcombine.low %v14777_v7, %v14784_v5  ;;  %v22209_v16 = vcombine.low %v21288_v52, %v21291_v62 }
 0x5cc   : > { %v14718_v19 = vadd.f32 %v21482_v47, %v22208_v45  ;;  %v14710_v43 = vadd.f32 %v14678_v42, %v14439_v49  ;;  %v14055_v23 = vcombine.high %v14047_v57, %v14047_v57  ;;  %v14201_v1 = vcombine.high %v14199_v21, %v14199_v21 }
 0x5cd   : > { %v21646_v11 = vrot.slane %v22209_v16, %v22017_v51  ;;  %v14454_v0 = vrot.slane %v14440_v48, %v22017_v51  ;;  %v14455_v36 = vcombine.high %v14447_v58, %v14447_v58  ;;  %v21650_v28 = vrot.slane %v14786_v61, %v22017_v51 }
 0x5ce   : > { %v14734_v33 = vadd.f32 %v14702_v25, %v14168_v40  ;;  %v14812_v37 = vcombine.low %v21538_v20, %v14726_v26  ;;  %v21653_v47 = vadd.f32 %v14699_v54, %v14086_v8  ;;  %v14730_v18 = vadd.f32 %v14698_v29, %v14055_v23  ;;  %v14994_v20 = vld [vmem:[%s21756_s8 + $0x28] sm:$0xff]  ;;  %v14993_v8 = vld [vmem:[%s21756_s8 + $0x20] sm:$0xff] }
 0x5cf   : > { %v16414_v30 = vpop.eup %16413  ;;  %v14456_v41 = vcombine.high %v14454_v0, %v14454_v0  ;;  %v14463_v52 = vrot.slane %v14455_v36, %v22017_v51  ;;  %v14801_v62 = vcombine.low %v21646_v11, %v21650_v28  ;;  %v14811_v15 = vcombine.low %v21577_v56, %v14718_v19  ;;  %15974 = vmatpush3.msra.mxu0 %v14994_v20  ;;  %v14992_v36 = vld [vmem:[%s21756_s8 + $0x18] sm:$0xff] }
 0x5d0   : > { %v15587_v59 = vadd.f32 -1.0, %v16414_v30  ;;  %v14735_v10 = vadd.f32 %v14703_v22, %v14201_v1  ;;  %v14813_v29 = vcombine.low %v14730_v18, %v14734_v33  ;;  %v14828_v56 = vrot.slane %v14812_v37, %v22017_v51  ;;  %15975 = vmatprep.subr.mxu0 %v22109_v35 }
 0x5d1   : > { %v14470_v57 = vrot.slane %v14456_v41, %v22017_v51  ;;  %v14471_v17 = vcombine.high %v14463_v52, %v14463_v52  ;;  %v14742_v3 = vadd.f32 %v14710_v43, %v14463_v52  ;;  %v14871_v12 = vcombine.low %v21623_v6, %v21532_v13  ;;  %15976 = vmatpush3.msra.mxu0 %v14993_v8  ;;  %v14991_v43 = vld [vmem:[%s21756_s8 + $0x10] sm:$0xff]  ;;  %v14989_v8 = vld [vmem:[%s21756_s8] sm:$0xff] }
 0x5d2   : > { %v13398_v55 = vsel %vm13213_vm15, %v21597_v34, %v15587_v59  ;;  %v14821_v34 = vrot.slane %v14811_v15, %v22017_v51  ;;  %v14872_v26 = vcombine.low %v21544_v9, %v21566_v46  ;;  %vm13214_vm0 = vcmp.gt.f32.partialorder %v21609_v4, 0.0  ;;  %15977 = vmatprep.subr.mxu0 %v22109_v35 }
 0x5d3   : > { %v16416_v7 = vpop.eup %16415  ;;  %v14472_v49 = vcombine.high %v14470_v57, %v14470_v57  ;;  %v14679_v42 = vadd.f32 %v14471_v17, %v14470_v57  ;;  %v14473_v5 = vcombine.high %v13398_v55, %v13398_v55  ;;  %v14480_v25 = vrot.slane %v13398_v55, %v22017_v51  ;;  %15978 = vmatpush3.msra.mxu0 %v14992_v36 }
 0x5d4   : > { %v15588_v21 = vadd.f32 -1.0, %v16416_v7  ;;  %v14814_v44 = vcombine.low %v21410_v27, %v14742_v3  ;;  %v14835_v58 = vrot.slane %v14813_v29, %v22017_v51  ;;  %v14843_v61 = vcombine.low %v14821_v34, %v14828_v56  ;;  %15979 = vmatprep.subr.mxu0 %v22109_v35 }
 0x5d5   : > { %v14487_v13 = vrot.slane %v14473_v5, %v22017_v51  ;;  %v14488_v6 = vcombine.high %v14480_v25, %v14480_v25  ;;  %v14711_v54 = vadd.f32 %v14679_v42, %v14472_v49  ;;  %v14728_v46 = vadd.f32 %v21615_v2, %v21580_v14  ;;  %15980 = vmatpush3.msra.mxu0 %v14991_v43 }
 0x5d6   : > { %v13399_v48 = vsel %vm13214_vm0, %v21609_v4, %v15588_v21  ;;  %v14842_v27 = vrot.slane %v14814_v44, %v22017_v51  ;;  %v14873_v19 = vcombine.low %v21653_v47, %v14735_v10  ;;  %v14888_v16 = vrot.slane %v14872_v26, %v22017_v51  ;;  %15981 = vmatprep.subr.mxu0 %v22109_v35 }
 0x5d7   : > { %v14489_v40 = vcombine.high %v14487_v13, %v14487_v13  ;;  %v14496_v22 = vrot.slane %v14488_v6, %v22017_v51  ;;  %v14512_v9 = vrot.slane %v13399_v48, %v22017_v51  ;;  %v22210_v4 = vcombine.high %v21500_v31, %v21500_v31 }
 0x5d8   : > { %v14844_v45 = vcombine.low %v14835_v58, %v14842_v27  ;;  %v14851_v33 = vrot.slane %v14843_v61, %v22017_v51  ;;  %v22211_v37 = vcombine.high %v21387_v32, %v21387_v32  ;;  %v14932_v59 = vcombine.low %v21555_v53, %v14728_v46  ;;  %v14990_v53 = vld [vmem:[%s21756_s8 + $0x8] sm:$0xff] }
 0x5d9   : > { %v14720_v0 = vadd.f32 %v21528_v38, %v22210_v4  ;;  %v14503_v14 = vrot.slane %v14489_v40, %v22017_v51  ;;  %v14504_v2 = vcombine.high %v14496_v22, %v14496_v22  ;;  %v14743_v23 = vadd.f32 %v14711_v54, %v14496_v22  ;;  %15982 = vmatpush3.msra.mxu0 %v14990_v53 }
 0x5da   : > { %v14513_v1 = vcombine.high %v14512_v9, %v14512_v9  ;;  %v14858_v31 = vrot.slane %v14844_v45, %v22017_v51  ;;  %v14881_v38 = vrot.slane %v14871_v12, %v22017_v51  ;;  %v14716_v30 = vadd.f32 %v21452_v63, %v22211_v37  ;;  %15983 = vmatprep.subr.mxu0 %v22109_v35 }
 0x5db   : > { %v14505_v47 = vcombine.high %v14503_v14, %v14503_v14  ;;  %v14680_v41 = vadd.f32 %v14504_v2, %v14503_v14  ;;  %v14874_v52 = vcombine.low %v21430_v39, %v14743_v23  ;;  %v14895_v15 = vrot.slane %v14873_v19, %v22017_v51  ;;  %15984 = vmatpush3.msra.mxu0 %v14989_v8 }
 0x5dc   : > { %v14859_v18 = vcombine.low %v14851_v33, %v14858_v31  ;;  %v14903_v10 = vcombine.low %v14881_v38, %v14888_v16  ;;  %v14520_v57 = vrot.slane %v14513_v1, %v22017_v51  ;;  %v14931_v17 = vcombine.low %v14716_v30, %v14720_v0 }
 0x5dd   : > { %v14712_v32 = vadd.f32 %v14680_v41, %v14505_v47  ;;  %v14902_v63 = vrot.slane %v14874_v52, %v22017_v51  ;;  %v14948_v39 = vrot.slane %v14932_v59, %v22017_v51  ;;  %v22212_v49 = vcombine.low %v21261_v24, %v21263_v50 }
 0x5de   : > { %14860 = vrot.lane.b32.xlu0 %v14859_v18, %s16439_s23  ;;  %v14911_v55 = vrot.slane %v14903_v10, %v22017_v51  ;;  %v14941_v12 = vrot.slane %v14931_v17, %v22017_v51 }
 0x5df   : > { %v14744_v3 = vadd.f32 %v14712_v32, %v14520_v57  ;;  %v14904_v20 = vcombine.low %v14895_v15, %v14902_v63  ;;  %v14955_v42 = vrot.slane %v22212_v49, %v22017_v51 }
 0x5e0   : > { %v14963_v25 = vcombine.low %v14941_v12, %v14948_v39 }
 0x5e1   : > { %v14918_v29 = vrot.slane %v14904_v20, %v22017_v51  ;;  %v14934_v56 = vcombine.low %v21461_v60, %v14744_v3 }
 0x5e2   : > { %v14971_v44 = vrot.slane %v14963_v25, %v22017_v51 }
 0x5e3   : > { %v14919_v7 = vcombine.low %v14911_v55, %v14918_v29  ;;  %v14962_v5 = vrot.slane %v14934_v56, %v22017_v51 }
 0x5e5   : > { %14920 = vrot.lane.b32.xlu0 %v14919_v7, %s16440_s28  ;;  %v14964_v21 = vcombine.low %v14955_v42, %v14962_v5 }
 0x5e7   : > { %v14978_v60 = vrot.slane %v14964_v21, %v22017_v51  ;;  %v15589_v51 = vld [vmem:[%s21757_s9 + $0x2] ss:$0 sm:$0xff] }
 0x5e9   : > { %v14979_v35 = vcombine.low %v14971_v44, %v14978_v60 }
 0x5eb   : > { %14980 = vrot.lane.b32.xlu1 %v14979_v35, %s16441_s29 }
 0x650   : > { %v14861_v34 = vpop.permute.xlu0 %14860 }
 0x651   : > { %v14983_v24 = vsel %vm4504_vm9, %v14801_v62, %v14861_v34 }
 0x657   : > { %v14921_v26 = vpop.permute.xlu0 %14920 }
 0x658   : > { %v14985_v50 = vsel %vm14984_vm1, %v14983_v24, %v14921_v26 }
 0x65d   : > { %v14981_v13 = vpop.permute.xlu1 %14980 }
 0x65e   : > { %v14987_v6 = vsel %vm14986_vm2, %v14985_v50, %v14981_v13 }
 0x65f   : > { %v14988_v54 = vmul.f32 0.25, %v14987_v6 }
 0x661   : > { %15986 = vmatmul.mubr.msk.f32.vlgmr.msra.gmra.mxu0 %vm15001_vm12, %v14988_v54 }
 0x721   : > { %v15071_v11 = vpop.f32.mrf.mxu0 }
 0x722   : > { %v15072_v28 = vadd.f32 %v15589_v51, %v15071_v11 }
 0x723   : > { %v15987_v62 = vpop.f32.mrf.mxu0 }
 0x724   : > { %15076 = vst.msk [vmem:[%s412_s30] sm:$0xff] %vm15075_vm3, %v15072_v28 }
 0x725 PF: > { %s20_s13 = sadd.s32 1, %s16433_s13  }
 0x726   : > { %p17_p7 = scmp.ge.s32.totalorder %s20_s13, 4  }
 0x728   :  { %19 = sbr.rel (!%p17_p7) target bundleno = 1 (0x1), region = 96 }

</bundles_post_ra>
